<compile_context>
chip_gen: v6e
topology: v6e:2x2x1
jax: 0.10.0
libtpu: 0.0.40
codegen_flags: <defaults>
</compile_context>

<pallas_src>
import functools

import jax
import jax.numpy as jnp
from jax import lax
from jax.experimental import pallas as pl
from jax.experimental.pallas import tpu as pltpu


# -----------------------------------------------------------------------------
# Pallas kernel 1: fused decoder head (mlp + traj/ctrl offsets + flattened update
#                  + per-tap aff contribution to the BEV conv)
# Rows of x/wp/ctrl are ordered t-major: row = t*B + b.
# -----------------------------------------------------------------------------
def _fused_head_kernel(
        x_ref, wp_ref, ctrl_ref, flat_ref,
        ln_g_ref, ln_b_ref, mw1_ref, mb1_ref, mw2_ref, mb2_ref,
        tcw1b_ref, tw1a_ref, tb1_ref, tw2_ref, tb2_ref,
        cw1a_ref, cb1_ref, cw2_ref, cb2_ref,
        hw_ref, hb_ref,
        fw1a_ref, fw1b_ref, fb1_ref, fw2_ref, fb2_ref, waff_ref,
        small_ref, uflat_ref, taps_ref, *, B, T):
    f32 = jnp.float32
    bf16 = jnp.bfloat16

    def bdot(a, w):
        # native bf16 x bf16 MXU path, f32 accumulation
        return jnp.dot(a.astype(bf16), w, preferred_element_type=f32)

    # ---- self.mlp: LayerNorm(1024) -> Linear(1024,512) -> ReLU -> Linear(512,512) -> ReLU
    x = x_ref[...].astype(f32)
    mu = jnp.mean(x, axis=-1, keepdims=True)
    var = jnp.mean((x - mu) ** 2, axis=-1, keepdims=True)
    xn = (x - mu) * lax.rsqrt(var + 1e-5) * ln_g_ref[...] + ln_b_ref[...]
    h = jnp.maximum(bdot(xn, mw1_ref[...]) + mb1_ref[...], 0.0)
    feat = jnp.maximum(bdot(h, mw2_ref[...]) + mb2_ref[...], 0.0)     # [T*B, 512]

    # ---- traj/ctrl first layers: one fused 512-wide matmul on feat, split lanes
    tc = bdot(feat, tcw1b_ref[...])                                   # [T*B, 512]

    # traj_offset_module uses raw current_wp (reference: cat([current_wp, feat]))
    wpv = wp_ref[...]
    twp = wpv[:, 0:1] * tw1a_ref[0:1, :] + wpv[:, 1:2] * tw1a_ref[1:2, :]
    th = jnp.maximum(tc[:, 0:256] + twp + tb1_ref[...], 0.0)
    th = jnp.maximum(bdot(th, tw2_ref[...]) + tb2_ref[...], 0.0)      # [T*B, 64]

    # ctrl_offset_module uses raw current_ctrl (reference passes pre-softplus ctrl)
    cv = ctrl_ref[...]
    cwp = (cv[:, 0:1] * cw1a_ref[0:1, :] + cv[:, 1:2] * cw1a_ref[1:2, :]
           + cv[:, 2:3] * cw1a_ref[2:3, :] + cv[:, 3:4] * cw1a_ref[3:4, :])
    ch = jnp.maximum(tc[:, 256:512] + cwp + cb1_ref[...], 0.0)
    ch = jnp.maximum(bdot(ch, cw2_ref[...]) + cb2_ref[...], 0.0)      # [T*B, 64]

    # ---- last traj/ctrl layers: block weight -> one lane-dense [n,128] store
    # (traj in lanes 0:2, ctrl in lanes 2:6, rest exact zero)
    hc = jnp.concatenate([th, ch], axis=-1)                           # [T*B, 128]
    small_ref[...] = bdot(hc, hw_ref[...]) + hb_ref[...]

    # ---- contractions against the (T*512)-row update weights WITHOUT forming aff:
    # aff[b] = concat_t feat_row(t,b); since rows are t-major, the per-t block of
    # feat is a contiguous [B,512] slice and pairs with weight row block t.
    n_taps = waff_ref.shape[1]
    fh_aff = jnp.zeros((B, 512), f32)
    taps = jnp.zeros((B, n_taps), f32)
    for t in range(T):
        ft = feat[t * B:(t + 1) * B, :]                               # [B, 512]
        fh_aff = fh_aff + bdot(ft, fw1b_ref[t * 512:(t + 1) * 512, :])
        taps = taps + bdot(ft, waff_ref[t * 512:(t + 1) * 512, :])
    taps_ref[...] = taps                                              # [B, 9*128]

    # ---- flattened_BEV_feat_update_module: Linear(2304,512)->ReLU->Linear(512,256) + res
    fh = jnp.maximum(bdot(flat_ref[...], fw1a_ref[...]) + fh_aff + fb1_ref[...], 0.0)
    uflat_ref[...] = bdot(fh, fw2_ref[...]) + fb2_ref[...] + flat_ref[...]


def fused_head_pallas(mlp_in, wp_flat, ctrl_flat, flat_feat, p, B, T):
    n = mlp_in.shape[0]
    d_flat = flat_feat.shape[-1]
    n_taps = p["bev_w1_aff"].shape[-1]                                # 9*128
    return pl.pallas_call(
        functools.partial(_fused_head_kernel, B=B, T=T),
        out_shape=(
            jax.ShapeDtypeStruct((n, 128), jnp.float32),   # traj @ lanes 0:2, ctrl @ 2:6
            jax.ShapeDtypeStruct((B, d_flat), jnp.float32),
            jax.ShapeDtypeStruct((B, n_taps), jnp.float32),
        ),
        compiler_params=pltpu.CompilerParams(
            vmem_limit_bytes=24 * 1024 * 1024),   # ~10 MiB bf16 weights + small activations
    )(mlp_in, wp_flat, ctrl_flat, flat_feat,
      p["ln_g"], p["ln_b"], p["mlp_w1"], p["mlp_b1"], p["mlp_w2"], p["mlp_b2"],
      p["tc_w1b"], p["traj_w1a"], p["traj_b1"], p["traj_w2"], p["traj_b2"],
      p["ctrl_w1a"], p["ctrl_b1"], p["ctrl_w2"], p["ctrl_b2"],
      p["head_w"], p["head_b"],
      p["fu_w1a"], p["fu_w1b"], p["fu_b1"], p["fu_w2"], p["fu_b2"],
      p["bev_w1_aff"])


# -----------------------------------------------------------------------------
# Pallas kernel 2: BEV feature update.  Two 3x3 convs, im2col'd to single matmuls;
# B folded into the matmul M dimension; constant-channel (aff) contribution enters
# via a static block-diagonal tap-validity mask matmul; + BEV residual.
# -----------------------------------------------------------------------------
def _bev_update_kernel(bevp_ref, taps_ref, mask_ref, w1_ref, b1_ref,
                       w2_ref, b2_ref, res_ref, o_ref, h1p_ref,
                       *, B, H, W, Cin, Cmid, Cout):
    f32 = jnp.float32
    bf16 = jnp.bfloat16
    M = B * H * W

    # conv1: im2col over the 32 real BEV channels -> one [M, 9*Cin] x [9*Cin, Cmid] matmul
    patches = []
    for dy in range(3):
        for dx in range(3):
            patches.append(bevp_ref[:, dy:dy + H, dx:dx + W, :].reshape(M, Cin))
    im1 = jnp.concatenate(patches, axis=-1)                           # [M, 9*Cin]

    # constant-channel contribution: static 0/1 tap-validity mask (block-diag over B)
    aff_img = jnp.dot(mask_ref[...], taps_ref[...], preferred_element_type=f32)

    h1 = jnp.maximum(
        jnp.dot(im1.astype(bf16), w1_ref[...], preferred_element_type=f32)
        + aff_img + b1_ref[...], 0.0)                                 # [M, Cmid]

    # zero-padded intermediate for conv2
    h1p_ref[...] = jnp.zeros_like(h1p_ref)
    h1p_ref[:, 1:H + 1, 1:W + 1, :] = h1.reshape(B, H, W, Cmid)

    # conv2: im2col -> one [M, 9*Cmid] x [9*Cmid, Cout] matmul, + BEV residual
    patches2 = []
    for dy in range(3):
        for dx in range(3):
            patches2.append(h1p_ref[:, dy:dy + H, dx:dx + W, :].reshape(M, Cmid))
    im2 = jnp.concatenate(patches2, axis=-1)                          # [M, 9*Cmid]
    out = (jnp.dot(im2.astype(bf16), w2_ref[...], preferred_element_type=f32)
           + b2_ref[...])
    o_ref[...] = out.reshape(B, H, W, Cout) + res_ref[...]


def bev_update_pallas(bev_nhwc, aff_taps, p):
    B, H, W, C = bev_nhwc.shape
    Cmid = p["bev_b1"].shape[-1]
    bevp = jnp.pad(bev_nhwc, ((0, 0), (1, 1), (1, 1), (0, 0)))
    taps_flat = aff_taps.reshape(B * 9, Cmid)                         # row = b*9 + tap

    # static tap-validity mask (same math as zero-padding of the constant channels):
    # output (y,x) receives tap (dy,dx) iff the un-padded pixel (y+dy-1, x+dx-1) exists.
    yy, xx = jnp.meshgrid(jnp.arange(H), jnp.arange(W), indexing="ij")
    cols = []
    for dy in range(3):
        for dx in range(3):
            cols.append(((yy + dy - 1 >= 0) & (yy + dy - 1 < H)
                         & (xx + dx - 1 >= 0) & (xx + dx - 1 < W)).reshape(-1))
    mask_hw9 = jnp.stack(cols, axis=-1).astype(jnp.float32)           # [H*W, 9]
    mask_big = jnp.kron(jnp.eye(B, dtype=jnp.float32), mask_hw9)      # [B*H*W, B*9]

    kern = functools.partial(_bev_update_kernel, B=B, H=H, W=W,
                             Cin=C, Cmid=Cmid, Cout=C)
    return pl.pallas_call(
        kern,
        out_shape=jax.ShapeDtypeStruct((B, H, W, C), jnp.float32),
        scratch_shapes=[pltpu.VMEM((B, H + 2, W + 2, Cmid), jnp.float32)],
        compiler_params=pltpu.CompilerParams(
            vmem_limit_bytes=16 * 1024 * 1024),
    )(bevp, taps_flat, mask_big, p["bev_w1s"], p["bev_b1"],
      p["bev_w2"], p["bev_b2"], bev_nhwc)


# -----------------------------------------------------------------------------
# JAX glue (stand-ins for undefined classes + defined-but-light math)
# -----------------------------------------------------------------------------
def spatial_gru_standin(params, x_seq, state, act):
    # TODO(synk): SpatialGRU class is not provided in the reference; stand-in is a
    # standard ConvGRU with 3x3 gates and the declared input_size=6 / hidden_size=32.
    def conv(x, w, b):
        y = lax.conv_general_dilated(x, w, (1, 1), "SAME",
                                     dimension_numbers=("NCHW", "OIHW", "NCHW"))
        return y + b[None, :, None, None]

    h = state
    outs = []
    for t in range(x_seq.shape[1]):
        xt = x_seq[:, t]
        xh = jnp.concatenate([xt, h], axis=1)
        z = jax.nn.sigmoid(conv(xh, params["gru_wz"], params["gru_bz"]))
        r = jax.nn.sigmoid(conv(xh, params["gru_wr"], params["gru_br"]))
        n = act(conv(jnp.concatenate([xt, r * h], axis=1),
                     params["gru_wn"], params["gru_bn"]))
        h = (1.0 - z) * h + z * n
        outs.append(h)
    return jnp.stack(outs, axis=1)  # [B, T, 32, H, W]


def make_grid2feat_standin(params):
    # TODO(synk): `grid2feat` is an external callable in the reference; stand-in =
    # spatial global-average-pool followed by a fixed 32->256 projection.
    def grid2feat(bev_bt, parent_module):
        pooled = bev_bt.mean(axis=(2, 3))            # [B*T, 32]
        return pooled @ params["g2f_w"] + params["g2f_b"], None
    return grid2feat


def grid_sample_bilinear(feat, grid):
    # feat: [N, C, Hf, Wf] (NCHW, like torch); grid: [N, P, Q, 2] with (x, y) in [-1, 1]
    # bilinear, zero padding, align_corners=False (F.grid_sample defaults).
    N, C, Hf, Wf = feat.shape
    fx = (grid[..., 0] + 1.0) * Wf * 0.5 - 0.5
    fy = (grid[..., 1] + 1.0) * Hf * 0.5 - 0.5
    x0 = jnp.floor(fx)
    y0 = jnp.floor(fy)
    feat_nhwc = jnp.transpose(feat, (0, 2, 3, 1))
    nidx = jnp.arange(N)[:, None, None]

    def gather(xi, yi):
        valid = (xi >= 0) & (xi <= Wf - 1) & (yi >= 0) & (yi <= Hf - 1)
        xc = jnp.clip(xi, 0, Wf - 1).astype(jnp.int32)
        yc = jnp.clip(yi, 0, Hf - 1).astype(jnp.int32)
        v = feat_nhwc[nidx, yc, xc]                  # [N, P, Q, C]
        return v * valid[..., None]

    wx1 = fx - x0
    wy1 = fy - y0
    out = (gather(x0, y0) * ((1 - wx1) * (1 - wy1))[..., None]
           + gather(x0 + 1, y0) * (wx1 * (1 - wy1))[..., None]
           + gather(x0, y0 + 1) * ((1 - wx1) * wy1)[..., None]
           + gather(x0 + 1, y0 + 1) * (wx1 * wy1)[..., None])
    return jnp.transpose(out, (0, 3, 1, 2))          # [N, C, P, Q]


def obtain_cam_ref_points_query(reference_points, transform_mat, img_shape, query, mlvl_feats):
    lidar2img, ida_mat = transform_mat               # each [B, num_cam, 4, 4]
    B, Nq, _ = reference_points.shape
    num_cam = lidar2img.shape[1]
    eps = 1e-5
    rp = jnp.concatenate([reference_points, jnp.ones_like(reference_points[..., :1])], -1)
    rc = jnp.einsum("bcij,bqj->bcqi", lidar2img, rp)                   # [B,cam,Nq,4]
    denom = jnp.maximum(rc[..., 2:3], eps)
    new_rc = jnp.concatenate([rc[..., 0:2] / denom, rc[..., 2:]], axis=-1)
    rc2 = jnp.einsum("bcij,bcqj->bcqi", ida_mat, new_rc)               # [B,cam,Nq,4]
    mask = rc2[..., 2:3] > eps
    xy = rc2[..., :2] / jnp.array([img_shape[1], img_shape[0]], jnp.float32)
    mask = (mask & (xy[..., 1:2] > 0.0) & (xy[..., 1:2] < 1.0)
                 & (xy[..., 0:1] < 1.0) & (xy[..., 0:1] > 0.0))[..., 0]  # [B,cam,Nq]

    grid = xy.reshape(B * num_cam, Nq, 1, 2) * 2.0 - 1.0
    C = mlvl_feats[0].shape[1]
    per_lvl = []
    for feat in mlvl_feats:                                            # [B*cam, C, h, w]
        s = grid_sample_bilinear(feat, grid)                           # [B*cam, C, Nq, 1]
        per_lvl.append(s.reshape(B, num_cam, C, Nq))
    sampled = jnp.stack(per_lvl, axis=-1)                              # [B,cam,C,Nq,L]
    sampled = jnp.transpose(sampled, (0, 3, 1, 2, 4)).reshape(B, Nq, num_cam, -1)

    # TODO(synk): the reference packs only mask-selected queries via .nonzero() into a
    # [bs*num_cams, max_len, ...] rebatch (data-dependent shapes); here the full static
    # query length is kept and masked-off entries are zeroed instead.
    q_full = jnp.concatenate([
        jnp.broadcast_to(query[:, None], (B, num_cam) + query.shape[1:]),
        jnp.transpose(sampled, (0, 2, 1, 3))], axis=-1)                # [B,cam,Nq,qe+1024]
    m = mask[..., None].astype(q_full.dtype)
    return xy * m, q_full * m, mask


def look_module_forward(params, current_wp, ctrl_sp, measurement_feat, flattened_feat,
                        coor2img, img_size, mlvl_feats, temporal_embedding, static_embedding):
    B = current_wp.shape[0]
    T = temporal_embedding.shape[0]
    De = temporal_embedding.shape[-1]

    static_point = jnp.broadcast_to(
        jnp.array([[5.0, 0.0], [0.0, -5.0], [0.0, 5.0], [-5.0, 0.0]], jnp.float32)[None],
        (B, 4, 2))
    look_wp = jnp.concatenate([current_wp, static_point], axis=1)      # [B,8,2]
    Nw = look_wp.shape[1]
    zline = jnp.linspace(-4.0, 10.0, 15).astype(look_wp.dtype)
    look_wp_3d = jnp.concatenate([
        jnp.broadcast_to(look_wp[:, :, None, :], (B, Nw, 15, 2)),
        jnp.broadcast_to(zline[None, None, :, None], (B, Nw, 15, 1))], axis=-1
    ).reshape(B, Nw * 15, 3)                                           # [B,120,3]
    Nq = look_wp_3d.shape[1]

    input_ctrl = jnp.concatenate([
        jnp.broadcast_to(ctrl_sp[:, :, None, :], (B, T, 15, 4)).reshape(B, T * 15, 4),
        jnp.zeros((B, 4 * 15, 4), jnp.float32)], axis=1)               # [B,120,4]
    emb = jnp.concatenate([
        jnp.broadcast_to(temporal_embedding[None, :, None, :], (B, T, 15, De)).reshape(B, T * 15, De),
        jnp.broadcast_to(static_embedding[None, :, None, :], (B, 4, 15, De)).reshape(B, 4 * 15, De)],
        axis=1)                                                        # [B,120,De]
    img_query = jnp.concatenate([
        input_ctrl, look_wp_3d, emb,
        jnp.broadcast_to(measurement_feat[:, None, :], (B, Nq, measurement_feat.shape[-1])),
        jnp.broadcast_to(flattened_feat[:, None, :], (B, Nq, flattened_feat.shape[-1]))],
        axis=-1)                                                       # [B,120,519]

    _, q_rebatch, mask = obtain_cam_ref_points_query(
        look_wp_3d, coor2img, img_size, img_query, mlvl_feats)

    # TODO(synk): SpatialCrossAttention class is not provided in the reference; stand-in
    # is a masked mean over a linear projection of the rebatched per-camera queries.
    proj = q_rebatch @ params["sca_w"] + params["sca_b"]               # [B,cam,Nq,256]
    m = mask[..., None].astype(proj.dtype)
    img_look = (proj * m).sum(axis=(1, 2)) / jnp.maximum(m.sum(axis=(1, 2)), 1.0)
    img_look = jnp.broadcast_to(img_look[:, None, :], (B, T, 256))

    # Lidar branch: the reference replaces its output with zeros_like(...), so only
    # the shape [B, T, 256] matters (lidar_look_module_MLP output dim = 256).
    return jnp.concatenate([img_look, jnp.zeros((B, T, 256), jnp.float32)], axis=-1)


# -----------------------------------------------------------------------------
# ThinkTwiceDecoderLayer forward
# -----------------------------------------------------------------------------
def thinktwice_decoder_layer_forward(
        params, BEV_feat, current_wp, current_ctrl, future_bev_feat_from_last_layer,
        parent_module, grid2feat, measurement_feat, flattened_BEV_feat, coor2img,
        img_size, mlvl_feats, fpn_feat_flatten, spatial_shapes, level_start_index,
        lidar_feat_with_high_resolution, temporal_embedding, static_embedding):
    act = lambda x: jnp.maximum(x, 0.0)   # the module takes `act` as ctor arg; ReLU assumed
    B, C, H, W = BEV_feat.shape
    T = temporal_embedding.shape[0]
    ctrl_sp = jax.nn.softplus(current_ctrl)

    # ---- PredictionModule ----
    x = jnp.concatenate([current_wp, ctrl_sp], axis=2)                 # [B,T,6]
    x_seq = jnp.broadcast_to(x[..., None, None], x.shape + (H, W))     # [B,T,6,H,W]
    future = spatial_gru_standin(params, x_seq, BEV_feat, act)         # [B,T,32,H,W]
    future_bt = future.reshape(B * T, C, H, W)
    # (the ffn branch in PredictionModule only runs when future_bev_feat_from_last_layer
    #  is not None and its result is discarded; None is passed here.)
    flat_future, _ = grid2feat(future_bt, parent_module)
    flat_future = flat_future.reshape(B, 4, 256)
    future_bev_feat = future_bt.reshape(B, -1, C, H, W)

    # ---- LookModule ----
    look_features = look_module_forward(
        params, current_wp, ctrl_sp, measurement_feat, flattened_BEV_feat,
        coor2img, img_size, mlvl_feats, temporal_embedding, static_embedding)  # [B,T,512]

    # ---- fused head (Pallas kernel 1) ----
    mlp_in = jnp.concatenate([
        flat_future, look_features,
        jnp.broadcast_to(temporal_embedding[None], (B, T, temporal_embedding.shape[-1])),
        jnp.broadcast_to(measurement_feat[:, None], (B, T, measurement_feat.shape[-1]))],
        axis=-1)                                                       # [B,T,1024]
    # rows fed t-major (row = t*B + b) so the kernel contracts the (T*512)-row update
    # weights with contiguous per-t feat blocks (no in-kernel regroup/scatter).
    mlp_in_tm = jnp.transpose(mlp_in, (1, 0, 2)).reshape(T * B, -1)
    wp_tm = jnp.transpose(current_wp, (1, 0, 2)).reshape(T * B, 2)
    ctrl_tm = jnp.transpose(current_ctrl, (1, 0, 2)).reshape(T * B, 4)  # raw ctrl, per reference
    small, updated_flattened, aff_taps = fused_head_pallas(
        mlp_in_tm, wp_tm, ctrl_tm, flattened_BEV_feat, params, B, T)
    traj_offset = jnp.transpose(small[:, 0:2].reshape(T, B, 2), (1, 0, 2))
    ctrl_offset = jnp.transpose(small[:, 2:6].reshape(T, B, 4), (1, 0, 2))

    # ---- BEV feature update (Pallas kernel 2; NHWC inside) ----
    bev_nhwc = jnp.transpose(BEV_feat, (0, 2, 3, 1))                   # [B,H,W,32]
    upd = bev_update_pallas(bev_nhwc, aff_taps, params)
    updated_BEV_feat = jnp.transpose(upd, (0, 3, 1, 2))

    return traj_offset, ctrl_offset, future_bev_feat, updated_BEV_feat, updated_flattened


# -----------------------------------------------------------------------------
# Deterministic parameter init (shapes follow the module __init__)
# Large weights are stored in bf16 (native MXU operands); biases / tiny weights f32.
# -----------------------------------------------------------------------------
def init_params(key):
    QDIM = 4 + 3 + 128 + 128 + 256            # img_query embedding dim (519)
    keys = iter(jax.random.split(key, 40))

    def w(shape, scale=0.02):
        return jax.random.normal(next(keys), shape, jnp.float32) * scale

    def wb(shape, scale=0.02):
        return w(shape, scale).astype(jnp.bfloat16)

    z = lambda *s: jnp.zeros(s, jnp.float32)

    p = {}
    # SpatialGRU stand-in (ConvGRU, 3x3 gates, in=6+32, hidden=32)
    for g in ("z", "r", "n"):
        p[f"gru_w{g}"] = w((32, 38, 3, 3), 0.05)
        p[f"gru_b{g}"] = z(32)
    # grid2feat stand-in (32 -> 256)
    p["g2f_w"] = w((32, 256), 0.1)
    p["g2f_b"] = z(256)
    # SpatialCrossAttention stand-in (519+1024 -> 256)
    p["sca_w"] = w((QDIM + 1024, 256))
    p["sca_b"] = z(256)
    # main mlp: LayerNorm(1024), Linear(1024,512), Linear(512,512)
    p["ln_g"] = jnp.ones((1, 1024), jnp.float32)
    p["ln_b"] = z(1, 1024)
    p["mlp_w1"] = wb((1024, 512)); p["mlp_b1"] = z(1, 512)
    p["mlp_w2"] = wb((512, 512));  p["mlp_b2"] = z(1, 512)
    # traj_offset_module (512+2->256->64->2) / ctrl_offset_module (512+4->256->64->4):
    #  * first-layer feat weights packed into one [512, 512] matmul (cols 0:256 traj,
    #    256:512 ctrl); wp/ctrl parts kept separately (tiny, done on VPU).
    #  * last layers packed into one [128,128] block matrix so the kernel emits a
    #    single lane-dense [n,128] output (traj at lanes 0:2, ctrl at 2:6).
    tw1b = w((512, 256)); cw1b = w((512, 256))
    p["tc_w1b"] = jnp.concatenate([tw1b, cw1b], axis=1).astype(jnp.bfloat16)
    p["traj_w1a"] = w((2, 256));  p["traj_b1"] = z(1, 256)
    p["traj_w2"] = wb((256, 64)); p["traj_b2"] = z(1, 64)
    p["ctrl_w1a"] = w((4, 256));  p["ctrl_b1"] = z(1, 256)
    p["ctrl_w2"] = wb((256, 64)); p["ctrl_b2"] = z(1, 64)
    tw3 = w((64, 2)); cw3 = w((64, 4))
    head_w = jnp.zeros((128, 128), jnp.float32)
    head_w = head_w.at[0:64, 0:2].set(tw3).at[64:128, 2:6].set(cw3)
    p["head_w"] = head_w.astype(jnp.bfloat16)
    p["head_b"] = z(1, 128)   # traj bias at lanes 0:2, ctrl bias at 2:6 (zero init)
    # BEV_feat_update_module: Conv2d(2080,128,3) -> act -> Conv2d(128,32,3).
    # The 32 real BEV channels use im2col weights [(dy,dx,cin)-major rows]; the 2048
    # spatially-constant channels are held as a (2048, 9*128) matrix, tap-major in the
    # last axis (col = tap*128 + out_channel, tap = dy*3+dx), row block t = time step t.
    p["bev_w1s"] = wb((9 * 32, 128), 0.01)
    p["bev_w1_aff"] = wb((512 * 4, 9 * 128), 0.01)
    p["bev_b1"] = z(1, 128)
    p["bev_w2"] = wb((9 * 128, 32), 0.02)
    p["bev_b2"] = z(1, 32)
    # flattened_BEV_feat_update_module: Linear(2304,512) -> act -> Linear(512,256),
    # with the first weight split into flattened(256) and aff(2048) row blocks
    # (aff rows ordered t-major in 512-wide blocks, matching all_future_feat.view(B,-1)).
    p["fu_w1a"] = wb((256, 512)); p["fu_w1b"] = wb((512 * 4, 512)); p["fu_b1"] = z(1, 512)
    p["fu_w2"] = wb((512, 256)); p["fu_b2"] = z(1, 256)
    # NOTE: lidar_look_module_atten / lidar_look_module_MLP / look_feature_MLP params are
    # not allocated: their outputs never reach the returned values in the reference.
    return p


# -----------------------------------------------------------------------------
if __name__ == "__main__":
    B, T, C_BEV, H, W = 2, 4, 32, 8, 8
    D_EMB, D_MEAS, D_FLAT = 128, 128, 256
    NUM_CAM, C_IMG = 4, 256
    IMG_H, IMG_W = 128, 352

    root = jax.random.PRNGKey(0)
    pkey, dkey = jax.random.split(root)
    params = init_params(pkey)
    grid2feat = make_grid2feat_standin(params)
    dk = iter(jax.random.split(dkey, 20))

    BEV_feat = jax.random.normal(next(dk), (B, C_BEV, H, W), jnp.float32)
    current_wp = jax.random.normal(next(dk), (B, T, 2), jnp.float32) * 3.0
    current_ctrl = jax.random.normal(next(dk), (B, T, 4), jnp.float32)
    measurement_feat = jax.random.normal(next(dk), (B, D_MEAS), jnp.float32)
    flattened_BEV_feat = jax.random.normal(next(dk), (B, D_FLAT), jnp.float32)
    lidar2img = (jnp.broadcast_to(jnp.eye(4, dtype=jnp.float32), (B, NUM_CAM, 4, 4))
                 + 0.1 * jax.random.normal(next(dk), (B, NUM_CAM, 4, 4), jnp.float32))
    ida_mat = jnp.broadcast_to(jnp.eye(4, dtype=jnp.float32), (B, NUM_CAM, 4, 4))
    mlvl_feats = [jax.random.normal(next(dk), (B * NUM_CAM, C_IMG, hw, hw), jnp.float32)
                  for hw in (16, 8, 4, 2)]
    spatial_shapes = jnp.array([[16, 16], [8, 8], [4, 4], [2, 2]], jnp.int32)
    level_start_index = jnp.array([0, 256, 320, 336], jnp.int32)
    fpn_feat_flatten = jax.random.normal(
        next(dk), (B * NUM_CAM, int(sum(s * s for s in (16, 8, 4, 2))), C_IMG), jnp.float32)
    lidar_feat_hr = jax.random.normal(next(dk), (B, 512, H, W), jnp.float32)
    temporal_embedding = jax.random.normal(next(dk), (T, D_EMB), jnp.float32)
    static_embedding = jax.random.normal(next(dk), (4, D_EMB), jnp.float32)

    outs = thinktwice_decoder_layer_forward(
        params, BEV_feat, current_wp, current_ctrl, None, None, grid2feat,
        measurement_feat, flattened_BEV_feat, (lidar2img, ida_mat), (IMG_H, IMG_W),
        mlvl_feats, fpn_feat_flatten, spatial_shapes, level_start_index,
        lidar_feat_hr, temporal_embedding, static_embedding)

    for o in outs:
        jax.block_until_ready(o)
    traj_offset, ctrl_offset, future_bev, upd_bev, upd_flat = outs
    assert traj_offset.shape == (B, T, 2)
    assert ctrl_offset.shape == (B, T, 4)
    assert future_bev.shape == (B, T, C_BEV, H, W)
    assert upd_bev.shape == (B, C_BEV, H, W)
    assert upd_flat.shape == (B, D_FLAT)
    print("KERNEL_OK")
</pallas_src>

<mosaic_0001>
module attributes {stable_mosaic.version = 11 : i64} {
  func.func @_fused_head_kernel(%arg0: memref<8x1024xf32, #tpu.memory_space<vmem>>, %arg1: memref<8x2xf32, #tpu.memory_space<vmem>>, %arg2: memref<8x4xf32, #tpu.memory_space<vmem>>, %arg3: memref<2x256xf32, #tpu.memory_space<vmem>>, %arg4: memref<1x1024xf32, #tpu.memory_space<vmem>>, %arg5: memref<1x1024xf32, #tpu.memory_space<vmem>>, %arg6: memref<1024x512xbf16, #tpu.memory_space<vmem>>, %arg7: memref<1x512xf32, #tpu.memory_space<vmem>>, %arg8: memref<512x512xbf16, #tpu.memory_space<vmem>>, %arg9: memref<1x512xf32, #tpu.memory_space<vmem>>, %arg10: memref<512x512xbf16, #tpu.memory_space<vmem>>, %arg11: memref<2x256xf32, #tpu.memory_space<vmem>>, %arg12: memref<1x256xf32, #tpu.memory_space<vmem>>, %arg13: memref<256x64xbf16, #tpu.memory_space<vmem>>, %arg14: memref<1x64xf32, #tpu.memory_space<vmem>>, %arg15: memref<4x256xf32, #tpu.memory_space<vmem>>, %arg16: memref<1x256xf32, #tpu.memory_space<vmem>>, %arg17: memref<256x64xbf16, #tpu.memory_space<vmem>>, %arg18: memref<1x64xf32, #tpu.memory_space<vmem>>, %arg19: memref<128x128xbf16, #tpu.memory_space<vmem>>, %arg20: memref<1x128xf32, #tpu.memory_space<vmem>>, %arg21: memref<256x512xbf16, #tpu.memory_space<vmem>>, %arg22: memref<2048x512xbf16, #tpu.memory_space<vmem>>, %arg23: memref<1x512xf32, #tpu.memory_space<vmem>>, %arg24: memref<512x256xbf16, #tpu.memory_space<vmem>>, %arg25: memref<1x256xf32, #tpu.memory_space<vmem>>, %arg26: memref<2048x1152xbf16, #tpu.memory_space<vmem>>, %arg27: memref<8x128xf32, #tpu.memory_space<vmem>>, %arg28: memref<2x256xf32, #tpu.memory_space<vmem>>, %arg29: memref<2x1152xf32, #tpu.memory_space<vmem>>) attributes {dimension_semantics = [], scalar_prefetch = 0 : i64, scratch_operands = 0 : i64, tpu.core_type = #tpu.core_type<tc>} {
    %c0 = arith.constant 0 : index
    %c0_0 = arith.constant 0 : index
    %0 = vector.load %arg0[%c0, %c0_0] : memref<8x1024xf32, #tpu.memory_space<vmem>>, vector<8x1024xf32>
    %cst = arith.constant dense<0.000000e+00> : vector<8xf32>
    %1 = vector.multi_reduction <add>, %0, %cst [1] : vector<8x1024xf32> to vector<8xf32>
    %2 = vector.shape_cast %1 : vector<8xf32> to vector<8x1xf32>
    %cst_1 = arith.constant 1.024000e+03 : f32
    %3 = vector.broadcast %cst_1 : f32 to vector<8x1xf32>
    %4 = arith.divf %2, %3 : vector<8x1xf32>
    %5 = vector.broadcast %4 : vector<8x1xf32> to vector<8x1024xf32>
    %6 = arith.subf %0, %5 : vector<8x1024xf32>
    %7 = arith.mulf %6, %6 : vector<8x1024xf32>
    %cst_2 = arith.constant dense<0.000000e+00> : vector<8xf32>
    %8 = vector.multi_reduction <add>, %7, %cst_2 [1] : vector<8x1024xf32> to vector<8xf32>
    %9 = vector.shape_cast %8 : vector<8xf32> to vector<8x1xf32>
    %cst_3 = arith.constant 1.024000e+03 : f32
    %10 = vector.broadcast %cst_3 : f32 to vector<8x1xf32>
    %11 = arith.divf %9, %10 : vector<8x1xf32>
    %12 = vector.broadcast %4 : vector<8x1xf32> to vector<8x1024xf32>
    %13 = arith.subf %0, %12 : vector<8x1024xf32>
    %cst_4 = arith.constant 9.99999974E-6 : f32
    %14 = vector.broadcast %cst_4 : f32 to vector<8x1xf32>
    %15 = arith.addf %11, %14 : vector<8x1xf32>
    %16 = math.rsqrt %15 : vector<8x1xf32>
    %17 = vector.broadcast %16 : vector<8x1xf32> to vector<8x1024xf32>
    %18 = arith.mulf %13, %17 : vector<8x1024xf32>
    %c0_5 = arith.constant 0 : index
    %c0_6 = arith.constant 0 : index
    %19 = vector.load %arg4[%c0_5, %c0_6] : memref<1x1024xf32, #tpu.memory_space<vmem>>, vector<1x1024xf32>
    %20 = vector.broadcast %19 : vector<1x1024xf32> to vector<8x1024xf32>
    %21 = arith.mulf %18, %20 : vector<8x1024xf32>
    %c0_7 = arith.constant 0 : index
    %c0_8 = arith.constant 0 : index
    %22 = vector.load %arg5[%c0_7, %c0_8] : memref<1x1024xf32, #tpu.memory_space<vmem>>, vector<1x1024xf32>
    %23 = vector.broadcast %22 : vector<1x1024xf32> to vector<8x1024xf32>
    %24 = arith.addf %21, %23 : vector<8x1024xf32>
    %c0_9 = arith.constant 0 : index
    %c0_10 = arith.constant 0 : index
    %25 = vector.load %arg6[%c0_9, %c0_10] : memref<1024x512xbf16, #tpu.memory_space<vmem>>, vector<1024x512xbf16>
    %26 = arith.truncf %24 : vector<8x1024xf32> to vector<8x1024xbf16>
    %cst_11 = arith.constant dense<0.000000e+00> : vector<8x512xf32>
    %27 = tpu.matmul %26, %25, %cst_11 {dimension_numbers = #tpu.dot_dimension_numbers<[1], [0], [0], [1], [0, 0, 1, 1], [], []>} : vector<8x1024xbf16>, vector<1024x512xbf16>, vector<8x512xf32> -> vector<8x512xf32>
    %c0_12 = arith.constant 0 : index
    %c0_13 = arith.constant 0 : index
    %28 = vector.load %arg7[%c0_12, %c0_13] : memref<1x512xf32, #tpu.memory_space<vmem>>, vector<1x512xf32>
    %29 = vector.broadcast %28 : vector<1x512xf32> to vector<8x512xf32>
    %30 = arith.addf %27, %29 : vector<8x512xf32>
    %cst_14 = arith.constant 0.000000e+00 : f32
    %31 = vector.broadcast %cst_14 : f32 to vector<8x512xf32>
    %32 = arith.maximumf %30, %31 : vector<8x512xf32>
    %c0_15 = arith.constant 0 : index
    %c0_16 = arith.constant 0 : index
    %33 = vector.load %arg8[%c0_15, %c0_16] : memref<512x512xbf16, #tpu.memory_space<vmem>>, vector<512x512xbf16>
    %34 = arith.truncf %32 : vector<8x512xf32> to vector<8x512xbf16>
    %cst_17 = arith.constant dense<0.000000e+00> : vector<8x512xf32>
    %35 = tpu.matmul %34, %33, %cst_17 {dimension_numbers = #tpu.dot_dimension_numbers<[1], [0], [0], [1], [0, 0, 1, 1], [], []>} : vector<8x512xbf16>, vector<512x512xbf16>, vector<8x512xf32> -> vector<8x512xf32>
    %c0_18 = arith.constant 0 : index
    %c0_19 = arith.constant 0 : index
    %36 = vector.load %arg9[%c0_18, %c0_19] : memref<1x512xf32, #tpu.memory_space<vmem>>, vector<1x512xf32>
    %37 = vector.broadcast %36 : vector<1x512xf32> to vector<8x512xf32>
    %38 = arith.addf %35, %37 : vector<8x512xf32>
    %cst_20 = arith.constant 0.000000e+00 : f32
    %39 = vector.broadcast %cst_20 : f32 to vector<8x512xf32>
    %40 = arith.maximumf %38, %39 : vector<8x512xf32>
    %c0_21 = arith.constant 0 : index
    %c0_22 = arith.constant 0 : index
    %41 = vector.load %arg10[%c0_21, %c0_22] : memref<512x512xbf16, #tpu.memory_space<vmem>>, vector<512x512xbf16>
    %42 = arith.truncf %40 : vector<8x512xf32> to vector<8x512xbf16>
    %cst_23 = arith.constant dense<0.000000e+00> : vector<8x512xf32>
    %43 = tpu.matmul %42, %41, %cst_23 {dimension_numbers = #tpu.dot_dimension_numbers<[1], [0], [0], [1], [0, 0, 1, 1], [], []>} : vector<8x512xbf16>, vector<512x512xbf16>, vector<8x512xf32> -> vector<8x512xf32>
    %c0_24 = arith.constant 0 : index
    %c0_25 = arith.constant 0 : index
    %44 = vector.load %arg1[%c0_24, %c0_25] : memref<8x2xf32, #tpu.memory_space<vmem>>, vector<8x2xf32>
    %45 = vector.extract_strided_slice %44 {offsets = [0, 0], sizes = [8, 1], strides = [1, 1]} : vector<8x2xf32> to vector<8x1xf32>
    %c0_26 = arith.constant 0 : index
    %c0_27 = arith.constant 0 : index
    %46 = vector.load %arg11[%c0_26, %c0_27] : memref<2x256xf32, #tpu.memory_space<vmem>>, vector<1x256xf32>
    %47 = vector.broadcast %45 : vector<8x1xf32> to vector<8x256xf32>
    %48 = vector.broadcast %46 : vector<1x256xf32> to vector<8x256xf32>
    %49 = arith.mulf %47, %48 : vector<8x256xf32>
    %50 = vector.extract_strided_slice %44 {offsets = [0, 1], sizes = [8, 1], strides = [1, 1]} : vector<8x2xf32> to vector<8x1xf32>
    %c1 = arith.constant 1 : index
    %c0_28 = arith.constant 0 : index
    %51 = vector.load %arg11[%c1, %c0_28] : memref<2x256xf32, #tpu.memory_space<vmem>>, vector<1x256xf32>
    %52 = vector.broadcast %50 : vector<8x1xf32> to vector<8x256xf32>
    %53 = vector.broadcast %51 : vector<1x256xf32> to vector<8x256xf32>
    %54 = arith.mulf %52, %53 : vector<8x256xf32>
    %55 = arith.addf %49, %54 : vector<8x256xf32>
    %56 = vector.extract_strided_slice %43 {offsets = [0, 0], sizes = [8, 256], strides = [1, 1]} : vector<8x512xf32> to vector<8x256xf32>
    %57 = arith.addf %56, %55 : vector<8x256xf32>
    %c0_29 = arith.constant 0 : index
    %c0_30 = arith.constant 0 : index
    %58 = vector.load %arg12[%c0_29, %c0_30] : memref<1x256xf32, #tpu.memory_space<vmem>>, vector<1x256xf32>
    %59 = vector.broadcast %58 : vector<1x256xf32> to vector<8x256xf32>
    %60 = arith.addf %57, %59 : vector<8x256xf32>
    %cst_31 = arith.constant 0.000000e+00 : f32
    %61 = vector.broadcast %cst_31 : f32 to vector<8x256xf32>
    %62 = arith.maximumf %60, %61 : vector<8x256xf32>
    %c0_32 = arith.constant 0 : index
    %c0_33 = arith.constant 0 : index
    %63 = vector.load %arg13[%c0_32, %c0_33] : memref<256x64xbf16, #tpu.memory_space<vmem>>, vector<256x64xbf16>
    %64 = arith.truncf %62 : vector<8x256xf32> to vector<8x256xbf16>
    %cst_34 = arith.constant dense<0.000000e+00> : vector<8x64xf32>
    %65 = tpu.matmul %64, %63, %cst_34 {dimension_numbers = #tpu.dot_dimension_numbers<[1], [0], [0], [1], [0, 0, 1, 1], [], []>} : vector<8x256xbf16>, vector<256x64xbf16>, vector<8x64xf32> -> vector<8x64xf32>
    %c0_35 = arith.constant 0 : index
    %c0_36 = arith.constant 0 : index
    %66 = vector.load %arg14[%c0_35, %c0_36] : memref<1x64xf32, #tpu.memory_space<vmem>>, vector<1x64xf32>
    %67 = vector.broadcast %66 : vector<1x64xf32> to vector<8x64xf32>
    %68 = arith.addf %65, %67 : vector<8x64xf32>
    %cst_37 = arith.constant 0.000000e+00 : f32
    %69 = vector.broadcast %cst_37 : f32 to vector<8x64xf32>
    %70 = arith.maximumf %68, %69 : vector<8x64xf32>
    %c0_38 = arith.constant 0 : index
    %c0_39 = arith.constant 0 : index
    %71 = vector.load %arg2[%c0_38, %c0_39] : memref<8x4xf32, #tpu.memory_space<vmem>>, vector<8x4xf32>
    %72 = vector.extract_strided_slice %71 {offsets = [0, 0], sizes = [8, 1], strides = [1, 1]} : vector<8x4xf32> to vector<8x1xf32>
    %c0_40 = arith.constant 0 : index
    %c0_41 = arith.constant 0 : index
    %73 = vector.load %arg15[%c0_40, %c0_41] : memref<4x256xf32, #tpu.memory_space<vmem>>, vector<1x256xf32>
    %74 = vector.broadcast %72 : vector<8x1xf32> to vector<8x256xf32>
    %75 = vector.broadcast %73 : vector<1x256xf32> to vector<8x256xf32>
    %76 = arith.mulf %74, %75 : vector<8x256xf32>
    %77 = vector.extract_strided_slice %71 {offsets = [0, 1], sizes = [8, 1], strides = [1, 1]} : vector<8x4xf32> to vector<8x1xf32>
    %c1_42 = arith.constant 1 : index
    %c0_43 = arith.constant 0 : index
    %78 = vector.load %arg15[%c1_42, %c0_43] : memref<4x256xf32, #tpu.memory_space<vmem>>, vector<1x256xf32>
    %79 = vector.broadcast %77 : vector<8x1xf32> to vector<8x256xf32>
    %80 = vector.broadcast %78 : vector<1x256xf32> to vector<8x256xf32>
    %81 = arith.mulf %79, %80 : vector<8x256xf32>
    %82 = arith.addf %76, %81 : vector<8x256xf32>
    %83 = vector.extract_strided_slice %71 {offsets = [0, 2], sizes = [8, 1], strides = [1, 1]} : vector<8x4xf32> to vector<8x1xf32>
    %c2 = arith.constant 2 : index
    %c0_44 = arith.constant 0 : index
    %84 = vector.load %arg15[%c2, %c0_44] : memref<4x256xf32, #tpu.memory_space<vmem>>, vector<1x256xf32>
    %85 = vector.broadcast %83 : vector<8x1xf32> to vector<8x256xf32>
    %86 = vector.broadcast %84 : vector<1x256xf32> to vector<8x256xf32>
    %87 = arith.mulf %85, %86 : vector<8x256xf32>
    %88 = arith.addf %82, %87 : vector<8x256xf32>
    %89 = vector.extract_strided_slice %71 {offsets = [0, 3], sizes = [8, 1], strides = [1, 1]} : vector<8x4xf32> to vector<8x1xf32>
    %c3 = arith.constant 3 : index
    %c0_45 = arith.constant 0 : index
    %90 = vector.load %arg15[%c3, %c0_45] : memref<4x256xf32, #tpu.memory_space<vmem>>, vector<1x256xf32>
    %91 = vector.broadcast %89 : vector<8x1xf32> to vector<8x256xf32>
    %92 = vector.broadcast %90 : vector<1x256xf32> to vector<8x256xf32>
    %93 = arith.mulf %91, %92 : vector<8x256xf32>
    %94 = arith.addf %88, %93 : vector<8x256xf32>
    %95 = vector.extract_strided_slice %43 {offsets = [0, 256], sizes = [8, 256], strides = [1, 1]} : vector<8x512xf32> to vector<8x256xf32>
    %96 = arith.addf %95, %94 : vector<8x256xf32>
    %c0_46 = arith.constant 0 : index
    %c0_47 = arith.constant 0 : index
    %97 = vector.load %arg16[%c0_46, %c0_47] : memref<1x256xf32, #tpu.memory_space<vmem>>, vector<1x256xf32>
    %98 = vector.broadcast %97 : vector<1x256xf32> to vector<8x256xf32>
    %99 = arith.addf %96, %98 : vector<8x256xf32>
    %cst_48 = arith.constant 0.000000e+00 : f32
    %100 = vector.broadcast %cst_48 : f32 to vector<8x256xf32>
    %101 = arith.maximumf %99, %100 : vector<8x256xf32>
    %c0_49 = arith.constant 0 : index
    %c0_50 = arith.constant 0 : index
    %102 = vector.load %arg17[%c0_49, %c0_50] : memref<256x64xbf16, #tpu.memory_space<vmem>>, vector<256x64xbf16>
    %103 = arith.truncf %101 : vector<8x256xf32> to vector<8x256xbf16>
    %cst_51 = arith.constant dense<0.000000e+00> : vector<8x64xf32>
    %104 = tpu.matmul %103, %102, %cst_51 {dimension_numbers = #tpu.dot_dimension_numbers<[1], [0], [0], [1], [0, 0, 1, 1], [], []>} : vector<8x256xbf16>, vector<256x64xbf16>, vector<8x64xf32> -> vector<8x64xf32>
    %c0_52 = arith.constant 0 : index
    %c0_53 = arith.constant 0 : index
    %105 = vector.load %arg18[%c0_52, %c0_53] : memref<1x64xf32, #tpu.memory_space<vmem>>, vector<1x64xf32>
    %106 = vector.broadcast %105 : vector<1x64xf32> to vector<8x64xf32>
    %107 = arith.addf %104, %106 : vector<8x64xf32>
    %cst_54 = arith.constant 0.000000e+00 : f32
    %108 = vector.broadcast %cst_54 : f32 to vector<8x64xf32>
    %109 = arith.maximumf %107, %108 : vector<8x64xf32>
    %110 = tpu.concatenate %70, %109 in 1 : vector<8x64xf32>, vector<8x64xf32> -> vector<8x128xf32>
    %c0_55 = arith.constant 0 : index
    %c0_56 = arith.constant 0 : index
    %111 = vector.load %arg19[%c0_55, %c0_56] : memref<128x128xbf16, #tpu.memory_space<vmem>>, vector<128x128xbf16>
    %112 = arith.truncf %110 : vector<8x128xf32> to vector<8x128xbf16>
    %cst_57 = arith.constant dense<0.000000e+00> : vector<8x128xf32>
    %113 = tpu.matmul %112, %111, %cst_57 {dimension_numbers = #tpu.dot_dimension_numbers<[1], [0], [0], [1], [0, 0, 1, 1], [], []>} : vector<8x128xbf16>, vector<128x128xbf16>, vector<8x128xf32> -> vector<8x128xf32>
    %c0_58 = arith.constant 0 : index
    %c0_59 = arith.constant 0 : index
    %114 = vector.load %arg20[%c0_58, %c0_59] : memref<1x128xf32, #tpu.memory_space<vmem>>, vector<1x128xf32>
    %115 = vector.broadcast %114 : vector<1x128xf32> to vector<8x128xf32>
    %116 = arith.addf %113, %115 : vector<8x128xf32>
    %c0_60 = arith.constant 0 : index
    %c0_61 = arith.constant 0 : index
    %117 = vector.load %arg27[%c0_60, %c0_61] : memref<8x128xf32, #tpu.memory_space<vmem>>, vector<8x128xf32>
    tpu.vector_store %arg27[%c0_60, %c0_61], %116 {strides = array<i32>} : memref<8x128xf32, #tpu.memory_space<vmem>>, vector<8x128xf32>,
    %cst_62 = arith.constant 0.000000e+00 : f32
    %118 = vector.broadcast %cst_62 : f32 to vector<2x512xf32>
    %cst_63 = arith.constant 0.000000e+00 : f32
    %119 = vector.broadcast %cst_63 : f32 to vector<2x1152xf32>
    %120 = vector.extract_strided_slice %40 {offsets = [0, 0], sizes = [2, 512], strides = [1, 1]} : vector<8x512xf32> to vector<2x512xf32>
    %c0_64 = arith.constant 0 : index
    %c0_65 = arith.constant 0 : index
    %121 = vector.load %arg22[%c0_64, %c0_65] : memref<2048x512xbf16, #tpu.memory_space<vmem>>, vector<512x512xbf16>
    %122 = arith.truncf %120 : vector<2x512xf32> to vector<2x512xbf16>
    %cst_66 = arith.constant dense<0.000000e+00> : vector<2x512xf32>
    %123 = tpu.matmul %122, %121, %cst_66 {dimension_numbers = #tpu.dot_dimension_numbers<[1], [0], [0], [1], [0, 0, 1, 1], [], []>} : vector<2x512xbf16>, vector<512x512xbf16>, vector<2x512xf32> -> vector<2x512xf32>
    %124 = arith.addf %118, %123 : vector<2x512xf32>
    %c0_67 = arith.constant 0 : index
    %c0_68 = arith.constant 0 : index
    %125 = vector.load %arg26[%c0_67, %c0_68] : memref<2048x1152xbf16, #tpu.memory_space<vmem>>, vector<512x1152xbf16>
    %126 = arith.truncf %120 : vector<2x512xf32> to vector<2x512xbf16>
    %cst_69 = arith.constant dense<0.000000e+00> : vector<2x1152xf32>
    %127 = tpu.matmul %126, %125, %cst_69 {dimension_numbers = #tpu.dot_dimension_numbers<[1], [0], [0], [1], [0, 0, 1, 1], [], []>} : vector<2x512xbf16>, vector<512x1152xbf16>, vector<2x1152xf32> -> vector<2x1152xf32>
    %128 = arith.addf %119, %127 : vector<2x1152xf32>
    %129 = vector.extract_strided_slice %40 {offsets = [2, 0], sizes = [2, 512], strides = [1, 1]} : vector<8x512xf32> to vector<2x512xf32>
    %c512 = arith.constant 512 : index
    %c0_70 = arith.constant 0 : index
    %130 = vector.load %arg22[%c512, %c0_70] : memref<2048x512xbf16, #tpu.memory_space<vmem>>, vector<512x512xbf16>
    %131 = arith.truncf %129 : vector<2x512xf32> to vector<2x512xbf16>
    %cst_71 = arith.constant dense<0.000000e+00> : vector<2x512xf32>
    %132 = tpu.matmul %131, %130, %cst_71 {dimension_numbers = #tpu.dot_dimension_numbers<[1], [0], [0], [1], [0, 0, 1, 1], [], []>} : vector<2x512xbf16>, vector<512x512xbf16>, vector<2x512xf32> -> vector<2x512xf32>
    %133 = arith.addf %124, %132 : vector<2x512xf32>
    %c512_72 = arith.constant 512 : index
    %c0_73 = arith.constant 0 : index
    %134 = vector.load %arg26[%c512_72, %c0_73] : memref<2048x1152xbf16, #tpu.memory_space<vmem>>, vector<512x1152xbf16>
    %135 = arith.truncf %129 : vector<2x512xf32> to vector<2x512xbf16>
    %cst_74 = arith.constant dense<0.000000e+00> : vector<2x1152xf32>
    %136 = tpu.matmul %135, %134, %cst_74 {dimension_numbers = #tpu.dot_dimension_numbers<[1], [0], [0], [1], [0, 0, 1, 1], [], []>} : vector<2x512xbf16>, vector<512x1152xbf16>, vector<2x1152xf32> -> vector<2x1152xf32>
    %137 = arith.addf %128, %136 : vector<2x1152xf32>
    %138 = vector.extract_strided_slice %40 {offsets = [4, 0], sizes = [2, 512], strides = [1, 1]} : vector<8x512xf32> to vector<2x512xf32>
    %c1024 = arith.constant 1024 : index
    %c0_75 = arith.constant 0 : index
    %139 = vector.load %arg22[%c1024, %c0_75] : memref<2048x512xbf16, #tpu.memory_space<vmem>>, vector<512x512xbf16>
    %140 = arith.truncf %138 : vector<2x512xf32> to vector<2x512xbf16>
    %cst_76 = arith.constant dense<0.000000e+00> : vector<2x512xf32>
    %141 = tpu.matmul %140, %139, %cst_76 {dimension_numbers = #tpu.dot_dimension_numbers<[1], [0], [0], [1], [0, 0, 1, 1], [], []>} : vector<2x512xbf16>, vector<512x512xbf16>, vector<2x512xf32> -> vector<2x512xf32>
    %142 = arith.addf %133, %141 : vector<2x512xf32>
    %c1024_77 = arith.constant 1024 : index
    %c0_78 = arith.constant 0 : index
    %143 = vector.load %arg26[%c1024_77, %c0_78] : memref<2048x1152xbf16, #tpu.memory_space<vmem>>, vector<512x1152xbf16>
    %144 = arith.truncf %138 : vector<2x512xf32> to vector<2x512xbf16>
    %cst_79 = arith.constant dense<0.000000e+00> : vector<2x1152xf32>
    %145 = tpu.matmul %144, %143, %cst_79 {dimension_numbers = #tpu.dot_dimension_numbers<[1], [0], [0], [1], [0, 0, 1, 1], [], []>} : vector<2x512xbf16>, vector<512x1152xbf16>, vector<2x1152xf32> -> vector<2x1152xf32>
    %146 = arith.addf %137, %145 : vector<2x1152xf32>
    %147 = vector.extract_strided_slice %40 {offsets = [6, 0], sizes = [2, 512], strides = [1, 1]} : vector<8x512xf32> to vector<2x512xf32>
    %c1536 = arith.constant 1536 : index
    %c0_80 = arith.constant 0 : index
    %148 = vector.load %arg22[%c1536, %c0_80] : memref<2048x512xbf16, #tpu.memory_space<vmem>>, vector<512x512xbf16>
    %149 = arith.truncf %147 : vector<2x512xf32> to vector<2x512xbf16>
    %cst_81 = arith.constant dense<0.000000e+00> : vector<2x512xf32>
    %150 = tpu.matmul %149, %148, %cst_81 {dimension_numbers = #tpu.dot_dimension_numbers<[1], [0], [0], [1], [0, 0, 1, 1], [], []>} : vector<2x512xbf16>, vector<512x512xbf16>, vector<2x512xf32> -> vector<2x512xf32>
    %151 = arith.addf %142, %150 : vector<2x512xf32>
    %c1536_82 = arith.constant 1536 : index
    %c0_83 = arith.constant 0 : index
    %152 = vector.load %arg26[%c1536_82, %c0_83] : memref<2048x1152xbf16, #tpu.memory_space<vmem>>, vector<512x1152xbf16>
    %153 = arith.truncf %147 : vector<2x512xf32> to vector<2x512xbf16>
    %cst_84 = arith.constant dense<0.000000e+00> : vector<2x1152xf32>
    %154 = tpu.matmul %153, %152, %cst_84 {dimension_numbers = #tpu.dot_dimension_numbers<[1], [0], [0], [1], [0, 0, 1, 1], [], []>} : vector<2x512xbf16>, vector<512x1152xbf16>, vector<2x1152xf32> -> vector<2x1152xf32>
    %155 = arith.addf %146, %154 : vector<2x1152xf32>
    %c0_85 = arith.constant 0 : index
    %c0_86 = arith.constant 0 : index
    %156 = vector.load %arg29[%c0_85, %c0_86] : memref<2x1152xf32, #tpu.memory_space<vmem>>, vector<2x1152xf32>
    tpu.vector_store %arg29[%c0_85, %c0_86], %155 {strides = array<i32>} : memref<2x1152xf32, #tpu.memory_space<vmem>>, vector<2x1152xf32>,
    %c0_87 = arith.constant 0 : index
    %c0_88 = arith.constant 0 : index
    %157 = vector.load %arg3[%c0_87, %c0_88] : memref<2x256xf32, #tpu.memory_space<vmem>>, vector<2x256xf32>
    %c0_89 = arith.constant 0 : index
    %c0_90 = arith.constant 0 : index
    %158 = vector.load %arg21[%c0_89, %c0_90] : memref<256x512xbf16, #tpu.memory_space<vmem>>, vector<256x512xbf16>
    %159 = arith.truncf %157 : vector<2x256xf32> to vector<2x256xbf16>
    %cst_91 = arith.constant dense<0.000000e+00> : vector<2x512xf32>
    %160 = tpu.matmul %159, %158, %cst_91 {dimension_numbers = #tpu.dot_dimension_numbers<[1], [0], [0], [1], [0, 0, 1, 1], [], []>} : vector<2x256xbf16>, vector<256x512xbf16>, vector<2x512xf32> -> vector<2x512xf32>
    %161 = arith.addf %160, %151 : vector<2x512xf32>
    %c0_92 = arith.constant 0 : index
    %c0_93 = arith.constant 0 : index
    %162 = vector.load %arg23[%c0_92, %c0_93] : memref<1x512xf32, #tpu.memory_space<vmem>>, vector<1x512xf32>
    %163 = vector.broadcast %162 : vector<1x512xf32> to vector<2x512xf32>
    %164 = arith.addf %161, %163 : vector<2x512xf32>
    %cst_94 = arith.constant 0.000000e+00 : f32
    %165 = vector.broadcast %cst_94 : f32 to vector<2x512xf32>
    %166 = arith.maximumf %164, %165 : vector<2x512xf32>
    %c0_95 = arith.constant 0 : index
    %c0_96 = arith.constant 0 : index
    %167 = vector.load %arg24[%c0_95, %c0_96] : memref<512x256xbf16, #tpu.memory_space<vmem>>, vector<512x256xbf16>
    %168 = arith.truncf %166 : vector<2x512xf32> to vector<2x512xbf16>
    %cst_97 = arith.constant dense<0.000000e+00> : vector<2x256xf32>
    %169 = tpu.matmul %168, %167, %cst_97 {dimension_numbers = #tpu.dot_dimension_numbers<[1], [0], [0], [1], [0, 0, 1, 1], [], []>} : vector<2x512xbf16>, vector<512x256xbf16>, vector<2x256xf32> -> vector<2x256xf32>
    %c0_98 = arith.constant 0 : index
    %c0_99 = arith.constant 0 : index
    %170 = vector.load %arg25[%c0_98, %c0_99] : memref<1x256xf32, #tpu.memory_space<vmem>>, vector<1x256xf32>
    %171 = vector.broadcast %170 : vector<1x256xf32> to vector<2x256xf32>
    %172 = arith.addf %169, %171 : vector<2x256xf32>
    %c0_100 = arith.constant 0 : index
    %c0_101 = arith.constant 0 : index
    %173 = vector.load %arg3[%c0_100, %c0_101] : memref<2x256xf32, #tpu.memory_space<vmem>>, vector<2x256xf32>
    %174 = arith.addf %172, %173 : vector<2x256xf32>
    %c0_102 = arith.constant 0 : index
    %c0_103 = arith.constant 0 : index
    %175 = vector.load %arg28[%c0_102, %c0_103] : memref<2x256xf32, #tpu.memory_space<vmem>>, vector<2x256xf32>
    tpu.vector_store %arg28[%c0_102, %c0_103], %174 {strides = array<i32>} : memref<2x256xf32, #tpu.memory_space<vmem>>, vector<2x256xf32>,
    return
  }
}

</mosaic_0001>

<bundles_post_ra>
// kernel: tpu_custom_call.1
= control target key start
LH: loop header
LB: loop body
LE: loop exit
PB: predicated region body
PF: predicated region fallthrough
CT: control target
= control target key end

     0   :  { %s25382_s6 = smov 1   ;;  %s25383_s10 = smov 2   ;;  %s26355_s0 = inlined_call_operand.smem [shape: u32[30], index: -1, kind: input, shape index: {}] }
   0x1   :  { %s25460_s5 = sld [smem:[%s26355_s0]]   ;;  %s25384_s14 = smov 3  }
   0x2   :  { %s25465_s9 = sld [smem:[%s26355_s0 + %s25382_s6]]   ;;  %s25385_s18 = smov 4  }
   0x3   :  { %s25470_s13 = sld [smem:[%s26355_s0 + %s25383_s10]]   ;;  %s25386_s22 = smov 5  }
   0x4   :  { %s25475_s17 = sld [smem:[%s26355_s0 + %s25384_s14]]   ;;  %s25387_s26 = smov 6  }
   0x5   :  { %s25480_s21 = sld [smem:[%s26355_s0 + %s25385_s18]]   ;;  %s25388_s30 = smov 7  }
   0x6   :  { %s25485_s25 = sld [smem:[%s26355_s0 + %s25386_s22]]   ;;  %s25389_s4 = smov 8  }
   0x7   :  { %s25490_s29 = sld [smem:[%s26355_s0 + %s25387_s26]]   ;;  %s25390_s10 = smov 9  }
   0x8   :  { %26358 = sst [smem:[#allocation56_spill]] %s25465_s9  ;;  %s25391_s15 = smov 10  }
   0x9   :  { %26359 = sst [smem:[#allocation57_spill]] %s25470_s13  ;;  %s25392_s20 = smov 11  }
   0xa   :  { %s25495_s3 = sld [smem:[%s26355_s0 + %s25388_s30]]   ;;  %s25393_s26 = smov 12  }
   0xb   :  { %s25500_s8 = sld [smem:[%s26355_s0 + %s25389_s4]]   ;;  %s25394_s1 = smov 13  }
   0xc   :  { %s25505_s14 = sld [smem:[%s26355_s0 + %s25390_s10]]   ;;  %s25395_s7 = smov 14  }
   0xd   :  { %s25510_s19 = sld [smem:[%s26355_s0 + %s25391_s15]]   ;;  %s25396_s15 = smov 15  }
   0xe   :  { %s25515_s24 = sld [smem:[%s26355_s0 + %s25392_s20]]   ;;  %s25397_s22 = smov 16  }
   0xf   :  { %s25520_s30 = sld [smem:[%s26355_s0 + %s25393_s26]]   ;;  %s25398_s28 = smov 17  }
  0x10   :  { %s25525_s6 = sld [smem:[%s26355_s0 + %s25394_s1]]  }
  0x11   :  { %26360 = sst [smem:[#allocation58_spill]] %s25500_s8 }
  0x12   :  { %s25530_s12 = sld [smem:[%s26355_s0 + %s25395_s7]]   ;;  %s25399_s7 = smov 18  }
  0x13   :  { %26361 = sst [smem:[#allocation59_spill]] %s25510_s19 }
  0x14   :  { %s25535_s20 = sld [smem:[%s26355_s0 + %s25396_s15]]   ;;  %s25400_s15 = smov 19  }
  0x15   :  { %26362 = sst [smem:[#allocation60_spill]] %s25520_s30 }
  0x16   :  { %26363 = sst [smem:[#allocation61_spill]] %s25525_s6 }
  0x17   :  { %s25540_s27 = sld [smem:[%s26355_s0 + %s25397_s22]]   ;;  %s25401_s22 = smov 20  }
  0x18   :  { %s25545_s4 = sld [smem:[%s26355_s0 + %s25398_s28]]   ;;  %s25402_s28 = smov 21  }
  0x19   :  { %s25550_s6 = sld [smem:[%s26355_s0 + %s25399_s7]]   ;;  %s25403_s7 = smov 22  }
  0x1a   :  { %26364 = sst [smem:[#allocation62_spill]] %s25535_s20 }
  0x1b   :  { %s25555_s9 = sld [smem:[%s26355_s0 + %s25400_s15]]   ;;  %s25404_s15 = smov 23  }
  0x1c   :  { %s25560_s13 = sld [smem:[%s26355_s0 + %s25401_s22]]   ;;  %s25405_s22 = smov 24  }
  0x1d   :  { %s25575_s20 = sld [smem:[%s26355_s0 + %s25404_s15]]   ;;  %s25408_s15 = smov 27  }
  0x1e   :  { %26365 = sst [smem:[#allocation63_spill]] %s25545_s4 }
  0x1f   :  { %26366 = sst [smem:[#allocation64_spill]] %s25550_s6 }
  0x20   :  { %s25565_s4 = sld [smem:[%s26355_s0 + %s25402_s28]]   ;;  %s25406_s28 = smov 25  }
  0x21   :  { %s25570_s6 = sld [smem:[%s26355_s0 + %s25403_s7]]   ;;  %s25407_s7 = smov 26  }
  0x22   :  { %26367 = sst [smem:[#allocation65_spill]] %s25560_s13 }
  0x23   :  { %s25580_s13 = sld [smem:[%s26355_s0 + %s25405_s22]]   ;;  %s25409_s22 = smov 28  }
  0x24   :  { %s25585_s30 = sld [smem:[%s26355_s0 + %s25406_s28]]   ;;  %s25410_s28 = smov 29  }
  0x25   :  { %s25595_s19 = sld [smem:[%s26355_s0 + %s25408_s15]]  }
  0x26   :  { %s25605_s8 = sld [smem:[%s26355_s0 + %s25410_s28]]  }
  0x27   :  { %26368 = sst [smem:[#allocation66_spill]] %s25570_s6 }
  0x28   :  { %s25590_s6 = sld [smem:[%s26355_s0 + %s25407_s7]]  }
  0x29   :  { %26369 = sst [smem:[#allocation67_spill]] %s25580_s13 }
  0x2a   :  { %s25600_s13 = sld [smem:[%s26355_s0 + %s25409_s22]]  }
  0x2b   :  { %65 = vsyncpa [#allocation3], 0 }
  0x2c   :  { %66 = vsyncpa [#allocation6], 0 }
  0x2d   :  { %67 = vsyncpa [#allocation9], 0 }
  0x2e   :  { %68 = vsyncpa [#allocation12], 0 }
  0x2f   :  { %69 = vsyncpa [#allocation15], 0 }
  0x30   :  { %70 = vsyncpa [#allocation18], 0 }
  0x31   :  { %71 = vsyncpa [#allocation21], 0 }
  0x32   :  { %72 = vsyncpa [#allocation24], 0 }
  0x33   :  { %73 = vsyncpa [#allocation27], 0 }
  0x34   :  { %74 = vsyncpa [#allocation30], 0 }
  0x35   :  { %75 = vsyncpa [#allocation33], 0 }
  0x36   :  { %76 = vsyncpa [#allocation36], 0 }
  0x37   :  { %77 = vsyncpa [#allocation4], 0 }
  0x38   :  { %78 = vsyncpa [#allocation40], 0  ;;  %s25411_s7 = smov [#allocation5]   ;;  %s25412_s11 = smov [#allocation8]  }
  0x39   :  { %s99_s10 = sshll.u32 %s25411_s7, 4  ;;  %s119_s15 = sshll.u32 %s25412_s11, 4  ;;  %s100_s10 = int_to_ptr.vmem [resolvable:$true] %s99_s10  ;;  %s120_s15 = int_to_ptr.vmem [resolvable:$true] %s119_s15 }
  0x3a   :  { %s24842_s0 = scalar_lea.vmem %s100_s10, 64  ;;  %p24847_p1 = scmp.lt.s32.totalorder %s100_s10, %s100_s10 }
  0x3b   :  { %p24843_p0 = scmp.ne.s32.totalorder %s100_s10, %s24842_s0  ;;  %p24848_p2 = scmp.lt.s32.totalorder %s24842_s0, %s24842_s0 }
  0x3d   :  { %p24849_p3 = por %p24848_p2, %p24847_p1 }
  0x3f   :  { %p24850_p4 = pnand %p24849_p3, %p24843_p0 }
  0x41   :  { %24853 = shalt.err (!%p24850_p4)
}
  0x42   :  { %102 = dma.hbm_to_vmem [thread:$0]  %s25475_s17, 64, %s100_s10, [#allocation6]  }
  0x43   :  { %s24862_s16 = scalar_lea.vmem %s120_s15, 128  ;;  %p24867_p6 = scmp.lt.s32.totalorder %s120_s15, %s120_s15 }
  0x44   :  { %p24863_p5 = scmp.ne.s32.totalorder %s120_s15, %s24862_s16  ;;  %p24868_p7 = scmp.lt.s32.totalorder %s24862_s16, %s24862_s16 }
  0x46   :  { %p24869_p8 = por %p24868_p7, %p24867_p6 }
  0x48   :  { %p24870_p9 = pnand %p24869_p8, %p24863_p5 }
  0x4a   :  { %24873 = shalt.err (!%p24870_p9)
}
  0x4b   :  { %122 = dma.hbm_to_vmem [thread:$0]  %s25485_s25, 128, %s120_s15, [#allocation9]  }
  0x4c   :  { %s25413_s18 = smov [#allocation11]   ;;  %s25414_s23 = smov [#allocation14]  }
  0x4d   :  { %s141_s22 = sshll.u32 %s25413_s18, 4  ;;  %s163_s26 = sshll.u32 %s25414_s23, 4  ;;  %s142_s22 = int_to_ptr.vmem [resolvable:$true] %s141_s22  ;;  %s164_s26 = int_to_ptr.vmem [resolvable:$true] %s163_s26 }
  0x4e   :  { %s24882_s28 = scalar_lea.vmem %s142_s22, 64  ;;  %p24887_p11 = scmp.lt.s32.totalorder %s142_s22, %s142_s22 }
  0x4f   :  { %p24883_p10 = scmp.ne.s32.totalorder %s142_s22, %s24882_s28  ;;  %p24888_p12 = scmp.lt.s32.totalorder %s24882_s28, %s24882_s28 }
  0x51   :  { %p24889_p13 = por %p24888_p12, %p24887_p11 }
  0x53   :  { %p24890_p0 = pnand %p24889_p13, %p24883_p10 }
  0x55   :  { %24893 = shalt.err (!%p24890_p0)
}
  0x56   :  { %144 = dma.hbm_to_vmem [thread:$0]  %s25495_s3, 64, %s142_s22, [#allocation12]  }
  0x57   :  { %s24902_s17 = scalar_lea.vmem %s164_s26, 64  ;;  %p24907_p2 = scmp.lt.s32.totalorder %s164_s26, %s164_s26 }
  0x58   :  { %p24903_p1 = scmp.ne.s32.totalorder %s164_s26, %s24902_s17  ;;  %p24908_p3 = scmp.lt.s32.totalorder %s24902_s17, %s24902_s17 }
  0x5a   :  { %p24909_p4 = por %p24908_p3, %p24907_p2 }
  0x5c   :  { %p24910_p5 = pnand %p24909_p4, %p24903_p1 }
  0x5e   :  { %24913 = shalt.err (!%p24910_p5)
}
  0x5f   :  { %166 = dma.hbm_to_vmem [thread:$0]  %s25505_s14, 64, %s164_s26, [#allocation15]  }
  0x60   :  { %s25415_s25 = smov [#allocation17]   ;;  %s25416_s2 = smov [#allocation20]  }
  0x61   :  { %s185_s1 = sshll.u32 %s25415_s25, 4  ;;  %s207_s7 = sshll.u32 %s25416_s2, 4  ;;  %s186_s1 = int_to_ptr.vmem [resolvable:$true] %s185_s1  ;;  %s208_s7 = int_to_ptr.vmem [resolvable:$true] %s207_s7 }
  0x62   :  { %s24922_s10 = scalar_lea.vmem %s186_s1, 64  ;;  %p24927_p7 = scmp.lt.s32.totalorder %s186_s1, %s186_s1 }
  0x63   :  { %p24923_p6 = scmp.ne.s32.totalorder %s186_s1, %s24922_s10  ;;  %p24928_p8 = scmp.lt.s32.totalorder %s24922_s10, %s24922_s10 }
  0x65   :  { %p24929_p9 = por %p24928_p8, %p24927_p7 }
  0x67   :  { %p24930_p10 = pnand %p24929_p9, %p24923_p6 }
  0x69   :  { %24933 = shalt.err (!%p24930_p10)
}
  0x6a   :  { %188 = dma.hbm_to_vmem [thread:$0]  %s25515_s24, 64, %s186_s1, [#allocation18]  }
  0x6b   :  { %s24942_s3 = scalar_lea.vmem %s208_s7, 16  ;;  %s24946_s11 = scalar_lea.vmem %s208_s7, 32 }
  0x6c   :  { %p24943_p11 = scmp.ne.s32.totalorder %s208_s7, %s24942_s3  ;;  %p24947_p12 = scmp.lt.s32.totalorder %s208_s7, %s208_s7 }
  0x6d   :  { %p24948_p13 = scmp.lt.s32.totalorder %s24946_s11, %s24942_s3 }
  0x6f   :  { %p24949_p0 = por %p24948_p13, %p24947_p12 }
  0x71   :  { %p24950_p1 = pnand %p24949_p0, %p24943_p11 }
  0x73   :  { %24953 = shalt.err (!%p24950_p1)
}
  0x74   :  { %210 = dma.hbm_to_vmem [thread:$0]  %s25530_s12, 16, %s208_s7, [#allocation21]  }
  0x75   :  { %s25417_s14 = smov [#allocation23]   ;;  %s25418_s0 = smov [#allocation26]  }
  0x76   :  { %s227_s15 = sshll.u32 %s25417_s14, 4  ;;  %s248_s16 = sshll.u32 %s25418_s0, 4  ;;  %s228_s15 = int_to_ptr.vmem [resolvable:$true] %s227_s15  ;;  %s249_s16 = int_to_ptr.vmem [resolvable:$true] %s248_s16 }
  0x77   :  { %s24962_s18 = scalar_lea.vmem %s228_s15, 32  ;;  %p24967_p3 = scmp.lt.s32.totalorder %s228_s15, %s228_s15 }
  0x78   :  { %p24963_p2 = scmp.ne.s32.totalorder %s228_s15, %s24962_s18  ;;  %p24968_p4 = scmp.lt.s32.totalorder %s24962_s18, %s24962_s18 }
  0x7a   :  { %p24969_p5 = por %p24968_p4, %p24967_p3 }
  0x7c   :  { %p24970_p6 = pnand %p24969_p5, %p24963_p2 }
  0x7e   :  { %24973 = shalt.err (!%p24970_p6)
}
  0x7f   :  { %230 = dma.hbm_to_vmem [thread:$0]  %s25540_s27, 32, %s228_s15, [#allocation24]  }
  0x80   :  { %s24982_s24 = scalar_lea.vmem %s249_s16, 1024  ;;  %p24987_p8 = scmp.lt.s32.totalorder %s249_s16, %s249_s16 }
  0x81   :  { %p24983_p7 = scmp.ne.s32.totalorder %s249_s16, %s24982_s24  ;;  %p24988_p9 = scmp.lt.s32.totalorder %s24982_s24, %s24982_s24 }
  0x83   :  { %p24989_p10 = por %p24988_p9, %p24987_p8 }
  0x85   :  { %p24990_p11 = pnand %p24989_p10, %p24983_p7 }
  0x87   :  { %24993 = shalt.err (!%p24990_p11)
}
  0x88   :  { %s25419_s12 = smov 64   ;;  %s25420_s22 = smov 4  }
  0x89   :  { %254 = dma.hbm_to_vmem [thread:$0]  %s25555_s9, 1024, %s249_s16, [#allocation27], %s25419_s12, %s25419_s12, %s25420_s22  }
  0x8a   :  { %s25421_s23 = smov [#allocation29]   ;;  %s25422_s28 = smov [#allocation32]  }
  0x8b   :  { %s270_s26 = sshll.u32 %s25421_s23, 4  ;;  %s295_s17 = sshll.u32 %s25422_s28, 4  ;;  %s271_s26 = int_to_ptr.vmem [resolvable:$true] %s270_s26  ;;  %s296_s17 = int_to_ptr.vmem [resolvable:$true] %s295_s17 }
  0x8c   :  { %s25002_s27 = scalar_lea.vmem %s271_s26, 8192  ;;  %p25007_p13 = scmp.lt.s32.totalorder %s271_s26, %s271_s26 }
  0x8d   :  { %p25003_p12 = scmp.ne.s32.totalorder %s271_s26, %s25002_s27  ;;  %p25008_p0 = scmp.lt.s32.totalorder %s25002_s27, %s25002_s27 }
  0x8f   :  { %p25009_p1 = por %p25008_p0, %p25007_p13 }
  0x91   :  { %p25010_p2 = pnand %p25009_p1, %p25003_p12 }
  0x93   :  { %25013 = shalt.err (!%p25010_p2)
}
  0x94   :  { %s25423_s25 = smov 256   ;;  %s25424_s1 = smov 16  }
  0x95   :  { %276 = dma.hbm_to_vmem [thread:$0]  %s25565_s4, 8192, %s271_s26, [#allocation30], %s25423_s25, %s25423_s25, %s25424_s1  }
  0x96   :  { %s25022_s9 = scalar_lea.vmem %s296_s17, 64  ;;  %p25027_p4 = scmp.lt.s32.totalorder %s296_s17, %s296_s17 }
  0x97   :  { %p25023_p3 = scmp.ne.s32.totalorder %s296_s17, %s25022_s9  ;;  %p25028_p5 = scmp.lt.s32.totalorder %s25022_s9, %s25022_s9 }
  0x99   :  { %p25029_p6 = por %p25028_p5, %p25027_p4 }
  0x9b   :  { %p25030_p7 = pnand %p25029_p6, %p25023_p3 }
  0x9d   :  { %25033 = shalt.err (!%p25030_p7)
}
  0x9e   :  { %298 = dma.hbm_to_vmem [thread:$0]  %s25575_s20, 64, %s296_s17, [#allocation33]  }
  0x9f   :  { %s25425_s2 = smov [#allocation35]   ;;  %s25426_s10 = smov [#allocation2]  }
  0xa0   :  { %s317_s7 = sshll.u32 %s25425_s2, 4  ;;  %s85_s3 = sshll.u32 %s25426_s10, 4  ;;  %s318_s7 = int_to_ptr.vmem [resolvable:$true] %s317_s7  ;;  %s86_s3 = int_to_ptr.vmem [resolvable:$true] %s85_s3 }
  0xa1   :  { %s25042_s11 = scalar_lea.vmem %s318_s7, 32  ;;  %p25047_p9 = scmp.lt.s32.totalorder %s318_s7, %s318_s7 }
  0xa2   :  { %p25043_p8 = scmp.ne.s32.totalorder %s318_s7, %s25042_s11  ;;  %p25048_p10 = scmp.lt.s32.totalorder %s25042_s11, %s25042_s11 }
  0xa4   :  { %p25049_p11 = por %p25048_p10, %p25047_p9 }
  0xa6   :  { %p25050_p12 = pnand %p25049_p11, %p25043_p8 }
  0xa8   :  { %25053 = shalt.err (!%p25050_p12)
}
  0xa9   :  { %320 = dma.hbm_to_vmem [thread:$0]  %s25585_s30, 32, %s318_s7, [#allocation36]  }
  0xaa   :  { %s25062_s4 = scalar_lea.vmem %s86_s3, 1024  ;;  %p25067_p0 = scmp.lt.s32.totalorder %s86_s3, %s86_s3 }
  0xab   :  { %p25063_p13 = scmp.ne.s32.totalorder %s86_s3, %s25062_s4  ;;  %p25068_p1 = scmp.lt.s32.totalorder %s25062_s4, %s25062_s4 }
  0xad   :  { %p25069_p2 = por %p25068_p1, %p25067_p0 }
  0xaf   :  { %p25070_p3 = pnand %p25069_p2, %p25063_p13 }
  0xb1   :  { %25073 = shalt.err (!%p25070_p3)
}
  0xb2   :  { %88 = dma.hbm_to_vmem [thread:$0]  %s25460_s5, 1024, %s86_s3, [#allocation3]  }
  0xb3   :  { %s25427_s20 = smov [#allocation7]   ;;  %s25428_s15 = smov [#allocation10]  }
  0xb4   :  { %s109_s14 = sshll.u32 %s25427_s20, 4  ;;  %s128_s0 = sshll.u32 %s25428_s15, 4  ;;  %s110_s14 = int_to_ptr.vmem [resolvable:$true] %s109_s14  ;;  %s129_s0 = int_to_ptr.vmem [resolvable:$true] %s128_s0 }
  0xb5   :  { %s25082_s16 = scalar_lea.vmem %s110_s14, 128  ;;  %p25087_p5 = scmp.lt.s32.totalorder %s110_s14, %s110_s14 }
  0xb6   :  { %p25083_p4 = scmp.ne.s32.totalorder %s110_s14, %s25082_s16  ;;  %p25088_p6 = scmp.lt.s32.totalorder %s25082_s16, %s25082_s16 }
  0xb8   :  { %p25089_p7 = por %p25088_p6, %p25087_p5 }
  0xba   :  { %p25090_p8 = pnand %p25089_p7, %p25083_p4 }
  0xbc   :  { %25093 = shalt.err (!%p25090_p8)
}
  0xbd   :  { %112 = dma.hbm_to_vmem [thread:$0]  %s25480_s21, 128, %s110_s14, [#allocation6]  }
  0xbe   :  { %s25102_s30 = scalar_lea.vmem %s129_s0, 32768  ;;  %p25107_p10 = scmp.lt.s32.totalorder %s129_s0, %s129_s0 }
  0xbf   :  { %p25103_p9 = scmp.ne.s32.totalorder %s129_s0, %s25102_s30  ;;  %p25108_p11 = scmp.lt.s32.totalorder %s25102_s30, %s25102_s30 }
  0xc1   :  { %p25109_p12 = por %p25108_p11, %p25107_p10 }
  0xc3   :  { %p25110_p13 = pnand %p25109_p12, %p25103_p9 }
  0xc5   :  { %25113 = shalt.err (!%p25110_p13)
}
  0xc6   :  { %134 = dma.hbm_to_vmem [thread:$0]  %s25490_s29, 32768, %s129_s0, [#allocation9], %s25423_s25, %s25423_s25, %s25424_s1  }
  0xc7   :  { %s25429_s5 = smov [#allocation13]   ;;  %s25430_s24 = smov [#allocation16]  }
  0xc8   :  { %s150_s18 = sshll.u32 %s25429_s5, 4  ;;  %s172_s22 = sshll.u32 %s25430_s24, 4  ;;  %s151_s18 = int_to_ptr.vmem [resolvable:$true] %s150_s18  ;;  %s173_s22 = int_to_ptr.vmem [resolvable:$true] %s172_s22 }
  0xc9   :  { %s25122_s23 = scalar_lea.vmem %s151_s18, 16384  ;;  %p25127_p1 = scmp.lt.s32.totalorder %s151_s18, %s151_s18 }
  0xca   :  { %p25123_p0 = scmp.ne.s32.totalorder %s151_s18, %s25122_s23  ;;  %p25128_p2 = scmp.lt.s32.totalorder %s25122_s23, %s25122_s23 }
  0xcc   :  { %p25129_p3 = por %p25128_p2, %p25127_p1 }
  0xce   :  { %p25130_p4 = pnand %p25129_p3, %p25123_p0 }
  0xd0   :  { %25133 = shalt.err (!%p25130_p4)
}
  0xd1   :  { %s26370_s21 = sld [smem:[#allocation58_spill]]  ;;  %s25142_s26 = scalar_lea.vmem %s173_s22, 16384 }
  0xd2   :  { %p25143_p5 = scmp.ne.s32.totalorder %s173_s22, %s25142_s26  ;;  %p25147_p6 = scmp.lt.s32.totalorder %s173_s22, %s173_s22 }
  0xd3   :  { %p25148_p7 = scmp.lt.s32.totalorder %s25142_s26, %s25142_s26 }
  0xd5   :  { %p25149_p8 = por %p25148_p7, %p25147_p6 }
  0xd7   :  { %156 = dma.hbm_to_vmem [thread:$0]  %s26370_s21, 16384, %s151_s18, [#allocation12], %s25423_s25, %s25423_s25, %s25424_s1  }
  0xd8   :  { %p25150_p9 = pnand %p25149_p8, %p25143_p5 }
  0xda   :  { %25153 = shalt.err (!%p25150_p9)
}
  0xdb   :  { %s26371_s29 = sld [smem:[#allocation59_spill]]  ;;  %s25431_s28 = smov [#allocation19]  }
  0xdc   :  { %s195_s17 = sshll.u32 %s25431_s28, 4  ;;  %s25432_s27 = smov [#allocation22]   ;;  %s196_s17 = int_to_ptr.vmem [resolvable:$true] %s195_s17 }
  0xdd   :  { %s217_s9 = sshll.u32 %s25432_s27, 4  ;;  %s25162_s2 = scalar_lea.vmem %s196_s17, 32  ;;  %s218_s9 = int_to_ptr.vmem [resolvable:$true] %s217_s9 }
  0xde   :  { %p25163_p10 = scmp.ne.s32.totalorder %s196_s17, %s25162_s2  ;;  %p25167_p11 = scmp.lt.s32.totalorder %s196_s17, %s196_s17 }
  0xdf   :  { %p25168_p12 = scmp.lt.s32.totalorder %s25162_s2, %s25162_s2 }
  0xe1   :  { %178 = dma.hbm_to_vmem [thread:$0]  %s26371_s29, 16384, %s173_s22, [#allocation15], %s25423_s25, %s25423_s25, %s25424_s1  }
  0xe2   :  { %p25169_p13 = por %p25168_p12, %p25167_p11 }
  0xe4   :  { %p25170_p0 = pnand %p25169_p13, %p25163_p10 }
  0xe6   :  { %25173 = shalt.err (!%p25170_p0)
}
  0xe7   :  { %s26372_s7 = sld [smem:[#allocation60_spill]]  ;;  %s25182_s10 = scalar_lea.vmem %s218_s9, 128 }
  0xe8   :  { %p25183_p1 = scmp.ne.s32.totalorder %s218_s9, %s25182_s10  ;;  %p25187_p2 = scmp.lt.s32.totalorder %s218_s9, %s218_s9 }
  0xe9   :  { %p25188_p3 = scmp.lt.s32.totalorder %s25182_s10, %s25182_s10 }
  0xeb   :  { %p25189_p4 = por %p25188_p3, %p25187_p2 }
  0xed   :  { %198 = dma.hbm_to_vmem [thread:$0]  %s26372_s7, 32, %s196_s17, [#allocation18]  }
  0xee   :  { %p25190_p5 = pnand %p25189_p4, %p25183_p1 }
  0xf0   :  { %25193 = shalt.err (!%p25190_p5)
}
  0xf1   :  { %s26373_s3 = sld [smem:[#allocation62_spill]]  ;;  %s25433_s11 = smov [#allocation25]  }
  0xf2   :  { %s239_s4 = sshll.u32 %s25433_s11, 4  ;;  %s25434_s20 = smov [#allocation28]   ;;  %s240_s4 = int_to_ptr.vmem [resolvable:$true] %s239_s4 }
  0xf3   :  { %s261_s14 = sshll.u32 %s25434_s20, 4  ;;  %s25202_s15 = scalar_lea.vmem %s240_s4, 16  ;;  %s262_s14 = int_to_ptr.vmem [resolvable:$true] %s261_s14 }
  0xf4   :  { %p25203_p6 = scmp.ne.s32.totalorder %s240_s4, %s25202_s15  ;;  %s25206_s0 = scalar_lea.vmem %s240_s4, 32 }
  0xf5   :  { %p25207_p7 = scmp.lt.s32.totalorder %s240_s4, %s240_s4  ;;  %p25208_p8 = scmp.lt.s32.totalorder %s25206_s0, %s25202_s15 }
  0xf7   :  { %220 = dma.hbm_to_vmem [thread:$0]  %s26373_s3, 128, %s218_s9, [#allocation21]  }
  0xf8   :  { %p25209_p9 = por %p25208_p8, %p25207_p7 }
  0xfa   :  { %p25210_p10 = pnand %p25209_p9, %p25203_p6 }
  0xfc   :  { %25213 = shalt.err (!%p25210_p10)
}
  0xfd   :  { %s26374_s16 = sld [smem:[#allocation64_spill]]  ;;  %s25222_s30 = scalar_lea.vmem %s262_s14, 16 }
  0xfe   :  { %p25223_p11 = scmp.ne.s32.totalorder %s262_s14, %s25222_s30  ;;  %s25226_s5 = scalar_lea.vmem %s262_s14, 32 }
  0xff   :  { %p25227_p12 = scmp.lt.s32.totalorder %s262_s14, %s262_s14  ;;  %p25228_p13 = scmp.lt.s32.totalorder %s25226_s5, %s25222_s30 }
 0x101   :  { %p25229_p0 = por %p25228_p13, %p25227_p12 }
 0x103   :  { %242 = dma.hbm_to_vmem [thread:$0]  %s26374_s16, 16, %s240_s4, [#allocation24]  }
 0x104   :  { %p25230_p1 = pnand %p25229_p0, %p25223_p11 }
 0x106   :  { %25233 = shalt.err (!%p25230_p1)
}
 0x107   :  { %s26375_s18 = sld [smem:[#allocation65_spill]]  ;;  %s25435_s24 = smov [#allocation31]  }
 0x108   :  { %s282_s22 = sshll.u32 %s25435_s24, 4  ;;  %s25436_s23 = smov [#allocation34]   ;;  %s283_s22 = int_to_ptr.vmem [resolvable:$true] %s282_s22 }
 0x109   :  { %s304_s21 = sshll.u32 %s25436_s23, 4  ;;  %s25242_s26 = scalar_lea.vmem %s283_s22, 65536  ;;  %s305_s21 = int_to_ptr.vmem [resolvable:$true] %s304_s21 }
 0x10a   :  { %p25243_p2 = scmp.ne.s32.totalorder %s283_s22, %s25242_s26  ;;  %p25247_p3 = scmp.lt.s32.totalorder %s283_s22, %s283_s22 }
 0x10b   :  { %p25248_p4 = scmp.lt.s32.totalorder %s25242_s26, %s25242_s26 }
 0x10d   :  { %264 = dma.hbm_to_vmem [thread:$0]  %s26375_s18, 16, %s262_s14, [#allocation27]  }
 0x10e   :  { %p25249_p5 = por %p25248_p4, %p25247_p3 }
 0x110   :  { %p25250_p6 = pnand %p25249_p5, %p25243_p2 }
 0x112   :  { %25253 = shalt.err (!%p25250_p6)
}
 0x113   :  { %s26376_s29 = sld [smem:[#allocation66_spill]]  ;;  %s25262_s28 = scalar_lea.vmem %s305_s21, 8192 }
 0x114   :  { %p25263_p7 = scmp.ne.s32.totalorder %s305_s21, %s25262_s28  ;;  %p25267_p8 = scmp.lt.s32.totalorder %s305_s21, %s305_s21 }
 0x115   :  { %p25268_p9 = scmp.lt.s32.totalorder %s25262_s28, %s25262_s28 }
 0x117   :  { %p25269_p10 = por %p25268_p9, %p25267_p8 }
 0x119   :  { %288 = dma.hbm_to_vmem [thread:$0]  %s26376_s29, 65536, %s283_s22, [#allocation30], %s25423_s25, %s25423_s25, %s25424_s1  }
 0x11a   :  { %p25270_p11 = pnand %p25269_p10, %p25263_p7 }
 0x11c   :  { %25273 = shalt.err (!%p25270_p11)
}
 0x11d   :  { %s25437_s17 = smov 128   ;;  %s26377_s27 = sld [smem:[#allocation67_spill]] }
 0x11e   :  { %s25438_s9 = smov 8   ;;  %s25439_s2 = smov [#allocation37]  }
 0x11f   :  { %s326_s7 = sshll.u32 %s25439_s2, 4  ;;  %s327_s7 = int_to_ptr.vmem [resolvable:$true] %s326_s7 }
 0x120   :  { %s25282_s10 = scalar_lea.vmem %s327_s7, 147456  ;;  %p25287_p13 = scmp.lt.s32.totalorder %s327_s7, %s327_s7 }
 0x121   :  { %p25283_p12 = scmp.ne.s32.totalorder %s327_s7, %s25282_s10  ;;  %p25288_p0 = scmp.lt.s32.totalorder %s25282_s10, %s25282_s10 }
 0x123   :  { %310 = dma.hbm_to_vmem [thread:$0]  %s26377_s27, 8192, %s305_s21, [#allocation33], %s25437_s17, %s25437_s17, %s25438_s9  }
 0x124   :  { %p25289_p1 = por %p25288_p0, %p25287_p13 }
 0x126   :  { %p25290_p2 = pnand %p25289_p1, %p25283_p12 }
 0x128   :  { %25293 = shalt.err (!%p25290_p2)
}
 0x129   :  { %s25440_s25 = smov 576   ;;  %s25441_s1 = smov 36  }
 0x12a   :  { %332 = dma.hbm_to_vmem [thread:$0]  %s25590_s6, 147456, %s327_s7, [#allocation36], %s25440_s25, %s25440_s25, %s25441_s1  }
 0x12b   :  { %25354 = dma.done.wait [#allocation3], 1024  }
 0x12c   :  { %25355 = vsyncadd [#allocation3], 4294966272 }
 0x12d   :  { %25356 = dma.done.wait [#allocation6], 192  }
 0x12e   :  { %25357 = vsyncadd [#allocation6], 4294967104 }
 0x12f   :  { %25358 = dma.done.wait [#allocation9], 32896  }
 0x130   :  { %25359 = vsyncadd [#allocation9], 4294934400 }
 0x131   :  { %25360 = dma.done.wait [#allocation12], 16448  }
 0x132   :  { %25361 = vsyncadd [#allocation12], 4294950848 }
 0x133   :  { %25362 = dma.done.wait [#allocation15], 16448  }
 0x134   :  { %25363 = vsyncadd [#allocation15], 4294950848 }
 0x135   :  { %25364 = dma.done.wait [#allocation18], 96  }
 0x136   :  { %25365 = vsyncadd [#allocation18], 4294967200 }
 0x137   :  { %25366 = dma.done.wait [#allocation21], 144  }
 0x138   :  { %25367 = vsyncadd [#allocation21], 4294967152 }
 0x139   :  { %25368 = dma.done.wait [#allocation24], 48  }
 0x13a   :  { %25369 = vsyncadd [#allocation24], 4294967248 }
 0x13b   :  { %25370 = dma.done.wait [#allocation27], 1040  }
 0x13c   :  { %25371 = vsyncadd [#allocation27], 4294966256 }
 0x13d   :  { %25372 = dma.done.wait [#allocation30], 73728  }
 0x13e   :  { %25373 = vsyncadd [#allocation30], 4294893568 }
 0x13f   :  { %25374 = dma.done.wait [#allocation33], 8256  }
 0x140   :  { %25375 = vsyncadd [#allocation33], 4294959040 }
 0x141   :  { %25376 = dma.done.wait [#allocation36], 147488  }
 0x142   :  { %25377 = vsyncadd [#allocation36], 4294819808  ;;  %v403_v0 = vld [vmem:[#allocation2] sm:$0xff]  ;;  %v404_v1 = vld [vmem:[#allocation2 + $0x8] sm:$0xff]  ;;  %s26378_s6 = sld [smem:[#allocation57_spill]]  ;;  %vm25447_vm0 = vmmov 0  }
 0x143   :  { %v405_v2 = vld [vmem:[#allocation2 + $0x10] sm:$0xff]  ;;  %v411_v3 = vadd.f32 %v404_v1, %v403_v0  ;;  %v406_v4 = vld [vmem:[#allocation2 + $0x18] sm:$0xff]  ;;  %v407_v5 = vld [vmem:[#allocation2 + $0x20] sm:$0xff]  ;;  %s26379_s3 = sld [smem:[#allocation56_spill]]  ;;  %vm4874_vm1 = vcmask 523264  }
 0x144   :  { %v408_v7 = vld [vmem:[#allocation2 + $0x28] sm:$0xff]  ;;  %v409_v9 = vld [vmem:[#allocation2 + $0x30] sm:$0xff]  ;;  %v410_v11 = vld [vmem:[#allocation2 + $0x38] sm:$0xff]  ;;  %s26380_s11 = sld [smem:[#allocation61_spill]] }
 0x145   :  { %v412_v6 = vadd.f32 %v411_v3, %v405_v2  ;;  %v21391_v15 = vld [vmem:[#allocation10 + $0xe4] ss:$16 sps:$4 sm:$0xff]   ;;  %v21395_v17 = vld [vmem:[#allocation10 + $0xe0] ss:$16 sps:$4 sm:$0xff]   ;;  %s26381_s4 = sld [smem:[#allocation63_spill]] }
 0x146   :  { %v21393_v16 = vld [vmem:[#allocation10 + $0x2e4] ss:$16 sps:$4 sm:$0xff]   ;;  %v21396_v18 = vld [vmem:[#allocation10 + $0x2e0] ss:$16 sps:$4 sm:$0xff]   ;;  %2124 = vmatprep.subr.bf16.mxu0 %v21391_v15 }
 0x147   :  { %v413_v8 = vadd.f32 %v412_v6, %v406_v4  ;;  %v21397_v19 = vld [vmem:[#allocation10 + $0xc4] ss:$16 sps:$4 sm:$0xff]   ;;  %2165 = vmatprep.subr.bf16.mxu1 %v21393_v16  ;;  %2125 = vmatpush1.bf16.msra.mxu0 %v21395_v17  ;;  %v21401_v21 = vld [vmem:[#allocation10 + $0xc0] ss:$16 sps:$4 sm:$0xff]  }
 0x148   :  { %v21399_v20 = vld [vmem:[#allocation10 + $0x2c4] ss:$16 sps:$4 sm:$0xff]   ;;  %2166 = vmatpush1.bf16.msra.mxu1 %v21396_v18  ;;  %v21402_v22 = vld [vmem:[#allocation10 + $0x2c0] ss:$16 sps:$4 sm:$0xff]   ;;  %2126 = vmatprep.subr.bf16.mxu0 %v21397_v19 }
 0x149   :  { %v414_v10 = vadd.f32 %v413_v8, %v407_v5  ;;  %2167 = vmatprep.subr.bf16.mxu1 %v21399_v20  ;;  %v21403_v23 = vld [vmem:[#allocation10 + $0xa4] ss:$16 sps:$4 sm:$0xff]   ;;  %v21407_v25 = vld [vmem:[#allocation10 + $0xa0] ss:$16 sps:$4 sm:$0xff]  }
 0x14a   :  { %v21405_v24 = vld [vmem:[#allocation10 + $0x2a4] ss:$16 sps:$4 sm:$0xff]   ;;  %v21408_v26 = vld [vmem:[#allocation10 + $0x2a0] ss:$16 sps:$4 sm:$0xff]  }
 0x14b   :  { %v415_v12 = vadd.f32 %v414_v10, %v408_v7  ;;  %2127 = vmatpush1.bf16.msra.mxu0 %v21401_v21  ;;  %v21409_v27 = vld [vmem:[#allocation10 + $0x84] ss:$16 sps:$4 sm:$0xff]   ;;  %v21413_v29 = vld [vmem:[#allocation10 + $0x80] ss:$16 sps:$4 sm:$0xff]  }
 0x14c   :  { %2168 = vmatpush1.bf16.msra.mxu1 %v21402_v22  ;;  %2128 = vmatprep.subr.bf16.mxu0 %v21403_v23  ;;  %v21411_v28 = vld [vmem:[#allocation10 + $0x284] ss:$16 sps:$4 sm:$0xff]   ;;  %v21414_v30 = vld [vmem:[#allocation10 + $0x280] ss:$16 sps:$4 sm:$0xff]  }
 0x14d   :  { %v416_v13 = vadd.f32 %v415_v12, %v409_v9  ;;  %2169 = vmatprep.subr.bf16.mxu1 %v21405_v24  ;;  %v21415_v31 = vld [vmem:[#allocation10 + $0x64] ss:$16 sps:$4 sm:$0xff]   ;;  %v21419_v33 = vld [vmem:[#allocation10 + $0x60] ss:$16 sps:$4 sm:$0xff]  }
 0x14e   :  { %v21417_v32 = vld [vmem:[#allocation10 + $0x264] ss:$16 sps:$4 sm:$0xff]   ;;  %v21420_v34 = vld [vmem:[#allocation10 + $0x260] ss:$16 sps:$4 sm:$0xff]  }
 0x14f   :  { %v417_v14 = vadd.f32 %v416_v13, %v410_v11  ;;  %2129 = vmatpush1.bf16.msra.mxu0 %v21407_v25  ;;  %v21421_v35 = vld [vmem:[#allocation10 + $0x44] ss:$16 sps:$4 sm:$0xff]   ;;  %v21425_v37 = vld [vmem:[#allocation10 + $0x40] ss:$16 sps:$4 sm:$0xff]  }
 0x150   :  { %2170 = vmatpush1.bf16.msra.mxu1 %v21408_v26  ;;  %2130 = vmatprep.subr.bf16.mxu0 %v21409_v27  ;;  %v21423_v36 = vld [vmem:[#allocation10 + $0x244] ss:$16 sps:$4 sm:$0xff]   ;;  %v21426_v38 = vld [vmem:[#allocation10 + $0x240] ss:$16 sps:$4 sm:$0xff]  }
 0x151   :  { %418 = vadd.xlane.f32.xlu0 %v417_v14  ;;  %2171 = vmatprep.subr.bf16.mxu1 %v21411_v28  ;;  %v21427_v39 = vld [vmem:[#allocation10 + $0x24] ss:$16 sps:$4 sm:$0xff]   ;;  %v21431_v41 = vld [vmem:[#allocation10 + $0x20] ss:$16 sps:$4 sm:$0xff]  }
 0x152   :  { %v21429_v40 = vld [vmem:[#allocation10 + $0x224] ss:$16 sps:$4 sm:$0xff]   ;;  %v21432_v42 = vld [vmem:[#allocation10 + $0x220] ss:$16 sps:$4 sm:$0xff]  }
 0x153   :  { %2131 = vmatpush1.bf16.msra.mxu0 %v21413_v29  ;;  %v21433_v43 = vld [vmem:[#allocation10 + $0x4] ss:$16 sps:$4 sm:$0xff]   ;;  %v21437_v45 = vld [vmem:[#allocation10] ss:$16 sps:$4 sm:$0xff]  }
 0x154   :  { %2172 = vmatpush1.bf16.msra.mxu1 %v21414_v30  ;;  %2132 = vmatprep.subr.bf16.mxu0 %v21415_v31  ;;  %v21435_v44 = vld [vmem:[#allocation10 + $0x204] ss:$16 sps:$4 sm:$0xff]   ;;  %v21438_v46 = vld [vmem:[#allocation10 + $0x200] ss:$16 sps:$4 sm:$0xff]  }
 0x155   :  { %2173 = vmatprep.subr.bf16.mxu1 %v21417_v32  ;;  %v21439_v47 = vld [vmem:[#allocation10 + $0x1e4] ss:$16 sps:$4 sm:$0xff]   ;;  %v21443_v49 = vld [vmem:[#allocation10 + $0x1e0] ss:$16 sps:$4 sm:$0xff]  }
 0x156   :  { %v21441_v48 = vld [vmem:[#allocation10 + $0x3e4] ss:$16 sps:$4 sm:$0xff]   ;;  %v21444_v50 = vld [vmem:[#allocation10 + $0x3e0] ss:$16 sps:$4 sm:$0xff]  }
 0x157   :  { %2133 = vmatpush1.bf16.msra.mxu0 %v21419_v33  ;;  %v21445_v51 = vld [vmem:[#allocation10 + $0x1c4] ss:$16 sps:$4 sm:$0xff]   ;;  %v21449_v53 = vld [vmem:[#allocation10 + $0x1c0] ss:$16 sps:$4 sm:$0xff]  }
 0x158   :  { %2174 = vmatpush1.bf16.msra.mxu1 %v21420_v34  ;;  %2134 = vmatprep.subr.bf16.mxu0 %v21421_v35  ;;  %v21447_v52 = vld [vmem:[#allocation10 + $0x3c4] ss:$16 sps:$4 sm:$0xff]   ;;  %v21450_v54 = vld [vmem:[#allocation10 + $0x3c0] ss:$16 sps:$4 sm:$0xff]  }
 0x159   :  { %2175 = vmatprep.subr.bf16.mxu1 %v21423_v36  ;;  %v24825_v57 = vld [vmem:[#allocation2] sm:$0xff]  ;;  %v24826_v59 = vld [vmem:[#allocation2 + $0x8] sm:$0xff]  ;;  %v24827_v61 = vld [vmem:[#allocation2 + $0x10] sm:$0xff] }
 0x15a   :  { %v24828_v63 = vld [vmem:[#allocation2 + $0x18] sm:$0xff]  ;;  %v24829_v3 = vld [vmem:[#allocation2 + $0x20] sm:$0xff]  ;;  %v24830_v7 = vld [vmem:[#allocation2 + $0x28] sm:$0xff] }
 0x15b   :  { %2135 = vmatpush1.bf16.msra.mxu0 %v21425_v37  ;;  %v24831_v11 = vld [vmem:[#allocation2 + $0x30] sm:$0xff]  ;;  %v24832_v15 = vld [vmem:[#allocation2 + $0x38] sm:$0xff] }
 0x15c   :  { %2176 = vmatpush1.bf16.msra.mxu1 %v21426_v38  ;;  %2136 = vmatprep.subr.bf16.mxu0 %v21427_v39  ;;  %v21451_v24 = vld [vmem:[#allocation10 + $0x1a4] ss:$16 sps:$4 sm:$0xff]   ;;  %v21455_v26 = vld [vmem:[#allocation10 + $0x1a0] ss:$16 sps:$4 sm:$0xff]  }
 0x15d   :  { %2177 = vmatprep.subr.bf16.mxu1 %v21429_v40  ;;  %v21453_v25 = vld [vmem:[#allocation10 + $0x3a4] ss:$16 sps:$4 sm:$0xff]   ;;  %v21456_v27 = vld [vmem:[#allocation10 + $0x3a0] ss:$16 sps:$4 sm:$0xff]  }
 0x15e   :  { %v21457_v28 = vld [vmem:[#allocation10 + $0x184] ss:$16 sps:$4 sm:$0xff]   ;;  %v21461_v30 = vld [vmem:[#allocation10 + $0x180] ss:$16 sps:$4 sm:$0xff]  }
 0x15f   :  { %2137 = vmatpush1.bf16.msra.mxu0 %v21431_v41  ;;  %v21459_v29 = vld [vmem:[#allocation10 + $0x384] ss:$16 sps:$4 sm:$0xff]   ;;  %v21462_v31 = vld [vmem:[#allocation10 + $0x380] ss:$16 sps:$4 sm:$0xff]  }
 0x160   :  { %2178 = vmatpush1.bf16.msra.mxu1 %v21432_v42  ;;  %2138 = vmatprep.subr.bf16.mxu0 %v21433_v43  ;;  %v21463_v32 = vld [vmem:[#allocation10 + $0x164] ss:$16 sps:$4 sm:$0xff]   ;;  %v21467_v34 = vld [vmem:[#allocation10 + $0x160] ss:$16 sps:$4 sm:$0xff]  }
 0x161   :  { %2179 = vmatprep.subr.bf16.mxu1 %v21435_v44  ;;  %v21465_v33 = vld [vmem:[#allocation10 + $0x364] ss:$16 sps:$4 sm:$0xff]   ;;  %v21468_v35 = vld [vmem:[#allocation10 + $0x360] ss:$16 sps:$4 sm:$0xff]  }
 0x162   :  { %v21469_v36 = vld [vmem:[#allocation10 + $0x144] ss:$16 sps:$4 sm:$0xff]   ;;  %v21473_v38 = vld [vmem:[#allocation10 + $0x140] ss:$16 sps:$4 sm:$0xff]  }
 0x163   :  { %2139 = vmatpush1.bf16.msra.mxu0 %v21437_v45  ;;  %v21471_v37 = vld [vmem:[#allocation10 + $0x344] ss:$16 sps:$4 sm:$0xff]   ;;  %v21474_v39 = vld [vmem:[#allocation10 + $0x340] ss:$16 sps:$4 sm:$0xff]  }
 0x164   :  { %2180 = vmatpush1.bf16.msra.mxu1 %v21438_v46  ;;  %2140 = vmatprep.subr.bf16.mxu0 %v21439_v47  ;;  %v21475_v40 = vld [vmem:[#allocation10 + $0x124] ss:$16 sps:$4 sm:$0xff]   ;;  %v21479_v42 = vld [vmem:[#allocation10 + $0x120] ss:$16 sps:$4 sm:$0xff]  }
 0x165   :  { %2181 = vmatprep.subr.bf16.mxu1 %v21441_v48  ;;  %v21477_v41 = vld [vmem:[#allocation10 + $0x324] ss:$16 sps:$4 sm:$0xff]   ;;  %v21480_v43 = vld [vmem:[#allocation10 + $0x320] ss:$16 sps:$4 sm:$0xff]  }
 0x166   :  { %v21481_v44 = vld [vmem:[#allocation10 + $0x104] ss:$16 sps:$4 sm:$0xff]   ;;  %v21485_v46 = vld [vmem:[#allocation10 + $0x100] ss:$16 sps:$4 sm:$0xff]  }
 0x167   :  { %2141 = vmatpush2.bf16.msra.mxu0 %v21443_v49  ;;  %v21483_v45 = vld [vmem:[#allocation10 + $0x304] ss:$16 sps:$4 sm:$0xff]   ;;  %v21486_v47 = vld [vmem:[#allocation10 + $0x300] ss:$16 sps:$4 sm:$0xff]  }
 0x168   :  { %2182 = vmatpush2.bf16.msra.mxu1 %v21444_v50  ;;  %2142 = vmatprep.subr.bf16.mxu0 %v21445_v51  ;;  %v21489_v48 = vld [vmem:[#allocation10 + $0x4e4] ss:$16 sps:$4 sm:$0xff]  }
 0x169   :  { %2183 = vmatprep.subr.bf16.mxu1 %v21447_v52  ;;  %v21492_v49 = vld [vmem:[#allocation10 + $0x6e4] ss:$16 sps:$4 sm:$0xff]   ;;  %v460_v52 = vlaneseq }
 0x16b   :  { %2143 = vmatpush2.bf16.msra.mxu0 %v21449_v53 }
 0x16c   :  { %2184 = vmatpush2.bf16.msra.mxu1 %v21450_v54  ;;  %2144 = vmatprep.subr.bf16.mxu0 %v21451_v24  ;;  %v25679_v54 = vshrl.u32 %v460_v52, 7 }
 0x16d   :  { %2185 = vmatprep.subr.bf16.mxu1 %v21453_v25 }
 0x16f   :  { %2145 = vmatpush2.bf16.msra.mxu0 %v21455_v26 }
 0x170   :  { %2186 = vmatpush2.bf16.msra.mxu1 %v21456_v27  ;;  %2146 = vmatprep.subr.bf16.mxu0 %v21457_v28 }
 0x171   :  { %2187 = vmatprep.subr.bf16.mxu1 %v21459_v29 }
 0x173   :  { %2147 = vmatpush2.bf16.msra.mxu0 %v21461_v30 }
 0x174   :  { %2188 = vmatpush2.bf16.msra.mxu1 %v21462_v31  ;;  %2148 = vmatprep.subr.bf16.mxu0 %v21463_v32 }
 0x175   :  { %2189 = vmatprep.subr.bf16.mxu1 %v21465_v33 }
 0x177   :  { %2149 = vmatpush2.bf16.msra.mxu0 %v21467_v34 }
 0x178   :  { %2190 = vmatpush2.bf16.msra.mxu1 %v21468_v35  ;;  %2150 = vmatprep.subr.bf16.mxu0 %v21469_v36 }
 0x179   :  { %2191 = vmatprep.subr.bf16.mxu1 %v21471_v37 }
 0x17b   :  { %2151 = vmatpush2.bf16.msra.mxu0 %v21473_v38 }
 0x17c   :  { %2192 = vmatpush2.bf16.msra.mxu1 %v21474_v39  ;;  %2152 = vmatprep.subr.bf16.mxu0 %v21475_v40 }
 0x17d   :  { %2193 = vmatprep.subr.bf16.mxu1 %v21477_v41  ;;  %v21487_v41 = vld [vmem:[#allocation10 + $0x4e0] ss:$16 sps:$4 sm:$0xff]  }
 0x17f   :  { %2153 = vmatpush2.bf16.msra.mxu0 %v21479_v42 }
 0x180   :  { %2194 = vmatpush2.bf16.msra.mxu1 %v21480_v43  ;;  %2154 = vmatprep.subr.bf16.mxu0 %v21481_v44 }
 0x181   :  { %2195 = vmatprep.subr.bf16.mxu1 %v21483_v45 }
 0x183   :  { %2155 = vmatpush2.bf16.msra.mxu0 %v21485_v46 }
 0x184   :  { %2196 = vmatpush2.bf16.msra.mxu1 %v21486_v47  ;;  %2206 = vmatprep.subr.bf16.mxu0 %v21489_v48  ;;  %v21495_v48 = vld [vmem:[#allocation10 + $0x4c4] ss:$16 sps:$4 sm:$0xff]  }
 0x185   :  { %2247 = vmatprep.subr.bf16.mxu1 %v21492_v49  ;;  %v21493_v49 = vld [vmem:[#allocation10 + $0x4c0] ss:$16 sps:$4 sm:$0xff]  }
 0x1da   :  { %v419_v55 = vpop.xlane.xlu0 %418 }
 0x1db   :  { %v421_v56 = vmul.f32 0.0009765625, %v419_v55  ;;  %v458_v55 = vld [vmem:[#allocation7] sm:$0xff] }
 0x1dd   :  { %v25647_v58 = vsub.f32 %v24825_v57, %v421_v56  ;;  %v25649_v60 = vsub.f32 %v24826_v59, %v421_v56  ;;  %v25651_v62 = vsub.f32 %v24827_v61, %v421_v56  ;;  %v25653_v0 = vsub.f32 %v24828_v63, %v421_v56  ;;  %v508_v57 = vld [vmem:[#allocation8] sm:$0xff] }
 0x1de   :  { %v25659_v4 = vsub.f32 %v24829_v3, %v421_v56  ;;  %v25663_v8 = vsub.f32 %v24830_v7, %v421_v56  ;;  %v25667_v12 = vsub.f32 %v24831_v11, %v421_v56  ;;  %v25671_v16 = vsub.f32 %v24832_v15, %v421_v56 }
 0x1df   :  { %v430_v1 = vmul.f32 %v25647_v58, %v25647_v58  ;;  %v431_v2 = vmul.f32 %v25649_v60, %v25649_v60  ;;  %v432_v5 = vmul.f32 %v25651_v62, %v25651_v62  ;;  %v433_v9 = vmul.f32 %v25653_v0, %v25653_v0 }
 0x1e0   :  { %v434_v13 = vmul.f32 %v25659_v4, %v25659_v4  ;;  %v435_v17 = vmul.f32 %v25663_v8, %v25663_v8  ;;  %v436_v19 = vmul.f32 %v25667_v12, %v25667_v12  ;;  %v437_v21 = vmul.f32 %v25671_v16, %v25671_v16 }
 0x1e1   :  { %v438_v6 = vadd.f32 %v431_v2, %v430_v1  ;;  %v25682_v56 = vsub.s32 1, %v25679_v54  ;;  %v25685_v59 = vsub.s32 3, %v25679_v54  ;;  %v25688_v61 = vsub.s32 0, %v25679_v54 }
 0x1e2   :  { %v25691_v63 = vsub.s32 2, %v25679_v54  ;;  %v482_v1 = vsub.s32 5, %v25679_v54  ;;  %v490_v2 = vsub.s32 7, %v25679_v54  ;;  %v478_v3 = vsub.s32 4, %v25679_v54 }
 0x1e3   :  { %v439_v10 = vadd.f32 %v438_v6, %v432_v5  ;;  %v486_v5 = vsub.s32 6, %v25679_v54  ;;  %v467_v6 = vrot.slane %v458_v55, %v25682_v56  ;;  %v475_v7 = vrot.slane %v458_v55, %v25685_v59 }
 0x1e4   :  { %v517_v11 = vrot.slane %v508_v57, %v25682_v56  ;;  %v479_v15 = vrot.slane %v458_v55, %v478_v3 }
 0x1e5   :  { %v440_v14 = vadd.f32 %v439_v10, %v433_v9  ;;  %v463_v9 = vrot.slane %v458_v55, %v25688_v61  ;;  %v471_v10 = vrot.slane %v458_v55, %v25691_v63  ;;  %v487_v24 = vrot.slane %v458_v55, %v486_v5 }
 0x1e6   :  { %v537_v25 = vrot.slane %v508_v57, %v486_v5  ;;  %v21510_v5 = vld [vmem:[#allocation10 + $0x684] ss:$16 sps:$4 sm:$0xff]  }
 0x1e7   :  { %v441_v18 = vadd.f32 %v440_v14, %v434_v13  ;;  %v483_v13 = vrot.slane %v458_v55, %v482_v1  ;;  %v491_v14 = vrot.slane %v458_v55, %v490_v2  ;;  %v21501_v55 = vld [vmem:[#allocation10 + $0x4a4] ss:$16 sps:$4 sm:$0xff]  }
 0x1e9   :  { %v442_v20 = vadd.f32 %v441_v18, %v435_v17  ;;  %v525_v17 = vrot.slane %v508_v57, %v25685_v59  ;;  %v513_v18 = vrot.slane %v508_v57, %v25688_v61 }
 0x1eb   :  { %v443_v22 = vadd.f32 %v442_v20, %v436_v19  ;;  %v521_v19 = vrot.slane %v508_v57, %v25691_v63  ;;  %v533_v20 = vrot.slane %v508_v57, %v482_v1  ;;  %v21499_v1 = vld [vmem:[#allocation10 + $0x4a0] ss:$16 sps:$4 sm:$0xff]  }
 0x1ed   :  { %v444_v23 = vadd.f32 %v443_v22, %v437_v21  ;;  %v541_v22 = vrot.slane %v508_v57, %v490_v2  ;;  %v21502_v2 = vld [vmem:[#allocation10 + $0x6a0] ss:$16 sps:$4 sm:$0xff]  }
 0x1ef   :  { %445 = vadd.xlane.f32.xlu0 %v444_v23  ;;  %v529_v23 = vrot.slane %v508_v57, %v478_v3  ;;  %v21504_v57 = vld [vmem:[#allocation10 + $0x6a4] ss:$16 sps:$4 sm:$0xff]  }
 0x1f0   :  { %v21507_v3 = vld [vmem:[#allocation10 + $0x484] ss:$16 sps:$4 sm:$0xff]  }
 0x278   :  { %v446_v50 = vpop.xlane.xlu0 %445 }
 0x279   :  { %v447_v51 = vmul.f32 0.0009765625, %v446_v50  ;;  %v21496_v50 = vld [vmem:[#allocation10 + $0x6c0] ss:$16 sps:$4 sm:$0xff]  }
 0x27b   :  { %v448_v53 = vadd.f32 1e-05, %v447_v51  ;;  %v21498_v51 = vld [vmem:[#allocation10 + $0x6c4] ss:$16 sps:$4 sm:$0xff]  }
 0x27d   :  { %24823 = vrsqrt.f32 %v448_v53 }
 0x28a   :  { %v24824_v21 = vpop.eup %24823 }
 0x28b   :  { %v451_v26 = vmul.f32 %v24824_v21, %v25649_v60  ;;  %v453_v27 = vmul.f32 %v24824_v21, %v25653_v0  ;;  %v450_v28 = vmul.f32 %v24824_v21, %v25647_v58  ;;  %v452_v29 = vmul.f32 %v24824_v21, %v25651_v62  ;;  %v21490_v62 = vld [vmem:[#allocation10 + $0x6e0] ss:$16 sps:$4 sm:$0xff]  }
 0x28c   :  { %v455_v30 = vmul.f32 %v24824_v21, %v25663_v8  ;;  %v457_v31 = vmul.f32 %v24824_v21, %v25671_v16  ;;  %v454_v32 = vmul.f32 %v24824_v21, %v25659_v4  ;;  %v456_v33 = vmul.f32 %v24824_v21, %v25667_v12  ;;  %v21523_v21 = vld [vmem:[#allocation10 + $0x420] ss:$16 sps:$4 sm:$0xff]  }
 0x28d   :  { %v501_v34 = vmul.f32 %v467_v6, %v451_v26  ;;  %v503_v35 = vmul.f32 %v475_v7, %v453_v27  ;;  %v500_v36 = vmul.f32 %v463_v9, %v450_v28  ;;  %v502_v37 = vmul.f32 %v471_v10, %v452_v29  ;;  %v21505_v6 = vld [vmem:[#allocation10 + $0x480] ss:$16 sps:$4 sm:$0xff]   ;;  %v21513_v9 = vld [vmem:[#allocation10 + $0x464] ss:$16 sps:$4 sm:$0xff]  }
 0x28e   :  { %v505_v38 = vmul.f32 %v483_v13, %v455_v30  ;;  %v507_v60 = vmul.f32 %v491_v14, %v457_v31  ;;  %v504_v39 = vmul.f32 %v479_v15, %v454_v32  ;;  %v506_v0 = vmul.f32 %v487_v24, %v456_v33  ;;  %v21508_v7 = vld [vmem:[#allocation10 + $0x680] ss:$16 sps:$4 sm:$0xff]   ;;  %v21516_v10 = vld [vmem:[#allocation10 + $0x664] ss:$16 sps:$4 sm:$0xff]  }
 0x28f   :  { %v551_v40 = vadd.f32 %v517_v11, %v501_v34  ;;  %v553_v58 = vadd.f32 %v525_v17, %v503_v35  ;;  %v550_v42 = vadd.f32 %v513_v18, %v500_v36  ;;  %v552_v8 = vadd.f32 %v521_v19, %v502_v37  ;;  %v21511_v11 = vld [vmem:[#allocation10 + $0x460] ss:$16 sps:$4 sm:$0xff]   ;;  %v21519_v14 = vld [vmem:[#allocation10 + $0x444] ss:$16 sps:$4 sm:$0xff]  }
 0x290   :  { %v555_v43 = vadd.f32 %v533_v20, %v505_v38  ;;  %v557_v16 = vadd.f32 %v541_v22, %v507_v60  ;;  %v25713_v44 = vadd.f32 %v529_v23, %v504_v39  ;;  %v25715_v4 = vadd.f32 %v537_v25, %v506_v0  ;;  %v21514_v13 = vld [vmem:[#allocation10 + $0x660] ss:$16 sps:$4 sm:$0xff]   ;;  %v21522_v15 = vld [vmem:[#allocation10 + $0x644] ss:$16 sps:$4 sm:$0xff]  }
 0x291   :  { %v25717_v12 = vpack.c.bf16 %v551_v40, %v551_v40  ;;  %v25719_v45 = vpack.c.bf16 %v553_v58, %v553_v58  ;;  %v25721_v46 = vpack.c.bf16 %v550_v42, %v550_v42  ;;  %v25723_v47 = vpack.c.bf16 %v552_v8, %v552_v8  ;;  %v21517_v17 = vld [vmem:[#allocation10 + $0x440] ss:$16 sps:$4 sm:$0xff]   ;;  %v21525_v19 = vld [vmem:[#allocation10 + $0x424] ss:$16 sps:$4 sm:$0xff]  }
 0x292   :  { %v25729_v52 = vpack.c.bf16 %v555_v43, %v555_v43  ;;  %v25731_v53 = vpack.c.bf16 %v557_v16, %v557_v16  ;;  %v21520_v18 = vld [vmem:[#allocation10 + $0x640] ss:$16 sps:$4 sm:$0xff]   ;;  %v21528_v20 = vld [vmem:[#allocation10 + $0x624] ss:$16 sps:$4 sm:$0xff]  }
 0x293   :  { %2156 = vmatprep.mubr.bf16.mxu0 %v25717_v12  ;;  %2197 = vmatprep.mubr.bf16.mxu1 %v25719_v45  ;;  %v21526_v22 = vld [vmem:[#allocation10 + $0x620] ss:$16 sps:$4 sm:$0xff]   ;;  %v21531_v23 = vld [vmem:[#allocation10 + $0x404] ss:$16 sps:$4 sm:$0xff]  }
 0x294   :  { %2157 = vmatmul.mubr.bf16.vlgmr.msra.gmra.mxu0 %v25721_v46  ;;  %2198 = vmatmul.mubr.bf16.vlgmr.msra.gmra.mxu1 %v25723_v47  ;;  %v21534_v24 = vld [vmem:[#allocation10 + $0x604] ss:$16 sps:$4 sm:$0xff]   ;;  %v21529_v25 = vld [vmem:[#allocation10 + $0x400] ss:$16 sps:$4 sm:$0xff]  }
 0x295   :  { %2207 = vmatpush1.bf16.msra.mxu0 %v21487_v41  ;;  %2248 = vmatpush1.bf16.msra.mxu1 %v21490_v62  ;;  %v21532_v26 = vld [vmem:[#allocation10 + $0x600] ss:$16 sps:$4 sm:$0xff]   ;;  %v21537_v27 = vld [vmem:[#allocation10 + $0x5e4] ss:$16 sps:$4 sm:$0xff]  }
 0x296   :  { %2238 = vmatprep.mubr.bf16.mxu0 %v25729_v52  ;;  %2279 = vmatprep.mubr.bf16.mxu1 %v25731_v53  ;;  %v21540_v28 = vld [vmem:[#allocation10 + $0x7e4] ss:$16 sps:$4 sm:$0xff]   ;;  %v21535_v29 = vld [vmem:[#allocation10 + $0x5e0] ss:$16 sps:$4 sm:$0xff]  }
 0x297   :  { %2208 = vmatprep.subr.bf16.mxu0 %v21495_v48  ;;  %2249 = vmatprep.subr.bf16.mxu1 %v21498_v51  ;;  %v21538_v30 = vld [vmem:[#allocation10 + $0x7e0] ss:$16 sps:$4 sm:$0xff]   ;;  %v21543_v31 = vld [vmem:[#allocation10 + $0x5c4] ss:$16 sps:$4 sm:$0xff]  }
 0x298   :  { %v21546_v32 = vld [vmem:[#allocation10 + $0x7c4] ss:$16 sps:$4 sm:$0xff]   ;;  %v21541_v33 = vld [vmem:[#allocation10 + $0x5c0] ss:$16 sps:$4 sm:$0xff]  }
 0x299   :  { %2209 = vmatpush1.bf16.msra.mxu0 %v21493_v49  ;;  %2250 = vmatpush1.bf16.msra.mxu1 %v21496_v50  ;;  %v21544_v34 = vld [vmem:[#allocation10 + $0x7c0] ss:$16 sps:$4 sm:$0xff]   ;;  %v21549_v35 = vld [vmem:[#allocation10 + $0x5a4] ss:$16 sps:$4 sm:$0xff]  }
 0x29a   :  { %2210 = vmatprep.subr.bf16.mxu0 %v21501_v55  ;;  %2251 = vmatprep.subr.bf16.mxu1 %v21504_v57  ;;  %v21552_v36 = vld [vmem:[#allocation10 + $0x7a4] ss:$16 sps:$4 sm:$0xff]   ;;  %v21547_v37 = vld [vmem:[#allocation10 + $0x5a0] ss:$16 sps:$4 sm:$0xff]  }
 0x29b   :  { %v21550_v38 = vld [vmem:[#allocation10 + $0x7a0] ss:$16 sps:$4 sm:$0xff]   ;;  %v21555_v60 = vld [vmem:[#allocation10 + $0x584] ss:$16 sps:$4 sm:$0xff]  }
 0x29c   :  { %v21558_v39 = vld [vmem:[#allocation10 + $0x784] ss:$16 sps:$4 sm:$0xff]   ;;  %v21553_v0 = vld [vmem:[#allocation10 + $0x580] ss:$16 sps:$4 sm:$0xff]  }
 0x29d   :  { %2211 = vmatpush1.bf16.msra.mxu0 %v21499_v1  ;;  %2252 = vmatpush1.bf16.msra.mxu1 %v21502_v2  ;;  %v21556_v40 = vld [vmem:[#allocation10 + $0x780] ss:$16 sps:$4 sm:$0xff]   ;;  %v21561_v58 = vld [vmem:[#allocation10 + $0x564] ss:$16 sps:$4 sm:$0xff]  }
 0x29e   :  { %2212 = vmatprep.subr.bf16.mxu0 %v21507_v3  ;;  %2253 = vmatprep.subr.bf16.mxu1 %v21510_v5  ;;  %v21564_v41 = vld [vmem:[#allocation10 + $0x764] ss:$16 sps:$4 sm:$0xff]   ;;  %v21559_v62 = vld [vmem:[#allocation10 + $0x560] ss:$16 sps:$4 sm:$0xff]   ;;  %v21585_v5 = vld [vmem:[#allocation10 + $0xec] ss:$16 sps:$4 sm:$0xff]  }
 0x29f   :  { %v21562_v42 = vld [vmem:[#allocation10 + $0x760] ss:$16 sps:$4 sm:$0xff]   ;;  %v21567_v8 = vld [vmem:[#allocation10 + $0x544] ss:$16 sps:$4 sm:$0xff]  }
 0x2a0   :  { %v21570_v43 = vld [vmem:[#allocation10 + $0x744] ss:$16 sps:$4 sm:$0xff]   ;;  %v21565_v16 = vld [vmem:[#allocation10 + $0x540] ss:$16 sps:$4 sm:$0xff]  }
 0x2a1   :  { %2213 = vmatpush1.bf16.msra.mxu0 %v21505_v6  ;;  %2254 = vmatpush1.bf16.msra.mxu1 %v21508_v7  ;;  %v21568_v48 = vld [vmem:[#allocation10 + $0x740] ss:$16 sps:$4 sm:$0xff]   ;;  %v21573_v49 = vld [vmem:[#allocation10 + $0x524] ss:$16 sps:$4 sm:$0xff]   ;;  %v21588_v6 = vld [vmem:[#allocation10 + $0x2ec] ss:$16 sps:$4 sm:$0xff]  }
 0x2a2   :  { %2214 = vmatprep.subr.bf16.mxu0 %v21513_v9  ;;  %2255 = vmatprep.subr.bf16.mxu1 %v21516_v10  ;;  %v21576_v50 = vld [vmem:[#allocation10 + $0x724] ss:$16 sps:$4 sm:$0xff]   ;;  %v21571_v51 = vld [vmem:[#allocation10 + $0x520] ss:$16 sps:$4 sm:$0xff]   ;;  %v21583_v7 = vld [vmem:[#allocation10 + $0xe8] ss:$16 sps:$4 sm:$0xff]  }
 0x2a3   :  { %v21574_v55 = vld [vmem:[#allocation10 + $0x720] ss:$16 sps:$4 sm:$0xff]   ;;  %v21579_v57 = vld [vmem:[#allocation10 + $0x504] ss:$16 sps:$4 sm:$0xff]   ;;  %v21586_v9 = vld [vmem:[#allocation10 + $0x2e8] ss:$16 sps:$4 sm:$0xff]  }
 0x2a4   :  { %v21582_v1 = vld [vmem:[#allocation10 + $0x704] ss:$16 sps:$4 sm:$0xff]   ;;  %v21577_v2 = vld [vmem:[#allocation10 + $0x500] ss:$16 sps:$4 sm:$0xff]   ;;  %v21591_v10 = vld [vmem:[#allocation10 + $0xcc] ss:$16 sps:$4 sm:$0xff]  }
 0x2a5   :  { %2215 = vmatpush1.bf16.msra.mxu0 %v21511_v11  ;;  %2256 = vmatpush1.bf16.msra.mxu1 %v21514_v13  ;;  %v21580_v3 = vld [vmem:[#allocation10 + $0x700] ss:$16 sps:$4 sm:$0xff]   ;;  %v21594_v11 = vld [vmem:[#allocation10 + $0x2cc] ss:$16 sps:$4 sm:$0xff]   ;;  %v25737_v13 = vpack.c.bf16 %v25713_v44, %v25713_v44  ;;  %v21595_v44 = vld [vmem:[#allocation10 + $0xa8] ss:$16 sps:$4 sm:$0xff]  }
 0x2a6   :  { %2216 = vmatprep.subr.bf16.mxu0 %v21519_v14  ;;  %2257 = vmatprep.subr.bf16.mxu1 %v21522_v15  ;;  %v25741_v14 = vpack.c.bf16 %v25715_v4, %v25715_v4  ;;  %v21589_v15 = vld [vmem:[#allocation10 + $0xc8] ss:$16 sps:$4 sm:$0xff]  }
 0x2a7   :  { %v21598_v4 = vld [vmem:[#allocation10 + $0x2a8] ss:$16 sps:$4 sm:$0xff]  }
 0x2a9   :  { %2217 = vmatpush1.bf16.msra.mxu0 %v21517_v17  ;;  %2258 = vmatpush1.bf16.msra.mxu1 %v21520_v18  ;;  %v21592_v17 = vld [vmem:[#allocation10 + $0x2c8] ss:$16 sps:$4 sm:$0xff]   ;;  %v21597_v18 = vld [vmem:[#allocation10 + $0xac] ss:$16 sps:$4 sm:$0xff]  }
 0x2aa   :  { %2218 = vmatprep.subr.bf16.mxu0 %v21525_v19  ;;  %2259 = vmatprep.subr.bf16.mxu1 %v21528_v20  ;;  %v21600_v19 = vld [vmem:[#allocation10 + $0x2ac] ss:$16 sps:$4 sm:$0xff]  }
 0x2ab   :  { %v21603_v20 = vld [vmem:[#allocation10 + $0x8c] ss:$16 sps:$4 sm:$0xff]  }
 0x2ad   :  { %2219 = vmatpush1.bf16.msra.mxu0 %v21523_v21  ;;  %2260 = vmatpush1.bf16.msra.mxu1 %v21526_v22  ;;  %v21601_v21 = vld [vmem:[#allocation10 + $0x88] ss:$16 sps:$4 sm:$0xff]   ;;  %v21606_v22 = vld [vmem:[#allocation10 + $0x28c] ss:$16 sps:$4 sm:$0xff]  }
 0x2ae   :  { %2220 = vmatprep.subr.bf16.mxu0 %v21531_v23  ;;  %2261 = vmatprep.subr.bf16.mxu1 %v21534_v24  ;;  %v21604_v23 = vld [vmem:[#allocation10 + $0x288] ss:$16 sps:$4 sm:$0xff]   ;;  %v21609_v24 = vld [vmem:[#allocation10 + $0x6c] ss:$16 sps:$4 sm:$0xff]  }
 0x2b1   :  { %2221 = vmatpush1.bf16.msra.mxu0 %v21529_v25  ;;  %2262 = vmatpush1.bf16.msra.mxu1 %v21532_v26  ;;  %v21612_v25 = vld [vmem:[#allocation10 + $0x26c] ss:$16 sps:$4 sm:$0xff]  }
 0x2b2   :  { %2222 = vmatprep.subr.bf16.mxu0 %v21537_v27  ;;  %2263 = vmatprep.subr.bf16.mxu1 %v21540_v28  ;;  %v21615_v26 = vld [vmem:[#allocation10 + $0x4c] ss:$16 sps:$4 sm:$0xff]   ;;  %v21613_v28 = vld [vmem:[#allocation10 + $0x48] ss:$16 sps:$4 sm:$0xff]  }
 0x2b3   :  { %v21618_v27 = vld [vmem:[#allocation10 + $0x24c] ss:$16 sps:$4 sm:$0xff]  }
 0x2b5   :  { %2223 = vmatpush2.bf16.msra.mxu0 %v21535_v29  ;;  %2264 = vmatpush2.bf16.msra.mxu1 %v21538_v30  ;;  %v21616_v29 = vld [vmem:[#allocation10 + $0x248] ss:$16 sps:$4 sm:$0xff]   ;;  %v21621_v30 = vld [vmem:[#allocation10 + $0x2c] ss:$16 sps:$4 sm:$0xff]  }
 0x2b6   :  { %2224 = vmatprep.subr.bf16.mxu0 %v21543_v31  ;;  %2265 = vmatprep.subr.bf16.mxu1 %v21546_v32  ;;  %v21624_v31 = vld [vmem:[#allocation10 + $0x22c] ss:$16 sps:$4 sm:$0xff]   ;;  %v21619_v32 = vld [vmem:[#allocation10 + $0x28] ss:$16 sps:$4 sm:$0xff]  }
 0x2b9   :  { %2225 = vmatpush2.bf16.msra.mxu0 %v21541_v33  ;;  %2266 = vmatpush2.bf16.msra.mxu1 %v21544_v34  ;;  %v21622_v33 = vld [vmem:[#allocation10 + $0x228] ss:$16 sps:$4 sm:$0xff]   ;;  %v21627_v34 = vld [vmem:[#allocation10 + $0xc] ss:$16 sps:$4 sm:$0xff]  }
 0x2ba   :  { %2226 = vmatprep.subr.bf16.mxu0 %v21549_v35  ;;  %2267 = vmatprep.subr.bf16.mxu1 %v21552_v36  ;;  %v21630_v35 = vld [vmem:[#allocation10 + $0x20c] ss:$16 sps:$4 sm:$0xff]   ;;  %v21625_v36 = vld [vmem:[#allocation10 + $0x8] ss:$16 sps:$4 sm:$0xff]  }
 0x2bd   :  { %2227 = vmatpush2.bf16.msra.mxu0 %v21547_v37  ;;  %2268 = vmatpush2.bf16.msra.mxu1 %v21550_v38  ;;  %v21628_v37 = vld [vmem:[#allocation10 + $0x208] ss:$16 sps:$4 sm:$0xff]   ;;  %v21633_v38 = vld [vmem:[#allocation10 + $0x1ec] ss:$16 sps:$4 sm:$0xff]  }
 0x2be   :  { %2228 = vmatprep.subr.bf16.mxu0 %v21555_v60  ;;  %2269 = vmatprep.subr.bf16.mxu1 %v21558_v39  ;;  %v21636_v60 = vld [vmem:[#allocation10 + $0x3ec] ss:$16 sps:$4 sm:$0xff]   ;;  %v21631_v39 = vld [vmem:[#allocation10 + $0x1e8] ss:$16 sps:$4 sm:$0xff]  }
 0x2c1   :  { %2229 = vmatpush2.bf16.msra.mxu0 %v21553_v0  ;;  %2270 = vmatpush2.bf16.msra.mxu1 %v21556_v40  ;;  %v21634_v0 = vld [vmem:[#allocation10 + $0x3e8] ss:$16 sps:$4 sm:$0xff]   ;;  %v21639_v40 = vld [vmem:[#allocation10 + $0x1cc] ss:$16 sps:$4 sm:$0xff]  }
 0x2c2   :  { %2230 = vmatprep.subr.bf16.mxu0 %v21561_v58  ;;  %2271 = vmatprep.subr.bf16.mxu1 %v21564_v41  ;;  %v21642_v58 = vld [vmem:[#allocation10 + $0x3cc] ss:$16 sps:$4 sm:$0xff]   ;;  %v21637_v41 = vld [vmem:[#allocation10 + $0x1c8] ss:$16 sps:$4 sm:$0xff]  }
 0x2c5   :  { %2231 = vmatpush2.bf16.msra.mxu0 %v21559_v62  ;;  %2272 = vmatpush2.bf16.msra.mxu1 %v21562_v42  ;;  %v21640_v62 = vld [vmem:[#allocation10 + $0x3c8] ss:$16 sps:$4 sm:$0xff]   ;;  %v21645_v42 = vld [vmem:[#allocation10 + $0x1ac] ss:$16 sps:$4 sm:$0xff]  }
 0x2c6   :  { %2232 = vmatprep.subr.bf16.mxu0 %v21567_v8  ;;  %2273 = vmatprep.subr.bf16.mxu1 %v21570_v43  ;;  %v21648_v8 = vld [vmem:[#allocation10 + $0x3ac] ss:$16 sps:$4 sm:$0xff]   ;;  %v21643_v43 = vld [vmem:[#allocation10 + $0x1a8] ss:$16 sps:$4 sm:$0xff]  }
 0x2c9   :  { %2233 = vmatpush2.bf16.msra.mxu0 %v21565_v16  ;;  %2274 = vmatpush2.bf16.msra.mxu1 %v21568_v48  ;;  %v21646_v16 = vld [vmem:[#allocation10 + $0x3a8] ss:$16 sps:$4 sm:$0xff]   ;;  %v21651_v48 = vld [vmem:[#allocation10 + $0x18c] ss:$16 sps:$4 sm:$0xff]  }
 0x2ca   :  { %2234 = vmatprep.subr.bf16.mxu0 %v21573_v49  ;;  %2275 = vmatprep.subr.bf16.mxu1 %v21576_v50  ;;  %v21654_v49 = vld [vmem:[#allocation10 + $0x38c] ss:$16 sps:$4 sm:$0xff]   ;;  %v21649_v50 = vld [vmem:[#allocation10 + $0x188] ss:$16 sps:$4 sm:$0xff]  }
 0x2cd   :  { %2235 = vmatpush2.bf16.msra.mxu0 %v21571_v51  ;;  %2276 = vmatpush2.bf16.msra.mxu1 %v21574_v55  ;;  %v21652_v51 = vld [vmem:[#allocation10 + $0x388] ss:$16 sps:$4 sm:$0xff]   ;;  %v21657_v55 = vld [vmem:[#allocation10 + $0x16c] ss:$16 sps:$4 sm:$0xff]  }
 0x2ce   :  { %2236 = vmatprep.subr.bf16.mxu0 %v21579_v57  ;;  %2277 = vmatprep.subr.bf16.mxu1 %v21582_v1  ;;  %v21660_v57 = vld [vmem:[#allocation10 + $0x36c] ss:$16 sps:$4 sm:$0xff]   ;;  %v21655_v1 = vld [vmem:[#allocation10 + $0x168] ss:$16 sps:$4 sm:$0xff]  }
 0x2d1   :  { %2237 = vmatpush2.bf16.msra.mxu0 %v21577_v2  ;;  %2278 = vmatpush2.bf16.msra.mxu1 %v21580_v3  ;;  %v21658_v2 = vld [vmem:[#allocation10 + $0x368] ss:$16 sps:$4 sm:$0xff]   ;;  %v21663_v3 = vld [vmem:[#allocation10 + $0x14c] ss:$16 sps:$4 sm:$0xff]  }
 0x2d2   :  { %2288 = vmatprep.subr.bf16.mxu0 %v21585_v5  ;;  %2329 = vmatprep.subr.bf16.mxu1 %v21588_v6  ;;  %v21666_v5 = vld [vmem:[#allocation10 + $0x34c] ss:$16 sps:$4 sm:$0xff]   ;;  %v21661_v6 = vld [vmem:[#allocation10 + $0x148] ss:$16 sps:$4 sm:$0xff]  }
 0x2d4   :  { %2239 = vmatmul.mubr.bf16.vlgmr.msra.gmra.mxu0 %v25737_v13  ;;  %2280 = vmatmul.mubr.bf16.vlgmr.msra.gmra.mxu1 %v25741_v14 }
 0x2d5   :  { %2289 = vmatpush1.bf16.msra.mxu0 %v21583_v7  ;;  %2320 = vmatprep.mubr.bf16.mxu0 %v25717_v12  ;;  %v21607_v12 = vld [vmem:[#allocation10 + $0x68] ss:$16 sps:$4 sm:$0xff]  }
 0x2d6   :  { %2330 = vmatpush1.bf16.msra.mxu1 %v21586_v9  ;;  %2361 = vmatprep.mubr.bf16.mxu1 %v25719_v45  ;;  %v21610_v45 = vld [vmem:[#allocation10 + $0x268] ss:$16 sps:$4 sm:$0xff]   ;;  %v21669_v9 = vld [vmem:[#allocation10 + $0x12c] ss:$16 sps:$4 sm:$0xff]  }
 0x2d7   :  { %2290 = vmatprep.subr.bf16.mxu0 %v21591_v10  ;;  %2331 = vmatprep.subr.bf16.mxu1 %v21594_v11  ;;  %v21664_v7 = vld [vmem:[#allocation10 + $0x348] ss:$16 sps:$4 sm:$0xff]   ;;  %v21672_v10 = vld [vmem:[#allocation10 + $0x32c] ss:$16 sps:$4 sm:$0xff]  }
 0x2d8   :  { %v21667_v11 = vld [vmem:[#allocation10 + $0x128] ss:$16 sps:$4 sm:$0xff]  }
 0x2d9   :  { %2291 = vmatpush1.bf16.msra.mxu0 %v21589_v15  ;;  %v21670_v15 = vld [vmem:[#allocation10 + $0x328] ss:$16 sps:$4 sm:$0xff]  }
 0x2da   :  { %2332 = vmatpush1.bf16.msra.mxu1 %v21592_v17  ;;  %2292 = vmatprep.subr.bf16.mxu0 %v21597_v18  ;;  %v21675_v17 = vld [vmem:[#allocation10 + $0x10c] ss:$16 sps:$4 sm:$0xff]  }
 0x2db   :  { %2333 = vmatprep.subr.bf16.mxu1 %v21600_v19  ;;  %v21678_v18 = vld [vmem:[#allocation10 + $0x30c] ss:$16 sps:$4 sm:$0xff]   ;;  %v21673_v19 = vld [vmem:[#allocation10 + $0x108] ss:$16 sps:$4 sm:$0xff]  }
 0x2dd   :  { %2293 = vmatpush1.bf16.msra.mxu0 %v21595_v44  ;;  %v21676_v44 = vld [vmem:[#allocation10 + $0x308] ss:$16 sps:$4 sm:$0xff]  }
 0x2de   :  { %2334 = vmatpush1.bf16.msra.mxu1 %v21598_v4  ;;  %2294 = vmatprep.subr.bf16.mxu0 %v21603_v20  ;;  %v21681_v4 = vld [vmem:[#allocation10 + $0x4ec] ss:$16 sps:$4 sm:$0xff]  }
 0x2df   :  { %2335 = vmatprep.subr.bf16.mxu1 %v21606_v22  ;;  %v21684_v20 = vld [vmem:[#allocation10 + $0x6ec] ss:$16 sps:$4 sm:$0xff]   ;;  %v21682_v22 = vld [vmem:[#allocation10 + $0x6e8] ss:$16 sps:$4 sm:$0xff]  }
 0x2e1   :  { %2295 = vmatpush1.bf16.msra.mxu0 %v21601_v21  ;;  %v21679_v21 = vld [vmem:[#allocation10 + $0x4e8] ss:$16 sps:$4 sm:$0xff]  }
 0x2e2   :  { %2336 = vmatpush1.bf16.msra.mxu1 %v21604_v23  ;;  %2296 = vmatprep.subr.bf16.mxu0 %v21609_v24  ;;  %v21687_v23 = vld [vmem:[#allocation10 + $0x4cc] ss:$16 sps:$4 sm:$0xff]  }
 0x2e3   :  { %2337 = vmatprep.subr.bf16.mxu1 %v21612_v25  ;;  %v21690_v24 = vld [vmem:[#allocation10 + $0x6cc] ss:$16 sps:$4 sm:$0xff]   ;;  %v21685_v25 = vld [vmem:[#allocation10 + $0x4c8] ss:$16 sps:$4 sm:$0xff]  }
 0x2e5   :  { %2297 = vmatpush1.bf16.msra.mxu0 %v21607_v12  ;;  %v21688_v12 = vld [vmem:[#allocation10 + $0x6c8] ss:$16 sps:$4 sm:$0xff]  }
 0x2e6   :  { %2338 = vmatpush1.bf16.msra.mxu1 %v21610_v45  ;;  %2298 = vmatprep.subr.bf16.mxu0 %v21615_v26  ;;  %v21693_v45 = vld [vmem:[#allocation10 + $0x4ac] ss:$16 sps:$4 sm:$0xff]   ;;  %v21691_v26 = vld [vmem:[#allocation10 + $0x4a8] ss:$16 sps:$4 sm:$0xff]  }
 0x2e7   :  { %2339 = vmatprep.subr.bf16.mxu1 %v21618_v27  ;;  %v21696_v27 = vld [vmem:[#allocation10 + $0x6ac] ss:$16 sps:$4 sm:$0xff]  }
 0x2e9   :  { %2299 = vmatpush1.bf16.msra.mxu0 %v21613_v28  ;;  %v21694_v28 = vld [vmem:[#allocation10 + $0x6a8] ss:$16 sps:$4 sm:$0xff]  }
 0x2ea   :  { %2340 = vmatpush1.bf16.msra.mxu1 %v21616_v29  ;;  %2300 = vmatprep.subr.bf16.mxu0 %v21621_v30  ;;  %v21699_v29 = vld [vmem:[#allocation10 + $0x48c] ss:$16 sps:$4 sm:$0xff]  }
 0x2eb   :  { %2341 = vmatprep.subr.bf16.mxu1 %v21624_v31  ;;  %v21702_v30 = vld [vmem:[#allocation10 + $0x68c] ss:$16 sps:$4 sm:$0xff]   ;;  %v21700_v31 = vld [vmem:[#allocation10 + $0x688] ss:$16 sps:$4 sm:$0xff]  }
 0x2ed   :  { %2301 = vmatpush1.bf16.msra.mxu0 %v21619_v32  ;;  %v21706_v32 = vld [vmem:[#allocation10 + $0x668] ss:$16 sps:$4 sm:$0xff]  }
 0x2ee   :  { %2342 = vmatpush1.bf16.msra.mxu1 %v21622_v33  ;;  %2302 = vmatprep.subr.bf16.mxu0 %v21627_v34  ;;  %v21711_v33 = vld [vmem:[#allocation10 + $0x44c] ss:$16 sps:$4 sm:$0xff]  }
 0x2ef   :  { %2343 = vmatprep.subr.bf16.mxu1 %v21630_v35  ;;  %v21714_v34 = vld [vmem:[#allocation10 + $0x64c] ss:$16 sps:$4 sm:$0xff]   ;;  %v21709_v35 = vld [vmem:[#allocation10 + $0x448] ss:$16 sps:$4 sm:$0xff]  }
 0x2f1   :  { %2303 = vmatpush1.bf16.msra.mxu0 %v21625_v36  ;;  %v21712_v36 = vld [vmem:[#allocation10 + $0x648] ss:$16 sps:$4 sm:$0xff]  }
 0x2f2   :  { %2344 = vmatpush1.bf16.msra.mxu1 %v21628_v37  ;;  %2304 = vmatprep.subr.bf16.mxu0 %v21633_v38  ;;  %v21717_v37 = vld [vmem:[#allocation10 + $0x42c] ss:$16 sps:$4 sm:$0xff]  }
 0x2f3   :  { %2345 = vmatprep.subr.bf16.mxu1 %v21636_v60  ;;  %v21720_v38 = vld [vmem:[#allocation10 + $0x62c] ss:$16 sps:$4 sm:$0xff]   ;;  %v21715_v60 = vld [vmem:[#allocation10 + $0x428] ss:$16 sps:$4 sm:$0xff]  }
 0x2f5   :  { %2305 = vmatpush2.bf16.msra.mxu0 %v21631_v39  ;;  %v21718_v39 = vld [vmem:[#allocation10 + $0x628] ss:$16 sps:$4 sm:$0xff]  }
 0x2f6   :  { %2346 = vmatpush2.bf16.msra.mxu1 %v21634_v0  ;;  %2306 = vmatprep.subr.bf16.mxu0 %v21639_v40  ;;  %v21723_v0 = vld [vmem:[#allocation10 + $0x40c] ss:$16 sps:$4 sm:$0xff]  }
 0x2f7   :  { %2347 = vmatprep.subr.bf16.mxu1 %v21642_v58  ;;  %v21726_v40 = vld [vmem:[#allocation10 + $0x60c] ss:$16 sps:$4 sm:$0xff]   ;;  %v21721_v58 = vld [vmem:[#allocation10 + $0x408] ss:$16 sps:$4 sm:$0xff]  }
 0x2f9   :  { %2307 = vmatpush2.bf16.msra.mxu0 %v21637_v41  ;;  %v21724_v41 = vld [vmem:[#allocation10 + $0x608] ss:$16 sps:$4 sm:$0xff]  }
 0x2fa   :  { %2348 = vmatpush2.bf16.msra.mxu1 %v21640_v62  ;;  %2308 = vmatprep.subr.bf16.mxu0 %v21645_v42  ;;  %v21729_v62 = vld [vmem:[#allocation10 + $0x5ec] ss:$16 sps:$4 sm:$0xff]  }
 0x2fb   :  { %2349 = vmatprep.subr.bf16.mxu1 %v21648_v8  ;;  %v21732_v42 = vld [vmem:[#allocation10 + $0x7ec] ss:$16 sps:$4 sm:$0xff]   ;;  %v21727_v8 = vld [vmem:[#allocation10 + $0x5e8] ss:$16 sps:$4 sm:$0xff]  }
 0x2fd   :  { %2309 = vmatpush2.bf16.msra.mxu0 %v21643_v43  ;;  %v21730_v43 = vld [vmem:[#allocation10 + $0x7e8] ss:$16 sps:$4 sm:$0xff]  }
 0x2fe   :  { %2350 = vmatpush2.bf16.msra.mxu1 %v21646_v16  ;;  %2310 = vmatprep.subr.bf16.mxu0 %v21651_v48  ;;  %v21735_v16 = vld [vmem:[#allocation10 + $0x5cc] ss:$16 sps:$4 sm:$0xff]  }
 0x2ff   :  { %2351 = vmatprep.subr.bf16.mxu1 %v21654_v49  ;;  %v21738_v48 = vld [vmem:[#allocation10 + $0x7cc] ss:$16 sps:$4 sm:$0xff]   ;;  %v21733_v49 = vld [vmem:[#allocation10 + $0x5c8] ss:$16 sps:$4 sm:$0xff]  }
 0x301   :  { %2311 = vmatpush2.bf16.msra.mxu0 %v21649_v50  ;;  %v21736_v50 = vld [vmem:[#allocation10 + $0x7c8] ss:$16 sps:$4 sm:$0xff]  }
 0x302   :  { %2352 = vmatpush2.bf16.msra.mxu1 %v21652_v51  ;;  %2312 = vmatprep.subr.bf16.mxu0 %v21657_v55  ;;  %v21741_v51 = vld [vmem:[#allocation10 + $0x5ac] ss:$16 sps:$4 sm:$0xff]  }
 0x303   :  { %2353 = vmatprep.subr.bf16.mxu1 %v21660_v57  ;;  %v21744_v55 = vld [vmem:[#allocation10 + $0x7ac] ss:$16 sps:$4 sm:$0xff]   ;;  %v21739_v57 = vld [vmem:[#allocation10 + $0x5a8] ss:$16 sps:$4 sm:$0xff]  }
 0x305   :  { %2313 = vmatpush2.bf16.msra.mxu0 %v21655_v1  ;;  %v21742_v1 = vld [vmem:[#allocation10 + $0x7a8] ss:$16 sps:$4 sm:$0xff]  }
 0x306   :  { %2354 = vmatpush2.bf16.msra.mxu1 %v21658_v2  ;;  %2314 = vmatprep.subr.bf16.mxu0 %v21663_v3  ;;  %v21747_v2 = vld [vmem:[#allocation10 + $0x58c] ss:$16 sps:$4 sm:$0xff]  }
 0x307   :  { %2355 = vmatprep.subr.bf16.mxu1 %v21666_v5  ;;  %v21750_v3 = vld [vmem:[#allocation10 + $0x78c] ss:$16 sps:$4 sm:$0xff]   ;;  %v21745_v5 = vld [vmem:[#allocation10 + $0x588] ss:$16 sps:$4 sm:$0xff]  }
 0x309   :  { %2315 = vmatpush2.bf16.msra.mxu0 %v21661_v6  ;;  %v21748_v6 = vld [vmem:[#allocation10 + $0x788] ss:$16 sps:$4 sm:$0xff]  }
 0x30a   :  { %2356 = vmatpush2.bf16.msra.mxu1 %v21664_v7  ;;  %2316 = vmatprep.subr.bf16.mxu0 %v21669_v9  ;;  %v21753_v7 = vld [vmem:[#allocation10 + $0x56c] ss:$16 sps:$4 sm:$0xff]  }
 0x30b   :  { %2357 = vmatprep.subr.bf16.mxu1 %v21672_v10  ;;  %v21756_v9 = vld [vmem:[#allocation10 + $0x76c] ss:$16 sps:$4 sm:$0xff]   ;;  %v21751_v10 = vld [vmem:[#allocation10 + $0x568] ss:$16 sps:$4 sm:$0xff]  }
 0x30d   :  { %2317 = vmatpush2.bf16.msra.mxu0 %v21667_v11  ;;  %v21754_v11 = vld [vmem:[#allocation10 + $0x768] ss:$16 sps:$4 sm:$0xff]  }
 0x30e   :  { %2358 = vmatpush2.bf16.msra.mxu1 %v21670_v15  ;;  %2318 = vmatprep.subr.bf16.mxu0 %v21675_v17  ;;  %v21759_v15 = vld [vmem:[#allocation10 + $0x54c] ss:$16 sps:$4 sm:$0xff]  }
 0x30f   :  { %2359 = vmatprep.subr.bf16.mxu1 %v21678_v18  ;;  %v21762_v17 = vld [vmem:[#allocation10 + $0x74c] ss:$16 sps:$4 sm:$0xff]   ;;  %v21757_v18 = vld [vmem:[#allocation10 + $0x548] ss:$16 sps:$4 sm:$0xff]  }
 0x311   :  { %2319 = vmatpush2.bf16.msra.mxu0 %v21673_v19  ;;  %v21760_v19 = vld [vmem:[#allocation10 + $0x748] ss:$16 sps:$4 sm:$0xff]  }
 0x312   :  { %2360 = vmatpush2.bf16.msra.mxu1 %v21676_v44  ;;  %2370 = vmatprep.subr.bf16.mxu0 %v21681_v4  ;;  %v21765_v44 = vld [vmem:[#allocation10 + $0x52c] ss:$16 sps:$4 sm:$0xff]  }
 0x313   :  { %2411 = vmatprep.subr.bf16.mxu1 %v21684_v20  ;;  %v21768_v4 = vld [vmem:[#allocation10 + $0x72c] ss:$16 sps:$4 sm:$0xff]   ;;  %v21763_v20 = vld [vmem:[#allocation10 + $0x528] ss:$16 sps:$4 sm:$0xff]  }
 0x314   :  { %2321 = vmatmul.mubr.bf16.vlgmr.msra.gmra.mxu0 %v25721_v46  ;;  %v21697_v46 = vld [vmem:[#allocation10 + $0x488] ss:$16 sps:$4 sm:$0xff]  }
 0x315   :  { %2362 = vmatmul.mubr.bf16.vlgmr.msra.gmra.mxu1 %v25723_v47  ;;  %2371 = vmatpush1.bf16.msra.mxu0 %v21679_v21  ;;  %v21705_v47 = vld [vmem:[#allocation10 + $0x46c] ss:$16 sps:$4 sm:$0xff]   ;;  %v21766_v21 = vld [vmem:[#allocation10 + $0x728] ss:$16 sps:$4 sm:$0xff]  }
 0x316   :  { %2402 = vmatprep.mubr.bf16.mxu0 %v25729_v52  ;;  %2412 = vmatpush1.bf16.msra.mxu1 %v21682_v22  ;;  %v21703_v52 = vld [vmem:[#allocation10 + $0x468] ss:$16 sps:$4 sm:$0xff]   ;;  %v21771_v22 = vld [vmem:[#allocation10 + $0x50c] ss:$16 sps:$4 sm:$0xff]  }
 0x317   :  { %2443 = vmatprep.mubr.bf16.mxu1 %v25731_v53  ;;  %2372 = vmatprep.subr.bf16.mxu0 %v21687_v23  ;;  %v21708_v53 = vld [vmem:[#allocation10 + $0x66c] ss:$16 sps:$4 sm:$0xff]  }
 0x318   :  { %2413 = vmatprep.subr.bf16.mxu1 %v21690_v24  ;;  %v21774_v23 = vld [vmem:[#allocation10 + $0x70c] ss:$16 sps:$4 sm:$0xff]   ;;  %v21769_v24 = vld [vmem:[#allocation10 + $0x508] ss:$16 sps:$4 sm:$0xff]  }
 0x319   :  { %2373 = vmatpush1.bf16.msra.mxu0 %v21685_v25  ;;  %v21772_v25 = vld [vmem:[#allocation10 + $0x708] ss:$16 sps:$4 sm:$0xff]  }
 0x31a   :  { %2414 = vmatpush1.bf16.msra.mxu1 %v21688_v12  ;;  %2374 = vmatprep.subr.bf16.mxu0 %v21693_v45  ;;  %v21777_v12 = vld [vmem:[#allocation13 + $0xe4] ss:$16 sps:$4 sm:$0xff]   ;;  %v21775_v45 = vld [vmem:[#allocation13 + $0xe0] ss:$16 sps:$4 sm:$0xff]  }
 0x31b   :  { %2415 = vmatprep.subr.bf16.mxu1 %v21696_v27  ;;  %v21778_v27 = vld [vmem:[#allocation13 + $0xc0] ss:$16 sps:$4 sm:$0xff]  }
 0x31d   :  { %2375 = vmatpush1.bf16.msra.mxu0 %v21691_v26  ;;  %v21780_v26 = vld [vmem:[#allocation13 + $0xc4] ss:$16 sps:$4 sm:$0xff]  }
 0x31e   :  { %2416 = vmatpush1.bf16.msra.mxu1 %v21694_v28  ;;  %2376 = vmatprep.subr.bf16.mxu0 %v21699_v29 }
 0x31f   :  { %2417 = vmatprep.subr.bf16.mxu1 %v21702_v30 }
 0x321   :  { %2377 = vmatpush1.bf16.msra.mxu0 %v21697_v46  ;;  %v21783_v46 = vld [vmem:[#allocation13 + $0xa4] ss:$16 sps:$4 sm:$0xff]  }
 0x322   :  { %2418 = vmatpush1.bf16.msra.mxu1 %v21700_v31  ;;  %2378 = vmatprep.subr.bf16.mxu0 %v21705_v47  ;;  %v21781_v47 = vld [vmem:[#allocation13 + $0xa0] ss:$16 sps:$4 sm:$0xff]  }
 0x323   :  { %2419 = vmatprep.subr.bf16.mxu1 %v21708_v53 }
 0x325   :  { %2379 = vmatpush1.bf16.msra.mxu0 %v21703_v52 }
 0x326   :  { %2420 = vmatpush1.bf16.msra.mxu1 %v21706_v32  ;;  %2380 = vmatprep.subr.bf16.mxu0 %v21711_v33  ;;  %v21786_v32 = vld [vmem:[#allocation13 + $0x84] ss:$16 sps:$4 sm:$0xff]  }
 0x327   :  { %2421 = vmatprep.subr.bf16.mxu1 %v21714_v34  ;;  %v21784_v34 = vld [vmem:[#allocation13 + $0x80] ss:$16 sps:$4 sm:$0xff]  }
 0x329   :  { %2381 = vmatpush1.bf16.msra.mxu0 %v21709_v35  ;;  %v21789_v35 = vld [vmem:[#allocation13 + $0x64] ss:$16 sps:$4 sm:$0xff]  }
 0x32a   :  { %2422 = vmatpush1.bf16.msra.mxu1 %v21712_v36  ;;  %2382 = vmatprep.subr.bf16.mxu0 %v21717_v37  ;;  %v21871_v36 = vld [vmem:[#allocation13 + $0x2e0] ss:$16 sps:$4 sm:$0xff]   ;;  %v21873_v37 = vld [vmem:[#allocation13 + $0x2e4] ss:$16 sps:$4 sm:$0xff]  }
 0x32b   :  { %2423 = vmatprep.subr.bf16.mxu1 %v21720_v38  ;;  %v21876_v38 = vld [vmem:[#allocation13 + $0x2c4] ss:$16 sps:$4 sm:$0xff]  }
 0x32d   :  { %2383 = vmatpush1.bf16.msra.mxu0 %v21715_v60  ;;  %v21787_v60 = vld [vmem:[#allocation13 + $0x60] ss:$16 sps:$4 sm:$0xff]  }
 0x32e   :  { %2424 = vmatpush1.bf16.msra.mxu1 %v21718_v39  ;;  %2384 = vmatprep.subr.bf16.mxu0 %v21723_v0  ;;  %v21879_v39 = vld [vmem:[#allocation13 + $0x2a4] ss:$16 sps:$4 sm:$0xff]  }
 0x32f   :  { %2425 = vmatprep.subr.bf16.mxu1 %v21726_v40  ;;  %v21792_v0 = vld [vmem:[#allocation13 + $0x44] ss:$16 sps:$4 sm:$0xff]   ;;  %v21877_v40 = vld [vmem:[#allocation13 + $0x2a0] ss:$16 sps:$4 sm:$0xff]  }
 0x331   :  { %2385 = vmatpush1.bf16.msra.mxu0 %v21721_v58  ;;  %v21790_v58 = vld [vmem:[#allocation13 + $0x40] ss:$16 sps:$4 sm:$0xff]  }
 0x332   :  { %2426 = vmatpush1.bf16.msra.mxu1 %v21724_v41  ;;  %2386 = vmatprep.subr.bf16.mxu0 %v21729_v62  ;;  %v21882_v41 = vld [vmem:[#allocation13 + $0x284] ss:$16 sps:$4 sm:$0xff]  }
 0x333   :  { %2427 = vmatprep.subr.bf16.mxu1 %v21732_v42  ;;  %v21795_v62 = vld [vmem:[#allocation13 + $0x24] ss:$16 sps:$4 sm:$0xff]   ;;  %v21793_v42 = vld [vmem:[#allocation13 + $0x20] ss:$16 sps:$4 sm:$0xff]  }
 0x335   :  { %2387 = vmatpush2.bf16.msra.mxu0 %v21727_v8  ;;  %v21798_v8 = vld [vmem:[#allocation13 + $0x4] ss:$16 sps:$4 sm:$0xff]  }
 0x336   :  { %2428 = vmatpush2.bf16.msra.mxu1 %v21730_v43  ;;  %2388 = vmatprep.subr.bf16.mxu0 %v21735_v16  ;;  %v21880_v43 = vld [vmem:[#allocation13 + $0x280] ss:$16 sps:$4 sm:$0xff]   ;;  %v21885_v16 = vld [vmem:[#allocation13 + $0x264] ss:$16 sps:$4 sm:$0xff]  }
 0x337   :  { %2429 = vmatprep.subr.bf16.mxu1 %v21738_v48  ;;  %v21883_v48 = vld [vmem:[#allocation13 + $0x260] ss:$16 sps:$4 sm:$0xff]  }
 0x339   :  { %2389 = vmatpush2.bf16.msra.mxu0 %v21733_v49  ;;  %v21796_v49 = vld [vmem:[#allocation13] ss:$16 sps:$4 sm:$0xff]  }
 0x33a   :  { %2430 = vmatpush2.bf16.msra.mxu1 %v21736_v50  ;;  %2390 = vmatprep.subr.bf16.mxu0 %v21741_v51  ;;  %v21888_v50 = vld [vmem:[#allocation13 + $0x244] ss:$16 sps:$4 sm:$0xff]  }
 0x33b   :  { %2431 = vmatprep.subr.bf16.mxu1 %v21744_v55  ;;  %v21801_v51 = vld [vmem:[#allocation13 + $0x1e4] ss:$16 sps:$4 sm:$0xff]   ;;  %v21886_v55 = vld [vmem:[#allocation13 + $0x240] ss:$16 sps:$4 sm:$0xff]  }
 0x33d   :  { %2391 = vmatpush2.bf16.msra.mxu0 %v21739_v57  ;;  %v21799_v57 = vld [vmem:[#allocation13 + $0x1e0] ss:$16 sps:$4 sm:$0xff]  }
 0x33e   :  { %2432 = vmatpush2.bf16.msra.mxu1 %v21742_v1  ;;  %2392 = vmatprep.subr.bf16.mxu0 %v21747_v2  ;;  %v21891_v1 = vld [vmem:[#allocation13 + $0x224] ss:$16 sps:$4 sm:$0xff]  }
 0x33f   :  { %2433 = vmatprep.subr.bf16.mxu1 %v21750_v3  ;;  %v21804_v2 = vld [vmem:[#allocation13 + $0x1c4] ss:$16 sps:$4 sm:$0xff]   ;;  %v21889_v3 = vld [vmem:[#allocation13 + $0x220] ss:$16 sps:$4 sm:$0xff]  }
 0x341   :  { %2393 = vmatpush2.bf16.msra.mxu0 %v21745_v5  ;;  %v21802_v5 = vld [vmem:[#allocation13 + $0x1c0] ss:$16 sps:$4 sm:$0xff]  }
 0x342   :  { %2434 = vmatpush2.bf16.msra.mxu1 %v21748_v6  ;;  %2394 = vmatprep.subr.bf16.mxu0 %v21753_v7  ;;  %v21894_v6 = vld [vmem:[#allocation13 + $0x204] ss:$16 sps:$4 sm:$0xff]  }
 0x343   :  { %2435 = vmatprep.subr.bf16.mxu1 %v21756_v9  ;;  %v21807_v7 = vld [vmem:[#allocation13 + $0x1a4] ss:$16 sps:$4 sm:$0xff]   ;;  %v21892_v9 = vld [vmem:[#allocation13 + $0x200] ss:$16 sps:$4 sm:$0xff]  }
 0x345   :  { %2395 = vmatpush2.bf16.msra.mxu0 %v21751_v10  ;;  %v21805_v10 = vld [vmem:[#allocation13 + $0x1a0] ss:$16 sps:$4 sm:$0xff]  }
 0x346   :  { %2436 = vmatpush2.bf16.msra.mxu1 %v21754_v11  ;;  %2396 = vmatprep.subr.bf16.mxu0 %v21759_v15  ;;  %v21897_v11 = vld [vmem:[#allocation13 + $0x3e4] ss:$16 sps:$4 sm:$0xff]  }
 0x347   :  { %2437 = vmatprep.subr.bf16.mxu1 %v21762_v17  ;;  %v21810_v15 = vld [vmem:[#allocation13 + $0x184] ss:$16 sps:$4 sm:$0xff]   ;;  %v21895_v17 = vld [vmem:[#allocation13 + $0x3e0] ss:$16 sps:$4 sm:$0xff]  }
 0x349   :  { %2397 = vmatpush2.bf16.msra.mxu0 %v21757_v18  ;;  %v21808_v18 = vld [vmem:[#allocation13 + $0x180] ss:$16 sps:$4 sm:$0xff]  }
 0x34a   :  { %2438 = vmatpush2.bf16.msra.mxu1 %v21760_v19  ;;  %2398 = vmatprep.subr.bf16.mxu0 %v21765_v44  ;;  %v21900_v19 = vld [vmem:[#allocation13 + $0x3c4] ss:$16 sps:$4 sm:$0xff]  }
 0x34b   :  { %2439 = vmatprep.subr.bf16.mxu1 %v21768_v4  ;;  %v21813_v44 = vld [vmem:[#allocation13 + $0x164] ss:$16 sps:$4 sm:$0xff]   ;;  %v21898_v4 = vld [vmem:[#allocation13 + $0x3c0] ss:$16 sps:$4 sm:$0xff]  }
 0x34d   :  { %2399 = vmatpush2.bf16.msra.mxu0 %v21763_v20  ;;  %v21811_v20 = vld [vmem:[#allocation13 + $0x160] ss:$16 sps:$4 sm:$0xff]  }
 0x34e   :  { %2440 = vmatpush2.bf16.msra.mxu1 %v21766_v21  ;;  %2400 = vmatprep.subr.bf16.mxu0 %v21771_v22  ;;  %v21903_v21 = vld [vmem:[#allocation13 + $0x3a4] ss:$16 sps:$4 sm:$0xff]  }
 0x34f   :  { %2441 = vmatprep.subr.bf16.mxu1 %v21774_v23  ;;  %v21816_v22 = vld [vmem:[#allocation13 + $0x144] ss:$16 sps:$4 sm:$0xff]   ;;  %v21901_v23 = vld [vmem:[#allocation13 + $0x3a0] ss:$16 sps:$4 sm:$0xff]  }
 0x351   :  { %2401 = vmatpush2.bf16.msra.mxu0 %v21769_v24  ;;  %v21814_v24 = vld [vmem:[#allocation13 + $0x140] ss:$16 sps:$4 sm:$0xff]  }
 0x352   :  { %2442 = vmatpush2.bf16.msra.mxu1 %v21772_v25  ;;  %3250 = vmatprep.subr.bf16.mxu0 %v21777_v12  ;;  %v21906_v25 = vld [vmem:[#allocation13 + $0x384] ss:$16 sps:$4 sm:$0xff]  }
 0x353   :  { %3291 = vmatprep.subr.bf16.mxu1 %v21873_v37  ;;  %v21819_v12 = vld [vmem:[#allocation13 + $0x124] ss:$16 sps:$4 sm:$0xff]  }
 0x354   :  { %2403 = vmatmul.mubr.bf16.vlgmr.msra.gmra.mxu0 %v25737_v13  ;;  %v25752_v28 = vpop.f32.mrf.mxu0  ;;  %v25754_v29 = vpop.f32.mrf.mxu1 }
 0x355   :  { %2444 = vmatmul.mubr.bf16.vlgmr.msra.gmra.mxu1 %v25741_v14  ;;  %3251 = vmatpush1.bf16.msra.mxu0 %v21775_v45  ;;  %v21874_v14 = vld [vmem:[#allocation13 + $0x2c0] ss:$16 sps:$4 sm:$0xff]   ;;  %v25761_v45 = vld [vmem:[#allocation11] sm:$0xf] }
 0x356   :  { %v25757_v30 = vpop.f32.mrf.mxu0  ;;  %v25759_v31 = vpop.f32.mrf.mxu1  ;;  %3252 = vmatprep.subr.bf16.mxu0 %v21780_v26  ;;  %3292 = vmatpush1.bf16.msra.mxu1 %v21871_v36  ;;  %v21904_v26 = vld [vmem:[#allocation13 + $0x380] ss:$16 sps:$4 sm:$0xff]  }
 0x357   :  { %3293 = vmatprep.subr.bf16.mxu1 %v21876_v38 }
 0x358   :  { %v2162_v52 = vpop.f32.mrf.mxu0  ;;  %v2203_v53 = vpop.f32.mrf.mxu1 }
 0x359   :  { %3253 = vmatpush1.bf16.msra.mxu0 %v21778_v27  ;;  %v21817_v27 = vld [vmem:[#allocation13 + $0x120] ss:$16 sps:$4 sm:$0xff]   ;;  %v827_v53 = vrot.slane %v25761_v45, %v25688_v61 }
 0x35a   :  { %v2163_v33 = vpop.f32.mrf.mxu0  ;;  %v2204_v13 = vpop.f32.mrf.mxu1  ;;  %3254 = vmatprep.subr.bf16.mxu0 %v21783_v46  ;;  %3294 = vmatpush1.bf16.msra.mxu1 %v21874_v14  ;;  %v21909_v46 = vld [vmem:[#allocation13 + $0x364] ss:$16 sps:$4 sm:$0xff]   ;;  %v21907_v52 = vld [vmem:[#allocation13 + $0x360] ss:$16 sps:$4 sm:$0xff]  }
 0x35b   :  { %3295 = vmatprep.subr.bf16.mxu1 %v21879_v39  ;;  %v21912_v33 = vld [vmem:[#allocation13 + $0x344] ss:$16 sps:$4 sm:$0xff]   ;;  %v21825_v13 = vld [vmem:[#allocation13 + $0xec] ss:$16 sps:$4 sm:$0xff]   ;;  %v2159_v36 = vadd.f32 %v25752_v28, %v827_v53 }
 0x35c   :  { %v21867_v53 = vld [vmem:[#allocation13 + $0x12c] ss:$16 sps:$4 sm:$0xff]  }
 0x35d   :  { %3255 = vmatpush1.bf16.msra.mxu0 %v21781_v47  ;;  %v21822_v47 = vld [vmem:[#allocation13 + $0x104] ss:$16 sps:$4 sm:$0xff]   ;;  %v2200_v14 = vadd.f32 %v25754_v29, %v2159_v36 }
 0x35e   :  { %3256 = vmatprep.subr.bf16.mxu0 %v21786_v32  ;;  %3296 = vmatpush1.bf16.msra.mxu1 %v21877_v40  ;;  %v21820_v32 = vld [vmem:[#allocation13 + $0x100] ss:$16 sps:$4 sm:$0xff]  }
 0x35f   :  { %3297 = vmatprep.subr.bf16.mxu1 %v21882_v41 }
 0x361   :  { %3257 = vmatpush1.bf16.msra.mxu0 %v21784_v34  ;;  %v831_v34 = vrot.slane %v25761_v45, %v25682_v56 }
 0x362   :  { %3258 = vmatprep.subr.bf16.mxu0 %v21789_v35  ;;  %3298 = vmatpush1.bf16.msra.mxu1 %v21880_v43  ;;  %v21910_v35 = vld [vmem:[#allocation13 + $0x340] ss:$16 sps:$4 sm:$0xff]  }
 0x363   :  { %3299 = vmatprep.subr.bf16.mxu1 %v21885_v16  ;;  %v2161_v37 = vadd.f32 %v25757_v30, %v831_v34  ;;  %v21913_v43 = vld [vmem:[#allocation13 + $0x320] ss:$16 sps:$4 sm:$0xff]   ;;  %v21870_v34 = vld [vmem:[#allocation13 + $0x10c] ss:$16 sps:$4 sm:$0xff]  }
 0x365   :  { %3259 = vmatpush1.bf16.msra.mxu0 %v21787_v60  ;;  %v2202_v39 = vadd.f32 %v25759_v31, %v2161_v37  ;;  %v21916_v31 = vld [vmem:[#allocation13 + $0x300] ss:$16 sps:$4 sm:$0xff]  }
 0x366   :  { %3260 = vmatprep.subr.bf16.mxu0 %v21792_v0  ;;  %3300 = vmatpush1.bf16.msra.mxu1 %v21883_v48 }
 0x367   :  { %3301 = vmatprep.subr.bf16.mxu1 %v21888_v50  ;;  %v21823_v50 = vld [vmem:[#allocation13 + $0xe8] ss:$16 sps:$4 sm:$0xff]  }
 0x369   :  { %3261 = vmatpush1.bf16.msra.mxu0 %v21790_v58 }
 0x36a   :  { %3262 = vmatprep.subr.bf16.mxu0 %v21795_v62  ;;  %3302 = vmatpush1.bf16.msra.mxu1 %v21886_v55  ;;  %v21828_v55 = vld [vmem:[#allocation13 + $0xcc] ss:$16 sps:$4 sm:$0xff]  }
 0x36b   :  { %3303 = vmatprep.subr.bf16.mxu1 %v21891_v1 }
 0x36d   :  { %3263 = vmatpush1.bf16.msra.mxu0 %v21793_v42  ;;  %v21915_v42 = vld [vmem:[#allocation13 + $0x324] ss:$16 sps:$4 sm:$0xff]  }
 0x36e   :  { %3264 = vmatprep.subr.bf16.mxu0 %v21798_v8  ;;  %3304 = vmatpush1.bf16.msra.mxu1 %v21889_v3  ;;  %v21826_v3 = vld [vmem:[#allocation13 + $0xc8] ss:$16 sps:$4 sm:$0xff]  }
 0x36f   :  { %3305 = vmatprep.subr.bf16.mxu1 %v21894_v6  ;;  %v21829_v6 = vld [vmem:[#allocation13 + $0xa8] ss:$16 sps:$4 sm:$0xff]  }
 0x371   :  { %3265 = vmatpush1.bf16.msra.mxu0 %v21796_v49 }
 0x372   :  { %3266 = vmatprep.subr.bf16.mxu0 %v21801_v51  ;;  %3306 = vmatpush1.bf16.msra.mxu1 %v21892_v9  ;;  %v21918_v51 = vld [vmem:[#allocation13 + $0x304] ss:$16 sps:$4 sm:$0xff]   ;;  %v21832_v9 = vld [vmem:[#allocation13 + $0x88] ss:$16 sps:$4 sm:$0xff]  }
 0x373   :  { %3307 = vmatprep.subr.bf16.mxu1 %v21897_v11  ;;  %v21835_v11 = vld [vmem:[#allocation13 + $0x68] ss:$16 sps:$4 sm:$0xff]  }
 0x375   :  { %3267 = vmatpush2.bf16.msra.mxu0 %v21799_v57 }
 0x376   :  { %3268 = vmatprep.subr.bf16.mxu0 %v21804_v2  ;;  %3308 = vmatpush2.bf16.msra.mxu1 %v21895_v17  ;;  %v21921_v2 = vld [vmem:[#allocation13 + $0x2ec] ss:$16 sps:$4 sm:$0xff]   ;;  %v21838_v17 = vld [vmem:[#allocation13 + $0x48] ss:$16 sps:$4 sm:$0xff]  }
 0x377   :  { %3309 = vmatprep.subr.bf16.mxu1 %v21900_v19  ;;  %v21841_v19 = vld [vmem:[#allocation13 + $0x28] ss:$16 sps:$4 sm:$0xff]  }
 0x379   :  { %3269 = vmatpush2.bf16.msra.mxu0 %v21802_v5  ;;  %v21831_v5 = vld [vmem:[#allocation13 + $0xac] ss:$16 sps:$4 sm:$0xff]  }
 0x37a   :  { %3270 = vmatprep.subr.bf16.mxu0 %v21807_v7  ;;  %3310 = vmatpush2.bf16.msra.mxu1 %v21898_v4  ;;  %v21834_v7 = vld [vmem:[#allocation13 + $0x8c] ss:$16 sps:$4 sm:$0xff]   ;;  %v21844_v4 = vld [vmem:[#allocation13 + $0x8] ss:$16 sps:$4 sm:$0xff]  }
 0x37b   :  { %3311 = vmatprep.subr.bf16.mxu1 %v21903_v21  ;;  %v21847_v21 = vld [vmem:[#allocation13 + $0x1e8] ss:$16 sps:$4 sm:$0xff]  }
 0x37d   :  { %3271 = vmatpush2.bf16.msra.mxu0 %v21805_v10  ;;  %v21837_v10 = vld [vmem:[#allocation13 + $0x6c] ss:$16 sps:$4 sm:$0xff]  }
 0x37e   :  { %3272 = vmatprep.subr.bf16.mxu0 %v21810_v15  ;;  %3312 = vmatpush2.bf16.msra.mxu1 %v21901_v23  ;;  %v21840_v15 = vld [vmem:[#allocation13 + $0x4c] ss:$16 sps:$4 sm:$0xff]   ;;  %v21850_v23 = vld [vmem:[#allocation13 + $0x1c8] ss:$16 sps:$4 sm:$0xff]  }
 0x37f   :  { %3313 = vmatprep.subr.bf16.mxu1 %v21906_v25  ;;  %v21853_v25 = vld [vmem:[#allocation13 + $0x1a8] ss:$16 sps:$4 sm:$0xff]  }
 0x381   :  { %3273 = vmatpush2.bf16.msra.mxu0 %v21808_v18  ;;  %v21843_v18 = vld [vmem:[#allocation13 + $0x2c] ss:$16 sps:$4 sm:$0xff]  }
 0x382   :  { %3274 = vmatprep.subr.bf16.mxu0 %v21813_v44  ;;  %3314 = vmatpush2.bf16.msra.mxu1 %v21904_v26  ;;  %v21846_v44 = vld [vmem:[#allocation13 + $0xc] ss:$16 sps:$4 sm:$0xff]   ;;  %v21856_v26 = vld [vmem:[#allocation13 + $0x188] ss:$16 sps:$4 sm:$0xff]  }
 0x383   :  { %3315 = vmatprep.subr.bf16.mxu1 %v21909_v46  ;;  %v21859_v46 = vld [vmem:[#allocation13 + $0x168] ss:$16 sps:$4 sm:$0xff]  }
 0x385   :  { %3275 = vmatpush2.bf16.msra.mxu0 %v21811_v20  ;;  %v21849_v20 = vld [vmem:[#allocation13 + $0x1ec] ss:$16 sps:$4 sm:$0xff]  }
 0x386   :  { %3276 = vmatprep.subr.bf16.mxu0 %v21816_v22  ;;  %3316 = vmatpush2.bf16.msra.mxu1 %v21907_v52  ;;  %v21852_v22 = vld [vmem:[#allocation13 + $0x1cc] ss:$16 sps:$4 sm:$0xff]   ;;  %v21862_v52 = vld [vmem:[#allocation13 + $0x148] ss:$16 sps:$4 sm:$0xff]  }
 0x387   :  { %3317 = vmatprep.subr.bf16.mxu1 %v21912_v33 }
 0x389   :  { %3277 = vmatpush2.bf16.msra.mxu0 %v21814_v24  ;;  %v21855_v24 = vld [vmem:[#allocation13 + $0x1ac] ss:$16 sps:$4 sm:$0xff]  }
 0x38a   :  { %3278 = vmatprep.subr.bf16.mxu0 %v21819_v12  ;;  %3318 = vmatpush2.bf16.msra.mxu1 %v21910_v35  ;;  %v21858_v12 = vld [vmem:[#allocation13 + $0x18c] ss:$16 sps:$4 sm:$0xff]  }
 0x38b   :  { %3319 = vmatprep.subr.bf16.mxu1 %v21915_v42 }
 0x38d   :  { %3279 = vmatpush2.bf16.msra.mxu0 %v21817_v27  ;;  %v21861_v27 = vld [vmem:[#allocation13 + $0x16c] ss:$16 sps:$4 sm:$0xff]  }
 0x38e   :  { %3280 = vmatprep.subr.bf16.mxu0 %v21822_v47  ;;  %3320 = vmatpush2.bf16.msra.mxu1 %v21913_v43  ;;  %v21864_v47 = vld [vmem:[#allocation13 + $0x14c] ss:$16 sps:$4 sm:$0xff]  }
 0x38f   :  { %3321 = vmatprep.subr.bf16.mxu1 %v21918_v51 }
 0x391   :  { %3281 = vmatpush2.bf16.msra.mxu0 %v21820_v32 }
 0x392   :  { %3332 = vmatprep.subr.bf16.mxu0 %v21825_v13  ;;  %3322 = vmatpush2.bf16.msra.mxu1 %v21916_v31  ;;  %v21865_v13 = vld [vmem:[#allocation13 + $0x128] ss:$16 sps:$4 sm:$0xff]  }
 0x393   :  { %3373 = vmatprep.subr.bf16.mxu1 %v21921_v2  ;;  %v21919_v2 = vld [vmem:[#allocation13 + $0x2e8] ss:$16 sps:$4 sm:$0xff]  }
 0x394   :  { %v2240_v38 = vpop.f32.mrf.mxu0  ;;  %v2281_v60 = vpop.f32.mrf.mxu1 }
 0x395   :  { %v2241_v0 = vadd.f32 %v2240_v38, %v2200_v14  ;;  %v21868_v38 = vld [vmem:[#allocation13 + $0x108] ss:$16 sps:$4 sm:$0xff]  }
 0x396   :  { %v2242_v40 = vpop.f32.mrf.mxu0  ;;  %v2283_v58 = vpop.f32.mrf.mxu1 }
 0x397   :  { %v2282_v41 = vadd.f32 %v2281_v60, %v2241_v0  ;;  %v2243_v62 = vadd.f32 %v2242_v40, %v2202_v39  ;;  %v835_v0 = vrot.slane %v25761_v45, %v25691_v63  ;;  %v839_v40 = vrot.slane %v25761_v45, %v25685_v59  ;;  %v21924_v45 = vld [vmem:[#allocation13 + $0x2cc] ss:$16 sps:$4 sm:$0xff]  }
 0x398   :  { %v2244_v28 = vpop.f32.mrf.mxu0  ;;  %v2285_v8 = vpop.f32.mrf.mxu1 }
 0x399   :  { %v2284_v30 = vadd.f32 %v2283_v58, %v2243_v62  ;;  %v2452_v16 = vmax.f32 %v2282_v41, 0.0 }
 0x39a   :  { %v2245_v48 = vpop.f32.mrf.mxu0  ;;  %v2286_v49 = vpop.f32.mrf.mxu1 }
 0x39b   :  { %v2453_v29 = vmax.f32 %v2284_v30, 0.0  ;;  %v25771_v1 = vpack.c.bf16 %v2452_v16, %v2452_v16 }
 0x39d   :  { %v2585_v57 = vpack.c.bf16 %v2453_v29, %v2453_v29 }
 0x39f   :  { %3282 = vmatprep.mubr.bf16.mxu0 %v2585_v57 }
 0x3a0   :  { %3283 = vmatmul.mubr.bf16.vlgmr.msra.gmra.mxu0 %v25771_v1 }
 0x3a1   :  { %3333 = vmatpush1.bf16.msra.mxu0 %v21823_v50  ;;  %3364 = vmatprep.mubr.bf16.mxu0 %v2585_v57 }
 0x3a2   :  { %3334 = vmatprep.subr.bf16.mxu0 %v21828_v55 }
 0x3a5   :  { %3335 = vmatpush1.bf16.msra.mxu0 %v21826_v3 }
 0x3a6   :  { %3336 = vmatprep.subr.bf16.mxu0 %v21831_v5 }
 0x3a9   :  { %3337 = vmatpush1.bf16.msra.mxu0 %v21829_v6  ;;  %v21922_v6 = vld [vmem:[#allocation13 + $0x2c8] ss:$16 sps:$4 sm:$0xff]  }
 0x3aa   :  { %3338 = vmatprep.subr.bf16.mxu0 %v21834_v7  ;;  %v21927_v7 = vld [vmem:[#allocation13 + $0x2ac] ss:$16 sps:$4 sm:$0xff]  }
 0x3ad   :  { %3339 = vmatpush1.bf16.msra.mxu0 %v21832_v9  ;;  %v21925_v9 = vld [vmem:[#allocation13 + $0x2a8] ss:$16 sps:$4 sm:$0xff]  }
 0x3ae   :  { %3340 = vmatprep.subr.bf16.mxu0 %v21837_v10  ;;  %v21930_v10 = vld [vmem:[#allocation13 + $0x28c] ss:$16 sps:$4 sm:$0xff]  }
 0x3b1   :  { %3341 = vmatpush1.bf16.msra.mxu0 %v21835_v11  ;;  %v21967_v11 = vld [vmem:[#allocation16 + $0xe0] ss:$16 sps:$4 sm:$0xff]  }
 0x3b2   :  { %3342 = vmatprep.subr.bf16.mxu0 %v21840_v15  ;;  %v21969_v15 = vld [vmem:[#allocation16 + $0xe4] ss:$16 sps:$4 sm:$0xff]  }
 0x3b5   :  { %3343 = vmatpush1.bf16.msra.mxu0 %v21838_v17  ;;  %v21972_v17 = vld [vmem:[#allocation16 + $0xc4] ss:$16 sps:$4 sm:$0xff]  }
 0x3b6   :  { %3344 = vmatprep.subr.bf16.mxu0 %v21843_v18  ;;  %v21928_v18 = vld [vmem:[#allocation13 + $0x288] ss:$16 sps:$4 sm:$0xff]  }
 0x3b9   :  { %3345 = vmatpush1.bf16.msra.mxu0 %v21841_v19  ;;  %v21970_v19 = vld [vmem:[#allocation16 + $0xc0] ss:$16 sps:$4 sm:$0xff]  }
 0x3ba   :  { %3346 = vmatprep.subr.bf16.mxu0 %v21846_v44  ;;  %v21933_v44 = vld [vmem:[#allocation13 + $0x26c] ss:$16 sps:$4 sm:$0xff]  }
 0x3bd   :  { %3347 = vmatpush1.bf16.msra.mxu0 %v21844_v4  ;;  %v21975_v4 = vld [vmem:[#allocation16 + $0xa4] ss:$16 sps:$4 sm:$0xff]  }
 0x3be   :  { %3348 = vmatprep.subr.bf16.mxu0 %v21849_v20  ;;  %v21931_v20 = vld [vmem:[#allocation13 + $0x268] ss:$16 sps:$4 sm:$0xff]  }
 0x3c1   :  { %3349 = vmatpush2.bf16.msra.mxu0 %v21847_v21  ;;  %v21973_v21 = vld [vmem:[#allocation16 + $0xa0] ss:$16 sps:$4 sm:$0xff]  }
 0x3c2   :  { %3350 = vmatprep.subr.bf16.mxu0 %v21852_v22  ;;  %v21936_v22 = vld [vmem:[#allocation13 + $0x24c] ss:$16 sps:$4 sm:$0xff]  }
 0x3c5   :  { %3351 = vmatpush2.bf16.msra.mxu0 %v21850_v23  ;;  %v21978_v23 = vld [vmem:[#allocation16 + $0x84] ss:$16 sps:$4 sm:$0xff]  }
 0x3c6   :  { %3352 = vmatprep.subr.bf16.mxu0 %v21855_v24  ;;  %v21934_v24 = vld [vmem:[#allocation13 + $0x248] ss:$16 sps:$4 sm:$0xff]  }
 0x3c9   :  { %3353 = vmatpush2.bf16.msra.mxu0 %v21853_v25  ;;  %v21976_v25 = vld [vmem:[#allocation16 + $0x80] ss:$16 sps:$4 sm:$0xff]  }
 0x3ca   :  { %3354 = vmatprep.subr.bf16.mxu0 %v21858_v12  ;;  %v21939_v12 = vld [vmem:[#allocation13 + $0x22c] ss:$16 sps:$4 sm:$0xff]  }
 0x3cd   :  { %3355 = vmatpush2.bf16.msra.mxu0 %v21856_v26  ;;  %v21981_v26 = vld [vmem:[#allocation16 + $0x64] ss:$16 sps:$4 sm:$0xff]  }
 0x3ce   :  { %3356 = vmatprep.subr.bf16.mxu0 %v21861_v27  ;;  %v21937_v27 = vld [vmem:[#allocation13 + $0x228] ss:$16 sps:$4 sm:$0xff]  }
 0x3d1   :  { %3357 = vmatpush2.bf16.msra.mxu0 %v21859_v46  ;;  %v21979_v46 = vld [vmem:[#allocation16 + $0x60] ss:$16 sps:$4 sm:$0xff]  }
 0x3d2   :  { %3358 = vmatprep.subr.bf16.mxu0 %v21864_v47  ;;  %v21942_v47 = vld [vmem:[#allocation13 + $0x20c] ss:$16 sps:$4 sm:$0xff]  }
 0x3d4   :  { %v2322_v32 = vpop.f32.mrf.mxu0 }
 0x3d5   :  { %v2363_v33 = vpop.f32.mrf.mxu1  ;;  %3359 = vmatpush2.bf16.msra.mxu0 %v21862_v52  ;;  %v2323_v58 = vadd.f32 %v2322_v32, %v835_v0  ;;  %v21984_v52 = vld [vmem:[#allocation16 + $0x44] ss:$16 sps:$4 sm:$0xff]   ;;  %v21982_v32 = vld [vmem:[#allocation16 + $0x40] ss:$16 sps:$4 sm:$0xff]  }
 0x3d6   :  { %v2324_v35 = vpop.f32.mrf.mxu0  ;;  %3360 = vmatprep.subr.bf16.mxu0 %v21867_v53  ;;  %v21940_v53 = vld [vmem:[#allocation13 + $0x208] ss:$16 sps:$4 sm:$0xff]  }
 0x3d7   :  { %v2365_v36 = vpop.f32.mrf.mxu1  ;;  %v2325_v41 = vadd.f32 %v2324_v35, %v839_v40  ;;  %v2364_v62 = vadd.f32 %v2363_v33, %v2323_v58  ;;  %v21945_v33 = vld [vmem:[#allocation13 + $0x3ec] ss:$16 sps:$4 sm:$0xff]   ;;  %v21985_v35 = vld [vmem:[#allocation16 + $0x20] ss:$16 sps:$4 sm:$0xff]   ;;  %v21949_v0 = vld [vmem:[#allocation13 + $0x3a8] ss:$16 sps:$4 sm:$0xff]  }
 0x3d8   :  { %v2326_v37 = vpop.f32.mrf.mxu0  ;;  %v21991_v40 = vld [vmem:[#allocation16 + $0x1e0] ss:$16 sps:$4 sm:$0xff]   ;;  %v21954_v58 = vld [vmem:[#allocation13 + $0x38c] ss:$16 sps:$4 sm:$0xff]  }
 0x3d9   :  { %v2367_v14 = vpop.f32.mrf.mxu1  ;;  %3361 = vmatpush2.bf16.msra.mxu0 %v21865_v13  ;;  %v2366_v28 = vadd.f32 %v2365_v36, %v2325_v41  ;;  %v21987_v13 = vld [vmem:[#allocation16 + $0x24] ss:$16 sps:$4 sm:$0xff]   ;;  %v21948_v36 = vld [vmem:[#allocation13 + $0x3cc] ss:$16 sps:$4 sm:$0xff]  }
 0x3da   :  { %v2327_v60 = vpop.f32.mrf.mxu0  ;;  %3362 = vmatprep.subr.bf16.mxu0 %v21870_v34  ;;  %v21943_v34 = vld [vmem:[#allocation13 + $0x3e8] ss:$16 sps:$4 sm:$0xff]  }
 0x3db   :  { %v2368_v39 = vpop.f32.mrf.mxu1  ;;  %v21990_v37 = vld [vmem:[#allocation16 + $0x4] ss:$16 sps:$4 sm:$0xff]   ;;  %v21951_v60 = vld [vmem:[#allocation13 + $0x3ac] ss:$16 sps:$4 sm:$0xff]  }
 0x3dc   :  { %v21946_v14 = vld [vmem:[#allocation13 + $0x3c8] ss:$16 sps:$4 sm:$0xff]  }
 0x3dd   :  { %3363 = vmatpush2.bf16.msra.mxu0 %v21868_v38  ;;  %v21988_v38 = vld [vmem:[#allocation16] ss:$16 sps:$4 sm:$0xff]   ;;  %v21993_v39 = vld [vmem:[#allocation16 + $0x1e4] ss:$16 sps:$4 sm:$0xff]  }
 0x3de   :  { %4190 = vmatprep.subr.bf16.mxu0 %v21969_v15  ;;  %v21996_v41 = vld [vmem:[#allocation16 + $0x1c4] ss:$16 sps:$4 sm:$0xff]  }
 0x3e0   :  { %3365 = vmatmul.mubr.bf16.vlgmr.msra.gmra.mxu0 %v25771_v1 }
 0x3e1   :  { %4191 = vmatpush1.bf16.msra.mxu0 %v21967_v11  ;;  %v22014_v11 = vld [vmem:[#allocation16 + $0x104] ss:$16 sps:$4 sm:$0xff]  }
 0x3e2   :  { %4192 = vmatprep.subr.bf16.mxu0 %v21972_v17  ;;  %v22012_v17 = vld [vmem:[#allocation16 + $0x100] ss:$16 sps:$4 sm:$0xff]  }
 0x3e5   :  { %4193 = vmatpush1.bf16.msra.mxu0 %v21970_v19  ;;  %v22017_v19 = vld [vmem:[#allocation16 + $0x2e4] ss:$16 sps:$4 sm:$0xff]  }
 0x3e6   :  { %4194 = vmatprep.subr.bf16.mxu0 %v21975_v4  ;;  %v22023_v4 = vld [vmem:[#allocation16 + $0x2c4] ss:$16 sps:$4 sm:$0xff]  }
 0x3e9   :  { %4195 = vmatpush1.bf16.msra.mxu0 %v21973_v21  ;;  %v22029_v21 = vld [vmem:[#allocation16 + $0x2a4] ss:$16 sps:$4 sm:$0xff]  }
 0x3ea   :  { %4196 = vmatprep.subr.bf16.mxu0 %v21978_v23  ;;  %v22035_v23 = vld [vmem:[#allocation16 + $0x284] ss:$16 sps:$4 sm:$0xff]  }
 0x3ed   :  { %4197 = vmatpush1.bf16.msra.mxu0 %v21976_v25  ;;  %v22041_v25 = vld [vmem:[#allocation16 + $0x264] ss:$16 sps:$4 sm:$0xff]  }
 0x3ee   :  { %4198 = vmatprep.subr.bf16.mxu0 %v21981_v26  ;;  %v22047_v26 = vld [vmem:[#allocation16 + $0x244] ss:$16 sps:$4 sm:$0xff]  }
 0x3f1   :  { %4199 = vmatpush1.bf16.msra.mxu0 %v21979_v46  ;;  %v22053_v46 = vld [vmem:[#allocation16 + $0x224] ss:$16 sps:$4 sm:$0xff]  }
 0x3f2   :  { %4200 = vmatprep.subr.bf16.mxu0 %v21984_v52  ;;  %v22059_v52 = vld [vmem:[#allocation16 + $0x204] ss:$16 sps:$4 sm:$0xff]  }
 0x3f5   :  { %4201 = vmatpush1.bf16.msra.mxu0 %v21982_v32  ;;  %v22065_v32 = vld [vmem:[#allocation16 + $0x3e4] ss:$16 sps:$4 sm:$0xff]  }
 0x3f6   :  { %4202 = vmatprep.subr.bf16.mxu0 %v21987_v13  ;;  %v22071_v13 = vld [vmem:[#allocation16 + $0x3c4] ss:$16 sps:$4 sm:$0xff]  }
 0x3f9   :  { %4203 = vmatpush1.bf16.msra.mxu0 %v21985_v35  ;;  %v22077_v35 = vld [vmem:[#allocation16 + $0x3a4] ss:$16 sps:$4 sm:$0xff]  }
 0x3fa   :  { %4204 = vmatprep.subr.bf16.mxu0 %v21990_v37  ;;  %v22083_v37 = vld [vmem:[#allocation16 + $0x384] ss:$16 sps:$4 sm:$0xff]  }
 0x3fd   :  { %4205 = vmatpush1.bf16.msra.mxu0 %v21988_v38  ;;  %v22089_v38 = vld [vmem:[#allocation16 + $0x364] ss:$16 sps:$4 sm:$0xff]  }
 0x3fe   :  { %4206 = vmatprep.subr.bf16.mxu0 %v21993_v39  ;;  %v22095_v39 = vld [vmem:[#allocation16 + $0x344] ss:$16 sps:$4 sm:$0xff]  }
 0x401   :  { %4207 = vmatpush2.bf16.msra.mxu0 %v21991_v40 }
 0x402   :  { %4208 = vmatprep.subr.bf16.mxu0 %v21996_v41 }
 0x414   :  { %v2404_v42 = vpop.f32.mrf.mxu0 }
 0x415   :  { %v2405_v8 = vadd.f32 %v2404_v42, %v2364_v62  ;;  %v2445_v43 = vpop.f32.mrf.mxu1  ;;  %v21952_v62 = vld [vmem:[#allocation13 + $0x388] ss:$16 sps:$4 sm:$0xff]   ;;  %v21994_v42 = vld [vmem:[#allocation16 + $0x1c0] ss:$16 sps:$4 sm:$0xff]  }
 0x416   :  { %v2406_v30 = vpop.f32.mrf.mxu0  ;;  %4209 = vmatpush2.bf16.msra.mxu0 %v21994_v42 }
 0x417   :  { %v2446_v16 = vadd.f32 %v2445_v43, %v2405_v8  ;;  %v2407_v48 = vadd.f32 %v2406_v30, %v2366_v28  ;;  %v2447_v49 = vpop.f32.mrf.mxu1  ;;  %v21957_v28 = vld [vmem:[#allocation13 + $0x36c] ss:$16 sps:$4 sm:$0xff]   ;;  %v21999_v8 = vld [vmem:[#allocation16 + $0x1a4] ss:$16 sps:$4 sm:$0xff]   ;;  %v21997_v30 = vld [vmem:[#allocation16 + $0x1a0] ss:$16 sps:$4 sm:$0xff]  }
 0x418   :  { %v2408_v29 = vpop.f32.mrf.mxu0  ;;  %v21955_v43 = vld [vmem:[#allocation13 + $0x368] ss:$16 sps:$4 sm:$0xff]   ;;  %4210 = vmatprep.subr.bf16.mxu0 %v21999_v8 }
 0x419   :  { %v2448_v50 = vadd.f32 %v2447_v49, %v2407_v48  ;;  %v2449_v51 = vpop.f32.mrf.mxu1  ;;  %v2454_v55 = vmax.f32 %v2446_v16, 0.0  ;;  %v21960_v16 = vld [vmem:[#allocation13 + $0x34c] ss:$16 sps:$4 sm:$0xff]   ;;  %v22002_v48 = vld [vmem:[#allocation16 + $0x184] ss:$16 sps:$4 sm:$0xff]  }
 0x41a   :  { %v2409_v31 = vpop.f32.mrf.mxu0  ;;  %v21958_v49 = vld [vmem:[#allocation13 + $0x348] ss:$16 sps:$4 sm:$0xff]   ;;  %v22000_v29 = vld [vmem:[#allocation16 + $0x180] ss:$16 sps:$4 sm:$0xff]   ;;  %4211 = vmatpush2.bf16.msra.mxu0 %v21997_v30 }
 0x41b   :  { %v2455_v57 = vmax.f32 %v2448_v50, 0.0  ;;  %v2450_v1 = vpop.f32.mrf.mxu1  ;;  %v25779_v5 = vpack.c.bf16 %v2454_v55, %v2454_v55  ;;  %v21963_v50 = vld [vmem:[#allocation13 + $0x32c] ss:$16 sps:$4 sm:$0xff]   ;;  %v22005_v51 = vld [vmem:[#allocation16 + $0x164] ss:$16 sps:$4 sm:$0xff]   ;;  %4212 = vmatprep.subr.bf16.mxu0 %v22002_v48 }
 0x41c   :  { %v21961_v55 = vld [vmem:[#allocation13 + $0x328] ss:$16 sps:$4 sm:$0xff]   ;;  %v22003_v31 = vld [vmem:[#allocation16 + $0x160] ss:$16 sps:$4 sm:$0xff]  }
 0x41d   :  { %v2587_v3 = vpack.c.bf16 %v2455_v57, %v2455_v57  ;;  %v21966_v57 = vld [vmem:[#allocation13 + $0x30c] ss:$16 sps:$4 sm:$0xff]   ;;  %v22008_v1 = vld [vmem:[#allocation16 + $0x144] ss:$16 sps:$4 sm:$0xff]   ;;  %v22105_v48 = vld [vmem:[#allocation16 + $0x300] ss:$16 sps:$4 sm:$0xff]  }
 0x41e   :  { %4213 = vmatpush2.bf16.msra.mxu0 %v22000_v29  ;;  %v22113_v29 = vld [vmem:[#allocation16 + $0x2ec] ss:$16 sps:$4 sm:$0xff]  }
 0x41f   :  { %3323 = vmatprep.mubr.bf16.mxu1 %v2587_v3  ;;  %4214 = vmatprep.subr.bf16.mxu0 %v22005_v51  ;;  %v25442_v51 = vmov 0  }
 0x420   :  { %3324 = vmatmul.mubr.bf16.vlgmr.msra.gmra.mxu1 %v25779_v5  ;;  %21384 = vset.pattern.permute.xlu1 %v25442_v51 }
 0x421   :  { %3374 = vmatpush1.bf16.msra.mxu1 %v21919_v2  ;;  %3405 = vmatprep.mubr.bf16.mxu1 %v2587_v3  ;;  %v21964_v2 = vld [vmem:[#allocation13 + $0x308] ss:$16 sps:$4 sm:$0xff]  }
 0x422   :  { %3375 = vmatprep.subr.bf16.mxu1 %v21924_v45  ;;  %v22006_v45 = vld [vmem:[#allocation16 + $0x140] ss:$16 sps:$4 sm:$0xff]   ;;  %4215 = vmatpush2.bf16.msra.mxu0 %v22003_v31 }
 0x423   :  { %4216 = vmatprep.subr.bf16.mxu0 %v22008_v1 }
 0x425   :  { %3376 = vmatpush1.bf16.msra.mxu1 %v21922_v6  ;;  %v22011_v6 = vld [vmem:[#allocation16 + $0x124] ss:$16 sps:$4 sm:$0xff]  }
 0x426   :  { %3377 = vmatprep.subr.bf16.mxu1 %v21927_v7  ;;  %4217 = vmatpush2.bf16.msra.mxu0 %v22006_v45 }
 0x427   :  { %4218 = vmatprep.subr.bf16.mxu0 %v22011_v6 }
 0x429   :  { %3378 = vmatpush1.bf16.msra.mxu1 %v21925_v9  ;;  %v22009_v9 = vld [vmem:[#allocation16 + $0x120] ss:$16 sps:$4 sm:$0xff]  }
 0x42a   :  { %3379 = vmatprep.subr.bf16.mxu1 %v21930_v10  ;;  %4219 = vmatpush2.bf16.msra.mxu0 %v22009_v9 }
 0x42b   :  { %4220 = vmatprep.subr.bf16.mxu0 %v22014_v11 }
 0x42d   :  { %3380 = vmatpush1.bf16.msra.mxu1 %v21928_v18  ;;  %v22015_v18 = vld [vmem:[#allocation16 + $0x2e0] ss:$16 sps:$4 sm:$0xff]  }
 0x42e   :  { %3381 = vmatprep.subr.bf16.mxu1 %v21933_v44  ;;  %4221 = vmatpush2.bf16.msra.mxu0 %v22012_v17  ;;  %v22020_v44 = vld [vmem:[#allocation16 + $0xec] ss:$16 sps:$4 sm:$0xff]  }
 0x42f   :  { %4272 = vmatprep.subr.bf16.mxu0 %v22020_v44 }
 0x431   :  { %3382 = vmatpush1.bf16.msra.mxu1 %v21931_v20  ;;  %v22027_v20 = vld [vmem:[#allocation16 + $0x2a0] ss:$16 sps:$4 sm:$0xff]  }
 0x432   :  { %3383 = vmatprep.subr.bf16.mxu1 %v21936_v22  ;;  %v22033_v22 = vld [vmem:[#allocation16 + $0x280] ss:$16 sps:$4 sm:$0xff]  }
 0x435   :  { %3384 = vmatpush1.bf16.msra.mxu1 %v21934_v24  ;;  %v22039_v24 = vld [vmem:[#allocation16 + $0x260] ss:$16 sps:$4 sm:$0xff]  }
 0x436   :  { %3385 = vmatprep.subr.bf16.mxu1 %v21939_v12  ;;  %v22045_v12 = vld [vmem:[#allocation16 + $0x240] ss:$16 sps:$4 sm:$0xff]  }
 0x439   :  { %3386 = vmatpush1.bf16.msra.mxu1 %v21937_v27  ;;  %v22051_v27 = vld [vmem:[#allocation16 + $0x220] ss:$16 sps:$4 sm:$0xff]  }
 0x43a   :  { %3387 = vmatprep.subr.bf16.mxu1 %v21942_v47  ;;  %v22057_v47 = vld [vmem:[#allocation16 + $0x200] ss:$16 sps:$4 sm:$0xff]  }
 0x43d   :  { %3388 = vmatpush1.bf16.msra.mxu1 %v21940_v53  ;;  %v22063_v53 = vld [vmem:[#allocation16 + $0x3e0] ss:$16 sps:$4 sm:$0xff]  }
 0x43e   :  { %3389 = vmatprep.subr.bf16.mxu1 %v21945_v33  ;;  %v22069_v33 = vld [vmem:[#allocation16 + $0x3c0] ss:$16 sps:$4 sm:$0xff]  }
 0x441   :  { %3390 = vmatpush2.bf16.msra.mxu1 %v21943_v34  ;;  %v22075_v34 = vld [vmem:[#allocation16 + $0x3a0] ss:$16 sps:$4 sm:$0xff]  }
 0x442   :  { %3391 = vmatprep.subr.bf16.mxu1 %v21948_v36  ;;  %v22081_v36 = vld [vmem:[#allocation16 + $0x380] ss:$16 sps:$4 sm:$0xff]  }
 0x445   :  { %3392 = vmatpush2.bf16.msra.mxu1 %v21946_v14  ;;  %v22087_v14 = vld [vmem:[#allocation16 + $0x360] ss:$16 sps:$4 sm:$0xff]  }
 0x446   :  { %3393 = vmatprep.subr.bf16.mxu1 %v21951_v60  ;;  %v22093_v60 = vld [vmem:[#allocation16 + $0x340] ss:$16 sps:$4 sm:$0xff]  }
 0x449   :  { %3394 = vmatpush2.bf16.msra.mxu1 %v21949_v0  ;;  %v2588_v0 = vld [vmem:[#allocation14] sm:$0xf] }
 0x44a   :  { %3395 = vmatprep.subr.bf16.mxu1 %v21954_v58  ;;  %v2601_v40 = vrot.slane %v2588_v0, %v25691_v63  ;;  %v2605_v58 = vrot.slane %v2588_v0, %v25685_v59  ;;  %v2597_v31 = vrot.slane %v2588_v0, %v25682_v56 }
 0x44d   :  { %3396 = vmatpush2.bf16.msra.mxu1 %v21952_v62  ;;  %v22101_v62 = vld [vmem:[#allocation16 + $0x324] ss:$16 sps:$4 sm:$0xff]  }
 0x44e   :  { %3397 = vmatprep.subr.bf16.mxu1 %v21957_v28  ;;  %v22099_v28 = vld [vmem:[#allocation16 + $0x320] ss:$16 sps:$4 sm:$0xff]  }
 0x451   :  { %3398 = vmatpush2.bf16.msra.mxu1 %v21955_v43 }
 0x452   :  { %3399 = vmatprep.subr.bf16.mxu1 %v21960_v16  ;;  %v22107_v16 = vld [vmem:[#allocation16 + $0x304] ss:$16 sps:$4 sm:$0xff]  }
 0x455   :  { %3400 = vmatpush2.bf16.msra.mxu1 %v21958_v49 }
 0x456   :  { %3401 = vmatprep.subr.bf16.mxu1 %v21963_v50  ;;  %v4591_v50 = vld [vmem:[%s26378_s6] sm:$0xff] }
 0x457   :  { %4595 = vperm.xlu1 %21384, %v4591_v50  }
 0x459   :  { %3402 = vmatpush2.bf16.msra.mxu1 %v21961_v55  ;;  %v2593_v55 = vrot.slane %v2588_v0, %v25688_v61  ;;  %v22098_v0 = vld [vmem:[#allocation16 + $0x14c] ss:$16 sps:$4 sm:$0xff]  }
 0x45a   :  { %3403 = vmatprep.subr.bf16.mxu1 %v21966_v57  ;;  %v25443_v57 = vmov 1  }
 0x45b   :  { %21385 = vset.pattern.permute.xlu1 %v25443_v57 }
 0x45c   :  { %4614 = vperm.xlu1 %21385, %v4591_v50  }
 0x45d   :  { %3404 = vmatpush2.bf16.msra.mxu1 %v21964_v2 }
 0x45e   :  { %4231 = vmatprep.subr.bf16.mxu1 %v22017_v19  ;;  %v22018_v19 = vld [vmem:[#allocation16 + $0xe8] ss:$16 sps:$4 sm:$0xff]  }
 0x460   :  { %3406 = vmatmul.mubr.bf16.vlgmr.msra.gmra.mxu1 %v25779_v5  ;;  %v25783_v3 = vpop.f32.mrf.mxu0  ;;  %v22021_v5 = vld [vmem:[#allocation16 + $0x2c0] ss:$16 sps:$4 sm:$0xff]  }
 0x461   :  { %4232 = vmatpush1.bf16.msra.mxu1 %v22015_v18  ;;  %v3285_v1 = vadd.f32 %v25783_v3, %v2593_v55  ;;  %v4354_v3 = vld [vmem:[%s26379_s3] sm:$0xff] }
 0x462   :  { %v25785_v7 = vpop.f32.mrf.mxu0  ;;  %4233 = vmatprep.subr.bf16.mxu1 %v22023_v4 }
 0x463   :  { %v3287_v45 = vadd.f32 %v25785_v7, %v2597_v31  ;;  %v22024_v7 = vld [vmem:[#allocation16 + $0xc8] ss:$16 sps:$4 sm:$0xff]   ;;  %v22116_v31 = vld [vmem:[#allocation16 + $0x2cc] ss:$16 sps:$4 sm:$0xff]  }
 0x464   :  { %v3288_v10 = vpop.f32.mrf.mxu0 }
 0x465   :  { %4234 = vmatpush1.bf16.msra.mxu1 %v22021_v5  ;;  %v25444_v10 = vmov 3   ;;  %v22026_v5 = vld [vmem:[#allocation16 + $0xcc] ss:$16 sps:$4 sm:$0xff]  }
 0x466   :  { %v3289_v15 = vpop.f32.mrf.mxu0  ;;  %4235 = vmatprep.subr.bf16.mxu1 %v22029_v21  ;;  %21387 = vset.pattern.permute.xlu1 %v25444_v10  ;;  %v22032_v21 = vld [vmem:[#allocation16 + $0xac] ss:$16 sps:$4 sm:$0xff]  }
 0x467   :  { %4656 = vperm.xlu1 %21387, %v4591_v50  }
 0x469   :  { %4236 = vmatpush1.bf16.msra.mxu1 %v22027_v20 }
 0x46a   :  { %4237 = vmatprep.subr.bf16.mxu1 %v22035_v23  ;;  %v25445_v23 = vmov 2  }
 0x46b   :  { %21388 = vset.pattern.permute.xlu1 %v25442_v51  ;;  %21386 = vset.pattern.permute.xlu0 %v25445_v23  ;;  %v22111_v51 = vld [vmem:[#allocation16 + $0x2e8] ss:$16 sps:$4 sm:$0xff]   ;;  %v22167_v23 = vld [vmem:[%s26380_s11 + $0x58] sm:$0xff]  }
 0x46c   :  { %4358 = vperm.xlu1 %21388, %v4354_v3   ;;  %4635 = vperm.xlu0 %21386, %v4591_v50  }
 0x46d   :  { %4238 = vmatpush1.bf16.msra.mxu1 %v22033_v22  ;;  %v22030_v22 = vld [vmem:[#allocation16 + $0xa8] ss:$16 sps:$4 sm:$0xff]  }
 0x46e   :  { %4239 = vmatprep.subr.bf16.mxu1 %v22041_v25  ;;  %v22036_v25 = vld [vmem:[#allocation16 + $0x88] ss:$16 sps:$4 sm:$0xff]  }
 0x470   :  { %21389 = vset.pattern.permute.xlu1 %v25443_v57  ;;  %21390 = vset.pattern.permute.xlu0 %v25444_v10  ;;  %v22161_v10 = vld [vmem:[%s26380_s11 + $0x70] sm:$0xff]  }
 0x471   :  { %4240 = vmatpush1.bf16.msra.mxu1 %v22039_v24  ;;  %4377 = vperm.xlu1 %21389, %v4354_v3   ;;  %v22038_v24 = vld [vmem:[#allocation16 + $0x8c] ss:$16 sps:$4 sm:$0xff]   ;;  %v22165_v3 = vld [vmem:[%s26380_s11 + $0x60] sm:$0xff]  }
 0x472   :  { %4241 = vmatprep.subr.bf16.mxu1 %v22047_v26  ;;  %v22042_v26 = vld [vmem:[#allocation16 + $0x68] ss:$16 sps:$4 sm:$0xff]  }
 0x475   :  { %4242 = vmatpush1.bf16.msra.mxu1 %v22045_v12  ;;  %v22044_v12 = vld [vmem:[#allocation16 + $0x6c] ss:$16 sps:$4 sm:$0xff]  }
 0x476   :  { %4243 = vmatprep.subr.bf16.mxu1 %v22053_v46  ;;  %v22048_v46 = vld [vmem:[#allocation16 + $0x48] ss:$16 sps:$4 sm:$0xff]  }
 0x479   :  { %4244 = vmatpush1.bf16.msra.mxu1 %v22051_v27  ;;  %v22050_v27 = vld [vmem:[#allocation16 + $0x4c] ss:$16 sps:$4 sm:$0xff]  }
 0x47a   :  { %4245 = vmatprep.subr.bf16.mxu1 %v22059_v52  ;;  %v22054_v52 = vld [vmem:[#allocation16 + $0x28] ss:$16 sps:$4 sm:$0xff]  }
 0x47d   :  { %4246 = vmatpush1.bf16.msra.mxu1 %v22057_v47  ;;  %v22056_v47 = vld [vmem:[#allocation16 + $0x2c] ss:$16 sps:$4 sm:$0xff]  }
 0x47e   :  { %4247 = vmatprep.subr.bf16.mxu1 %v22065_v32  ;;  %v22060_v32 = vld [vmem:[#allocation16 + $0x8] ss:$16 sps:$4 sm:$0xff]  }
 0x481   :  { %4248 = vmatpush2.bf16.msra.mxu1 %v22063_v53  ;;  %v22062_v53 = vld [vmem:[#allocation16 + $0xc] ss:$16 sps:$4 sm:$0xff]  }
 0x482   :  { %4249 = vmatprep.subr.bf16.mxu1 %v22071_v13  ;;  %v22066_v13 = vld [vmem:[#allocation16 + $0x1e8] ss:$16 sps:$4 sm:$0xff]  }
 0x485   :  { %4250 = vmatpush2.bf16.msra.mxu1 %v22069_v33  ;;  %v22068_v33 = vld [vmem:[#allocation16 + $0x1ec] ss:$16 sps:$4 sm:$0xff]  }
 0x486   :  { %4251 = vmatprep.subr.bf16.mxu1 %v22077_v35  ;;  %v22072_v35 = vld [vmem:[#allocation16 + $0x1c8] ss:$16 sps:$4 sm:$0xff]  }
 0x489   :  { %4252 = vmatpush2.bf16.msra.mxu1 %v22075_v34  ;;  %v22074_v34 = vld [vmem:[#allocation16 + $0x1cc] ss:$16 sps:$4 sm:$0xff]  }
 0x48a   :  { %4253 = vmatprep.subr.bf16.mxu1 %v22083_v37  ;;  %v22078_v37 = vld [vmem:[#allocation16 + $0x1a8] ss:$16 sps:$4 sm:$0xff]  }
 0x48d   :  { %4254 = vmatpush2.bf16.msra.mxu1 %v22081_v36  ;;  %v22080_v36 = vld [vmem:[#allocation16 + $0x1ac] ss:$16 sps:$4 sm:$0xff]  }
 0x48e   :  { %4255 = vmatprep.subr.bf16.mxu1 %v22089_v38  ;;  %v22084_v38 = vld [vmem:[#allocation16 + $0x188] ss:$16 sps:$4 sm:$0xff]  }
 0x491   :  { %4256 = vmatpush2.bf16.msra.mxu1 %v22087_v14  ;;  %v22086_v14 = vld [vmem:[#allocation16 + $0x18c] ss:$16 sps:$4 sm:$0xff]  }
 0x492   :  { %4257 = vmatprep.subr.bf16.mxu1 %v22095_v39  ;;  %v22090_v39 = vld [vmem:[#allocation16 + $0x168] ss:$16 sps:$4 sm:$0xff]  }
 0x495   :  { %4258 = vmatpush2.bf16.msra.mxu1 %v22093_v60  ;;  %v22092_v60 = vld [vmem:[#allocation16 + $0x16c] ss:$16 sps:$4 sm:$0xff]  }
 0x496   :  { %4259 = vmatprep.subr.bf16.mxu1 %v22101_v62  ;;  %v22110_v62 = vld [vmem:[#allocation16 + $0x10c] ss:$16 sps:$4 sm:$0xff]  }
 0x499   :  { %4260 = vmatpush2.bf16.msra.mxu1 %v22099_v28 }
 0x49a   :  { %4261 = vmatprep.subr.bf16.mxu1 %v22107_v16 }
 0x49d   :  { %4262 = vmatpush2.bf16.msra.mxu1 %v22105_v48 }
 0x49e   :  { %4313 = vmatprep.subr.bf16.mxu1 %v22113_v29 }
 0x4a0   :  { %v3366_v41 = vpop.f32.mrf.mxu0 }
 0x4a1   :  { %v25789_v42 = vadd.f32 %v3366_v41, %v2601_v40  ;;  %v22096_v40 = vld [vmem:[#allocation16 + $0x148] ss:$16 sps:$4 sm:$0xff]  }
 0x4a2   :  { %v3368_v8 = vpop.f32.mrf.mxu0  ;;  %v22102_v41 = vld [vmem:[#allocation16 + $0x128] ss:$16 sps:$4 sm:$0xff]  }
 0x4a3   :  { %v25791_v43 = vadd.f32 %v3368_v8, %v2605_v58  ;;  %v22104_v58 = vld [vmem:[#allocation16 + $0x12c] ss:$16 sps:$4 sm:$0xff]  }
 0x4a4   :  { %v3370_v30 = vpop.f32.mrf.mxu0 }
 0x4a5   :  { %v22108_v30 = vld [vmem:[#allocation16 + $0x108] ss:$16 sps:$4 sm:$0xff]  }
 0x4a6   :  { %v3371_v49 = vpop.f32.mrf.mxu0 }
 0x4e0   :  { %v3325_v2 = vpop.f32.mrf.mxu1 }
 0x4e1   :  { %v3326_v6 = vadd.f32 %v3325_v2, %v3285_v1  ;;  %v22117_v2 = vld [vmem:[#allocation16 + $0x2a8] ss:$16 sps:$4 sm:$0xff]  }
 0x4e2   :  { %v3327_v9 = vpop.f32.mrf.mxu1 }
 0x4e3   :  { %v3328_v11 = vadd.f32 %v3327_v9, %v3287_v45  ;;  %v3414_v15 = vmax.f32 %v3326_v6, 0.0  ;;  %v22122_v45 = vld [vmem:[#allocation16 + $0x28c] ss:$16 sps:$4 sm:$0xff]  }
 0x4e4   :  { %v3329_v17 = vpop.f32.mrf.mxu1  ;;  %v22159_v6 = vld [vmem:[%s26380_s11 + $0x78] sm:$0xff]  }
 0x4e5   :  { %v3415_v18 = vmax.f32 %v3328_v11, 0.0  ;;  %v25801_v20 = vpack.c.bf16 %v3414_v15, %v3414_v15  ;;  %v22160_v9 = vld [vmem:[%s26380_s11 + $0x38] sm:$0xff]   ;;  %v22120_v11 = vld [vmem:[#allocation16 + $0x288] ss:$16 sps:$4 sm:$0xff]  }
 0x4e6   :  { %v3330_v44 = vpop.f32.mrf.mxu1  ;;  %v22162_v15 = vld [vmem:[%s26380_s11 + $0x30] sm:$0xff]   ;;  %v22125_v17 = vld [vmem:[#allocation16 + $0x26c] ss:$16 sps:$4 sm:$0xff]  }
 0x4e7   :  { %v25798_v4 = vpack.c.bf16 %v3415_v18, %v3415_v18  ;;  %v22163_v18 = vld [vmem:[%s26380_s11 + $0x68] sm:$0xff]  }
 0x4e8   :  { %v22164_v44 = vld [vmem:[%s26380_s11 + $0x28] sm:$0xff]  }
 0x4e9   :  { %4222 = vmatprep.mubr.bf16.mxu0 %v25798_v4 }
 0x4ea   :  { %4223 = vmatmul.mubr.bf16.vlgmr.msra.gmra.mxu0 %v25801_v20 }
 0x4eb   :  { %4273 = vmatpush1.bf16.msra.mxu0 %v22018_v19  ;;  %4304 = vmatprep.mubr.bf16.mxu0 %v25798_v4  ;;  %v22123_v19 = vld [vmem:[#allocation16 + $0x268] ss:$16 sps:$4 sm:$0xff]  }
 0x4ec   :  { %4274 = vmatprep.subr.bf16.mxu0 %v22026_v5  ;;  %v22128_v5 = vld [vmem:[#allocation16 + $0x24c] ss:$16 sps:$4 sm:$0xff]  }
 0x4ef   :  { %4275 = vmatpush1.bf16.msra.mxu0 %v22024_v7  ;;  %v22126_v7 = vld [vmem:[#allocation16 + $0x248] ss:$16 sps:$4 sm:$0xff]  }
 0x4f0   :  { %4276 = vmatprep.subr.bf16.mxu0 %v22032_v21  ;;  %v22166_v21 = vld [vmem:[%s26380_s11 + $0x20] sm:$0xff]  }
 0x4f3   :  { %4277 = vmatpush1.bf16.msra.mxu0 %v22030_v22  ;;  %v22131_v22 = vld [vmem:[#allocation16 + $0x22c] ss:$16 sps:$4 sm:$0xff]  }
 0x4f4   :  { %4278 = vmatprep.subr.bf16.mxu0 %v22038_v24  ;;  %v22129_v24 = vld [vmem:[#allocation16 + $0x228] ss:$16 sps:$4 sm:$0xff]  }
 0x4f7   :  { %4279 = vmatpush1.bf16.msra.mxu0 %v22036_v25  ;;  %v22168_v25 = vld [vmem:[%s26380_s11 + $0x18] sm:$0xff]  }
 0x4f8   :  { %4280 = vmatprep.subr.bf16.mxu0 %v22044_v12  ;;  %v22134_v12 = vld [vmem:[#allocation16 + $0x20c] ss:$16 sps:$4 sm:$0xff]  }
 0x4fb   :  { %4281 = vmatpush1.bf16.msra.mxu0 %v22042_v26  ;;  %v22132_v26 = vld [vmem:[#allocation16 + $0x208] ss:$16 sps:$4 sm:$0xff]  }
 0x4fc   :  { %4282 = vmatprep.subr.bf16.mxu0 %v22050_v27  ;;  %v22137_v27 = vld [vmem:[#allocation16 + $0x3ec] ss:$16 sps:$4 sm:$0xff]  }
 0x4ff   :  { %4283 = vmatpush1.bf16.msra.mxu0 %v22048_v46  ;;  %v22135_v46 = vld [vmem:[#allocation16 + $0x3e8] ss:$16 sps:$4 sm:$0xff]  }
 0x500   :  { %4284 = vmatprep.subr.bf16.mxu0 %v22056_v47  ;;  %v22140_v47 = vld [vmem:[#allocation16 + $0x3cc] ss:$16 sps:$4 sm:$0xff]  }
 0x503   :  { %4285 = vmatpush1.bf16.msra.mxu0 %v22054_v52  ;;  %v22138_v52 = vld [vmem:[#allocation16 + $0x3c8] ss:$16 sps:$4 sm:$0xff]  }
 0x504   :  { %4286 = vmatprep.subr.bf16.mxu0 %v22062_v53  ;;  %v22143_v53 = vld [vmem:[#allocation16 + $0x3ac] ss:$16 sps:$4 sm:$0xff]  }
 0x507   :  { %4287 = vmatpush1.bf16.msra.mxu0 %v22060_v32  ;;  %v22141_v32 = vld [vmem:[#allocation16 + $0x3a8] ss:$16 sps:$4 sm:$0xff]  }
 0x508   :  { %4288 = vmatprep.subr.bf16.mxu0 %v22068_v33  ;;  %v22146_v33 = vld [vmem:[#allocation16 + $0x38c] ss:$16 sps:$4 sm:$0xff]  }
 0x50b   :  { %4289 = vmatpush2.bf16.msra.mxu0 %v22066_v13  ;;  %v4592_v13 = vld [vmem:[#allocation22] ss:$4 sm:$0x3] }
 0x50c   :  { %4290 = vmatprep.subr.bf16.mxu0 %v22074_v34  ;;  %v22144_v34 = vld [vmem:[#allocation16 + $0x388] ss:$16 sps:$4 sm:$0xff]  }
 0x50f   :  { %4291 = vmatpush2.bf16.msra.mxu0 %v22072_v35  ;;  %v4612_v35 = vld [vmem:[#allocation22 + $0x1] ss:$4 sm:$0x3] }
 0x510   :  { %4292 = vmatprep.subr.bf16.mxu0 %v22080_v36  ;;  %v22149_v36 = vld [vmem:[#allocation16 + $0x36c] ss:$16 sps:$4 sm:$0xff]  }
 0x513   :  { %4293 = vmatpush2.bf16.msra.mxu0 %v22078_v37  ;;  %v4602_v37 = vrot.slane %v4592_v13, %v25688_v61 }
 0x514   :  { %4294 = vmatprep.subr.bf16.mxu0 %v22086_v14  ;;  %v4606_v14 = vrot.slane %v4592_v13, %v25682_v56  ;;  %v22185_v13 = vld [vmem:[%s26381_s4 + $0x50] sm:$0xff]  }
 0x517   :  { %4295 = vmatpush2.bf16.msra.mxu0 %v22084_v38  ;;  %v4596_v38 = vpop.permute.xlu1 %4595 }
 0x518   :  { %4296 = vmatprep.subr.bf16.mxu0 %v22092_v60  ;;  %v4621_v60 = vrot.slane %v4612_v35, %v25688_v61 }
 0x51b   :  { %4297 = vmatpush2.bf16.msra.mxu0 %v22090_v39  ;;  %v4625_v39 = vrot.slane %v4612_v35, %v25682_v56  ;;  %v22186_v35 = vld [vmem:[%s26381_s4 + $0x10] sm:$0xff]  }
 0x51c   :  { %4298 = vmatprep.subr.bf16.mxu0 %v22098_v0  ;;  %v22147_v0 = vld [vmem:[#allocation16 + $0x368] ss:$16 sps:$4 sm:$0xff]  }
 0x51f   :  { %4299 = vmatpush2.bf16.msra.mxu0 %v22096_v40  ;;  %v22152_v40 = vld [vmem:[#allocation16 + $0x34c] ss:$16 sps:$4 sm:$0xff]  }
 0x520   :  { %v3407_v28 = vpop.f32.mrf.mxu1  ;;  %4300 = vmatprep.subr.bf16.mxu0 %v22104_v58  ;;  %v4609_v58 = vmul.f32 %v4602_v37, %v4596_v38  ;;  %v22187_v37 = vld [vmem:[%s26381_s4 + $0x48] sm:$0xff]  }
 0x521   :  { %v3408_v8 = vadd.f32 %v3407_v28, %v25789_v42  ;;  %v22114_v42 = vld [vmem:[#allocation16 + $0x2c8] ss:$16 sps:$4 sm:$0xff]  }
 0x522   :  { %v3409_v16 = vpop.f32.mrf.mxu1 }
 0x523   :  { %v3410_v48 = vadd.f32 %v3409_v16, %v25791_v43  ;;  %4301 = vmatpush2.bf16.msra.mxu0 %v22102_v41  ;;  %v3416_v49 = vmax.f32 %v3408_v8, 0.0  ;;  %v22119_v43 = vld [vmem:[#allocation16 + $0x2ac] ss:$16 sps:$4 sm:$0xff]   ;;  %v4610_v41 = vmul.f32 %v4606_v14, %v4596_v38 }
 0x524   :  { %v3411_v29 = vpop.f32.mrf.mxu1  ;;  %4302 = vmatprep.subr.bf16.mxu0 %v22110_v62  ;;  %v4615_v62 = vpop.permute.xlu1 %4614  ;;  %v22155_v16 = vld [vmem:[#allocation16 + $0x32c] ss:$16 sps:$4 sm:$0xff]  }
 0x525   :  { %v3417_v50 = vmax.f32 %v3410_v48, 0.0  ;;  %v25810_v1 = vpack.c.bf16 %v3416_v49, %v3416_v49  ;;  %v4628_v28 = vmul.f32 %v4621_v60, %v4615_v62  ;;  %v4629_v8 = vmul.f32 %v4625_v39, %v4615_v62  ;;  %v22153_v29 = vld [vmem:[#allocation16 + $0x328] ss:$16 sps:$4 sm:$0xff]   ;;  %v22188_v38 = vld [vmem:[%s26381_s4 + $0x8] sm:$0xff]  }
 0x526   :  { %v3412_v55 = vpop.f32.mrf.mxu1  ;;  %v22189_v39 = vld [vmem:[%s26381_s4 + $0x40] sm:$0xff]   ;;  %v4375_v62 = vld [vmem:[#allocation17 + $0x1] ss:$2 sm:$0x3] }
 0x527   :  { %v25808_v57 = vpack.c.bf16 %v3417_v50, %v3417_v50  ;;  %4303 = vmatpush2.bf16.msra.mxu0 %v22108_v30  ;;  %v22150_v30 = vld [vmem:[#allocation16 + $0x348] ss:$16 sps:$4 sm:$0xff]   ;;  %v4630_v48 = vadd.f32 %v4628_v28, %v4609_v58  ;;  %v4631_v49 = vadd.f32 %v4629_v8, %v4610_v41  ;;  %v22158_v50 = vld [vmem:[#allocation16 + $0x30c] ss:$16 sps:$4 sm:$0xff]   ;;  %v4384_v8 = vrot.slane %v4375_v62, %v25688_v61 }
 0x528   :  { %21065 = vmatprep.subr.bf16.mxu0 %v22159_v6  ;;  %v22169_v55 = vld [vmem:[%s26380_s11 + $0x50] sm:$0xff]   ;;  %v22175_v6 = vld [vmem:[%s26381_s4 + $0x78] sm:$0xff]  }
 0x529   :  { %4263 = vmatprep.mubr.bf16.mxu1 %v25808_v57  ;;  %v4355_v41 = vld [vmem:[#allocation17] ss:$2 sm:$0x3] }
 0x52a   :  { %4264 = vmatmul.mubr.bf16.vlgmr.msra.gmra.mxu1 %v25810_v1  ;;  %4305 = vmatmul.mubr.bf16.vlgmr.msra.gmra.mxu0 %v25801_v20  ;;  %v4365_v28 = vrot.slane %v4355_v41, %v25688_v61 }
 0x52b   :  { %4314 = vmatpush1.bf16.msra.mxu1 %v22111_v51  ;;  %4345 = vmatprep.mubr.bf16.mxu1 %v25808_v57  ;;  %v22156_v51 = vld [vmem:[#allocation16 + $0x308] ss:$16 sps:$4 sm:$0xff]  }
 0x52c   :  { %4315 = vmatprep.subr.bf16.mxu1 %v22116_v31  ;;  %21066 = vmatpush3.bf16.msra.mxu0 %v22160_v9  ;;  %v22170_v31 = vld [vmem:[%s26380_s11 + $0x10] sm:$0xff]   ;;  %v22176_v9 = vld [vmem:[%s26381_s4 + $0x38] sm:$0xff]  }
 0x52d   :  { %21067 = vmatprep.subr.bf16.mxu0 %v22161_v10  ;;  %v22177_v10 = vld [vmem:[%s26381_s4 + $0x70] sm:$0xff]  }
 0x52f   :  { %4316 = vmatpush1.bf16.msra.mxu1 %v22114_v42  ;;  %v22171_v42 = vld [vmem:[%s26380_s11 + $0x48] sm:$0xff]  }
 0x530   :  { %4317 = vmatprep.subr.bf16.mxu1 %v22119_v43  ;;  %21068 = vmatpush3.bf16.msra.mxu0 %v22162_v15  ;;  %v22172_v43 = vld [vmem:[%s26380_s11 + $0x8] sm:$0xff]  }
 0x531   :  { %21069 = vmatprep.subr.bf16.mxu0 %v22163_v18  ;;  %v22179_v15 = vld [vmem:[%s26381_s4 + $0x68] sm:$0xff]   ;;  %v22181_v18 = vld [vmem:[%s26381_s4 + $0x60] sm:$0xff]  }
 0x533   :  { %4318 = vmatpush1.bf16.msra.mxu1 %v22117_v2  ;;  %v22173_v2 = vld [vmem:[%s26380_s11 + $0x40] sm:$0xff]  }
 0x534   :  { %4319 = vmatprep.subr.bf16.mxu1 %v22122_v45  ;;  %21070 = vmatpush3.bf16.msra.mxu0 %v22164_v44  ;;  %v22174_v45 = vld [vmem:[%s26380_s11] sm:$0xff]   ;;  %v22183_v44 = vld [vmem:[%s26381_s4 + $0x58] sm:$0xff]  }
 0x535   :  { %21071 = vmatprep.subr.bf16.mxu0 %v22165_v3  ;;  %v4633_v3 = vld [vmem:[#allocation22 + $0x2] ss:$4 sm:$0x3] }
 0x537   :  { %4320 = vmatpush1.bf16.msra.mxu1 %v22120_v11  ;;  %v22178_v11 = vld [vmem:[%s26381_s4 + $0x30] sm:$0xff]  }
 0x538   :  { %4321 = vmatprep.subr.bf16.mxu1 %v22125_v17  ;;  %21072 = vmatpush3.bf16.msra.mxu0 %v22166_v21  ;;  %v22180_v17 = vld [vmem:[%s26381_s4 + $0x28] sm:$0xff]   ;;  %v4646_v21 = vrot.slane %v4633_v3, %v25682_v56 }
 0x539   :  { %21073 = vmatprep.subr.bf16.mxu0 %v22167_v23  ;;  %v4636_v23 = vpop.permute.xlu0 %4635 }
 0x53b   :  { %4322 = vmatpush1.bf16.msra.mxu1 %v22123_v19  ;;  %v22182_v19 = vld [vmem:[%s26381_s4 + $0x20] sm:$0xff]  }
 0x53c   :  { %4323 = vmatprep.subr.bf16.mxu1 %v22128_v5  ;;  %21074 = vmatpush3.bf16.msra.mxu0 %v22168_v25  ;;  %v22184_v5 = vld [vmem:[%s26381_s4 + $0x18] sm:$0xff]  }
 0x53d   :  { %21075 = vmatprep.subr.bf16.mxu0 %v22169_v55  ;;  %v4397_v55 = vld [vmem:[#allocation19] sm:$0x3] }
 0x53f   :  { %4324 = vmatpush1.bf16.msra.mxu1 %v22126_v7  ;;  %v4642_v7 = vrot.slane %v4633_v3, %v25688_v61 }
 0x540   :  { %4325 = vmatprep.subr.bf16.mxu1 %v22131_v22  ;;  %21076 = vmatpush3.bf16.msra.mxu0 %v22170_v31  ;;  %v4654_v22 = vld [vmem:[#allocation22 + $0x3] ss:$4 sm:$0x3] }
 0x541   :  { %21077 = vmatprep.subr.bf16.mxu0 %v22171_v42  ;;  %v4667_v25 = vrot.slane %v4654_v22, %v25682_v56 }
 0x543   :  { %4326 = vmatpush1.bf16.msra.mxu1 %v22129_v24  ;;  %v4663_v24 = vrot.slane %v4654_v22, %v25688_v61 }
 0x544   :  { %4327 = vmatprep.subr.bf16.mxu1 %v22134_v12  ;;  %21078 = vmatpush3.bf16.msra.mxu0 %v22172_v43  ;;  %v4649_v12 = vmul.f32 %v4642_v7, %v4636_v23 }
 0x545   :  { %21079 = vmatprep.subr.bf16.mxu0 %v22173_v2 }
 0x547   :  { %4328 = vmatpush1.bf16.msra.mxu1 %v22132_v26  ;;  %v4650_v26 = vmul.f32 %v4646_v21, %v4636_v23 }
 0x548   :  { %4329 = vmatprep.subr.bf16.mxu1 %v22137_v27  ;;  %21080 = vmatpush3.bf16.msra.mxu0 %v22174_v45  ;;  %v4657_v27 = vpop.permute.xlu1 %4656 }
 0x54b   :  { %4330 = vmatpush2.bf16.msra.mxu1 %v22135_v46  ;;  %v4670_v46 = vmul.f32 %v4663_v24, %v4657_v27 }
 0x54c   :  { %4331 = vmatprep.subr.bf16.mxu1 %v22140_v47  ;;  %v4671_v47 = vmul.f32 %v4667_v25, %v4657_v27  ;;  %v4359_v58 = vpop.permute.xlu1 %4358 }
 0x54f   :  { %4332 = vmatpush2.bf16.msra.mxu1 %v22138_v52  ;;  %v4651_v52 = vadd.f32 %v4649_v12, %v4630_v48  ;;  %v4388_v48 = vrot.slane %v4375_v62, %v25682_v56  ;;  %v4676_v12 = vld [vmem:[#allocation23] sm:$0x3]  ;;  %v22199_v62 = vld [vmem:[#allocation31 + $0x4a4] ss:$16 sps:$4 sm:$0xff]  }
 0x550   :  { %4333 = vmatprep.subr.bf16.mxu1 %v22143_v53  ;;  %v4652_v53 = vadd.f32 %v4650_v26, %v4631_v49  ;;  %v4372_v49 = vmul.f32 %v4365_v28, %v4359_v58  ;;  %v22202_v28 = vld [vmem:[#allocation31 + $0x484] ss:$16 sps:$4 sm:$0xff]  }
 0x553   :  { %4334 = vmatpush2.bf16.msra.mxu1 %v22141_v32  ;;  %v4672_v32 = vadd.f32 %v4670_v46, %v4651_v52  ;;  %v4681_v46 = vrot.slane %v4676_v12, %v25688_v61 }
 0x554   :  { %4335 = vmatprep.subr.bf16.mxu1 %v22146_v33  ;;  %v25851_v33 = vadd.f32 %v4671_v47, %v4652_v53 }
 0x557   :  { %4336 = vmatpush2.bf16.msra.mxu1 %v22144_v34 }
 0x558   :  { %4337 = vmatprep.subr.bf16.mxu1 %v22149_v36 }
 0x55b   :  { %4338 = vmatpush2.bf16.msra.mxu1 %v22147_v0  ;;  %v22190_v0 = vld [vmem:[%s26381_s4] sm:$0xff]  }
 0x55c   :  { %4339 = vmatprep.subr.bf16.mxu1 %v22152_v40  ;;  %v22193_v40 = vld [vmem:[#allocation31 + $0x4e4] ss:$16 sps:$4 sm:$0xff]  }
 0x55f   :  { %4340 = vmatpush2.bf16.msra.mxu1 %v22150_v30  ;;  %v4378_v30 = vpop.permute.xlu1 %4377 }
 0x560   :  { %4341 = vmatprep.subr.bf16.mxu1 %v22155_v16  ;;  %v4369_v16 = vrot.slane %v4355_v41, %v25682_v56  ;;  %v25869_v41 = vrot.slane %v25798_v4, 1 }
 0x563   :  { %4342 = vmatpush2.bf16.msra.mxu1 %v22153_v29  ;;  %v4391_v29 = vmul.f32 %v4384_v8, %v4378_v30  ;;  %v22200_v8 = vld [vmem:[#allocation31 + $0x480] ss:$16 sps:$4 sm:$0xff]  }
 0x564   :  { %4343 = vmatprep.subr.bf16.mxu1 %v22158_v50  ;;  %v4373_v50 = vmul.f32 %v4369_v16, %v4359_v58  ;;  %v22196_v58 = vld [vmem:[#allocation31 + $0x4c4] ss:$16 sps:$4 sm:$0xff]   ;;  %v22203_v16 = vld [vmem:[#allocation31 + $0x460] ss:$16 sps:$4 sm:$0xff]  }
 0x565   :  { %v4393_v31 = vadd.f32 %v4391_v29, %v4372_v49  ;;  %v22206_v49 = vld [vmem:[#allocation31 + $0x440] ss:$16 sps:$4 sm:$0xff]   ;;  %v22211_v29 = vld [vmem:[#allocation31 + $0x424] ss:$16 sps:$4 sm:$0xff]  }
 0x567   :  { %4344 = vmatpush2.bf16.msra.mxu1 %v22156_v51  ;;  %v4392_v51 = vmul.f32 %v4388_v48, %v4378_v30  ;;  %v22205_v30 = vld [vmem:[#allocation31 + $0x464] ss:$16 sps:$4 sm:$0xff]  }
 0x568   :  { %21087 = vmatprep.subr.bf16.mxu1 %v22175_v6  ;;  %v4402_v6 = vrot.slane %v4397_v55, %v25688_v61  ;;  %v22208_v48 = vld [vmem:[#allocation31 + $0x444] ss:$16 sps:$4 sm:$0xff]  }
 0x569   :  { %v4394_v2 = vadd.f32 %v4392_v51, %v4373_v50  ;;  %v22209_v50 = vld [vmem:[#allocation31 + $0x420] ss:$16 sps:$4 sm:$0xff]   ;;  %v22214_v51 = vld [vmem:[#allocation31 + $0x404] ss:$16 sps:$4 sm:$0xff]  }
 0x56a   :  { %4346 = vmatmul.mubr.bf16.vlgmr.msra.gmra.mxu1 %v25810_v1 }
 0x56b   :  { %21088 = vmatpush3.bf16.msra.mxu1 %v22176_v9 }
 0x56c   :  { %21089 = vmatprep.subr.bf16.mxu1 %v22177_v10 }
 0x56f   :  { %21090 = vmatpush3.bf16.msra.mxu1 %v22178_v11 }
 0x570   :  { %21091 = vmatprep.subr.bf16.mxu1 %v22179_v15 }
 0x573   :  { %21092 = vmatpush3.bf16.msra.mxu1 %v22180_v17  ;;  %v4406_v17 = vrot.slane %v4397_v55, %v25682_v56  ;;  %v22212_v55 = vld [vmem:[#allocation31 + $0x400] ss:$16 sps:$4 sm:$0xff]  }
 0x574   :  { %21093 = vmatprep.subr.bf16.mxu1 %v22181_v18 }
 0x577   :  { %21094 = vmatpush3.bf16.msra.mxu1 %v22182_v19 }
 0x578   :  { %21095 = vmatprep.subr.bf16.mxu1 %v22183_v44 }
 0x57b   :  { %21096 = vmatpush3.bf16.msra.mxu1 %v22184_v5 }
 0x57c   :  { %21097 = vmatprep.subr.bf16.mxu1 %v22185_v13  ;;  %v4685_v13 = vrot.slane %v4676_v12, %v25682_v56  ;;  %v22245_v12 = vld [vmem:[#allocation31 + $0x4a8] ss:$16 sps:$4 sm:$0xff]  }
 0x57f   :  { %21098 = vmatpush3.bf16.msra.mxu1 %v22186_v35 }
 0x580   :  { %21099 = vmatprep.subr.bf16.mxu1 %v22187_v37 }
 0x583   :  { %21100 = vmatpush3.bf16.msra.mxu1 %v22188_v38 }
 0x584   :  { %21101 = vmatprep.subr.bf16.mxu1 %v22189_v39 }
 0x587   :  { %21102 = vmatpush3.bf16.msra.mxu1 %v22190_v0  ;;  %v22191_v0 = vld [vmem:[#allocation31 + $0x4e0] ss:$16 sps:$4 sm:$0xff]  }
 0x588   :  { %6217 = vmatprep.subr.bf16.mxu1 %v22193_v40 }
 0x5aa   :  { %v4224_v34 = vpop.f32.mrf.mxu0 }
 0x5ac   :  { %v4226_v36 = vpop.f32.mrf.mxu0 }
 0x5ae   :  { %v4228_v14 = vpop.f32.mrf.mxu0 }
 0x5b0   :  { %v4229_v60 = vpop.f32.mrf.mxu0 }
 0x5ea   :  { %v4265_v42 = vpop.f32.mrf.mxu1  ;;  %v4306_v43 = vpop.f32.mrf.mxu0 }
 0x5eb   :  { %v4266_v45 = vadd.f32 %v4265_v42, %v4224_v34  ;;  %v22215_v42 = vld [vmem:[#allocation31 + $0x5e0] ss:$16 sps:$4 sm:$0xff]  }
 0x5ec   :  { %v4267_v9 = vpop.f32.mrf.mxu1  ;;  %v4308_v10 = vpop.f32.mrf.mxu0 }
 0x5ed   :  { %v4395_v11 = vadd.f32 %v4393_v31, %v4266_v45  ;;  %v4268_v15 = vadd.f32 %v4267_v9, %v4226_v36  ;;  %v22217_v31 = vld [vmem:[#allocation31 + $0x5e4] ss:$16 sps:$4 sm:$0xff]  }
 0x5ee   :  { %v4269_v18 = vpop.f32.mrf.mxu1  ;;  %v4310_v19 = vpop.f32.mrf.mxu0  ;;  %v22223_v45 = vld [vmem:[#allocation31 + $0x5a4] ss:$16 sps:$4 sm:$0xff]  }
 0x5ef   :  { %v4409_v44 = vadd.f32 %v4402_v6, %v4395_v11  ;;  %v4396_v5 = vadd.f32 %v4394_v2, %v4268_v15  ;;  %v22218_v2 = vld [vmem:[#allocation31 + $0x5c0] ss:$16 sps:$4 sm:$0xff]   ;;  %v22226_v9 = vld [vmem:[#allocation31 + $0x584] ss:$16 sps:$4 sm:$0xff]  }
 0x5f0   :  { %v4270_v3 = vpop.f32.mrf.mxu1  ;;  %v4311_v7 = vpop.f32.mrf.mxu0  ;;  %v22221_v6 = vld [vmem:[#allocation31 + $0x5a0] ss:$16 sps:$4 sm:$0xff]   ;;  %v22229_v11 = vld [vmem:[#allocation31 + $0x564] ss:$16 sps:$4 sm:$0xff]  }
 0x5f1   :  { %v4410_v21 = vadd.f32 %v4406_v17, %v4396_v5  ;;  %v4411_v22 = vmax.f32 %v4409_v44, 0.0  ;;  %v22227_v15 = vld [vmem:[#allocation31 + $0x560] ss:$16 sps:$4 sm:$0xff]   ;;  %v22232_v17 = vld [vmem:[#allocation31 + $0x544] ss:$16 sps:$4 sm:$0xff]  }
 0x5f2   :  { %v22230_v18 = vld [vmem:[#allocation31 + $0x540] ss:$16 sps:$4 sm:$0xff]   ;;  %v22235_v19 = vld [vmem:[#allocation31 + $0x524] ss:$16 sps:$4 sm:$0xff]   ;;  %v22241_v7 = vld [vmem:[#allocation31 + $0x4ec] ss:$16 sps:$4 sm:$0xff]  }
 0x5f3   :  { %v4412_v23 = vmax.f32 %v4410_v21, 0.0  ;;  %v4445_v25 = vpack.c.bf16 %v4411_v22, %v4411_v22  ;;  %v22233_v44 = vld [vmem:[#allocation31 + $0x520] ss:$16 sps:$4 sm:$0xff]   ;;  %v22238_v5 = vld [vmem:[#allocation31 + $0x504] ss:$16 sps:$4 sm:$0xff]   ;;  %v25873_v22 = vrot.slane %v25801_v20, 1 }
 0x5f4   :  { %v22236_v3 = vld [vmem:[#allocation31 + $0x500] ss:$16 sps:$4 sm:$0xff]   ;;  %v22239_v21 = vld [vmem:[#allocation31 + $0x4e8] ss:$16 sps:$4 sm:$0xff]  }
 0x5f5   :  { %v4446_v24 = vpack.c.bf16 %v4412_v23, %v4412_v23  ;;  %v22244_v23 = vld [vmem:[#allocation31 + $0x4cc] ss:$16 sps:$4 sm:$0xff]  }
 0x5f7   :  { %4582 = vmatprep.mubr.bf16.mxu0 %v4446_v24  ;;  %v22242_v24 = vld [vmem:[#allocation31 + $0x4c8] ss:$16 sps:$4 sm:$0xff]  }
 0x5f8   :  { %4583 = vmatmul.mubr.bf16.vlgmr.msra.gmra.mxu0 %v4445_v25  ;;  %v22247_v25 = vld [vmem:[#allocation31 + $0x4ac] ss:$16 sps:$4 sm:$0xff]  }
 0x62a   :  { %v4347_v26 = vpop.f32.mrf.mxu1 }
 0x62b   :  { %v4348_v27 = vadd.f32 %v4347_v26, %v4306_v43  ;;  %v22220_v43 = vld [vmem:[#allocation31 + $0x5c4] ss:$16 sps:$4 sm:$0xff]   ;;  %v22250_v26 = vld [vmem:[#allocation31 + $0x48c] ss:$16 sps:$4 sm:$0xff]  }
 0x62c   :  { %v4349_v47 = vpop.f32.mrf.mxu1 }
 0x62d   :  { %v4674_v52 = vadd.f32 %v4672_v32, %v4348_v27  ;;  %v4350_v53 = vadd.f32 %v4349_v47, %v4308_v10  ;;  %v22194_v32 = vld [vmem:[#allocation31 + $0x4c0] ss:$16 sps:$4 sm:$0xff]   ;;  %v22248_v27 = vld [vmem:[#allocation31 + $0x488] ss:$16 sps:$4 sm:$0xff]  }
 0x62e   :  { %v4351_v34 = vpop.f32.mrf.mxu1  ;;  %v22224_v10 = vld [vmem:[#allocation31 + $0x580] ss:$16 sps:$4 sm:$0xff]   ;;  %v22251_v47 = vld [vmem:[#allocation31 + $0x468] ss:$16 sps:$4 sm:$0xff]  }
 0x62f   :  { %v4688_v35 = vadd.f32 %v4681_v46, %v4674_v52  ;;  %v4675_v36 = vadd.f32 %v25851_v33, %v4350_v53  ;;  %v22197_v33 = vld [vmem:[#allocation31 + $0x4a0] ss:$16 sps:$4 sm:$0xff]   ;;  %v22253_v46 = vld [vmem:[#allocation31 + $0x46c] ss:$16 sps:$4 sm:$0xff]   ;;  %v22254_v53 = vld [vmem:[#allocation31 + $0x448] ss:$16 sps:$4 sm:$0xff]  }
 0x630   :  { %v4352_v37 = vpop.f32.mrf.mxu1  ;;  %v22256_v52 = vld [vmem:[#allocation31 + $0x44c] ss:$16 sps:$4 sm:$0xff]   ;;  %v22257_v34 = vld [vmem:[#allocation31 + $0x428] ss:$16 sps:$4 sm:$0xff]  }
 0x631   :  { %v4689_v14 = vadd.f32 %v4685_v13, %v4675_v36  ;;  %v4690_v38 = vmax.f32 %v4688_v35, 0.0  ;;  %v22259_v13 = vld [vmem:[#allocation31 + $0x42c] ss:$16 sps:$4 sm:$0xff]   ;;  %v22260_v36 = vld [vmem:[#allocation31 + $0x408] ss:$16 sps:$4 sm:$0xff]  }
 0x632   :  { %v22262_v35 = vld [vmem:[#allocation31 + $0x40c] ss:$16 sps:$4 sm:$0xff]  }
 0x633   :  { %v4691_v60 = vmax.f32 %v4689_v14, 0.0  ;;  %v4724_v40 = vpack.c.bf16 %v4690_v38, %v4690_v38  ;;  %v22265_v37 = vld [vmem:[#allocation31 + $0x5ec] ss:$16 sps:$4 sm:$0xff]   ;;  %v22263_v14 = vld [vmem:[#allocation31 + $0x5e8] ss:$16 sps:$4 sm:$0xff]  }
 0x634   :  { %v22268_v38 = vld [vmem:[#allocation31 + $0x5cc] ss:$16 sps:$4 sm:$0xff]  }
 0x635   :  { %v4725_v39 = vpack.c.bf16 %v4691_v60, %v4691_v60  ;;  %v22266_v60 = vld [vmem:[#allocation31 + $0x5c8] ss:$16 sps:$4 sm:$0xff]  }
 0x637   :  { %4861 = vmatprep.mubr.bf16.mxu1 %v4725_v39  ;;  %v22271_v39 = vld [vmem:[#allocation31 + $0x5ac] ss:$16 sps:$4 sm:$0xff]  }
 0x638   :  { %4862 = vmatmul.mubr.bf16.vlgmr.msra.gmra.mxu1 %v4724_v40  ;;  %v22274_v40 = vld [vmem:[#allocation31 + $0x58c] ss:$16 sps:$4 sm:$0xff]  }
 0x639   :  { %6218 = vmatpush1.bf16.msra.mxu1 %v22191_v0  ;;  %6249 = vmatprep.mubr.bf16.mxu1 %v25869_v41  ;;  %v22269_v0 = vld [vmem:[#allocation31 + $0x5a8] ss:$16 sps:$4 sm:$0xff]  }
 0x63a   :  { %6219 = vmatprep.subr.bf16.mxu1 %v22196_v58  ;;  %v22272_v58 = vld [vmem:[#allocation31 + $0x588] ss:$16 sps:$4 sm:$0xff]  }
 0x63d   :  { %6220 = vmatpush1.bf16.msra.mxu1 %v22194_v32  ;;  %v22277_v32 = vld [vmem:[#allocation31 + $0x56c] ss:$16 sps:$4 sm:$0xff]  }
 0x63e   :  { %6221 = vmatprep.subr.bf16.mxu1 %v22199_v62  ;;  %v22275_v62 = vld [vmem:[#allocation31 + $0x568] ss:$16 sps:$4 sm:$0xff]  }
 0x641   :  { %6222 = vmatpush1.bf16.msra.mxu1 %v22197_v33  ;;  %v22280_v33 = vld [vmem:[#allocation31 + $0x54c] ss:$16 sps:$4 sm:$0xff]  }
 0x642   :  { %6223 = vmatprep.subr.bf16.mxu1 %v22202_v28  ;;  %v22278_v28 = vld [vmem:[#allocation31 + $0x548] ss:$16 sps:$4 sm:$0xff]  }
 0x645   :  { %6224 = vmatpush1.bf16.msra.mxu1 %v22200_v8  ;;  %v22283_v8 = vld [vmem:[#allocation31 + $0x52c] ss:$16 sps:$4 sm:$0xff]  }
 0x646   :  { %6225 = vmatprep.subr.bf16.mxu1 %v22205_v30  ;;  %v22281_v30 = vld [vmem:[#allocation31 + $0x528] ss:$16 sps:$4 sm:$0xff]  }
 0x649   :  { %6226 = vmatpush1.bf16.msra.mxu1 %v22203_v16  ;;  %v22286_v16 = vld [vmem:[#allocation31 + $0x50c] ss:$16 sps:$4 sm:$0xff]  }
 0x64a   :  { %6227 = vmatprep.subr.bf16.mxu1 %v22208_v48  ;;  %v22284_v48 = vld [vmem:[#allocation31 + $0x508] ss:$16 sps:$4 sm:$0xff]  }
 0x64d   :  { %6228 = vmatpush1.bf16.msra.mxu1 %v22206_v49  ;;  %v22289_v49 = vld [vmem:[#allocation31 + $0xe4] ss:$16 sps:$4 sm:$0xff]  }
 0x64e   :  { %6229 = vmatprep.subr.bf16.mxu1 %v22211_v29  ;;  %v22287_v29 = vld [vmem:[#allocation31 + $0xe0] ss:$16 sps:$4 sm:$0xff]  }
 0x651   :  { %6230 = vmatpush1.bf16.msra.mxu1 %v22209_v50  ;;  %v22292_v50 = vld [vmem:[#allocation31 + $0xc4] ss:$16 sps:$4 sm:$0xff]  }
 0x652   :  { %6231 = vmatprep.subr.bf16.mxu1 %v22214_v51 }
 0x655   :  { %6232 = vmatpush1.bf16.msra.mxu1 %v22212_v55  ;;  %v22290_v55 = vld [vmem:[#allocation31 + $0xc0] ss:$16 sps:$4 sm:$0xff]  }
 0x656   :  { %6233 = vmatprep.subr.bf16.mxu1 %v22217_v31 }
 0x659   :  { %6234 = vmatpush2.bf16.msra.mxu1 %v22215_v42  ;;  %v22295_v42 = vld [vmem:[#allocation31 + $0xa4] ss:$16 sps:$4 sm:$0xff]  }
 0x65a   :  { %6235 = vmatprep.subr.bf16.mxu1 %v22220_v43 }
 0x65d   :  { %6236 = vmatpush2.bf16.msra.mxu1 %v22218_v2 }
 0x65e   :  { %6237 = vmatprep.subr.bf16.mxu1 %v22223_v45  ;;  %v22293_v45 = vld [vmem:[#allocation31 + $0xa0] ss:$16 sps:$4 sm:$0xff]  }
 0x661   :  { %6238 = vmatpush2.bf16.msra.mxu1 %v22221_v6 }
 0x662   :  { %6239 = vmatprep.subr.bf16.mxu1 %v22226_v9  ;;  %v22298_v9 = vld [vmem:[#allocation31 + $0x84] ss:$16 sps:$4 sm:$0xff]  }
 0x665   :  { %6240 = vmatpush2.bf16.msra.mxu1 %v22224_v10  ;;  %v22296_v10 = vld [vmem:[#allocation31 + $0x80] ss:$16 sps:$4 sm:$0xff]  }
 0x666   :  { %6241 = vmatprep.subr.bf16.mxu1 %v22229_v11  ;;  %v22301_v11 = vld [vmem:[#allocation31 + $0x64] ss:$16 sps:$4 sm:$0xff]  }
 0x669   :  { %6242 = vmatpush2.bf16.msra.mxu1 %v22227_v15  ;;  %v22299_v15 = vld [vmem:[#allocation31 + $0x60] ss:$16 sps:$4 sm:$0xff]  }
 0x66a   :  { %6243 = vmatprep.subr.bf16.mxu1 %v22232_v17  ;;  %v22304_v17 = vld [vmem:[#allocation31 + $0x44] ss:$16 sps:$4 sm:$0xff]  }
 0x66d   :  { %6244 = vmatpush2.bf16.msra.mxu1 %v22230_v18  ;;  %v22302_v18 = vld [vmem:[#allocation31 + $0x40] ss:$16 sps:$4 sm:$0xff]  }
 0x66e   :  { %6245 = vmatprep.subr.bf16.mxu1 %v22235_v19  ;;  %v22307_v19 = vld [vmem:[#allocation31 + $0x24] ss:$16 sps:$4 sm:$0xff]  }
 0x671   :  { %6246 = vmatpush2.bf16.msra.mxu1 %v22233_v44  ;;  %v22305_v44 = vld [vmem:[#allocation31 + $0x20] ss:$16 sps:$4 sm:$0xff]  }
 0x672   :  { %6247 = vmatprep.subr.bf16.mxu1 %v22238_v5  ;;  %v22310_v5 = vld [vmem:[#allocation31 + $0x4] ss:$16 sps:$4 sm:$0xff]  }
 0x675   :  { %6248 = vmatpush2.bf16.msra.mxu1 %v22236_v3  ;;  %v22308_v3 = vld [vmem:[#allocation31] ss:$16 sps:$4 sm:$0xff]  }
 0x676   :  { %6299 = vmatprep.subr.bf16.mxu1 %v22241_v7  ;;  %v22313_v7 = vld [vmem:[#allocation31 + $0x1e4] ss:$16 sps:$4 sm:$0xff]  }
 0x678   :  { %6250 = vmatmul.mubr.bf16.vlgmr.msra.gmra.mxu1 %v25873_v22 }
 0x679   :  { %6300 = vmatpush1.bf16.msra.mxu1 %v22239_v21  ;;  %6331 = vmatprep.mubr.bf16.mxu1 %v25869_v41  ;;  %v22311_v21 = vld [vmem:[#allocation31 + $0x1e0] ss:$16 sps:$4 sm:$0xff]  }
 0x67a   :  { %6301 = vmatprep.subr.bf16.mxu1 %v22244_v23  ;;  %v22407_v23 = vld [vmem:[#allocation26 + $0x38] sm:$0xff]  }
 0x67d   :  { %6302 = vmatpush1.bf16.msra.mxu1 %v22242_v24  ;;  %v22316_v24 = vld [vmem:[#allocation31 + $0x1c4] ss:$16 sps:$4 sm:$0xff]  }
 0x67e   :  { %6303 = vmatprep.subr.bf16.mxu1 %v22247_v25  ;;  %v25446_v25 = vmov 0.0  }
 0x67f   :  { %21294 = vmatprep.subr.bf16.mxu0 %v25446_v25  ;;  %21310 = vmatprep.mubr.msk.bf16.mxu0 %vm25447_vm0, %v25446_v25 }
 0x680   :  { %21295 = vmatpush3.bf16.msra.mxu0 %v22407_v23  ;;  %v22367_v23 = vld [vmem:[#allocation31 + $0x1ac] ss:$16 sps:$4 sm:$0xff]  }
 0x681   :  { %6304 = vmatpush1.bf16.msra.mxu1 %v22245_v12  ;;  %21296 = vmatprep.subr.bf16.mxu0 %v25446_v25  ;;  %v22314_v12 = vld [vmem:[#allocation31 + $0x1c0] ss:$16 sps:$4 sm:$0xff]  }
 0x682   :  { %6305 = vmatprep.subr.bf16.mxu1 %v22250_v26  ;;  %v22411_v26 = vld [vmem:[#allocation26 + $0x30] sm:$0xff]  }
 0x684   :  { %21297 = vmatpush3.bf16.msra.mxu0 %v22411_v26  ;;  %v22373_v26 = vld [vmem:[#allocation31 + $0x16c] ss:$16 sps:$4 sm:$0xff]  }
 0x685   :  { %6306 = vmatpush1.bf16.msra.mxu1 %v22248_v27  ;;  %v22319_v27 = vld [vmem:[#allocation31 + $0x1a4] ss:$16 sps:$4 sm:$0xff]   ;;  %21298 = vmatprep.subr.bf16.mxu0 %v25446_v25 }
 0x686   :  { %6307 = vmatprep.subr.bf16.mxu1 %v22253_v46  ;;  %v22317_v46 = vld [vmem:[#allocation31 + $0x1a0] ss:$16 sps:$4 sm:$0xff]  }
 0x689   :  { %6308 = vmatpush1.bf16.msra.mxu1 %v22251_v47  ;;  %v22415_v47 = vld [vmem:[#allocation26 + $0x28] sm:$0xff]  }
 0x68a   :  { %6309 = vmatprep.subr.bf16.mxu1 %v22256_v52  ;;  %v22322_v52 = vld [vmem:[#allocation31 + $0x184] ss:$16 sps:$4 sm:$0xff]   ;;  %21299 = vmatpush3.bf16.msra.mxu0 %v22415_v47  ;;  %v22374_v47 = vld [vmem:[#allocation31 + $0x148] ss:$16 sps:$4 sm:$0xff]  }
 0x68b   :  { %21300 = vmatprep.subr.bf16.mxu0 %v25446_v25 }
 0x68d   :  { %6310 = vmatpush1.bf16.msra.mxu1 %v22254_v53  ;;  %v22320_v53 = vld [vmem:[#allocation31 + $0x180] ss:$16 sps:$4 sm:$0xff]  }
 0x68e   :  { %6311 = vmatprep.subr.bf16.mxu1 %v22259_v13  ;;  %v22419_v13 = vld [vmem:[#allocation26 + $0x20] sm:$0xff]  }
 0x68f   :  { %21301 = vmatpush3.bf16.msra.mxu0 %v22419_v13  ;;  %v22382_v13 = vld [vmem:[#allocation31 + $0x10c] ss:$16 sps:$4 sm:$0xff]  }
 0x690   :  { %21302 = vmatprep.subr.bf16.mxu0 %v25446_v25 }
 0x691   :  { %6312 = vmatpush1.bf16.msra.mxu1 %v22257_v34  ;;  %v22325_v34 = vld [vmem:[#allocation31 + $0x164] ss:$16 sps:$4 sm:$0xff]  }
 0x692   :  { %6313 = vmatprep.subr.bf16.mxu1 %v22262_v35  ;;  %v22323_v35 = vld [vmem:[#allocation31 + $0x160] ss:$16 sps:$4 sm:$0xff]  }
 0x695   :  { %6314 = vmatpush1.bf16.msra.mxu1 %v22260_v36  ;;  %v22423_v36 = vld [vmem:[#allocation26 + $0x18] sm:$0xff]  }
 0x696   :  { %6315 = vmatprep.subr.bf16.mxu1 %v22265_v37  ;;  %v22328_v37 = vld [vmem:[#allocation31 + $0x144] ss:$16 sps:$4 sm:$0xff]   ;;  %21303 = vmatpush3.bf16.msra.mxu0 %v22423_v36 }
 0x697   :  { %21304 = vmatprep.subr.bf16.mxu0 %v25446_v25  ;;  %v22383_v36 = vld [vmem:[#allocation37 + $0xaf8] ss:$36 sps:$4 sm:$0xff]  }
 0x699   :  { %6316 = vmatpush2.bf16.msra.mxu1 %v22263_v14  ;;  %v22326_v14 = vld [vmem:[#allocation31 + $0x140] ss:$16 sps:$4 sm:$0xff]  }
 0x69a   :  { %6317 = vmatprep.subr.bf16.mxu1 %v22268_v38  ;;  %v22427_v38 = vld [vmem:[#allocation26 + $0x10] sm:$0xff]  }
 0x69b   :  { %21305 = vmatpush3.bf16.msra.mxu0 %v22427_v38  ;;  %v22386_v38 = vld [vmem:[#allocation37 + $0xab0] ss:$36 sps:$4 sm:$0xff]  }
 0x69c   :  { %21306 = vmatprep.subr.bf16.mxu0 %v25446_v25 }
 0x69d   :  { %6318 = vmatpush2.bf16.msra.mxu1 %v22266_v60  ;;  %v22331_v60 = vld [vmem:[#allocation31 + $0x124] ss:$16 sps:$4 sm:$0xff]  }
 0x69e   :  { %6319 = vmatprep.subr.bf16.mxu1 %v22271_v39  ;;  %v22329_v39 = vld [vmem:[#allocation31 + $0x120] ss:$16 sps:$4 sm:$0xff]  }
 0x6a1   :  { %6320 = vmatpush2.bf16.msra.mxu1 %v22269_v0  ;;  %v22431_v0 = vld [vmem:[#allocation26 + $0x8] sm:$0xff]  }
 0x6a2   :  { %6321 = vmatprep.subr.bf16.mxu1 %v22274_v40  ;;  %v22334_v40 = vld [vmem:[#allocation31 + $0x104] ss:$16 sps:$4 sm:$0xff]   ;;  %21307 = vmatpush3.bf16.msra.mxu0 %v22431_v0 }
 0x6a3   :  { %21308 = vmatprep.subr.bf16.mxu0 %v25446_v25  ;;  %v22370_v25 = vld [vmem:[#allocation31 + $0x18c] ss:$16 sps:$4 sm:$0xff]  }
 0x6a5   :  { %6322 = vmatpush2.bf16.msra.mxu1 %v22272_v58  ;;  %v22332_v58 = vld [vmem:[#allocation31 + $0x100] ss:$16 sps:$4 sm:$0xff]  }
 0x6a6   :  { %6323 = vmatprep.subr.bf16.mxu1 %v22277_v32  ;;  %v22435_v32 = vld [vmem:[#allocation26] sm:$0xff]  }
 0x6a7   :  { %21309 = vmatpush3.bf16.msra.mxu0 %v22435_v32  ;;  %v22394_v32 = vld [vmem:[#allocation37 + $0xa24] ss:$36 sps:$4 sm:$0xff]  }
 0x6a9   :  { %6324 = vmatpush2.bf16.msra.mxu1 %v22275_v62  ;;  %v22337_v62 = vld [vmem:[#allocation31 + $0xec] ss:$16 sps:$4 sm:$0xff]  }
 0x6aa   :  { %6325 = vmatprep.subr.bf16.mxu1 %v22280_v33  ;;  %v22335_v33 = vld [vmem:[#allocation31 + $0xe8] ss:$16 sps:$4 sm:$0xff]  }
 0x6ad   :  { %6326 = vmatpush2.bf16.msra.mxu1 %v22278_v28  ;;  %v22441_v28 = vld [vmem:[#allocation31 + $0x6e4] ss:$16 sps:$4 sm:$0xff]  }
 0x6ae   :  { %6327 = vmatprep.subr.bf16.mxu1 %v22283_v8  ;;  %v22340_v8 = vld [vmem:[#allocation31 + $0xcc] ss:$16 sps:$4 sm:$0xff]   ;;  %6258 = vmatprep.subr.bf16.mxu0 %v22441_v28 }
 0x6af   :  { %v22395_v28 = vld [vmem:[#allocation37 + $0x9d8] ss:$36 sps:$4 sm:$0xff]  }
 0x6b1   :  { %6328 = vmatpush2.bf16.msra.mxu1 %v22281_v30 }
 0x6b2   :  { %6329 = vmatprep.subr.bf16.mxu1 %v22286_v16  ;;  %v22338_v16 = vld [vmem:[#allocation31 + $0xc8] ss:$16 sps:$4 sm:$0xff]  }
 0x6b5   :  { %6330 = vmatpush2.bf16.msra.mxu1 %v22284_v48 }
 0x6b6   :  { %7021 = vmatprep.subr.bf16.mxu1 %v22289_v49  ;;  %v22343_v49 = vld [vmem:[#allocation31 + $0xac] ss:$16 sps:$4 sm:$0xff]  }
 0x6b8   :  { %6332 = vmatmul.mubr.bf16.vlgmr.msra.gmra.mxu1 %v25873_v22  ;;  %v21081_v51 = vpop.f32.mrf.mxu0 }
 0x6b9   :  { %7022 = vmatpush1.bf16.msra.mxu1 %v22287_v29  ;;  %7053 = vmatprep.mubr.bf16.mxu1 %v25798_v4  ;;  %v19244_v29 = vld [vmem:[#allocation25] ss:$0 sm:$0xff] }
 0x6ba   :  { %v21082_v31 = vpop.f32.mrf.mxu0  ;;  %7023 = vmatprep.subr.bf16.mxu1 %v22292_v50 }
 0x6bb   :  { %v25879_v43 = vadd.f32 %v21082_v31, %v21081_v51 }
 0x6bc   :  { %v21084_v2 = vpop.f32.mrf.mxu0 }
 0x6bd   :  { %7024 = vmatpush1.bf16.msra.mxu1 %v22290_v55  ;;  %v22341_v55 = vld [vmem:[#allocation31 + $0xa8] ss:$16 sps:$4 sm:$0xff]   ;;  %v22346_v2 = vld [vmem:[#allocation31 + $0x8c] ss:$16 sps:$4 sm:$0xff]  }
 0x6be   :  { %v21085_v6 = vpop.f32.mrf.mxu0  ;;  %7025 = vmatprep.subr.bf16.mxu1 %v22295_v42 }
 0x6bf   :  { %v22344_v6 = vld [vmem:[#allocation31 + $0x88] ss:$16 sps:$4 sm:$0xff]  }
 0x6c1   :  { %7026 = vmatpush1.bf16.msra.mxu1 %v22293_v45 }
 0x6c2   :  { %7027 = vmatprep.subr.bf16.mxu1 %v22298_v9  ;;  %v22349_v9 = vld [vmem:[#allocation31 + $0x6c] ss:$16 sps:$4 sm:$0xff]  }
 0x6c5   :  { %7028 = vmatpush1.bf16.msra.mxu1 %v22296_v10  ;;  %v22347_v10 = vld [vmem:[#allocation31 + $0x68] ss:$16 sps:$4 sm:$0xff]  }
 0x6c6   :  { %7029 = vmatprep.subr.bf16.mxu1 %v22301_v11  ;;  %v22352_v11 = vld [vmem:[#allocation31 + $0x4c] ss:$16 sps:$4 sm:$0xff]  }
 0x6c9   :  { %7030 = vmatpush1.bf16.msra.mxu1 %v22299_v15  ;;  %v22350_v15 = vld [vmem:[#allocation31 + $0x48] ss:$16 sps:$4 sm:$0xff]  }
 0x6ca   :  { %7031 = vmatprep.subr.bf16.mxu1 %v22304_v17  ;;  %v22355_v17 = vld [vmem:[#allocation31 + $0x2c] ss:$16 sps:$4 sm:$0xff]  }
 0x6cd   :  { %7032 = vmatpush1.bf16.msra.mxu1 %v22302_v18  ;;  %v22353_v18 = vld [vmem:[#allocation31 + $0x28] ss:$16 sps:$4 sm:$0xff]  }
 0x6ce   :  { %7033 = vmatprep.subr.bf16.mxu1 %v22307_v19  ;;  %v22358_v19 = vld [vmem:[#allocation31 + $0xc] ss:$16 sps:$4 sm:$0xff]  }
 0x6d1   :  { %7034 = vmatpush1.bf16.msra.mxu1 %v22305_v44  ;;  %v22356_v44 = vld [vmem:[#allocation31 + $0x8] ss:$16 sps:$4 sm:$0xff]  }
 0x6d2   :  { %7035 = vmatprep.subr.bf16.mxu1 %v22310_v5  ;;  %v22361_v5 = vld [vmem:[#allocation31 + $0x1ec] ss:$16 sps:$4 sm:$0xff]  }
 0x6d5   :  { %7036 = vmatpush1.bf16.msra.mxu1 %v22308_v3  ;;  %v22359_v3 = vld [vmem:[#allocation31 + $0x1e8] ss:$16 sps:$4 sm:$0xff]  }
 0x6d6   :  { %7037 = vmatprep.subr.bf16.mxu1 %v22313_v7  ;;  %v22364_v7 = vld [vmem:[#allocation31 + $0x1cc] ss:$16 sps:$4 sm:$0xff]  }
 0x6d9   :  { %7038 = vmatpush2.bf16.msra.mxu1 %v22311_v21  ;;  %v22362_v21 = vld [vmem:[#allocation31 + $0x1c8] ss:$16 sps:$4 sm:$0xff]  }
 0x6da   :  { %7039 = vmatprep.subr.bf16.mxu1 %v22316_v24  ;;  %v22365_v24 = vld [vmem:[#allocation31 + $0x1a8] ss:$16 sps:$4 sm:$0xff]  }
 0x6dd   :  { %7040 = vmatpush2.bf16.msra.mxu1 %v22314_v12  ;;  %v22368_v12 = vld [vmem:[#allocation31 + $0x188] ss:$16 sps:$4 sm:$0xff]  }
 0x6de   :  { %7041 = vmatprep.subr.bf16.mxu1 %v22319_v27  ;;  %v22371_v27 = vld [vmem:[#allocation31 + $0x168] ss:$16 sps:$4 sm:$0xff]  }
 0x6e1   :  { %7042 = vmatpush2.bf16.msra.mxu1 %v22317_v46  ;;  %v22376_v46 = vld [vmem:[#allocation31 + $0x14c] ss:$16 sps:$4 sm:$0xff]  }
 0x6e2   :  { %7043 = vmatprep.subr.bf16.mxu1 %v22322_v52  ;;  %v22379_v52 = vld [vmem:[#allocation31 + $0x12c] ss:$16 sps:$4 sm:$0xff]  }
 0x6e5   :  { %7044 = vmatpush2.bf16.msra.mxu1 %v22320_v53  ;;  %v22377_v53 = vld [vmem:[#allocation31 + $0x128] ss:$16 sps:$4 sm:$0xff]  }
 0x6e6   :  { %7045 = vmatprep.subr.bf16.mxu1 %v22325_v34  ;;  %v22380_v34 = vld [vmem:[#allocation31 + $0x108] ss:$16 sps:$4 sm:$0xff]  }
 0x6e9   :  { %7046 = vmatpush2.bf16.msra.mxu1 %v22323_v35  ;;  %v22385_v35 = vld [vmem:[#allocation37 + $0xafc] ss:$36 sps:$4 sm:$0xff]  }
 0x6ea   :  { %7047 = vmatprep.subr.bf16.mxu1 %v22328_v37  ;;  %v22388_v37 = vld [vmem:[#allocation37 + $0xab4] ss:$36 sps:$4 sm:$0xff]  }
 0x6ed   :  { %7048 = vmatpush2.bf16.msra.mxu1 %v22326_v14 }
 0x6ee   :  { %7049 = vmatprep.subr.bf16.mxu1 %v22331_v60 }
 0x6f1   :  { %7050 = vmatpush2.bf16.msra.mxu1 %v22329_v39  ;;  %v22391_v39 = vld [vmem:[#allocation37 + $0xa6c] ss:$36 sps:$4 sm:$0xff]  }
 0x6f2   :  { %7051 = vmatprep.subr.bf16.mxu1 %v22334_v40  ;;  %v22389_v40 = vld [vmem:[#allocation37 + $0xa68] ss:$36 sps:$4 sm:$0xff]  }
 0x6f5   :  { %7052 = vmatpush2.bf16.msra.mxu1 %v22332_v58 }
 0x6f6   :  { %7103 = vmatprep.subr.bf16.mxu1 %v22337_v62  ;;  %v22392_v62 = vld [vmem:[#allocation37 + $0xa20] ss:$36 sps:$4 sm:$0xff]  }
 0x6f8   :  { %7054 = vmatmul.mubr.bf16.vlgmr.msra.gmra.mxu1 %v25801_v20  ;;  %v21103_v30 = vpop.f32.mrf.mxu1 }
 0x6f9   :  { %7104 = vmatpush1.bf16.msra.mxu1 %v22335_v33  ;;  %7135 = vmatprep.mubr.bf16.mxu1 %v25798_v4  ;;  %v22397_v33 = vld [vmem:[#allocation37 + $0x9dc] ss:$36 sps:$4 sm:$0xff]  }
 0x6fa   :  { %v21104_v48 = vpop.f32.mrf.mxu1  ;;  %7105 = vmatprep.subr.bf16.mxu1 %v22340_v8  ;;  %v22400_v8 = vld [vmem:[#allocation37 + $0x994] ss:$36 sps:$4 sm:$0xff]  }
 0x6fb   :  { %v21105_v50 = vadd.f32 %v21104_v48, %v21103_v30  ;;  %v22398_v30 = vld [vmem:[#allocation37 + $0x990] ss:$36 sps:$4 sm:$0xff]   ;;  %v22401_v48 = vld [vmem:[#allocation37 + $0x948] ss:$36 sps:$4 sm:$0xff]  }
 0x6fc   :  { %v21106_v51 = vpop.f32.mrf.mxu1 }
 0x6fd   :  { %7106 = vmatpush1.bf16.msra.mxu1 %v22338_v16  ;;  %v4864_v31 = vadd.f32 %v21105_v50, %v19244_v29  ;;  %v22403_v16 = vld [vmem:[#allocation37 + $0x94c] ss:$36 sps:$4 sm:$0xff]   ;;  %v22404_v29 = vld [vmem:[#allocation37 + $0x900] ss:$36 sps:$4 sm:$0xff]   ;;  %v22408_v51 = vld [vmem:[#allocation37 + $0xd38] ss:$36 sps:$4 sm:$0xff]  }
 0x6fe   :  { %v21107_v42 = vpop.f32.mrf.mxu1  ;;  %7107 = vmatprep.subr.bf16.mxu1 %v22343_v49  ;;  %v22406_v49 = vld [vmem:[#allocation37 + $0x904] ss:$36 sps:$4 sm:$0xff]   ;;  %v22410_v50 = vld [vmem:[#allocation37 + $0xd3c] ss:$36 sps:$4 sm:$0xff]  }
 0x6ff   :  { %v4869_v45 = vmax.f32 %v4864_v31, 0.0  ;;  %v22412_v31 = vld [vmem:[#allocation37 + $0xcf0] ss:$36 sps:$4 sm:$0xff]  }
 0x700   :  { %v22418_v42 = vld [vmem:[#allocation37 + $0xcac] ss:$36 sps:$4 sm:$0xff]  }
 0x701   :  { %7108 = vmatpush1.bf16.msra.mxu1 %v22341_v55  ;;  %4871 = vrot.lane.b32.xlu1 %v4869_v45, %s25419_s12  ;;  %v22414_v55 = vld [vmem:[#allocation37 + $0xcf4] ss:$36 sps:$4 sm:$0xff]   ;;  %v22422_v45 = vld [vmem:[#allocation37 + $0xc64] ss:$36 sps:$4 sm:$0xff]   ;;  %s25449_s12 = smov [#allocation38]  }
 0x702   :  { %7109 = vmatprep.subr.bf16.mxu1 %v22346_v2  ;;  %v22416_v2 = vld [vmem:[#allocation37 + $0xca8] ss:$36 sps:$4 sm:$0xff]   ;;  %s18639_s20 = sshll.u32 %s25449_s12, 4  ;;  %s18640_s20 = int_to_ptr.vmem [resolvable:$true] %s18639_s20 }
 0x703   :  { %s25294_s14 = scalar_lea.vmem %s18640_s20, 128  ;;  %p25299_p4 = scmp.lt.s32.totalorder %s18640_s20, %s18640_s20 }
 0x704   :  { %p25295_p3 = scmp.ne.s32.totalorder %s18640_s20, %s25294_s14  ;;  %p25300_p5 = scmp.lt.s32.totalorder %s25294_s14, %s25294_s14 }
 0x705   :  { %7110 = vmatpush1.bf16.msra.mxu1 %v22344_v6  ;;  %v22420_v6 = vld [vmem:[#allocation37 + $0xc60] ss:$36 sps:$4 sm:$0xff]  }
 0x706   :  { %7111 = vmatprep.subr.bf16.mxu1 %v22349_v9  ;;  %v22426_v9 = vld [vmem:[#allocation37 + $0xc1c] ss:$36 sps:$4 sm:$0xff]   ;;  %p25301_p6 = por %p25300_p5, %p25299_p4 }
 0x708   :  { %p25302_p7 = pnand %p25301_p6, %p25295_p3 }
 0x709   :  { %7112 = vmatpush1.bf16.msra.mxu1 %v22347_v10  ;;  %v22424_v10 = vld [vmem:[#allocation37 + $0xc18] ss:$36 sps:$4 sm:$0xff]  }
 0x70a   :  { %7113 = vmatprep.subr.bf16.mxu1 %v22352_v11  ;;  %v22430_v11 = vld [vmem:[#allocation37 + $0xbd4] ss:$36 sps:$4 sm:$0xff]  }
 0x70d   :  { %7114 = vmatpush1.bf16.msra.mxu1 %v22350_v15  ;;  %v22428_v15 = vld [vmem:[#allocation37 + $0xbd0] ss:$36 sps:$4 sm:$0xff]  }
 0x70e   :  { %7115 = vmatprep.subr.bf16.mxu1 %v22355_v17  ;;  %v22434_v17 = vld [vmem:[#allocation37 + $0xb8c] ss:$36 sps:$4 sm:$0xff]  }
 0x711   :  { %7116 = vmatpush1.bf16.msra.mxu1 %v22353_v18  ;;  %v19227_v18 = vld [vmem:[#allocation20] ss:$0 sm:$0xff] }
 0x712   :  { %7117 = vmatprep.subr.bf16.mxu1 %v22358_v19  ;;  %v22432_v19 = vld [vmem:[#allocation37 + $0xb88] ss:$36 sps:$4 sm:$0xff]  }
 0x715   :  { %7118 = vmatpush1.bf16.msra.mxu1 %v22356_v44  ;;  %v4585_v44 = vadd.f32 %v25879_v43, %v19227_v18  ;;  %v22450_v43 = vld [vmem:[#allocation37 + $0xabc] ss:$36 sps:$4 sm:$0xff]  }
 0x716   :  { %7119 = vmatprep.subr.bf16.mxu1 %v22361_v5  ;;  %v22438_v5 = vld [vmem:[#allocation37 + $0xb44] ss:$36 sps:$4 sm:$0xff]  }
 0x717   :  { %v22493_v18 = vld [vmem:[#allocation31 + $0x7c0] ss:$16 sps:$4 sm:$0xff]  }
 0x719   :  { %7120 = vmatpush2.bf16.msra.mxu1 %v22359_v3  ;;  %v22436_v3 = vld [vmem:[#allocation37 + $0xb40] ss:$36 sps:$4 sm:$0xff]  }
 0x71a   :  { %7121 = vmatprep.subr.bf16.mxu1 %v22364_v7  ;;  %v4590_v7 = vmax.f32 %v4585_v44, 0.0  ;;  %v22501_v44 = vld [vmem:[#allocation31 + $0x7a4] ss:$16 sps:$4 sm:$0xff]  }
 0x71d   :  { %7122 = vmatpush2.bf16.msra.mxu1 %v22362_v21  ;;  %v22444_v21 = vld [vmem:[#allocation37 + $0xb04] ss:$36 sps:$4 sm:$0xff]  }
 0x71e   :  { %7123 = vmatprep.subr.bf16.mxu1 %v22367_v23 }
 0x721   :  { %7124 = vmatpush2.bf16.msra.mxu1 %v22365_v24 }
 0x722   :  { %7125 = vmatprep.subr.bf16.mxu1 %v22370_v25  ;;  %v22439_v25 = vld [vmem:[#allocation31 + $0x6e0] ss:$16 sps:$4 sm:$0xff]  }
 0x725   :  { %7126 = vmatpush2.bf16.msra.mxu1 %v22368_v12 }
 0x726   :  { %7127 = vmatprep.subr.bf16.mxu1 %v22373_v26  ;;  %v22442_v26 = vld [vmem:[#allocation37 + $0xb00] ss:$36 sps:$4 sm:$0xff]  }
 0x729   :  { %7128 = vmatpush2.bf16.msra.mxu1 %v22371_v27  ;;  %v22447_v27 = vld [vmem:[#allocation31 + $0x6c4] ss:$16 sps:$4 sm:$0xff]  }
 0x72a   :  { %7129 = vmatprep.subr.bf16.mxu1 %v22376_v46  ;;  %v25892_v46 = vrot.slane %v25808_v57, 1 }
 0x72d   :  { %7130 = vmatpush2.bf16.msra.mxu1 %v22374_v47 }
 0x72e   :  { %7131 = vmatprep.subr.bf16.mxu1 %v22379_v52  ;;  %v22445_v52 = vld [vmem:[#allocation31 + $0x6c0] ss:$16 sps:$4 sm:$0xff]  }
 0x731   :  { %7132 = vmatpush2.bf16.msra.mxu1 %v22377_v53  ;;  %v22448_v53 = vld [vmem:[#allocation37 + $0xab8] ss:$36 sps:$4 sm:$0xff]  }
 0x732   :  { %7133 = vmatprep.subr.bf16.mxu1 %v22382_v13  ;;  %v22453_v13 = vld [vmem:[#allocation31 + $0x6a4] ss:$16 sps:$4 sm:$0xff]  }
 0x735   :  { %7134 = vmatpush2.bf16.msra.mxu1 %v22380_v34 }
 0x736   :  { %8977 = vmatprep.subr.bf16.mxu1 %v22385_v35  ;;  %v22456_v35 = vld [vmem:[#allocation37 + $0xa74] ss:$36 sps:$4 sm:$0xff]  }
 0x738   :  { %v25884_v14 = vpop.f32.mrf.mxu1  ;;  %7136 = vmatmul.mubr.bf16.vlgmr.msra.gmra.mxu1 %v25801_v20 }
 0x739   :  { %8978 = vmatpush1.bf16.msra.mxu1 %v22383_v36  ;;  %9009 = vmatprep.mubr.bf16.mxu1 %v25869_v41 }
 0x73a   :  { %v25888_v60 = vpop.f32.mrf.mxu1  ;;  %8979 = vmatprep.subr.bf16.mxu1 %v22388_v37  ;;  %v22451_v37 = vld [vmem:[#allocation31 + $0x6a0] ss:$16 sps:$4 sm:$0xff]  }
 0x73c   :  { %v6255_v0 = vpop.f32.mrf.mxu1 }
 0x73d   :  { %8980 = vmatpush1.bf16.msra.mxu1 %v22386_v38  ;;  %v22454_v38 = vld [vmem:[#allocation37 + $0xa70] ss:$36 sps:$4 sm:$0xff]  }
 0x73e   :  { %v6256_v58 = vpop.f32.mrf.mxu1  ;;  %8981 = vmatprep.subr.bf16.mxu1 %v22391_v39  ;;  %v22459_v39 = vld [vmem:[#allocation31 + $0x684] ss:$16 sps:$4 sm:$0xff]  }
 0x73f   :  { %v22457_v58 = vld [vmem:[#allocation31 + $0x680] ss:$16 sps:$4 sm:$0xff]  }
 0x741   :  { %8982 = vmatpush1.bf16.msra.mxu1 %v22389_v40  ;;  %v22462_v40 = vld [vmem:[#allocation37 + $0xa2c] ss:$36 sps:$4 sm:$0xff]  }
 0x742   :  { %8983 = vmatprep.subr.bf16.mxu1 %v22394_v32  ;;  %v22460_v32 = vld [vmem:[#allocation37 + $0xa28] ss:$36 sps:$4 sm:$0xff]  }
 0x745   :  { %8984 = vmatpush1.bf16.msra.mxu1 %v22392_v62  ;;  %v22465_v62 = vld [vmem:[#allocation31 + $0x664] ss:$16 sps:$4 sm:$0xff]  }
 0x746   :  { %8985 = vmatprep.subr.bf16.mxu1 %v22397_v33  ;;  %v22468_v33 = vld [vmem:[#allocation37 + $0x9e4] ss:$36 sps:$4 sm:$0xff]  }
 0x749   :  { %8986 = vmatpush1.bf16.msra.mxu1 %v22395_v28  ;;  %v22463_v28 = vld [vmem:[#allocation31 + $0x660] ss:$16 sps:$4 sm:$0xff]  }
 0x74a   :  { %8987 = vmatprep.subr.bf16.mxu1 %v22400_v8  ;;  %v22466_v8 = vld [vmem:[#allocation37 + $0x9e0] ss:$36 sps:$4 sm:$0xff]  }
 0x74d   :  { %8988 = vmatpush1.bf16.msra.mxu1 %v22398_v30  ;;  %v22471_v30 = vld [vmem:[#allocation31 + $0x644] ss:$16 sps:$4 sm:$0xff]  }
 0x74e   :  { %8989 = vmatprep.subr.bf16.mxu1 %v22403_v16  ;;  %v22474_v16 = vld [vmem:[#allocation37 + $0x99c] ss:$36 sps:$4 sm:$0xff]  }
 0x751   :  { %8990 = vmatpush1.bf16.msra.mxu1 %v22401_v48  ;;  %v22469_v48 = vld [vmem:[#allocation31 + $0x640] ss:$16 sps:$4 sm:$0xff]  }
 0x752   :  { %8991 = vmatprep.subr.bf16.mxu1 %v22406_v49  ;;  %v22472_v49 = vld [vmem:[#allocation37 + $0x998] ss:$36 sps:$4 sm:$0xff]  }
 0x755   :  { %8992 = vmatpush1.bf16.msra.mxu1 %v22404_v29  ;;  %v22477_v29 = vld [vmem:[#allocation31 + $0x624] ss:$16 sps:$4 sm:$0xff]  }
 0x756   :  { %8993 = vmatprep.subr.bf16.mxu1 %v22410_v50  ;;  %v22480_v50 = vld [vmem:[#allocation37 + $0x954] ss:$36 sps:$4 sm:$0xff]  }
 0x759   :  { %8994 = vmatpush2.bf16.msra.mxu1 %v22408_v51  ;;  %v22475_v51 = vld [vmem:[#allocation31 + $0x620] ss:$16 sps:$4 sm:$0xff]  }
 0x75a   :  { %8995 = vmatprep.subr.bf16.mxu1 %v22414_v55  ;;  %v22478_v55 = vld [vmem:[#allocation37 + $0x950] ss:$36 sps:$4 sm:$0xff]  }
 0x75d   :  { %8996 = vmatpush2.bf16.msra.mxu1 %v22412_v31  ;;  %v22483_v31 = vld [vmem:[#allocation31 + $0x604] ss:$16 sps:$4 sm:$0xff]  }
 0x75e   :  { %8997 = vmatprep.subr.bf16.mxu1 %v22418_v42  ;;  %v22486_v42 = vld [vmem:[#allocation37 + $0x90c] ss:$36 sps:$4 sm:$0xff]  }
 0x761   :  { %8998 = vmatpush2.bf16.msra.mxu1 %v22416_v2  ;;  %v22481_v2 = vld [vmem:[#allocation31 + $0x600] ss:$16 sps:$4 sm:$0xff]  }
 0x762   :  { %8999 = vmatprep.subr.bf16.mxu1 %v22422_v45  ;;  %v22484_v45 = vld [vmem:[#allocation37 + $0x908] ss:$36 sps:$4 sm:$0xff]  }
 0x765   :  { %9000 = vmatpush2.bf16.msra.mxu1 %v22420_v6  ;;  %v22489_v6 = vld [vmem:[#allocation31 + $0x7e4] ss:$16 sps:$4 sm:$0xff]  }
 0x766   :  { %9001 = vmatprep.subr.bf16.mxu1 %v22426_v9  ;;  %v22492_v9 = vld [vmem:[#allocation37 + $0xd44] ss:$36 sps:$4 sm:$0xff]  }
 0x769   :  { %9002 = vmatpush2.bf16.msra.mxu1 %v22424_v10  ;;  %v22487_v10 = vld [vmem:[#allocation31 + $0x7e0] ss:$16 sps:$4 sm:$0xff]  }
 0x76a   :  { %9003 = vmatprep.subr.bf16.mxu1 %v22430_v11  ;;  %v22490_v11 = vld [vmem:[#allocation37 + $0xd40] ss:$36 sps:$4 sm:$0xff]  }
 0x76d   :  { %9004 = vmatpush2.bf16.msra.mxu1 %v22428_v15  ;;  %v22495_v15 = vld [vmem:[#allocation31 + $0x7c4] ss:$16 sps:$4 sm:$0xff]  }
 0x76e   :  { %9005 = vmatprep.subr.bf16.mxu1 %v22434_v17  ;;  %v22498_v17 = vld [vmem:[#allocation37 + $0xcfc] ss:$36 sps:$4 sm:$0xff]  }
 0x771   :  { %9006 = vmatpush2.bf16.msra.mxu1 %v22432_v19  ;;  %v22496_v19 = vld [vmem:[#allocation37 + $0xcf8] ss:$36 sps:$4 sm:$0xff]  }
 0x772   :  { %9007 = vmatprep.subr.bf16.mxu1 %v22438_v5  ;;  %v22504_v5 = vld [vmem:[#allocation37 + $0xcb4] ss:$36 sps:$4 sm:$0xff]  }
 0x773   :  { %v4872_v23 = vpop.permute.xlu1 %4871 }
 0x774   :  { %v4875_v24 = vsel %vm4874_vm1, %v4590_v7, %v4872_v23  ;;  %v22502_v7 = vld [vmem:[#allocation37 + $0xcb0] ss:$36 sps:$4 sm:$0xff]  }
 0x775   :  { %v4892_v12 = vpack.c.bf16 %v4875_v24, %v4875_v24  ;;  %9008 = vmatpush2.bf16.msra.mxu1 %v22436_v3  ;;  %v22499_v3 = vld [vmem:[#allocation31 + $0x7a0] ss:$16 sps:$4 sm:$0xff]  }
 0x776   :  { %9059 = vmatprep.subr.bf16.mxu1 %v22444_v21  ;;  %v22507_v21 = vld [vmem:[#allocation31 + $0x784] ss:$16 sps:$4 sm:$0xff]   ;;  %v22505_v24 = vld [vmem:[#allocation31 + $0x780] ss:$16 sps:$4 sm:$0xff]  }
 0x777   :  { %21311 = vmatmul.mubr.bf16.vlgmr.msra.gmra.mxu0 %v4892_v12  ;;  %v22510_v23 = vld [vmem:[#allocation37 + $0xc6c] ss:$36 sps:$4 sm:$0xff]  }
 0x778   :  { %6259 = vmatpush1.bf16.msra.mxu0 %v22439_v25  ;;  %v25894_v47 = vpop.f32.mrf.mxu1  ;;  %9010 = vmatmul.mubr.bf16.vlgmr.msra.gmra.mxu1 %v25873_v22  ;;  %v22508_v25 = vld [vmem:[#allocation37 + $0xc68] ss:$36 sps:$4 sm:$0xff]  }
 0x779   :  { %6290 = vmatprep.mubr.bf16.mxu0 %v25892_v46  ;;  %9060 = vmatpush1.bf16.msra.mxu1 %v22442_v26  ;;  %v22513_v12 = vld [vmem:[#allocation31 + $0x764] ss:$16 sps:$4 sm:$0xff]   ;;  %v22516_v26 = vld [vmem:[#allocation37 + $0xc24] ss:$36 sps:$4 sm:$0xff]  }
 0x77a   :  { %9091 = vmatprep.mubr.bf16.mxu1 %v25869_v41  ;;  %v25899_v34 = vpop.f32.mrf.mxu1  ;;  %6260 = vmatprep.subr.bf16.mxu0 %v22447_v27  ;;  %v22511_v27 = vld [vmem:[#allocation31 + $0x760] ss:$16 sps:$4 sm:$0xff]  }
 0x77b   :  { %9061 = vmatprep.subr.bf16.mxu1 %v22450_v43  ;;  %v22514_v43 = vld [vmem:[#allocation37 + $0xc20] ss:$36 sps:$4 sm:$0xff]  }
 0x77c   :  { %6261 = vmatpush1.bf16.msra.mxu0 %v22445_v52  ;;  %v6337_v36 = vpop.f32.mrf.mxu1  ;;  %v22519_v52 = vld [vmem:[#allocation31 + $0x744] ss:$16 sps:$4 sm:$0xff]  }
 0x77d   :  { %9062 = vmatpush1.bf16.msra.mxu1 %v22448_v53  ;;  %6262 = vmatprep.subr.bf16.mxu0 %v22453_v13  ;;  %v22522_v53 = vld [vmem:[#allocation37 + $0xbdc] ss:$36 sps:$4 sm:$0xff]  }
 0x77e   :  { %v6338_v0 = vpop.f32.mrf.mxu1  ;;  %9063 = vmatprep.subr.bf16.mxu1 %v22456_v35  ;;  %v22517_v13 = vld [vmem:[#allocation31 + $0x740] ss:$16 sps:$4 sm:$0xff]   ;;  %v22525_v36 = vld [vmem:[#allocation31 + $0x724] ss:$16 sps:$4 sm:$0xff]  }
 0x77f   :  { %v22520_v35 = vld [vmem:[#allocation37 + $0xbd8] ss:$36 sps:$4 sm:$0xff]  }
 0x780   :  { %6263 = vmatpush1.bf16.msra.mxu0 %v22451_v37  ;;  %v22528_v37 = vld [vmem:[#allocation37 + $0xb94] ss:$36 sps:$4 sm:$0xff]   ;;  %v22531_v0 = vld [vmem:[#allocation31 + $0x704] ss:$16 sps:$4 sm:$0xff]  }
 0x781   :  { %9064 = vmatpush1.bf16.msra.mxu1 %v22454_v38  ;;  %6264 = vmatprep.subr.bf16.mxu0 %v22459_v39  ;;  %v22523_v38 = vld [vmem:[#allocation31 + $0x720] ss:$16 sps:$4 sm:$0xff]   ;;  %v22526_v39 = vld [vmem:[#allocation37 + $0xb90] ss:$36 sps:$4 sm:$0xff]  }
 0x782   :  { %9065 = vmatprep.subr.bf16.mxu1 %v22462_v40  ;;  %v22534_v40 = vld [vmem:[#allocation37 + $0xb4c] ss:$36 sps:$4 sm:$0xff]  }
 0x784   :  { %6265 = vmatpush1.bf16.msra.mxu0 %v22457_v58  ;;  %v22529_v58 = vld [vmem:[#allocation31 + $0x700] ss:$16 sps:$4 sm:$0xff]  }
 0x785   :  { %9066 = vmatpush1.bf16.msra.mxu1 %v22460_v32  ;;  %6266 = vmatprep.subr.bf16.mxu0 %v22465_v62  ;;  %v22532_v32 = vld [vmem:[#allocation37 + $0xb48] ss:$36 sps:$4 sm:$0xff]  }
 0x786   :  { %9067 = vmatprep.subr.bf16.mxu1 %v22468_v33  ;;  %v22537_v62 = vld [vmem:[#allocation31 + $0x6ec] ss:$16 sps:$4 sm:$0xff]   ;;  %v22540_v33 = vld [vmem:[#allocation37 + $0xb0c] ss:$36 sps:$4 sm:$0xff]  }
 0x788   :  { %6267 = vmatpush1.bf16.msra.mxu0 %v22463_v28  ;;  %v22535_v28 = vld [vmem:[#allocation31 + $0x6e8] ss:$16 sps:$4 sm:$0xff]  }
 0x789   :  { %9068 = vmatpush1.bf16.msra.mxu1 %v22466_v8  ;;  %6268 = vmatprep.subr.bf16.mxu0 %v22471_v30  ;;  %v25902_v8 = vrot.slane %v25810_v1, 1  ;;  %v22543_v30 = vld [vmem:[#allocation31 + $0x6cc] ss:$16 sps:$4 sm:$0xff]  }
 0x78a   :  { %9069 = vmatprep.subr.bf16.mxu1 %v22474_v16  ;;  %v22538_v16 = vld [vmem:[#allocation37 + $0xb08] ss:$36 sps:$4 sm:$0xff]  }
 0x78c   :  { %6269 = vmatpush1.bf16.msra.mxu0 %v22469_v48  ;;  %v22546_v48 = vld [vmem:[#allocation37 + $0xac4] ss:$36 sps:$4 sm:$0xff]  }
 0x78d   :  { %9070 = vmatpush1.bf16.msra.mxu1 %v22472_v49  ;;  %6270 = vmatprep.subr.bf16.mxu0 %v22477_v29  ;;  %v22541_v29 = vld [vmem:[#allocation31 + $0x6c8] ss:$16 sps:$4 sm:$0xff]  }
 0x78e   :  { %9071 = vmatprep.subr.bf16.mxu1 %v22480_v50  ;;  %v22549_v50 = vld [vmem:[#allocation31 + $0x6ac] ss:$16 sps:$4 sm:$0xff]  }
 0x790   :  { %6271 = vmatpush1.bf16.msra.mxu0 %v22475_v51 }
 0x791   :  { %9072 = vmatpush1.bf16.msra.mxu1 %v22478_v55  ;;  %6272 = vmatprep.subr.bf16.mxu0 %v22483_v31  ;;  %v22544_v55 = vld [vmem:[#allocation37 + $0xac0] ss:$36 sps:$4 sm:$0xff]  }
 0x792   :  { %9073 = vmatprep.subr.bf16.mxu1 %v22486_v42  ;;  %v22552_v31 = vld [vmem:[#allocation37 + $0xa7c] ss:$36 sps:$4 sm:$0xff]  }
 0x794   :  { %6273 = vmatpush1.bf16.msra.mxu0 %v22481_v2  ;;  %v22547_v2 = vld [vmem:[#allocation31 + $0x6a8] ss:$16 sps:$4 sm:$0xff]  }
 0x795   :  { %9074 = vmatpush1.bf16.msra.mxu1 %v22484_v45  ;;  %6274 = vmatprep.subr.bf16.mxu0 %v22489_v6  ;;  %v22555_v45 = vld [vmem:[#allocation31 + $0x68c] ss:$16 sps:$4 sm:$0xff]  }
 0x796   :  { %9075 = vmatprep.subr.bf16.mxu1 %v22492_v9  ;;  %v22550_v9 = vld [vmem:[#allocation37 + $0xa78] ss:$36 sps:$4 sm:$0xff]  }
 0x798   :  { %6275 = vmatpush2.bf16.msra.mxu0 %v22487_v10  ;;  %v22558_v10 = vld [vmem:[#allocation37 + $0xa34] ss:$36 sps:$4 sm:$0xff]  }
 0x799   :  { %9076 = vmatpush2.bf16.msra.mxu1 %v22490_v11  ;;  %6276 = vmatprep.subr.bf16.mxu0 %v22495_v15  ;;  %v22553_v11 = vld [vmem:[#allocation31 + $0x688] ss:$16 sps:$4 sm:$0xff]   ;;  %v22561_v15 = vld [vmem:[#allocation31 + $0x66c] ss:$16 sps:$4 sm:$0xff]  }
 0x79a   :  { %9077 = vmatprep.subr.bf16.mxu1 %v22498_v17  ;;  %v22556_v17 = vld [vmem:[#allocation37 + $0xa30] ss:$36 sps:$4 sm:$0xff]  }
 0x79c   :  { %6277 = vmatpush2.bf16.msra.mxu0 %v22493_v18  ;;  %v22564_v18 = vld [vmem:[#allocation37 + $0x9ec] ss:$36 sps:$4 sm:$0xff]  }
 0x79d   :  { %9078 = vmatpush2.bf16.msra.mxu1 %v22496_v19  ;;  %6278 = vmatprep.subr.bf16.mxu0 %v22501_v44  ;;  %v22559_v19 = vld [vmem:[#allocation31 + $0x668] ss:$16 sps:$4 sm:$0xff]   ;;  %v22567_v44 = vld [vmem:[#allocation31 + $0x64c] ss:$16 sps:$4 sm:$0xff]  }
 0x79e   :  { %9079 = vmatprep.subr.bf16.mxu1 %v22504_v5  ;;  %v22562_v5 = vld [vmem:[#allocation37 + $0x9e8] ss:$36 sps:$4 sm:$0xff]  }
 0x7a0   :  { %6279 = vmatpush2.bf16.msra.mxu0 %v22499_v3  ;;  %v22570_v3 = vld [vmem:[#allocation37 + $0x9a4] ss:$36 sps:$4 sm:$0xff]  }
 0x7a1   :  { %9080 = vmatpush2.bf16.msra.mxu1 %v22502_v7  ;;  %6280 = vmatprep.subr.bf16.mxu0 %v22507_v21  ;;  %v22565_v7 = vld [vmem:[#allocation31 + $0x648] ss:$16 sps:$4 sm:$0xff]   ;;  %v22573_v21 = vld [vmem:[#allocation31 + $0x62c] ss:$16 sps:$4 sm:$0xff]  }
 0x7a2   :  { %9081 = vmatprep.subr.bf16.mxu1 %v22510_v23  ;;  %v22568_v23 = vld [vmem:[#allocation37 + $0x9a0] ss:$36 sps:$4 sm:$0xff]  }
 0x7a4   :  { %6281 = vmatpush2.bf16.msra.mxu0 %v22505_v24  ;;  %v22576_v24 = vld [vmem:[#allocation37 + $0x95c] ss:$36 sps:$4 sm:$0xff]  }
 0x7a5   :  { %9082 = vmatpush2.bf16.msra.mxu1 %v22508_v25  ;;  %6282 = vmatprep.subr.bf16.mxu0 %v22513_v12  ;;  %v22571_v25 = vld [vmem:[#allocation31 + $0x628] ss:$16 sps:$4 sm:$0xff]   ;;  %v22579_v12 = vld [vmem:[#allocation31 + $0x60c] ss:$16 sps:$4 sm:$0xff]  }
 0x7a6   :  { %9083 = vmatprep.subr.bf16.mxu1 %v22516_v26  ;;  %v22574_v26 = vld [vmem:[#allocation37 + $0x958] ss:$36 sps:$4 sm:$0xff]  }
 0x7a8   :  { %6283 = vmatpush2.bf16.msra.mxu0 %v22511_v27  ;;  %v22582_v27 = vld [vmem:[#allocation37 + $0x914] ss:$36 sps:$4 sm:$0xff]  }
 0x7a9   :  { %9084 = vmatpush2.bf16.msra.mxu1 %v22514_v43  ;;  %6284 = vmatprep.subr.bf16.mxu0 %v22519_v52  ;;  %v22577_v43 = vld [vmem:[#allocation31 + $0x608] ss:$16 sps:$4 sm:$0xff]   ;;  %v22585_v52 = vld [vmem:[#allocation31 + $0x7ec] ss:$16 sps:$4 sm:$0xff]  }
 0x7aa   :  { %9085 = vmatprep.subr.bf16.mxu1 %v22522_v53  ;;  %v22580_v53 = vld [vmem:[#allocation37 + $0x910] ss:$36 sps:$4 sm:$0xff]  }
 0x7ac   :  { %6285 = vmatpush2.bf16.msra.mxu0 %v22517_v13  ;;  %v22588_v13 = vld [vmem:[#allocation37 + $0xd4c] ss:$36 sps:$4 sm:$0xff]  }
 0x7ad   :  { %9086 = vmatpush2.bf16.msra.mxu1 %v22520_v35  ;;  %6286 = vmatprep.subr.bf16.mxu0 %v22525_v36  ;;  %v22583_v35 = vld [vmem:[#allocation31 + $0x7e8] ss:$16 sps:$4 sm:$0xff]   ;;  %v22591_v36 = vld [vmem:[#allocation31 + $0x7cc] ss:$16 sps:$4 sm:$0xff]  }
 0x7ae   :  { %9087 = vmatprep.subr.bf16.mxu1 %v22528_v37  ;;  %v22586_v37 = vld [vmem:[#allocation37 + $0xd48] ss:$36 sps:$4 sm:$0xff]  }
 0x7b0   :  { %6287 = vmatpush2.bf16.msra.mxu0 %v22523_v38  ;;  %v22594_v38 = vld [vmem:[#allocation37 + $0xd04] ss:$36 sps:$4 sm:$0xff]  }
 0x7b1   :  { %9088 = vmatpush2.bf16.msra.mxu1 %v22526_v39  ;;  %6288 = vmatprep.subr.bf16.mxu0 %v22531_v0  ;;  %v22589_v39 = vld [vmem:[#allocation31 + $0x7c8] ss:$16 sps:$4 sm:$0xff]   ;;  %v22597_v0 = vld [vmem:[#allocation31 + $0x7ac] ss:$16 sps:$4 sm:$0xff]  }
 0x7b2   :  { %9089 = vmatprep.subr.bf16.mxu1 %v22534_v40  ;;  %v22592_v40 = vld [vmem:[#allocation37 + $0xd00] ss:$36 sps:$4 sm:$0xff]  }
 0x7b4   :  { %6289 = vmatpush2.bf16.msra.mxu0 %v22529_v58  ;;  %v22600_v58 = vld [vmem:[#allocation37 + $0xcbc] ss:$36 sps:$4 sm:$0xff]  }
 0x7b5   :  { %9090 = vmatpush2.bf16.msra.mxu1 %v22532_v32  ;;  %6340 = vmatprep.subr.bf16.mxu0 %v22537_v62  ;;  %v22595_v32 = vld [vmem:[#allocation31 + $0x7a8] ss:$16 sps:$4 sm:$0xff]   ;;  %v22603_v62 = vld [vmem:[#allocation31 + $0x78c] ss:$16 sps:$4 sm:$0xff]  }
 0x7b6   :  { %9141 = vmatprep.subr.bf16.mxu1 %v22540_v33  ;;  %v22598_v33 = vld [vmem:[#allocation37 + $0xcb8] ss:$36 sps:$4 sm:$0xff]  }
 0x7b7   :  { %6291 = vmatmul.mubr.bf16.vlgmr.msra.gmra.mxu0 %v25902_v8 }
 0x7b8   :  { %6341 = vmatpush1.bf16.msra.mxu0 %v22535_v28  ;;  %6372 = vmatprep.mubr.bf16.mxu0 %v25892_v46  ;;  %v25906_v49 = vpop.f32.mrf.mxu1  ;;  %v22606_v28 = vld [vmem:[#allocation37 + $0xc74] ss:$36 sps:$4 sm:$0xff]  }
 0x7b9   :  { %9092 = vmatmul.mubr.bf16.vlgmr.msra.gmra.mxu1 %v25873_v22  ;;  %6342 = vmatprep.subr.bf16.mxu0 %v22543_v30  ;;  %v22601_v30 = vld [vmem:[#allocation31 + $0x788] ss:$16 sps:$4 sm:$0xff]  }
 0x7ba   :  { %9142 = vmatpush1.bf16.msra.mxu1 %v22538_v16  ;;  %9173 = vmatprep.mubr.bf16.mxu1 %v25869_v41  ;;  %v25910_v51 = vpop.f32.mrf.mxu1  ;;  %v22609_v16 = vld [vmem:[#allocation31 + $0x76c] ss:$16 sps:$4 sm:$0xff]  }
 0x7bb   :  { %9143 = vmatprep.subr.bf16.mxu1 %v22546_v48  ;;  %v22604_v48 = vld [vmem:[#allocation37 + $0xc70] ss:$36 sps:$4 sm:$0xff]  }
 0x7bc   :  { %6343 = vmatpush1.bf16.msra.mxu0 %v22541_v29  ;;  %v7059_v42 = vpop.f32.mrf.mxu1  ;;  %v22612_v29 = vld [vmem:[#allocation37 + $0xc2c] ss:$36 sps:$4 sm:$0xff]  }
 0x7bd   :  { %6344 = vmatprep.subr.bf16.mxu0 %v22549_v50  ;;  %v22607_v50 = vld [vmem:[#allocation31 + $0x768] ss:$16 sps:$4 sm:$0xff]  }
 0x7be   :  { %9144 = vmatpush1.bf16.msra.mxu1 %v22544_v55  ;;  %v7060_v6 = vpop.f32.mrf.mxu1  ;;  %v22615_v55 = vld [vmem:[#allocation31 + $0x74c] ss:$16 sps:$4 sm:$0xff]  }
 0x7bf   :  { %9145 = vmatprep.subr.bf16.mxu1 %v22552_v31  ;;  %v22610_v31 = vld [vmem:[#allocation37 + $0xc28] ss:$36 sps:$4 sm:$0xff]   ;;  %v22616_v6 = vld [vmem:[#allocation37 + $0xbe0] ss:$36 sps:$4 sm:$0xff]  }
 0x7c0   :  { %6345 = vmatpush1.bf16.msra.mxu0 %v22547_v2  ;;  %v22618_v42 = vld [vmem:[#allocation37 + $0xbe4] ss:$36 sps:$4 sm:$0xff]  }
 0x7c1   :  { %6346 = vmatprep.subr.bf16.mxu0 %v22555_v45  ;;  %v22613_v2 = vld [vmem:[#allocation31 + $0x748] ss:$16 sps:$4 sm:$0xff]   ;;  %v22621_v45 = vld [vmem:[#allocation31 + $0x72c] ss:$16 sps:$4 sm:$0xff]  }
 0x7c2   :  { %9146 = vmatpush1.bf16.msra.mxu1 %v22550_v9  ;;  %v22624_v9 = vld [vmem:[#allocation37 + $0xb9c] ss:$36 sps:$4 sm:$0xff]  }
 0x7c3   :  { %9147 = vmatprep.subr.bf16.mxu1 %v22558_v10  ;;  %v22619_v10 = vld [vmem:[#allocation31 + $0x728] ss:$16 sps:$4 sm:$0xff]  }
 0x7c4   :  { %6347 = vmatpush1.bf16.msra.mxu0 %v22553_v11  ;;  %v22627_v11 = vld [vmem:[#allocation31 + $0x70c] ss:$16 sps:$4 sm:$0xff]  }
 0x7c5   :  { %6348 = vmatprep.subr.bf16.mxu0 %v22561_v15  ;;  %v22622_v15 = vld [vmem:[#allocation37 + $0xb98] ss:$36 sps:$4 sm:$0xff]  }
 0x7c6   :  { %9148 = vmatpush1.bf16.msra.mxu1 %v22556_v17  ;;  %v22630_v17 = vld [vmem:[#allocation37 + $0xb54] ss:$36 sps:$4 sm:$0xff]  }
 0x7c7   :  { %9149 = vmatprep.subr.bf16.mxu1 %v22564_v18  ;;  %v22625_v18 = vld [vmem:[#allocation31 + $0x708] ss:$16 sps:$4 sm:$0xff]  }
 0x7c8   :  { %6349 = vmatpush1.bf16.msra.mxu0 %v22559_v19  ;;  %v22633_v19 = vld [vmem:[#allocation31 + $0x2e4] ss:$16 sps:$4 sm:$0xff]  }
 0x7c9   :  { %6350 = vmatprep.subr.bf16.mxu0 %v22567_v44  ;;  %v22628_v44 = vld [vmem:[#allocation37 + $0xb50] ss:$36 sps:$4 sm:$0xff]  }
 0x7ca   :  { %9150 = vmatpush1.bf16.msra.mxu1 %v22562_v5  ;;  %v22636_v5 = vld [vmem:[#allocation37 + $0xb14] ss:$36 sps:$4 sm:$0xff]  }
 0x7cb   :  { %9151 = vmatprep.subr.bf16.mxu1 %v22570_v3  ;;  %v22631_v3 = vld [vmem:[#allocation31 + $0x2e0] ss:$16 sps:$4 sm:$0xff]  }
 0x7cc   :  { %6351 = vmatpush1.bf16.msra.mxu0 %v22565_v7  ;;  %v22639_v7 = vld [vmem:[#allocation31 + $0x2c4] ss:$16 sps:$4 sm:$0xff]  }
 0x7cd   :  { %6352 = vmatprep.subr.bf16.mxu0 %v22573_v21  ;;  %v22634_v21 = vld [vmem:[#allocation37 + $0xb10] ss:$36 sps:$4 sm:$0xff]  }
 0x7ce   :  { %9152 = vmatpush1.bf16.msra.mxu1 %v22568_v23  ;;  %v22642_v23 = vld [vmem:[#allocation37 + $0xacc] ss:$36 sps:$4 sm:$0xff]  }
 0x7cf   :  { %9153 = vmatprep.subr.bf16.mxu1 %v22576_v24 }
 0x7d0   :  { %6353 = vmatpush1.bf16.msra.mxu0 %v22571_v25  ;;  %v22637_v25 = vld [vmem:[#allocation31 + $0x2c0] ss:$16 sps:$4 sm:$0xff]  }
 0x7d1   :  { %6354 = vmatprep.subr.bf16.mxu0 %v22579_v12  ;;  %v22645_v12 = vld [vmem:[#allocation31 + $0x2a4] ss:$16 sps:$4 sm:$0xff]  }
 0x7d2   :  { %9154 = vmatpush1.bf16.msra.mxu1 %v22574_v26 }
 0x7d3   :  { %9155 = vmatprep.subr.bf16.mxu1 %v22582_v27  ;;  %v22640_v27 = vld [vmem:[#allocation37 + $0xac8] ss:$36 sps:$4 sm:$0xff]  }
 0x7d4   :  { %6355 = vmatpush1.bf16.msra.mxu0 %v22577_v43  ;;  %v22648_v43 = vld [vmem:[#allocation37 + $0xa84] ss:$36 sps:$4 sm:$0xff]  }
 0x7d5   :  { %6356 = vmatprep.subr.bf16.mxu0 %v22585_v52 }
 0x7d6   :  { %9156 = vmatpush1.bf16.msra.mxu1 %v22580_v53  ;;  %v22643_v53 = vld [vmem:[#allocation31 + $0x2a0] ss:$16 sps:$4 sm:$0xff]  }
 0x7d7   :  { %9157 = vmatprep.subr.bf16.mxu1 %v22588_v13  ;;  %v22651_v13 = vld [vmem:[#allocation31 + $0x284] ss:$16 sps:$4 sm:$0xff]  }
 0x7d8   :  { %6357 = vmatpush2.bf16.msra.mxu0 %v22583_v35 }
 0x7d9   :  { %6358 = vmatprep.subr.bf16.mxu0 %v22591_v36  ;;  %v22646_v36 = vld [vmem:[#allocation37 + $0xa80] ss:$36 sps:$4 sm:$0xff]  }
 0x7da   :  { %9158 = vmatpush2.bf16.msra.mxu1 %v22586_v37  ;;  %v22654_v37 = vld [vmem:[#allocation37 + $0xa3c] ss:$36 sps:$4 sm:$0xff]  }
 0x7db   :  { %9159 = vmatprep.subr.bf16.mxu1 %v22594_v38  ;;  %v22649_v38 = vld [vmem:[#allocation31 + $0x280] ss:$16 sps:$4 sm:$0xff]  }
 0x7dc   :  { %6359 = vmatpush2.bf16.msra.mxu0 %v22589_v39  ;;  %v22657_v39 = vld [vmem:[#allocation31 + $0x264] ss:$16 sps:$4 sm:$0xff]  }
 0x7dd   :  { %6360 = vmatprep.subr.bf16.mxu0 %v22597_v0  ;;  %v22652_v0 = vld [vmem:[#allocation37 + $0xa38] ss:$36 sps:$4 sm:$0xff]  }
 0x7de   :  { %9160 = vmatpush2.bf16.msra.mxu1 %v22592_v40  ;;  %v22660_v40 = vld [vmem:[#allocation37 + $0x9f4] ss:$36 sps:$4 sm:$0xff]  }
 0x7df   :  { %9161 = vmatprep.subr.bf16.mxu1 %v22600_v58  ;;  %v22655_v58 = vld [vmem:[#allocation31 + $0x260] ss:$16 sps:$4 sm:$0xff]  }
 0x7e0   :  { %6361 = vmatpush2.bf16.msra.mxu0 %v22595_v32  ;;  %v22663_v32 = vld [vmem:[#allocation31 + $0x244] ss:$16 sps:$4 sm:$0xff]  }
 0x7e1   :  { %6362 = vmatprep.subr.bf16.mxu0 %v22603_v62  ;;  %v22658_v62 = vld [vmem:[#allocation37 + $0x9f0] ss:$36 sps:$4 sm:$0xff]  }
 0x7e2   :  { %9162 = vmatpush2.bf16.msra.mxu1 %v22598_v33  ;;  %v22666_v33 = vld [vmem:[#allocation37 + $0x9ac] ss:$36 sps:$4 sm:$0xff]  }
 0x7e3   :  { %9163 = vmatprep.subr.bf16.mxu1 %v22606_v28  ;;  %v22661_v28 = vld [vmem:[#allocation31 + $0x240] ss:$16 sps:$4 sm:$0xff]  }
 0x7e4   :  { %6363 = vmatpush2.bf16.msra.mxu0 %v22601_v30  ;;  %v22669_v30 = vld [vmem:[#allocation31 + $0x224] ss:$16 sps:$4 sm:$0xff]  }
 0x7e5   :  { %6364 = vmatprep.subr.bf16.mxu0 %v22609_v16  ;;  %v22664_v16 = vld [vmem:[#allocation37 + $0x9a8] ss:$36 sps:$4 sm:$0xff]  }
 0x7e6   :  { %9164 = vmatpush2.bf16.msra.mxu1 %v22604_v48  ;;  %v22672_v48 = vld [vmem:[#allocation37 + $0x964] ss:$36 sps:$4 sm:$0xff]  }
 0x7e7   :  { %9165 = vmatprep.subr.bf16.mxu1 %v22612_v29  ;;  %v22667_v29 = vld [vmem:[#allocation31 + $0x220] ss:$16 sps:$4 sm:$0xff]  }
 0x7e8   :  { %6365 = vmatpush2.bf16.msra.mxu0 %v22607_v50  ;;  %v22675_v50 = vld [vmem:[#allocation31 + $0x204] ss:$16 sps:$4 sm:$0xff]  }
 0x7e9   :  { %6366 = vmatprep.subr.bf16.mxu0 %v22615_v55  ;;  %v22670_v55 = vld [vmem:[#allocation37 + $0x960] ss:$36 sps:$4 sm:$0xff]  }
 0x7ea   :  { %9166 = vmatpush2.bf16.msra.mxu1 %v22610_v31  ;;  %v22678_v31 = vld [vmem:[#allocation37 + $0x91c] ss:$36 sps:$4 sm:$0xff]  }
 0x7eb   :  { %9167 = vmatprep.subr.bf16.mxu1 %v22618_v42  ;;  %v22673_v42 = vld [vmem:[#allocation31 + $0x200] ss:$16 sps:$4 sm:$0xff]  }
 0x7ec   :  { %6367 = vmatpush2.bf16.msra.mxu0 %v22613_v2  ;;  %v22681_v2 = vld [vmem:[#allocation31 + $0x3e4] ss:$16 sps:$4 sm:$0xff]  }
 0x7ed   :  { %6368 = vmatprep.subr.bf16.mxu0 %v22621_v45  ;;  %v22676_v45 = vld [vmem:[#allocation37 + $0x918] ss:$36 sps:$4 sm:$0xff]  }
 0x7ee   :  { %9168 = vmatpush2.bf16.msra.mxu1 %v22616_v6  ;;  %v22684_v6 = vld [vmem:[#allocation37 + $0xd54] ss:$36 sps:$4 sm:$0xff]  }
 0x7ef   :  { %9169 = vmatprep.subr.bf16.mxu1 %v22624_v9  ;;  %v22679_v9 = vld [vmem:[#allocation31 + $0x3e0] ss:$16 sps:$4 sm:$0xff]  }
 0x7f0   :  { %6369 = vmatpush2.bf16.msra.mxu0 %v22619_v10  ;;  %v22687_v10 = vld [vmem:[#allocation31 + $0x3c4] ss:$16 sps:$4 sm:$0xff]  }
 0x7f1   :  { %6370 = vmatprep.subr.bf16.mxu0 %v22627_v11  ;;  %v22682_v11 = vld [vmem:[#allocation37 + $0xd50] ss:$36 sps:$4 sm:$0xff]  }
 0x7f2   :  { %9170 = vmatpush2.bf16.msra.mxu1 %v22622_v15  ;;  %v22690_v15 = vld [vmem:[#allocation37 + $0xd0c] ss:$36 sps:$4 sm:$0xff]  }
 0x7f3   :  { %9171 = vmatprep.subr.bf16.mxu1 %v22630_v17  ;;  %v22685_v17 = vld [vmem:[#allocation31 + $0x3c0] ss:$16 sps:$4 sm:$0xff]  }
 0x7f4   :  { %6371 = vmatpush2.bf16.msra.mxu0 %v22625_v18  ;;  %v22693_v18 = vld [vmem:[#allocation31 + $0x3a4] ss:$16 sps:$4 sm:$0xff]  }
 0x7f5   :  { %7062 = vmatprep.subr.bf16.mxu0 %v22633_v19  ;;  %v22688_v19 = vld [vmem:[#allocation37 + $0xd08] ss:$36 sps:$4 sm:$0xff]  }
 0x7f6   :  { %9172 = vmatpush2.bf16.msra.mxu1 %v22628_v44  ;;  %v22696_v44 = vld [vmem:[#allocation37 + $0xcc4] ss:$36 sps:$4 sm:$0xff]  }
 0x7f7   :  { %6373 = vmatmul.mubr.bf16.vlgmr.msra.gmra.mxu0 %v25902_v8  ;;  %9223 = vmatprep.subr.bf16.mxu1 %v22636_v5  ;;  %v22691_v5 = vld [vmem:[#allocation31 + $0x3a0] ss:$16 sps:$4 sm:$0xff]  }
 0x7f8   :  { %7063 = vmatpush1.bf16.msra.mxu0 %v22631_v3  ;;  %7094 = vmatprep.mubr.bf16.mxu0 %v25808_v57  ;;  %v25914_v24 = vpop.f32.mrf.mxu1  ;;  %v22699_v3 = vld [vmem:[#allocation31 + $0x384] ss:$16 sps:$4 sm:$0xff]  }
 0x7f9   :  { %9174 = vmatmul.mubr.bf16.vlgmr.msra.gmra.mxu1 %v25873_v22  ;;  %7064 = vmatprep.subr.bf16.mxu0 %v22639_v7  ;;  %v22694_v7 = vld [vmem:[#allocation37 + $0xcc0] ss:$36 sps:$4 sm:$0xff]  }
 0x7fa   :  { %9224 = vmatpush1.bf16.msra.mxu1 %v22634_v21  ;;  %9255 = vmatprep.mubr.bf16.mxu1 %v25869_v41  ;;  %v25918_v26 = vpop.f32.mrf.mxu1  ;;  %v22702_v21 = vld [vmem:[#allocation37 + $0xc7c] ss:$36 sps:$4 sm:$0xff]  }
 0x7fb   :  { %9225 = vmatprep.subr.bf16.mxu1 %v22642_v23  ;;  %v22697_v23 = vld [vmem:[#allocation31 + $0x380] ss:$16 sps:$4 sm:$0xff]  }
 0x7fc   :  { %7065 = vmatpush1.bf16.msra.mxu0 %v22637_v25  ;;  %v7141_v52 = vpop.f32.mrf.mxu1  ;;  %v22705_v25 = vld [vmem:[#allocation31 + $0x364] ss:$16 sps:$4 sm:$0xff]  }
 0x7fd   :  { %7066 = vmatprep.subr.bf16.mxu0 %v22645_v12  ;;  %v22700_v12 = vld [vmem:[#allocation37 + $0xc78] ss:$36 sps:$4 sm:$0xff]  }
 0x7fe   :  { %9226 = vmatpush1.bf16.msra.mxu1 %v22640_v27  ;;  %v7142_v35 = vpop.f32.mrf.mxu1  ;;  %v22708_v27 = vld [vmem:[#allocation37 + $0xc34] ss:$36 sps:$4 sm:$0xff]   ;;  %v22711_v52 = vld [vmem:[#allocation31 + $0x344] ss:$16 sps:$4 sm:$0xff]  }
 0x7ff   :  { %9227 = vmatprep.subr.bf16.mxu1 %v22648_v43  ;;  %v22703_v43 = vld [vmem:[#allocation31 + $0x360] ss:$16 sps:$4 sm:$0xff]  }
 0x800   :  { %7067 = vmatpush1.bf16.msra.mxu0 %v22643_v53  ;;  %v22706_v53 = vld [vmem:[#allocation37 + $0xc30] ss:$36 sps:$4 sm:$0xff]   ;;  %v22709_v35 = vld [vmem:[#allocation31 + $0x340] ss:$16 sps:$4 sm:$0xff]  }
 0x801   :  { %7068 = vmatprep.subr.bf16.mxu0 %v22651_v13  ;;  %v22714_v13 = vld [vmem:[#allocation37 + $0xbec] ss:$36 sps:$4 sm:$0xff]  }
 0x802   :  { %9228 = vmatpush1.bf16.msra.mxu1 %v22646_v36  ;;  %v22717_v36 = vld [vmem:[#allocation31 + $0x324] ss:$16 sps:$4 sm:$0xff]  }
 0x803   :  { %9229 = vmatprep.subr.bf16.mxu1 %v22654_v37  ;;  %v22712_v37 = vld [vmem:[#allocation37 + $0xbe8] ss:$36 sps:$4 sm:$0xff]  }
 0x804   :  { %7069 = vmatpush1.bf16.msra.mxu0 %v22649_v38  ;;  %v22720_v38 = vld [vmem:[#allocation37 + $0xba4] ss:$36 sps:$4 sm:$0xff]  }
 0x805   :  { %7070 = vmatprep.subr.bf16.mxu0 %v22657_v39  ;;  %v22715_v39 = vld [vmem:[#allocation31 + $0x320] ss:$16 sps:$4 sm:$0xff]  }
 0x806   :  { %9230 = vmatpush1.bf16.msra.mxu1 %v22652_v0  ;;  %v22723_v0 = vld [vmem:[#allocation31 + $0x304] ss:$16 sps:$4 sm:$0xff]  }
 0x807   :  { %9231 = vmatprep.subr.bf16.mxu1 %v22660_v40  ;;  %v22718_v40 = vld [vmem:[#allocation37 + $0xba0] ss:$36 sps:$4 sm:$0xff]  }
 0x808   :  { %7071 = vmatpush1.bf16.msra.mxu0 %v22655_v58  ;;  %v22726_v58 = vld [vmem:[#allocation37 + $0xb5c] ss:$36 sps:$4 sm:$0xff]  }
 0x809   :  { %7072 = vmatprep.subr.bf16.mxu0 %v22663_v32  ;;  %v22721_v32 = vld [vmem:[#allocation31 + $0x300] ss:$16 sps:$4 sm:$0xff]  }
 0x80a   :  { %9232 = vmatpush1.bf16.msra.mxu1 %v22658_v62  ;;  %v22729_v62 = vld [vmem:[#allocation31 + $0x2ec] ss:$16 sps:$4 sm:$0xff]  }
 0x80b   :  { %9233 = vmatprep.subr.bf16.mxu1 %v22666_v33  ;;  %v22724_v33 = vld [vmem:[#allocation37 + $0xb58] ss:$36 sps:$4 sm:$0xff]  }
 0x80c   :  { %7073 = vmatpush1.bf16.msra.mxu0 %v22661_v28  ;;  %v22730_v28 = vld [vmem:[#allocation37 + $0xd58] ss:$36 sps:$4 sm:$0xff]  }
 0x80d   :  { %7074 = vmatprep.subr.bf16.mxu0 %v22669_v30  ;;  %v22727_v30 = vld [vmem:[#allocation31 + $0x2e8] ss:$16 sps:$4 sm:$0xff]  }
 0x80e   :  { %9234 = vmatpush1.bf16.msra.mxu1 %v22664_v16  ;;  %v19261_v16 = vld [vmem:[#allocation28] ss:$0 sm:$0xff] }
 0x80f   :  { %9235 = vmatprep.subr.bf16.mxu1 %v22672_v48  ;;  %v22734_v48 = vld [vmem:[#allocation31 + $0x2cc] ss:$16 sps:$4 sm:$0xff]  }
 0x810   :  { %7075 = vmatpush1.bf16.msra.mxu0 %v22667_v29  ;;  %v22731_v29 = vld [vmem:[#allocation37 + $0xb18] ss:$36 sps:$4 sm:$0xff]  }
 0x811   :  { %7076 = vmatprep.subr.bf16.mxu0 %v22675_v50 }
 0x812   :  { %9236 = vmatpush1.bf16.msra.mxu1 %v22670_v55  ;;  %v22735_v55 = vld [vmem:[#allocation37 + $0xd10] ss:$36 sps:$4 sm:$0xff]  }
 0x813   :  { %9237 = vmatprep.subr.bf16.mxu1 %v22678_v31 }
 0x814   :  { %7077 = vmatpush1.bf16.msra.mxu0 %v22673_v42 }
 0x815   :  { %7078 = vmatprep.subr.bf16.mxu0 %v22681_v2  ;;  %v22732_v2 = vld [vmem:[#allocation31 + $0x2c8] ss:$16 sps:$4 sm:$0xff]  }
 0x816   :  { %9238 = vmatpush1.bf16.msra.mxu1 %v22676_v45 }
 0x817   :  { %9239 = vmatprep.subr.bf16.mxu1 %v22684_v6  ;;  %v22739_v6 = vld [vmem:[#allocation31 + $0x2ac] ss:$16 sps:$4 sm:$0xff]  }
 0x818   :  { %7079 = vmatpush2.bf16.msra.mxu0 %v22679_v9 }
 0x819   :  { %7080 = vmatprep.subr.bf16.mxu0 %v22687_v10  ;;  %v22736_v10 = vld [vmem:[#allocation37 + $0xad0] ss:$36 sps:$4 sm:$0xff]  }
 0x81a   :  { %9240 = vmatpush2.bf16.msra.mxu1 %v22682_v11 }
 0x81b   :  { %9241 = vmatprep.subr.bf16.mxu1 %v22690_v15  ;;  %v22740_v15 = vld [vmem:[#allocation37 + $0xcc8] ss:$36 sps:$4 sm:$0xff]  }
 0x81c   :  { %7081 = vmatpush2.bf16.msra.mxu0 %v22685_v17 }
 0x81d   :  { %7082 = vmatprep.subr.bf16.mxu0 %v22693_v18  ;;  %v22737_v18 = vld [vmem:[#allocation31 + $0x2a8] ss:$16 sps:$4 sm:$0xff]  }
 0x81e   :  { %9242 = vmatpush2.bf16.msra.mxu1 %v22688_v19 }
 0x81f   :  { %9243 = vmatprep.subr.bf16.mxu1 %v22696_v44  ;;  %v22744_v44 = vld [vmem:[#allocation31 + $0x28c] ss:$16 sps:$4 sm:$0xff]  }
 0x820   :  { %7083 = vmatpush2.bf16.msra.mxu0 %v22691_v5 }
 0x821   :  { %7084 = vmatprep.subr.bf16.mxu0 %v22699_v3  ;;  %v22741_v3 = vld [vmem:[#allocation37 + $0xa88] ss:$36 sps:$4 sm:$0xff]  }
 0x822   :  { %9244 = vmatpush2.bf16.msra.mxu1 %v22694_v7  ;;  %v22745_v7 = vld [vmem:[#allocation37 + $0xc80] ss:$36 sps:$4 sm:$0xff]  }
 0x823   :  { %9245 = vmatprep.subr.bf16.mxu1 %v22702_v21  ;;  %v22742_v21 = vld [vmem:[#allocation31 + $0x288] ss:$16 sps:$4 sm:$0xff]  }
 0x824   :  { %7085 = vmatpush2.bf16.msra.mxu0 %v22697_v23  ;;  %v22746_v23 = vld [vmem:[#allocation37 + $0xa40] ss:$36 sps:$4 sm:$0xff]  }
 0x825   :  { %7086 = vmatprep.subr.bf16.mxu0 %v22705_v25  ;;  %v22750_v25 = vld [vmem:[#allocation37 + $0xc38] ss:$36 sps:$4 sm:$0xff]  }
 0x826   :  { %9246 = vmatpush2.bf16.msra.mxu1 %v22700_v12  ;;  %v22747_v12 = vld [vmem:[#allocation31 + $0x268] ss:$16 sps:$4 sm:$0xff]  }
 0x827   :  { %9247 = vmatprep.subr.bf16.mxu1 %v22708_v27  ;;  %v22754_v27 = vld [vmem:[#allocation31 + $0x24c] ss:$16 sps:$4 sm:$0xff]  }
 0x828   :  { %7087 = vmatpush2.bf16.msra.mxu0 %v22703_v43  ;;  %v22751_v43 = vld [vmem:[#allocation37 + $0x9f8] ss:$36 sps:$4 sm:$0xff]  }
 0x829   :  { %7088 = vmatprep.subr.bf16.mxu0 %v22711_v52  ;;  %v22755_v52 = vld [vmem:[#allocation37 + $0xbf0] ss:$36 sps:$4 sm:$0xff]  }
 0x82a   :  { %9248 = vmatpush2.bf16.msra.mxu1 %v22706_v53  ;;  %v22752_v53 = vld [vmem:[#allocation31 + $0x248] ss:$16 sps:$4 sm:$0xff]  }
 0x82b   :  { %9249 = vmatprep.subr.bf16.mxu1 %v22714_v13  ;;  %v22759_v13 = vld [vmem:[#allocation31 + $0x22c] ss:$16 sps:$4 sm:$0xff]  }
 0x82c   :  { %7089 = vmatpush2.bf16.msra.mxu0 %v22709_v35  ;;  %v22756_v35 = vld [vmem:[#allocation37 + $0x9b0] ss:$36 sps:$4 sm:$0xff]  }
 0x82d   :  { %7090 = vmatprep.subr.bf16.mxu0 %v22717_v36  ;;  %v22760_v36 = vld [vmem:[#allocation37 + $0xba8] ss:$36 sps:$4 sm:$0xff]  }
 0x82e   :  { %9250 = vmatpush2.bf16.msra.mxu1 %v22712_v37  ;;  %v22757_v37 = vld [vmem:[#allocation31 + $0x228] ss:$16 sps:$4 sm:$0xff]  }
 0x82f   :  { %9251 = vmatprep.subr.bf16.mxu1 %v22720_v38  ;;  %v22764_v38 = vld [vmem:[#allocation31 + $0x20c] ss:$16 sps:$4 sm:$0xff]  }
 0x830   :  { %7091 = vmatpush2.bf16.msra.mxu0 %v22715_v39  ;;  %v22761_v39 = vld [vmem:[#allocation37 + $0x968] ss:$36 sps:$4 sm:$0xff]  }
 0x831   :  { %7092 = vmatprep.subr.bf16.mxu0 %v22723_v0  ;;  %v22765_v0 = vld [vmem:[#allocation37 + $0xb60] ss:$36 sps:$4 sm:$0xff]  }
 0x832   :  { %9252 = vmatpush2.bf16.msra.mxu1 %v22718_v40  ;;  %v22762_v40 = vld [vmem:[#allocation31 + $0x208] ss:$16 sps:$4 sm:$0xff]  }
 0x833   :  { %9253 = vmatprep.subr.bf16.mxu1 %v22726_v58  ;;  %v22769_v58 = vld [vmem:[#allocation31 + $0x3ec] ss:$16 sps:$4 sm:$0xff]  }
 0x834   :  { %7093 = vmatpush2.bf16.msra.mxu0 %v22721_v32  ;;  %v22766_v32 = vld [vmem:[#allocation37 + $0x920] ss:$36 sps:$4 sm:$0xff]  }
 0x835   :  { %7144 = vmatprep.subr.bf16.mxu0 %v22729_v62  ;;  %v22772_v62 = vld [vmem:[#allocation37 + $0x1fc] ss:$36 sps:$4 sm:$0xff]  }
 0x836   :  { %9254 = vmatpush2.bf16.msra.mxu1 %v22724_v33  ;;  %v22767_v33 = vld [vmem:[#allocation31 + $0x3e8] ss:$16 sps:$4 sm:$0xff]  }
 0x837   :  { %7095 = vmatmul.mubr.bf16.vlgmr.msra.gmra.mxu0 %v25810_v1  ;;  %v4982_v50 = vpop.f32.mrf.mxu0  ;;  %21118 = vmatprep.subr.bf16.mxu1 %v22730_v28  ;;  %v22775_v28 = vld [vmem:[#allocation31 + $0x3cc] ss:$16 sps:$4 sm:$0xff]  }
 0x838   :  { %v4983_v31 = vadd.f32 %v19261_v16, %v4982_v50  ;;  %7145 = vmatpush1.bf16.msra.mxu0 %v22727_v30  ;;  %7176 = vmatprep.mubr.bf16.mxu0 %v25808_v57  ;;  %v25922_v42 = vpop.f32.mrf.mxu1  ;;  %v22770_v30 = vld [vmem:[#allocation37 + $0x1f8] ss:$36 sps:$4 sm:$0xff]   ;;  %v22776_v50 = vld [vmem:[#allocation37 + $0x1b0] ss:$36 sps:$4 sm:$0xff]  }
 0x839   :  { %9256 = vmatmul.mubr.bf16.vlgmr.msra.gmra.mxu1 %v25873_v22  ;;  %v21312_v45 = vpop.f32.mrf.mxu0  ;;  %7146 = vmatprep.subr.bf16.mxu0 %v22734_v48  ;;  %v22778_v16 = vld [vmem:[#allocation37 + $0x1b4] ss:$36 sps:$4 sm:$0xff]  }
 0x83a   :  { %4988 = vst [vmem:[#allocation38] sm:$0xff] %v4983_v31  ;;  %21119 = vmatpush3.bf16.msra.mxu1 %v22731_v29  ;;  %9337 = vmatprep.mubr.bf16.mxu1 %v25869_v41  ;;  %v25926_v9 = vpop.f32.mrf.mxu1  ;;  %v22749_v41 = vld [vmem:[#allocation31 + $0x26c] ss:$16 sps:$4 sm:$0xff]   ;;  %v22773_v48 = vld [vmem:[#allocation31 + $0x3c8] ss:$16 sps:$4 sm:$0xff]  }
 0x83b   :  { %v4985_v11 = vpop.f32.mrf.mxu0  ;;  %21120 = vmatprep.subr.bf16.mxu1 %v22735_v55  ;;  %v22781_v29 = vld [vmem:[#allocation31 + $0x3ac] ss:$16 sps:$4 sm:$0xff]   ;;  %v22784_v55 = vld [vmem:[#allocation37 + $0x16c] ss:$36 sps:$4 sm:$0xff]  }
 0x83c   :  { %7147 = vmatpush1.bf16.msra.mxu0 %v22732_v2  ;;  %v9015_v17 = vpop.f32.mrf.mxu1  ;;  %v22779_v31 = vld [vmem:[#allocation31 + $0x3a8] ss:$16 sps:$4 sm:$0xff]   ;;  %v22787_v2 = vld [vmem:[#allocation31 + $0x38c] ss:$16 sps:$4 sm:$0xff]  }
 0x83d   :  { %v21313_v19 = vpop.f32.mrf.mxu0  ;;  %7148 = vmatprep.subr.bf16.mxu0 %v22739_v6  ;;  %v22782_v45 = vld [vmem:[#allocation37 + $0x168] ss:$36 sps:$4 sm:$0xff]   ;;  %v22788_v11 = vld [vmem:[#allocation37 + $0x120] ss:$36 sps:$4 sm:$0xff]  }
 0x83e   :  { %21121 = vmatpush3.bf16.msra.mxu1 %v22736_v10  ;;  %v9016_v5 = vpop.f32.mrf.mxu1  ;;  %v22790_v6 = vld [vmem:[#allocation37 + $0x124] ss:$36 sps:$4 sm:$0xff]   ;;  %v22794_v19 = vld [vmem:[#allocation37 + $0xd8] ss:$36 sps:$4 sm:$0xff]  }
 0x83f   :  { %21122 = vmatprep.subr.bf16.mxu1 %v22740_v15  ;;  %v22785_v10 = vld [vmem:[#allocation31 + $0x388] ss:$16 sps:$4 sm:$0xff]  }
 0x840   :  { %7149 = vmatpush1.bf16.msra.mxu0 %v22737_v18  ;;  %v22796_v15 = vld [vmem:[#allocation37 + $0xdc] ss:$36 sps:$4 sm:$0xff]   ;;  %v22799_v18 = vld [vmem:[#allocation31 + $0x34c] ss:$16 sps:$4 sm:$0xff]  }
 0x841   :  { %7150 = vmatprep.subr.bf16.mxu0 %v22744_v44  ;;  %v22791_v17 = vld [vmem:[#allocation31 + $0x368] ss:$16 sps:$4 sm:$0xff]  }
 0x842   :  { %21123 = vmatpush3.bf16.msra.mxu1 %v22741_v3  ;;  %v22802_v44 = vld [vmem:[#allocation37 + $0x94] ss:$36 sps:$4 sm:$0xff]  }
 0x843   :  { %21124 = vmatprep.subr.bf16.mxu1 %v22745_v7  ;;  %v22797_v5 = vld [vmem:[#allocation31 + $0x348] ss:$16 sps:$4 sm:$0xff]   ;;  %v22805_v3 = vld [vmem:[#allocation31 + $0x32c] ss:$16 sps:$4 sm:$0xff]  }
 0x844   :  { %7151 = vmatpush1.bf16.msra.mxu0 %v22742_v21  ;;  %v22800_v7 = vld [vmem:[#allocation37 + $0x90] ss:$36 sps:$4 sm:$0xff]  }
 0x845   :  { %7152 = vmatprep.subr.bf16.mxu0 %v22749_v41  ;;  %v22808_v21 = vld [vmem:[#allocation37 + $0x4c] ss:$36 sps:$4 sm:$0xff]  }
 0x846   :  { %21125 = vmatpush3.bf16.msra.mxu1 %v22746_v23  ;;  %v22803_v41 = vld [vmem:[#allocation31 + $0x328] ss:$16 sps:$4 sm:$0xff]   ;;  %v22811_v23 = vld [vmem:[#allocation31 + $0x30c] ss:$16 sps:$4 sm:$0xff]  }
 0x847   :  { %21126 = vmatprep.subr.bf16.mxu1 %v22750_v25  ;;  %v22806_v25 = vld [vmem:[#allocation37 + $0x48] ss:$36 sps:$4 sm:$0xff]  }
 0x848   :  { %7153 = vmatpush1.bf16.msra.mxu0 %v22747_v12  ;;  %v22814_v12 = vld [vmem:[#allocation37 + $0x4] ss:$36 sps:$4 sm:$0xff]  }
 0x849   :  { %7154 = vmatprep.subr.bf16.mxu0 %v22754_v27  ;;  %v22809_v27 = vld [vmem:[#allocation31 + $0x308] ss:$16 sps:$4 sm:$0xff]  }
 0x84a   :  { %21127 = vmatpush3.bf16.msra.mxu1 %v22751_v43  ;;  %v22817_v43 = vld [vmem:[#allocation37 + $0xf7c] ss:$36 sps:$4 sm:$0xff]  }
 0x84b   :  { %21128 = vmatprep.subr.bf16.mxu1 %v22755_v52  ;;  %v22812_v52 = vld [vmem:[#allocation37] ss:$36 sps:$4 sm:$0xff]  }
 0x84c   :  { %7155 = vmatpush1.bf16.msra.mxu0 %v22752_v53  ;;  %v22820_v53 = vld [vmem:[#allocation37 + $0x43c] ss:$36 sps:$4 sm:$0xff]  }
 0x84d   :  { %7156 = vmatprep.subr.bf16.mxu0 %v22759_v13  ;;  %v22815_v13 = vld [vmem:[#allocation37 + $0xf78] ss:$36 sps:$4 sm:$0xff]  }
 0x84e   :  { %21129 = vmatpush3.bf16.msra.mxu1 %v22756_v35  ;;  %v22823_v35 = vld [vmem:[#allocation37 + $0xf34] ss:$36 sps:$4 sm:$0xff]  }
 0x84f   :  { %21130 = vmatprep.subr.bf16.mxu1 %v22760_v36  ;;  %v22818_v36 = vld [vmem:[#allocation37 + $0x438] ss:$36 sps:$4 sm:$0xff]  }
 0x850   :  { %7157 = vmatpush1.bf16.msra.mxu0 %v22757_v37 }
 0x851   :  { %7158 = vmatprep.subr.bf16.mxu0 %v22764_v38  ;;  %v22826_v38 = vld [vmem:[#allocation37 + $0x3f4] ss:$36 sps:$4 sm:$0xff]  }
 0x852   :  { %21131 = vmatpush3.bf16.msra.mxu1 %v22761_v39  ;;  %v22821_v39 = vld [vmem:[#allocation37 + $0xf30] ss:$36 sps:$4 sm:$0xff]  }
 0x853   :  { %21132 = vmatprep.subr.bf16.mxu1 %v22765_v0 }
 0x854   :  { %7159 = vmatpush1.bf16.msra.mxu0 %v22762_v40 }
 0x855   :  { %7160 = vmatprep.subr.bf16.mxu0 %v22769_v58  ;;  %v22829_v58 = vld [vmem:[#allocation37 + $0xeec] ss:$36 sps:$4 sm:$0xff]  }
 0x856   :  { %21133 = vmatpush3.bf16.msra.mxu1 %v22766_v32  ;;  %v22824_v32 = vld [vmem:[#allocation37 + $0x3f0] ss:$36 sps:$4 sm:$0xff]  }
 0x857   :  { %10857 = vmatprep.subr.bf16.mxu1 %v22772_v62 }
 0x858   :  { %7161 = vmatpush2.bf16.msra.mxu0 %v22767_v33 }
 0x859   :  { %9338 = vmatmul.mubr.bf16.vlgmr.msra.gmra.mxu1 %v25873_v22  ;;  %7162 = vmatprep.subr.bf16.mxu0 %v22775_v28  ;;  %v22793_v22 = vld [vmem:[#allocation31 + $0x36c] ss:$16 sps:$4 sm:$0xff]   ;;  %v22832_v28 = vld [vmem:[#allocation37 + $0x3ac] ss:$36 sps:$4 sm:$0xff]  }
 0x85a   :  { %10858 = vmatpush1.bf16.msra.mxu1 %v22770_v30  ;;  %10889 = vmatprep.mubr.bf16.mxu1 %v25798_v4  ;;  %v22827_v30 = vld [vmem:[#allocation37 + $0xee8] ss:$36 sps:$4 sm:$0xff]  }
 0x85b   :  { %10859 = vmatprep.subr.bf16.mxu1 %v22778_v16 }
 0x85c   :  { %7163 = vmatpush2.bf16.msra.mxu0 %v22773_v48 }
 0x85d   :  { %7164 = vmatprep.subr.bf16.mxu0 %v22781_v29  ;;  %v22835_v29 = vld [vmem:[#allocation37 + $0xea4] ss:$36 sps:$4 sm:$0xff]  }
 0x85e   :  { %10860 = vmatpush1.bf16.msra.mxu1 %v22776_v50  ;;  %v22830_v50 = vld [vmem:[#allocation37 + $0x3a8] ss:$36 sps:$4 sm:$0xff]  }
 0x85f   :  { %10861 = vmatprep.subr.bf16.mxu1 %v22784_v55 }
 0x860   :  { %7165 = vmatpush2.bf16.msra.mxu0 %v22779_v31  ;;  %v22838_v31 = vld [vmem:[#allocation37 + $0x364] ss:$36 sps:$4 sm:$0xff]  }
 0x861   :  { %7166 = vmatprep.subr.bf16.mxu0 %v22787_v2  ;;  %v22833_v2 = vld [vmem:[#allocation37 + $0xea0] ss:$36 sps:$4 sm:$0xff]  }
 0x862   :  { %10862 = vmatpush1.bf16.msra.mxu1 %v22782_v45  ;;  %v22841_v45 = vld [vmem:[#allocation37 + $0xe5c] ss:$36 sps:$4 sm:$0xff]  }
 0x863   :  { %10863 = vmatprep.subr.bf16.mxu1 %v22790_v6  ;;  %v22836_v6 = vld [vmem:[#allocation37 + $0x360] ss:$36 sps:$4 sm:$0xff]  }
 0x864   :  { %7167 = vmatpush2.bf16.msra.mxu0 %v22785_v10  ;;  %v22844_v10 = vld [vmem:[#allocation37 + $0x31c] ss:$36 sps:$4 sm:$0xff]  }
 0x865   :  { %7168 = vmatprep.subr.bf16.mxu0 %v22793_v22  ;;  %v22839_v22 = vld [vmem:[#allocation37 + $0xe58] ss:$36 sps:$4 sm:$0xff]  }
 0x866   :  { %10864 = vmatpush1.bf16.msra.mxu1 %v22788_v11  ;;  %v22847_v11 = vld [vmem:[#allocation37 + $0xe14] ss:$36 sps:$4 sm:$0xff]  }
 0x867   :  { %10865 = vmatprep.subr.bf16.mxu1 %v22796_v15  ;;  %v22842_v15 = vld [vmem:[#allocation37 + $0x318] ss:$36 sps:$4 sm:$0xff]  }
 0x868   :  { %7169 = vmatpush2.bf16.msra.mxu0 %v22791_v17  ;;  %v22850_v17 = vld [vmem:[#allocation37 + $0x2d4] ss:$36 sps:$4 sm:$0xff]  }
 0x869   :  { %7170 = vmatprep.subr.bf16.mxu0 %v22799_v18  ;;  %v22845_v18 = vld [vmem:[#allocation37 + $0xe10] ss:$36 sps:$4 sm:$0xff]  }
 0x86a   :  { %10866 = vmatpush1.bf16.msra.mxu1 %v22794_v19  ;;  %v22853_v19 = vld [vmem:[#allocation37 + $0xdcc] ss:$36 sps:$4 sm:$0xff]  }
 0x86b   :  { %10867 = vmatprep.subr.bf16.mxu1 %v22802_v44  ;;  %v22848_v44 = vld [vmem:[#allocation37 + $0x2d0] ss:$36 sps:$4 sm:$0xff]  }
 0x86c   :  { %7171 = vmatpush2.bf16.msra.mxu0 %v22797_v5  ;;  %v22856_v5 = vld [vmem:[#allocation37 + $0x28c] ss:$36 sps:$4 sm:$0xff]  }
 0x86d   :  { %7172 = vmatprep.subr.bf16.mxu0 %v22805_v3  ;;  %v22851_v3 = vld [vmem:[#allocation37 + $0xdc8] ss:$36 sps:$4 sm:$0xff]  }
 0x86e   :  { %10868 = vmatpush1.bf16.msra.mxu1 %v22800_v7  ;;  %v22859_v7 = vld [vmem:[#allocation37 + $0xd84] ss:$36 sps:$4 sm:$0xff]  }
 0x86f   :  { %10869 = vmatprep.subr.bf16.mxu1 %v22808_v21  ;;  %v22854_v21 = vld [vmem:[#allocation37 + $0x288] ss:$36 sps:$4 sm:$0xff]  }
 0x870   :  { %7173 = vmatpush2.bf16.msra.mxu0 %v22803_v41  ;;  %v22862_v41 = vld [vmem:[#allocation37 + $0x244] ss:$36 sps:$4 sm:$0xff]  }
 0x871   :  { %7174 = vmatprep.subr.bf16.mxu0 %v22811_v23  ;;  %v22857_v23 = vld [vmem:[#allocation37 + $0xd80] ss:$36 sps:$4 sm:$0xff]  }
 0x872   :  { %10870 = vmatpush1.bf16.msra.mxu1 %v22806_v25  ;;  %v22865_v25 = vld [vmem:[#allocation37 + $0x11bc] ss:$36 sps:$4 sm:$0xff]  }
 0x873   :  { %10871 = vmatprep.subr.bf16.mxu1 %v22814_v12  ;;  %v22860_v12 = vld [vmem:[#allocation37 + $0x240] ss:$36 sps:$4 sm:$0xff]  }
 0x874   :  { %7175 = vmatpush2.bf16.msra.mxu0 %v22809_v27  ;;  %v22868_v27 = vld [vmem:[#allocation37 + $0x204] ss:$36 sps:$4 sm:$0xff]  }
 0x875   :  { %9018 = vmatprep.subr.bf16.mxu0 %v22817_v43  ;;  %v22863_v43 = vld [vmem:[#allocation37 + $0x11b8] ss:$36 sps:$4 sm:$0xff]  }
 0x876   :  { %10872 = vmatpush1.bf16.msra.mxu1 %v22812_v52  ;;  %v22871_v52 = vld [vmem:[#allocation37 + $0x1174] ss:$36 sps:$4 sm:$0xff]  }
 0x877   :  { %v25930_v37 = vpop.f32.mrf.mxu0  ;;  %7177 = vmatmul.mubr.bf16.vlgmr.msra.gmra.mxu0 %v25810_v1  ;;  %10873 = vmatprep.subr.bf16.mxu1 %v22820_v53  ;;  %v22866_v53 = vld [vmem:[#allocation37 + $0x200] ss:$36 sps:$4 sm:$0xff]  }
 0x878   :  { %9019 = vmatpush1.bf16.msra.mxu0 %v22815_v13  ;;  %9050 = vmatprep.mubr.bf16.mxu0 %v25892_v46  ;;  %v22874_v13 = vld [vmem:[#allocation37 + $0x1bc] ss:$36 sps:$4 sm:$0xff]  }
 0x879   :  { %v25934_v0 = vpop.f32.mrf.mxu1  ;;  %v25936_v40 = vpop.f32.mrf.mxu0  ;;  %9020 = vmatprep.subr.bf16.mxu0 %v22823_v35  ;;  %v22869_v35 = vld [vmem:[#allocation37 + $0x1170] ss:$36 sps:$4 sm:$0xff]  }
 0x87a   :  { %10874 = vmatpush2.bf16.msra.mxu1 %v22818_v36  ;;  %v22877_v36 = vld [vmem:[#allocation37 + $0x112c] ss:$36 sps:$4 sm:$0xff]  }
 0x87b   :  { %v25938_v62 = vpop.f32.mrf.mxu1  ;;  %v6296_v33 = vpop.f32.mrf.mxu0  ;;  %10875 = vmatprep.subr.bf16.mxu1 %v22826_v38  ;;  %v22872_v38 = vld [vmem:[#allocation37 + $0x1b8] ss:$36 sps:$4 sm:$0xff]  }
 0x87c   :  { %9021 = vmatpush1.bf16.msra.mxu0 %v22821_v39  ;;  %v22880_v39 = vld [vmem:[#allocation37 + $0x174] ss:$36 sps:$4 sm:$0xff]  }
 0x87d   :  { %v9097_v16 = vpop.f32.mrf.mxu1  ;;  %v6297_v48 = vpop.f32.mrf.mxu0  ;;  %9022 = vmatprep.subr.bf16.mxu0 %v22829_v58  ;;  %v22875_v58 = vld [vmem:[#allocation37 + $0x1128] ss:$36 sps:$4 sm:$0xff]   ;;  %v22878_v33 = vld [vmem:[#allocation37 + $0x170] ss:$36 sps:$4 sm:$0xff]  }
 0x87e   :  { %10876 = vmatpush2.bf16.msra.mxu1 %v22824_v32  ;;  %v22883_v32 = vld [vmem:[#allocation37 + $0x10e4] ss:$36 sps:$4 sm:$0xff]   ;;  %v22889_v16 = vld [vmem:[#allocation37 + $0x109c] ss:$36 sps:$4 sm:$0xff]  }
 0x87f   :  { %v9098_v55 = vpop.f32.mrf.mxu1  ;;  %10877 = vmatprep.subr.bf16.mxu1 %v22832_v28  ;;  %v22886_v28 = vld [vmem:[#allocation37 + $0x12c] ss:$36 sps:$4 sm:$0xff]  }
 0x880   :  { %9023 = vmatpush1.bf16.msra.mxu0 %v22827_v30  ;;  %v22881_v30 = vld [vmem:[#allocation37 + $0x10e0] ss:$36 sps:$4 sm:$0xff]   ;;  %v22884_v48 = vld [vmem:[#allocation37 + $0x128] ss:$36 sps:$4 sm:$0xff]   ;;  %v22895_v55 = vld [vmem:[#allocation37 + $0x1054] ss:$36 sps:$4 sm:$0xff]  }
 0x881   :  { %9024 = vmatprep.subr.bf16.mxu0 %v22835_v29  ;;  %v22892_v29 = vld [vmem:[#allocation37 + $0xe4] ss:$36 sps:$4 sm:$0xff]  }
 0x882   :  { %10878 = vmatpush2.bf16.msra.mxu1 %v22830_v50  ;;  %v22887_v50 = vld [vmem:[#allocation37 + $0x1098] ss:$36 sps:$4 sm:$0xff]  }
 0x883   :  { %10879 = vmatprep.subr.bf16.mxu1 %v22838_v31  ;;  %v22890_v31 = vld [vmem:[#allocation37 + $0xe0] ss:$36 sps:$4 sm:$0xff]  }
 0x884   :  { %9025 = vmatpush1.bf16.msra.mxu0 %v22833_v2  ;;  %v22898_v2 = vld [vmem:[#allocation37 + $0x9c] ss:$36 sps:$4 sm:$0xff]  }
 0x885   :  { %9026 = vmatprep.subr.bf16.mxu0 %v22841_v45  ;;  %v22893_v45 = vld [vmem:[#allocation37 + $0x1050] ss:$36 sps:$4 sm:$0xff]  }
 0x886   :  { %10880 = vmatpush2.bf16.msra.mxu1 %v22836_v6  ;;  %v22901_v6 = vld [vmem:[#allocation37 + $0x100c] ss:$36 sps:$4 sm:$0xff]  }
 0x887   :  { %10881 = vmatprep.subr.bf16.mxu1 %v22844_v10  ;;  %v22896_v10 = vld [vmem:[#allocation37 + $0x98] ss:$36 sps:$4 sm:$0xff]  }
 0x888   :  { %9027 = vmatpush1.bf16.msra.mxu0 %v22839_v22  ;;  %v22904_v22 = vld [vmem:[#allocation37 + $0x54] ss:$36 sps:$4 sm:$0xff]  }
 0x889   :  { %9028 = vmatprep.subr.bf16.mxu0 %v22847_v11  ;;  %v22899_v11 = vld [vmem:[#allocation37 + $0x1008] ss:$36 sps:$4 sm:$0xff]  }
 0x88a   :  { %10882 = vmatpush2.bf16.msra.mxu1 %v22842_v15  ;;  %v22907_v15 = vld [vmem:[#allocation37 + $0xfc4] ss:$36 sps:$4 sm:$0xff]  }
 0x88b   :  { %10883 = vmatprep.subr.bf16.mxu1 %v22850_v17  ;;  %v22902_v17 = vld [vmem:[#allocation37 + $0x50] ss:$36 sps:$4 sm:$0xff]  }
 0x88c   :  { %9029 = vmatpush1.bf16.msra.mxu0 %v22845_v18  ;;  %v22910_v18 = vld [vmem:[#allocation37 + $0xc] ss:$36 sps:$4 sm:$0xff]  }
 0x88d   :  { %9030 = vmatprep.subr.bf16.mxu0 %v22853_v19  ;;  %v22905_v19 = vld [vmem:[#allocation37 + $0xfc0] ss:$36 sps:$4 sm:$0xff]  }
 0x88e   :  { %10884 = vmatpush2.bf16.msra.mxu1 %v22848_v44  ;;  %v22913_v44 = vld [vmem:[#allocation37 + $0xf84] ss:$36 sps:$4 sm:$0xff]  }
 0x88f   :  { %10885 = vmatprep.subr.bf16.mxu1 %v22856_v5  ;;  %v22908_v5 = vld [vmem:[#allocation37 + $0x8] ss:$36 sps:$4 sm:$0xff]  }
 0x890   :  { %9031 = vmatpush1.bf16.msra.mxu0 %v22851_v3  ;;  %v22916_v3 = vld [vmem:[#allocation37 + $0x444] ss:$36 sps:$4 sm:$0xff]  }
 0x891   :  { %9032 = vmatprep.subr.bf16.mxu0 %v22859_v7  ;;  %v22911_v7 = vld [vmem:[#allocation37 + $0xf80] ss:$36 sps:$4 sm:$0xff]  }
 0x892   :  { %10886 = vmatpush2.bf16.msra.mxu1 %v22854_v21  ;;  %v22919_v21 = vld [vmem:[#allocation37 + $0xf3c] ss:$36 sps:$4 sm:$0xff]  }
 0x893   :  { %10887 = vmatprep.subr.bf16.mxu1 %v22862_v41  ;;  %v22914_v41 = vld [vmem:[#allocation37 + $0x440] ss:$36 sps:$4 sm:$0xff]  }
 0x894   :  { %9033 = vmatpush1.bf16.msra.mxu0 %v22857_v23 }
 0x895   :  { %9034 = vmatprep.subr.bf16.mxu0 %v22865_v25  ;;  %v22922_v25 = vld [vmem:[#allocation37 + $0x3fc] ss:$36 sps:$4 sm:$0xff]  }
 0x896   :  { %10888 = vmatpush2.bf16.msra.mxu1 %v22860_v12  ;;  %v22917_v12 = vld [vmem:[#allocation37 + $0xf38] ss:$36 sps:$4 sm:$0xff]  }
 0x897   :  { %10939 = vmatprep.subr.bf16.mxu1 %v22868_v27 }
 0x898   :  { %9035 = vmatpush2.bf16.msra.mxu0 %v22863_v43 }
 0x899   :  { %10890 = vmatmul.mubr.bf16.vlgmr.msra.gmra.mxu1 %v25801_v20  ;;  %9036 = vmatprep.subr.bf16.mxu0 %v22871_v52  ;;  %v22925_v52 = vld [vmem:[#allocation37 + $0xef4] ss:$36 sps:$4 sm:$0xff]  }
 0x89a   :  { %10940 = vmatpush1.bf16.msra.mxu1 %v22866_v53  ;;  %10971 = vmatprep.mubr.bf16.mxu1 %v25798_v4  ;;  %v22920_v53 = vld [vmem:[#allocation37 + $0x3f8] ss:$36 sps:$4 sm:$0xff]  }
 0x89b   :  { %10941 = vmatprep.subr.bf16.mxu1 %v22874_v13 }
 0x89c   :  { %9037 = vmatpush2.bf16.msra.mxu0 %v22869_v35 }
 0x89d   :  { %9038 = vmatprep.subr.bf16.mxu0 %v22877_v36  ;;  %v22928_v36 = vld [vmem:[#allocation37 + $0x3b4] ss:$36 sps:$4 sm:$0xff]  }
 0x89e   :  { %10942 = vmatpush1.bf16.msra.mxu1 %v22872_v38  ;;  %v22923_v38 = vld [vmem:[#allocation37 + $0xef0] ss:$36 sps:$4 sm:$0xff]  }
 0x89f   :  { %10943 = vmatprep.subr.bf16.mxu1 %v22880_v39 }
 0x8a0   :  { %9039 = vmatpush2.bf16.msra.mxu0 %v22875_v58 }
 0x8a1   :  { %9040 = vmatprep.subr.bf16.mxu0 %v22883_v32  ;;  %v22931_v32 = vld [vmem:[#allocation37 + $0xeac] ss:$36 sps:$4 sm:$0xff]  }
 0x8a2   :  { %10944 = vmatpush1.bf16.msra.mxu1 %v22878_v33  ;;  %v22926_v33 = vld [vmem:[#allocation37 + $0x3b0] ss:$36 sps:$4 sm:$0xff]  }
 0x8a3   :  { %10945 = vmatprep.subr.bf16.mxu1 %v22886_v28 }
 0x8a4   :  { %9041 = vmatpush2.bf16.msra.mxu0 %v22881_v30  ;;  %v22934_v30 = vld [vmem:[#allocation37 + $0x36c] ss:$36 sps:$4 sm:$0xff]  }
 0x8a5   :  { %9042 = vmatprep.subr.bf16.mxu0 %v22889_v16  ;;  %v22929_v16 = vld [vmem:[#allocation37 + $0xea8] ss:$36 sps:$4 sm:$0xff]  }
 0x8a6   :  { %10946 = vmatpush1.bf16.msra.mxu1 %v22884_v48  ;;  %v22937_v48 = vld [vmem:[#allocation37 + $0xe64] ss:$36 sps:$4 sm:$0xff]  }
 0x8a7   :  { %10947 = vmatprep.subr.bf16.mxu1 %v22892_v29  ;;  %v22932_v29 = vld [vmem:[#allocation37 + $0x368] ss:$36 sps:$4 sm:$0xff]  }
 0x8a8   :  { %9043 = vmatpush2.bf16.msra.mxu0 %v22887_v50  ;;  %v22940_v50 = vld [vmem:[#allocation37 + $0x324] ss:$36 sps:$4 sm:$0xff]  }
 0x8a9   :  { %9044 = vmatprep.subr.bf16.mxu0 %v22895_v55  ;;  %v22935_v55 = vld [vmem:[#allocation37 + $0xe60] ss:$36 sps:$4 sm:$0xff]  }
 0x8aa   :  { %10948 = vmatpush1.bf16.msra.mxu1 %v22890_v31  ;;  %v22943_v31 = vld [vmem:[#allocation37 + $0xe1c] ss:$36 sps:$4 sm:$0xff]  }
 0x8ab   :  { %10949 = vmatprep.subr.bf16.mxu1 %v22898_v2  ;;  %v22938_v2 = vld [vmem:[#allocation37 + $0x320] ss:$36 sps:$4 sm:$0xff]  }
 0x8ac   :  { %9045 = vmatpush2.bf16.msra.mxu0 %v22893_v45  ;;  %v22946_v45 = vld [vmem:[#allocation37 + $0x2dc] ss:$36 sps:$4 sm:$0xff]  }
 0x8ad   :  { %9046 = vmatprep.subr.bf16.mxu0 %v22901_v6  ;;  %v22941_v6 = vld [vmem:[#allocation37 + $0xe18] ss:$36 sps:$4 sm:$0xff]  }
 0x8ae   :  { %10950 = vmatpush1.bf16.msra.mxu1 %v22896_v10  ;;  %v22949_v10 = vld [vmem:[#allocation37 + $0xdd4] ss:$36 sps:$4 sm:$0xff]  }
 0x8af   :  { %10951 = vmatprep.subr.bf16.mxu1 %v22904_v22  ;;  %v22944_v22 = vld [vmem:[#allocation37 + $0x2d8] ss:$36 sps:$4 sm:$0xff]  }
 0x8b0   :  { %9047 = vmatpush2.bf16.msra.mxu0 %v22899_v11  ;;  %v22952_v11 = vld [vmem:[#allocation37 + $0x294] ss:$36 sps:$4 sm:$0xff]  }
 0x8b1   :  { %9048 = vmatprep.subr.bf16.mxu0 %v22907_v15  ;;  %v22947_v15 = vld [vmem:[#allocation37 + $0xdd0] ss:$36 sps:$4 sm:$0xff]  }
 0x8b2   :  { %10952 = vmatpush1.bf16.msra.mxu1 %v22902_v17  ;;  %v22955_v17 = vld [vmem:[#allocation37 + $0xd8c] ss:$36 sps:$4 sm:$0xff]  }
 0x8b3   :  { %10953 = vmatprep.subr.bf16.mxu1 %v22910_v18  ;;  %v22950_v18 = vld [vmem:[#allocation37 + $0x290] ss:$36 sps:$4 sm:$0xff]  }
 0x8b4   :  { %9049 = vmatpush2.bf16.msra.mxu0 %v22905_v19  ;;  %v22958_v19 = vld [vmem:[#allocation37 + $0x24c] ss:$36 sps:$4 sm:$0xff]  }
 0x8b5   :  { %9100 = vmatprep.subr.bf16.mxu0 %v22913_v44  ;;  %v22953_v44 = vld [vmem:[#allocation37 + $0xd88] ss:$36 sps:$4 sm:$0xff]  }
 0x8b6   :  { %10954 = vmatpush1.bf16.msra.mxu1 %v22908_v5  ;;  %v22961_v5 = vld [vmem:[#allocation37 + $0x11c4] ss:$36 sps:$4 sm:$0xff]  }
 0x8b7   :  { %v25942_v23 = vpop.f32.mrf.mxu0  ;;  %9051 = vmatmul.mubr.bf16.vlgmr.msra.gmra.mxu0 %v25902_v8  ;;  %10955 = vmatprep.subr.bf16.mxu1 %v22916_v3  ;;  %v22956_v3 = vld [vmem:[#allocation37 + $0x248] ss:$36 sps:$4 sm:$0xff]  }
 0x8b8   :  { %9101 = vmatpush1.bf16.msra.mxu0 %v22911_v7  ;;  %9132 = vmatprep.mubr.bf16.mxu0 %v25892_v46  ;;  %v22964_v7 = vld [vmem:[#allocation37 + $0x20c] ss:$36 sps:$4 sm:$0xff]  }
 0x8b9   :  { %v25946_v27 = vpop.f32.mrf.mxu1  ;;  %v25948_v43 = vpop.f32.mrf.mxu0  ;;  %9102 = vmatprep.subr.bf16.mxu0 %v22919_v21  ;;  %v22959_v21 = vld [vmem:[#allocation37 + $0x11c0] ss:$36 sps:$4 sm:$0xff]  }
 0x8ba   :  { %10956 = vmatpush2.bf16.msra.mxu1 %v22914_v41  ;;  %v22967_v41 = vld [vmem:[#allocation37 + $0x117c] ss:$36 sps:$4 sm:$0xff]  }
 0x8bb   :  { %v25950_v13 = vpop.f32.mrf.mxu1  ;;  %v6378_v35 = vpop.f32.mrf.mxu0  ;;  %10957 = vmatprep.subr.bf16.mxu1 %v22922_v25  ;;  %v22962_v25 = vld [vmem:[#allocation37 + $0x208] ss:$36 sps:$4 sm:$0xff]  }
 0x8bc   :  { %9103 = vmatpush1.bf16.msra.mxu0 %v22917_v12  ;;  %v22970_v12 = vld [vmem:[#allocation37 + $0x1c4] ss:$36 sps:$4 sm:$0xff]  }
 0x8bd   :  { %v9179_v39 = vpop.f32.mrf.mxu1  ;;  %v6379_v58 = vpop.f32.mrf.mxu0  ;;  %9104 = vmatprep.subr.bf16.mxu0 %v22925_v52  ;;  %v22965_v52 = vld [vmem:[#allocation37 + $0x1178] ss:$36 sps:$4 sm:$0xff]   ;;  %v22968_v35 = vld [vmem:[#allocation37 + $0x1c0] ss:$36 sps:$4 sm:$0xff]  }
 0x8be   :  { %10958 = vmatpush2.bf16.msra.mxu1 %v22920_v53  ;;  %v22973_v53 = vld [vmem:[#allocation37 + $0x1134] ss:$36 sps:$4 sm:$0xff]   ;;  %v22979_v39 = vld [vmem:[#allocation37 + $0x10ec] ss:$36 sps:$4 sm:$0xff]  }
 0x8bf   :  { %v9180_v28 = vpop.f32.mrf.mxu1  ;;  %10959 = vmatprep.subr.bf16.mxu1 %v22928_v36  ;;  %v22976_v36 = vld [vmem:[#allocation37 + $0x17c] ss:$36 sps:$4 sm:$0xff]  }
 0x8c0   :  { %9105 = vmatpush1.bf16.msra.mxu0 %v22923_v38  ;;  %v22971_v38 = vld [vmem:[#allocation37 + $0x1130] ss:$36 sps:$4 sm:$0xff]   ;;  %v22974_v58 = vld [vmem:[#allocation37 + $0x178] ss:$36 sps:$4 sm:$0xff]   ;;  %v22985_v28 = vld [vmem:[#allocation37 + $0x10a4] ss:$36 sps:$4 sm:$0xff]  }
 0x8c1   :  { %9106 = vmatprep.subr.bf16.mxu0 %v22931_v32  ;;  %v22982_v32 = vld [vmem:[#allocation37 + $0x134] ss:$36 sps:$4 sm:$0xff]  }
 0x8c2   :  { %10960 = vmatpush2.bf16.msra.mxu1 %v22926_v33  ;;  %v22977_v33 = vld [vmem:[#allocation37 + $0x10e8] ss:$36 sps:$4 sm:$0xff]  }
 0x8c3   :  { %10961 = vmatprep.subr.bf16.mxu1 %v22934_v30  ;;  %v22980_v30 = vld [vmem:[#allocation37 + $0x130] ss:$36 sps:$4 sm:$0xff]  }
 0x8c4   :  { %9107 = vmatpush1.bf16.msra.mxu0 %v22929_v16  ;;  %v22988_v16 = vld [vmem:[#allocation37 + $0xec] ss:$36 sps:$4 sm:$0xff]  }
 0x8c5   :  { %9108 = vmatprep.subr.bf16.mxu0 %v22937_v48  ;;  %v22983_v48 = vld [vmem:[#allocation37 + $0x10a0] ss:$36 sps:$4 sm:$0xff]  }
 0x8c6   :  { %10962 = vmatpush2.bf16.msra.mxu1 %v22932_v29  ;;  %v22991_v29 = vld [vmem:[#allocation37 + $0x105c] ss:$36 sps:$4 sm:$0xff]  }
 0x8c7   :  { %10963 = vmatprep.subr.bf16.mxu1 %v22940_v50  ;;  %v22986_v50 = vld [vmem:[#allocation37 + $0xe8] ss:$36 sps:$4 sm:$0xff]  }
 0x8c8   :  { %9109 = vmatpush1.bf16.msra.mxu0 %v22935_v55  ;;  %v22994_v55 = vld [vmem:[#allocation37 + $0xa4] ss:$36 sps:$4 sm:$0xff]  }
 0x8c9   :  { %9110 = vmatprep.subr.bf16.mxu0 %v22943_v31  ;;  %v22989_v31 = vld [vmem:[#allocation37 + $0x1058] ss:$36 sps:$4 sm:$0xff]  }
 0x8ca   :  { %10964 = vmatpush2.bf16.msra.mxu1 %v22938_v2  ;;  %v22997_v2 = vld [vmem:[#allocation37 + $0x1014] ss:$36 sps:$4 sm:$0xff]  }
 0x8cb   :  { %10965 = vmatprep.subr.bf16.mxu1 %v22946_v45  ;;  %v22992_v45 = vld [vmem:[#allocation37 + $0xa0] ss:$36 sps:$4 sm:$0xff]  }
 0x8cc   :  { %9111 = vmatpush1.bf16.msra.mxu0 %v22941_v6  ;;  %v23000_v6 = vld [vmem:[#allocation37 + $0x5c] ss:$36 sps:$4 sm:$0xff]  }
 0x8cd   :  { %9112 = vmatprep.subr.bf16.mxu0 %v22949_v10  ;;  %v22995_v10 = vld [vmem:[#allocation37 + $0x1010] ss:$36 sps:$4 sm:$0xff]  }
 0x8ce   :  { %10966 = vmatpush2.bf16.msra.mxu1 %v22944_v22  ;;  %v23003_v22 = vld [vmem:[#allocation37 + $0xfcc] ss:$36 sps:$4 sm:$0xff]  }
 0x8cf   :  { %10967 = vmatprep.subr.bf16.mxu1 %v22952_v11  ;;  %v22998_v11 = vld [vmem:[#allocation37 + $0x58] ss:$36 sps:$4 sm:$0xff]  }
 0x8d0   :  { %9113 = vmatpush1.bf16.msra.mxu0 %v22947_v15  ;;  %v23006_v15 = vld [vmem:[#allocation37 + $0x14] ss:$36 sps:$4 sm:$0xff]  }
 0x8d1   :  { %9114 = vmatprep.subr.bf16.mxu0 %v22955_v17  ;;  %v23001_v17 = vld [vmem:[#allocation37 + $0xfc8] ss:$36 sps:$4 sm:$0xff]  }
 0x8d2   :  { %10968 = vmatpush2.bf16.msra.mxu1 %v22950_v18  ;;  %v23009_v18 = vld [vmem:[#allocation37 + $0xf8c] ss:$36 sps:$4 sm:$0xff]  }
 0x8d3   :  { %10969 = vmatprep.subr.bf16.mxu1 %v22958_v19  ;;  %v6293_v19 = vadd.f32 %v25930_v37, %v25884_v14  ;;  %v23018_v14 = vld [vmem:[#allocation37 + $0x404] ss:$36 sps:$4 sm:$0xff]  }
 0x8d4   :  { %9115 = vmatpush1.bf16.msra.mxu0 %v22953_v44  ;;  %v23004_v44 = vld [vmem:[#allocation37 + $0x10] ss:$36 sps:$4 sm:$0xff]  }
 0x8d5   :  { %9116 = vmatprep.subr.bf16.mxu0 %v22961_v5  ;;  %v23012_v5 = vld [vmem:[#allocation37 + $0x44c] ss:$36 sps:$4 sm:$0xff]  }
 0x8d6   :  { %10970 = vmatpush2.bf16.msra.mxu1 %v22956_v3  ;;  %v6295_v3 = vadd.f32 %v25936_v40, %v25888_v60  ;;  %v23013_v40 = vld [vmem:[#allocation37 + $0xf40] ss:$36 sps:$4 sm:$0xff]  }
 0x8d7   :  { %11021 = vmatprep.subr.bf16.mxu1 %v22964_v7  ;;  %v23007_v7 = vld [vmem:[#allocation37 + $0xf88] ss:$36 sps:$4 sm:$0xff]  }
 0x8d8   :  { %9117 = vmatpush2.bf16.msra.mxu0 %v22959_v21  ;;  %v23015_v21 = vld [vmem:[#allocation37 + $0xf44] ss:$36 sps:$4 sm:$0xff]   ;;  %v7058_v60 = vadd.f32 %v25910_v51, %v6295_v3  ;;  %v23027_v51 = vld [vmem:[#allocation37 + $0xeb4] ss:$36 sps:$4 sm:$0xff]  }
 0x8d9   :  { %10972 = vmatmul.mubr.bf16.vlgmr.msra.gmra.mxu1 %v25801_v20  ;;  %9118 = vmatprep.subr.bf16.mxu0 %v22967_v41  ;;  %v7056_v41 = vadd.f32 %v25906_v49, %v6293_v19  ;;  %v23051_v19 = vld [vmem:[#allocation37 + $0xd94] ss:$36 sps:$4 sm:$0xff]  }
 0x8da   :  { %11022 = vmatpush1.bf16.msra.mxu1 %v22962_v25  ;;  %11053 = vmatprep.mubr.bf16.mxu1 %v25798_v4  ;;  %v23010_v25 = vld [vmem:[#allocation37 + $0x448] ss:$36 sps:$4 sm:$0xff]   ;;  %v23049_v3 = vld [vmem:[#allocation37 + $0xd90] ss:$36 sps:$4 sm:$0xff]  }
 0x8db   :  { %11023 = vmatprep.subr.bf16.mxu1 %v22970_v12 }
 0x8dc   :  { %9119 = vmatpush2.bf16.msra.mxu0 %v22965_v52 }
 0x8dd   :  { %9120 = vmatprep.subr.bf16.mxu0 %v22973_v53 }
 0x8de   :  { %11024 = vmatpush1.bf16.msra.mxu1 %v22968_v35  ;;  %v23021_v35 = vld [vmem:[#allocation37 + $0xefc] ss:$36 sps:$4 sm:$0xff]  }
 0x8df   :  { %11025 = vmatprep.subr.bf16.mxu1 %v22976_v36  ;;  %v23016_v36 = vld [vmem:[#allocation37 + $0x400] ss:$36 sps:$4 sm:$0xff]  }
 0x8e0   :  { %9121 = vmatpush2.bf16.msra.mxu0 %v22971_v38 }
 0x8e1   :  { %9122 = vmatprep.subr.bf16.mxu0 %v22979_v39 }
 0x8e2   :  { %11026 = vmatpush1.bf16.msra.mxu1 %v22974_v58  ;;  %v23024_v58 = vld [vmem:[#allocation37 + $0x3bc] ss:$36 sps:$4 sm:$0xff]  }
 0x8e3   :  { %11027 = vmatprep.subr.bf16.mxu1 %v22982_v32  ;;  %v23019_v32 = vld [vmem:[#allocation37 + $0xef8] ss:$36 sps:$4 sm:$0xff]  }
 0x8e4   :  { %9123 = vmatpush2.bf16.msra.mxu0 %v22977_v33 }
 0x8e5   :  { %9124 = vmatprep.subr.bf16.mxu0 %v22985_v28 }
 0x8e6   :  { %11028 = vmatpush1.bf16.msra.mxu1 %v22980_v30  ;;  %v23022_v30 = vld [vmem:[#allocation37 + $0x3b8] ss:$36 sps:$4 sm:$0xff]  }
 0x8e7   :  { %11029 = vmatprep.subr.bf16.mxu1 %v22988_v16 }
 0x8e8   :  { %9125 = vmatpush2.bf16.msra.mxu0 %v22983_v48  ;;  %v23030_v48 = vld [vmem:[#allocation37 + $0x374] ss:$36 sps:$4 sm:$0xff]  }
 0x8e9   :  { %9126 = vmatprep.subr.bf16.mxu0 %v22991_v29  ;;  %v23025_v29 = vld [vmem:[#allocation37 + $0xeb0] ss:$36 sps:$4 sm:$0xff]  }
 0x8ea   :  { %11030 = vmatpush1.bf16.msra.mxu1 %v22986_v50  ;;  %v23033_v50 = vld [vmem:[#allocation37 + $0xe6c] ss:$36 sps:$4 sm:$0xff]  }
 0x8eb   :  { %11031 = vmatprep.subr.bf16.mxu1 %v22994_v55  ;;  %v23028_v55 = vld [vmem:[#allocation37 + $0x370] ss:$36 sps:$4 sm:$0xff]  }
 0x8ec   :  { %9127 = vmatpush2.bf16.msra.mxu0 %v22989_v31  ;;  %v23036_v31 = vld [vmem:[#allocation37 + $0x32c] ss:$36 sps:$4 sm:$0xff]  }
 0x8ed   :  { %9128 = vmatprep.subr.bf16.mxu0 %v22997_v2  ;;  %v23031_v2 = vld [vmem:[#allocation37 + $0xe68] ss:$36 sps:$4 sm:$0xff]  }
 0x8ee   :  { %11032 = vmatpush1.bf16.msra.mxu1 %v22992_v45  ;;  %v23039_v45 = vld [vmem:[#allocation37 + $0xe24] ss:$36 sps:$4 sm:$0xff]  }
 0x8ef   :  { %11033 = vmatprep.subr.bf16.mxu1 %v23000_v6  ;;  %v23034_v6 = vld [vmem:[#allocation37 + $0x328] ss:$36 sps:$4 sm:$0xff]  }
 0x8f0   :  { %9129 = vmatpush2.bf16.msra.mxu0 %v22995_v10  ;;  %v23042_v10 = vld [vmem:[#allocation37 + $0x2e4] ss:$36 sps:$4 sm:$0xff]  }
 0x8f1   :  { %9130 = vmatprep.subr.bf16.mxu0 %v23003_v22  ;;  %v23037_v22 = vld [vmem:[#allocation37 + $0xe20] ss:$36 sps:$4 sm:$0xff]  }
 0x8f2   :  { %11034 = vmatpush1.bf16.msra.mxu1 %v22998_v11  ;;  %v23045_v11 = vld [vmem:[#allocation37 + $0xddc] ss:$36 sps:$4 sm:$0xff]  }
 0x8f3   :  { %11035 = vmatprep.subr.bf16.mxu1 %v23006_v15  ;;  %v23040_v15 = vld [vmem:[#allocation37 + $0x2e0] ss:$36 sps:$4 sm:$0xff]  }
 0x8f4   :  { %9131 = vmatpush2.bf16.msra.mxu0 %v23001_v17  ;;  %v23048_v17 = vld [vmem:[#allocation37 + $0x29c] ss:$36 sps:$4 sm:$0xff]  }
 0x8f5   :  { %9182 = vmatprep.subr.bf16.mxu0 %v23009_v18  ;;  %v23043_v18 = vld [vmem:[#allocation37 + $0xdd8] ss:$36 sps:$4 sm:$0xff]  }
 0x8f6   :  { %11036 = vmatpush1.bf16.msra.mxu1 %v23004_v44  ;;  %v23046_v44 = vld [vmem:[#allocation37 + $0x298] ss:$36 sps:$4 sm:$0xff]  }
 0x8f7   :  { %v7096_v12 = vpop.f32.mrf.mxu0  ;;  %9133 = vmatmul.mubr.bf16.vlgmr.msra.gmra.mxu0 %v25902_v8  ;;  %11037 = vmatprep.subr.bf16.mxu1 %v23012_v5  ;;  %v23054_v5 = vld [vmem:[#allocation37 + $0x254] ss:$36 sps:$4 sm:$0xff]  }
 0x8f8   :  { %v25960_v37 = vadd.f32 %v7096_v12, %v7056_v41  ;;  %9183 = vmatpush1.bf16.msra.mxu0 %v23007_v7  ;;  %9214 = vmatprep.mubr.bf16.mxu0 %v25892_v46  ;;  %v23057_v7 = vld [vmem:[#allocation37 + $0x11cc] ss:$36 sps:$4 sm:$0xff]   ;;  %v23060_v41 = vld [vmem:[#allocation37 + $0x214] ss:$36 sps:$4 sm:$0xff]   ;;  %v23063_v12 = vld [vmem:[#allocation37 + $0x1184] ss:$36 sps:$4 sm:$0xff]  }
 0x8f9   :  { %v25964_v52 = vpop.f32.mrf.mxu1  ;;  %v7098_v53 = vpop.f32.mrf.mxu0  ;;  %9184 = vmatprep.subr.bf16.mxu0 %v23015_v21  ;;  %v23052_v21 = vld [vmem:[#allocation37 + $0x250] ss:$36 sps:$4 sm:$0xff]  }
 0x8fa   :  { %v25966_v49 = vadd.f32 %v7098_v53, %v7058_v60  ;;  %11038 = vmatpush2.bf16.msra.mxu1 %v23010_v25  ;;  %v23055_v25 = vld [vmem:[#allocation37 + $0x11c8] ss:$36 sps:$4 sm:$0xff]  }
 0x8fb   :  { %v25968_v38 = vpop.f32.mrf.mxu1  ;;  %v7100_v39 = vpop.f32.mrf.mxu0  ;;  %11039 = vmatprep.subr.bf16.mxu1 %v23018_v14  ;;  %v23058_v14 = vld [vmem:[#allocation37 + $0x210] ss:$36 sps:$4 sm:$0xff]  }
 0x8fc   :  { %9185 = vmatpush1.bf16.msra.mxu0 %v23013_v40  ;;  %v23066_v60 = vld [vmem:[#allocation37 + $0x1cc] ss:$36 sps:$4 sm:$0xff]   ;;  %v23061_v40 = vld [vmem:[#allocation37 + $0x1180] ss:$36 sps:$4 sm:$0xff]  }
 0x8fd   :  { %v9261_v33 = vpop.f32.mrf.mxu1  ;;  %v7101_v28 = vpop.f32.mrf.mxu0  ;;  %9186 = vmatprep.subr.bf16.mxu0 %v23021_v35  ;;  %v23069_v35 = vld [vmem:[#allocation37 + $0x113c] ss:$36 sps:$4 sm:$0xff]  }
 0x8fe   :  { %11040 = vmatpush2.bf16.msra.mxu1 %v23016_v36  ;;  %v23064_v36 = vld [vmem:[#allocation37 + $0x1c8] ss:$36 sps:$4 sm:$0xff]   ;;  %v23067_v33 = vld [vmem:[#allocation37 + $0x1138] ss:$36 sps:$4 sm:$0xff]  }
 0x8ff   :  { %v9262_v16 = vpop.f32.mrf.mxu1  ;;  %11041 = vmatprep.subr.bf16.mxu1 %v23024_v58  ;;  %v23072_v58 = vld [vmem:[#allocation37 + $0x184] ss:$36 sps:$4 sm:$0xff]  }
 0x900   :  { %9187 = vmatpush1.bf16.msra.mxu0 %v23019_v32 }
 0x901   :  { %9188 = vmatprep.subr.bf16.mxu0 %v23027_v51  ;;  %v23075_v51 = vld [vmem:[#allocation37 + $0x10f4] ss:$36 sps:$4 sm:$0xff]  }
 0x902   :  { %11042 = vmatpush2.bf16.msra.mxu1 %v23022_v30  ;;  %v23070_v30 = vld [vmem:[#allocation37 + $0x180] ss:$36 sps:$4 sm:$0xff]  }
 0x903   :  { %11043 = vmatprep.subr.bf16.mxu1 %v23030_v48  ;;  %v23078_v48 = vld [vmem:[#allocation37 + $0x13c] ss:$36 sps:$4 sm:$0xff]  }
 0x904   :  { %9189 = vmatpush1.bf16.msra.mxu0 %v23025_v29  ;;  %v23073_v29 = vld [vmem:[#allocation37 + $0x10f0] ss:$36 sps:$4 sm:$0xff]  }
 0x905   :  { %9190 = vmatprep.subr.bf16.mxu0 %v23033_v50  ;;  %v23081_v50 = vld [vmem:[#allocation37 + $0x10ac] ss:$36 sps:$4 sm:$0xff]  }
 0x906   :  { %11044 = vmatpush2.bf16.msra.mxu1 %v23028_v55  ;;  %v23076_v55 = vld [vmem:[#allocation37 + $0x138] ss:$36 sps:$4 sm:$0xff]  }
 0x907   :  { %11045 = vmatprep.subr.bf16.mxu1 %v23036_v31  ;;  %v23084_v31 = vld [vmem:[#allocation37 + $0xf4] ss:$36 sps:$4 sm:$0xff]  }
 0x908   :  { %9191 = vmatpush1.bf16.msra.mxu0 %v23031_v2  ;;  %v23079_v2 = vld [vmem:[#allocation37 + $0x10a8] ss:$36 sps:$4 sm:$0xff]  }
 0x909   :  { %9192 = vmatprep.subr.bf16.mxu0 %v23039_v45  ;;  %v23087_v45 = vld [vmem:[#allocation37 + $0x1064] ss:$36 sps:$4 sm:$0xff]  }
 0x90a   :  { %11046 = vmatpush2.bf16.msra.mxu1 %v23034_v6  ;;  %v23082_v6 = vld [vmem:[#allocation37 + $0xf0] ss:$36 sps:$4 sm:$0xff]  }
 0x90b   :  { %11047 = vmatprep.subr.bf16.mxu1 %v23042_v10  ;;  %v23090_v10 = vld [vmem:[#allocation37 + $0xac] ss:$36 sps:$4 sm:$0xff]  }
 0x90c   :  { %9193 = vmatpush1.bf16.msra.mxu0 %v23037_v22  ;;  %v23085_v22 = vld [vmem:[#allocation37 + $0x1060] ss:$36 sps:$4 sm:$0xff]  }
 0x90d   :  { %9194 = vmatprep.subr.bf16.mxu0 %v23045_v11  ;;  %v23093_v11 = vld [vmem:[#allocation37 + $0x101c] ss:$36 sps:$4 sm:$0xff]  }
 0x90e   :  { %11048 = vmatpush2.bf16.msra.mxu1 %v23040_v15  ;;  %v23088_v15 = vld [vmem:[#allocation37 + $0xa8] ss:$36 sps:$4 sm:$0xff]  }
 0x90f   :  { %11049 = vmatprep.subr.bf16.mxu1 %v23048_v17  ;;  %v23096_v17 = vld [vmem:[#allocation37 + $0x64] ss:$36 sps:$4 sm:$0xff]  }
 0x910   :  { %9195 = vmatpush1.bf16.msra.mxu0 %v23043_v18  ;;  %v23091_v18 = vld [vmem:[#allocation37 + $0x1018] ss:$36 sps:$4 sm:$0xff]  }
 0x911   :  { %9196 = vmatprep.subr.bf16.mxu0 %v23051_v19  ;;  %v23099_v19 = vld [vmem:[#allocation37 + $0xfd4] ss:$36 sps:$4 sm:$0xff]  }
 0x912   :  { %11050 = vmatpush2.bf16.msra.mxu1 %v23046_v44  ;;  %v23094_v44 = vld [vmem:[#allocation37 + $0x60] ss:$36 sps:$4 sm:$0xff]  }
 0x913   :  { %11051 = vmatprep.subr.bf16.mxu1 %v23054_v5  ;;  %v23102_v5 = vld [vmem:[#allocation37 + $0x1c] ss:$36 sps:$4 sm:$0xff]  }
 0x914   :  { %9197 = vmatpush1.bf16.msra.mxu0 %v23049_v3  ;;  %v23097_v3 = vld [vmem:[#allocation37 + $0xfd0] ss:$36 sps:$4 sm:$0xff]  }
 0x915   :  { %9198 = vmatprep.subr.bf16.mxu0 %v23057_v7  ;;  %v23105_v7 = vld [vmem:[#allocation37 + $0xf94] ss:$36 sps:$4 sm:$0xff]  }
 0x916   :  { %11052 = vmatpush2.bf16.msra.mxu1 %v23052_v21  ;;  %v6375_v21 = vadd.f32 %v25942_v23, %v25894_v47  ;;  %v23114_v47 = vld [vmem:[#allocation37 + $0x40c] ss:$36 sps:$4 sm:$0xff]  }
 0x917   :  { %11103 = vmatprep.subr.bf16.mxu1 %v23060_v41  ;;  %v23100_v41 = vld [vmem:[#allocation37 + $0x18] ss:$36 sps:$4 sm:$0xff]  }
 0x918   :  { %9199 = vmatpush2.bf16.msra.mxu0 %v23055_v25  ;;  %v23108_v25 = vld [vmem:[#allocation37 + $0x454] ss:$36 sps:$4 sm:$0xff]  }
 0x919   :  { %v21134_v53 = vpop.f32.mrf.mxu1  ;;  %11054 = vmatmul.mubr.bf16.vlgmr.msra.gmra.mxu1 %v25801_v20  ;;  %9200 = vmatprep.subr.bf16.mxu0 %v23063_v12  ;;  %v6377_v12 = vadd.f32 %v25948_v43, %v25899_v34  ;;  %v23109_v43 = vld [vmem:[#allocation37 + $0xf48] ss:$36 sps:$4 sm:$0xff]  }
 0x91a   :  { %11104 = vmatpush1.bf16.msra.mxu1 %v23058_v14  ;;  %11135 = vmatprep.mubr.bf16.mxu1 %v25798_v4  ;;  %v23103_v14 = vld [vmem:[#allocation37 + $0xf90] ss:$36 sps:$4 sm:$0xff]  }
 0x91b   :  { %v21135_v39 = vpop.f32.mrf.mxu1  ;;  %11105 = vmatprep.subr.bf16.mxu1 %v23066_v60  ;;  %v23111_v60 = vld [vmem:[#allocation37 + $0xf4c] ss:$36 sps:$4 sm:$0xff]   ;;  %v7140_v34 = vadd.f32 %v25918_v26, %v6377_v12  ;;  %v23126_v26 = vld [vmem:[#allocation37 + $0x37c] ss:$36 sps:$4 sm:$0xff]  }
 0x91c   :  { %v25972_v32 = vadd.f32 %v21135_v39, %v21134_v53  ;;  %9201 = vmatpush2.bf16.msra.mxu0 %v23061_v40  ;;  %v7138_v40 = vadd.f32 %v25914_v24, %v6375_v21  ;;  %v23106_v53 = vld [vmem:[#allocation37 + $0x450] ss:$36 sps:$4 sm:$0xff]   ;;  %v23117_v39 = vld [vmem:[#allocation37 + $0xf04] ss:$36 sps:$4 sm:$0xff]   ;;  %v23148_v21 = vld [vmem:[#allocation37 + $0x258] ss:$36 sps:$4 sm:$0xff]  }
 0x91d   :  { %v21137_v28 = vpop.f32.mrf.mxu1  ;;  %9202 = vmatprep.subr.bf16.mxu0 %v23069_v35  ;;  %v23112_v24 = vld [vmem:[#allocation37 + $0x408] ss:$36 sps:$4 sm:$0xff]  }
 0x91e   :  { %11106 = vmatpush1.bf16.msra.mxu1 %v23064_v36  ;;  %v23120_v28 = vld [vmem:[#allocation37 + $0x3c4] ss:$36 sps:$4 sm:$0xff]   ;;  %v23158_v12 = vld [vmem:[#allocation37 + $0x118c] ss:$36 sps:$4 sm:$0xff]  }
 0x91f   :  { %v21138_v16 = vpop.f32.mrf.mxu1  ;;  %11107 = vmatprep.subr.bf16.mxu1 %v23072_v58 }
 0x920   :  { %9203 = vmatpush2.bf16.msra.mxu0 %v23067_v33  ;;  %v23123_v16 = vld [vmem:[#allocation37 + $0xebc] ss:$36 sps:$4 sm:$0xff]  }
 0x921   :  { %9204 = vmatprep.subr.bf16.mxu0 %v23075_v51  ;;  %v23115_v51 = vld [vmem:[#allocation37 + $0xf00] ss:$36 sps:$4 sm:$0xff]  }
 0x922   :  { %11108 = vmatpush1.bf16.msra.mxu1 %v23070_v30 }
 0x923   :  { %11109 = vmatprep.subr.bf16.mxu1 %v23078_v48  ;;  %v23118_v48 = vld [vmem:[#allocation37 + $0x3c0] ss:$36 sps:$4 sm:$0xff]  }
 0x924   :  { %9205 = vmatpush2.bf16.msra.mxu0 %v23073_v29  ;;  %v23121_v29 = vld [vmem:[#allocation37 + $0xeb8] ss:$36 sps:$4 sm:$0xff]  }
 0x925   :  { %9206 = vmatprep.subr.bf16.mxu0 %v23081_v50  ;;  %v23129_v50 = vld [vmem:[#allocation37 + $0xe74] ss:$36 sps:$4 sm:$0xff]  }
 0x926   :  { %11110 = vmatpush1.bf16.msra.mxu1 %v23076_v55  ;;  %v23124_v55 = vld [vmem:[#allocation37 + $0x378] ss:$36 sps:$4 sm:$0xff]  }
 0x927   :  { %11111 = vmatprep.subr.bf16.mxu1 %v23084_v31  ;;  %v23132_v31 = vld [vmem:[#allocation37 + $0x334] ss:$36 sps:$4 sm:$0xff]  }
 0x928   :  { %9207 = vmatpush2.bf16.msra.mxu0 %v23079_v2  ;;  %v23127_v2 = vld [vmem:[#allocation37 + $0xe70] ss:$36 sps:$4 sm:$0xff]  }
 0x929   :  { %9208 = vmatprep.subr.bf16.mxu0 %v23087_v45  ;;  %v23135_v45 = vld [vmem:[#allocation37 + $0xe2c] ss:$36 sps:$4 sm:$0xff]  }
 0x92a   :  { %11112 = vmatpush1.bf16.msra.mxu1 %v23082_v6  ;;  %v23130_v6 = vld [vmem:[#allocation37 + $0x330] ss:$36 sps:$4 sm:$0xff]  }
 0x92b   :  { %11113 = vmatprep.subr.bf16.mxu1 %v23090_v10  ;;  %v23138_v10 = vld [vmem:[#allocation37 + $0x2ec] ss:$36 sps:$4 sm:$0xff]  }
 0x92c   :  { %9209 = vmatpush2.bf16.msra.mxu0 %v23085_v22  ;;  %v23133_v22 = vld [vmem:[#allocation37 + $0xe28] ss:$36 sps:$4 sm:$0xff]  }
 0x92d   :  { %9210 = vmatprep.subr.bf16.mxu0 %v23093_v11  ;;  %v23141_v11 = vld [vmem:[#allocation37 + $0xde4] ss:$36 sps:$4 sm:$0xff]  }
 0x92e   :  { %11114 = vmatpush1.bf16.msra.mxu1 %v23088_v15  ;;  %v23136_v15 = vld [vmem:[#allocation37 + $0x2e8] ss:$36 sps:$4 sm:$0xff]  }
 0x92f   :  { %11115 = vmatprep.subr.bf16.mxu1 %v23096_v17  ;;  %v23144_v17 = vld [vmem:[#allocation37 + $0x2a4] ss:$36 sps:$4 sm:$0xff]  }
 0x930   :  { %9211 = vmatpush2.bf16.msra.mxu0 %v23091_v18  ;;  %v23139_v18 = vld [vmem:[#allocation37 + $0xde0] ss:$36 sps:$4 sm:$0xff]  }
 0x931   :  { %9212 = vmatprep.subr.bf16.mxu0 %v23099_v19  ;;  %v23147_v19 = vld [vmem:[#allocation37 + $0xd9c] ss:$36 sps:$4 sm:$0xff]  }
 0x932   :  { %11116 = vmatpush1.bf16.msra.mxu1 %v23094_v44  ;;  %v23142_v44 = vld [vmem:[#allocation37 + $0x2a0] ss:$36 sps:$4 sm:$0xff]  }
 0x933   :  { %11117 = vmatprep.subr.bf16.mxu1 %v23102_v5  ;;  %v23150_v5 = vld [vmem:[#allocation37 + $0x25c] ss:$36 sps:$4 sm:$0xff]  }
 0x934   :  { %9213 = vmatpush2.bf16.msra.mxu0 %v23097_v3  ;;  %v23145_v3 = vld [vmem:[#allocation37 + $0xd98] ss:$36 sps:$4 sm:$0xff]  }
 0x935   :  { %9264 = vmatprep.subr.bf16.mxu0 %v23105_v7  ;;  %v23153_v7 = vld [vmem:[#allocation37 + $0x11d4] ss:$36 sps:$4 sm:$0xff]  }
 0x936   :  { %11118 = vmatpush1.bf16.msra.mxu1 %v23100_v41  ;;  %v23154_v41 = vld [vmem:[#allocation37 + $0x458] ss:$36 sps:$4 sm:$0xff]  }
 0x937   :  { %v7178_v35 = vpop.f32.mrf.mxu0  ;;  %9215 = vmatmul.mubr.bf16.vlgmr.msra.gmra.mxu0 %v25902_v8  ;;  %11119 = vmatprep.subr.bf16.mxu1 %v23108_v25  ;;  %v23151_v25 = vld [vmem:[#allocation37 + $0x11d0] ss:$36 sps:$4 sm:$0xff]  }
 0x938   :  { %v25980_v23 = vadd.f32 %v7178_v35, %v7138_v40  ;;  %9265 = vmatpush1.bf16.msra.mxu0 %v23103_v14  ;;  %9296 = vmatprep.mubr.bf16.mxu0 %v25892_v46  ;;  %v23155_v14 = vld [vmem:[#allocation37 + $0x218] ss:$36 sps:$4 sm:$0xff]   ;;  %v23156_v40 = vld [vmem:[#allocation37 + $0x1188] ss:$36 sps:$4 sm:$0xff]  }
 0x939   :  { %v7180_v36 = vpop.f32.mrf.mxu0  ;;  %9266 = vmatprep.subr.bf16.mxu0 %v23111_v60  ;;  %v23159_v60 = vld [vmem:[#allocation37 + $0x410] ss:$36 sps:$4 sm:$0xff]   ;;  %v23163_v35 = vld [vmem:[#allocation37 + $0x1144] ss:$36 sps:$4 sm:$0xff]  }
 0x93a   :  { %v25984_v58 = vadd.f32 %v7180_v36, %v7140_v34  ;;  %11120 = vmatpush2.bf16.msra.mxu1 %v23106_v53  ;;  %v23161_v36 = vld [vmem:[#allocation37 + $0x1140] ss:$36 sps:$4 sm:$0xff]  }
 0x93b   :  { %v7182_v33 = vpop.f32.mrf.mxu0  ;;  %11121 = vmatprep.subr.bf16.mxu1 %v23114_v47  ;;  %v23160_v47 = vld [vmem:[#allocation37 + $0x1d0] ss:$36 sps:$4 sm:$0xff]  }
 0x93c   :  { %9267 = vmatpush1.bf16.msra.mxu0 %v23109_v43  ;;  %v23164_v43 = vld [vmem:[#allocation37 + $0x3c8] ss:$36 sps:$4 sm:$0xff]  }
 0x93d   :  { %v7183_v30 = vpop.f32.mrf.mxu0  ;;  %9268 = vmatprep.subr.bf16.mxu0 %v23117_v39  ;;  %v23165_v33 = vld [vmem:[#allocation37 + $0x188] ss:$36 sps:$4 sm:$0xff]  }
 0x93e   :  { %11122 = vmatpush2.bf16.msra.mxu1 %v23112_v24  ;;  %v23168_v24 = vld [vmem:[#allocation37 + $0x10fc] ss:$36 sps:$4 sm:$0xff]  }
 0x93f   :  { %11123 = vmatprep.subr.bf16.mxu1 %v23120_v28  ;;  %v23166_v30 = vld [vmem:[#allocation37 + $0x10f8] ss:$36 sps:$4 sm:$0xff]  }
 0x940   :  { %9269 = vmatpush1.bf16.msra.mxu0 %v23115_v51  ;;  %v23169_v51 = vld [vmem:[#allocation37 + $0x380] ss:$36 sps:$4 sm:$0xff]  }
 0x941   :  { %9270 = vmatprep.subr.bf16.mxu0 %v23123_v16  ;;  %v23173_v16 = vld [vmem:[#allocation37 + $0x10b4] ss:$36 sps:$4 sm:$0xff]  }
 0x942   :  { %11124 = vmatpush2.bf16.msra.mxu1 %v23118_v48  ;;  %v23170_v48 = vld [vmem:[#allocation37 + $0x140] ss:$36 sps:$4 sm:$0xff]  }
 0x943   :  { %11125 = vmatprep.subr.bf16.mxu1 %v23126_v26  ;;  %v23174_v26 = vld [vmem:[#allocation37 + $0x338] ss:$36 sps:$4 sm:$0xff]  }
 0x944   :  { %9271 = vmatpush1.bf16.msra.mxu0 %v23121_v29  ;;  %v23171_v29 = vld [vmem:[#allocation37 + $0x10b0] ss:$36 sps:$4 sm:$0xff]  }
 0x945   :  { %9272 = vmatprep.subr.bf16.mxu0 %v23129_v50  ;;  %v23178_v50 = vld [vmem:[#allocation37 + $0x106c] ss:$36 sps:$4 sm:$0xff]  }
 0x946   :  { %11126 = vmatpush2.bf16.msra.mxu1 %v23124_v55  ;;  %v23175_v55 = vld [vmem:[#allocation37 + $0xf8] ss:$36 sps:$4 sm:$0xff]  }
 0x947   :  { %11127 = vmatprep.subr.bf16.mxu1 %v23132_v31  ;;  %v23179_v31 = vld [vmem:[#allocation37 + $0x2f0] ss:$36 sps:$4 sm:$0xff]  }
 0x948   :  { %9273 = vmatpush1.bf16.msra.mxu0 %v23127_v2  ;;  %v23176_v2 = vld [vmem:[#allocation37 + $0x1068] ss:$36 sps:$4 sm:$0xff]  }
 0x949   :  { %9274 = vmatprep.subr.bf16.mxu0 %v23135_v45  ;;  %v23183_v45 = vld [vmem:[#allocation37 + $0x1024] ss:$36 sps:$4 sm:$0xff]  }
 0x94a   :  { %11128 = vmatpush2.bf16.msra.mxu1 %v23130_v6  ;;  %v23180_v6 = vld [vmem:[#allocation37 + $0xb0] ss:$36 sps:$4 sm:$0xff]  }
 0x94b   :  { %11129 = vmatprep.subr.bf16.mxu1 %v23138_v10  ;;  %v23184_v10 = vld [vmem:[#allocation37 + $0x2a8] ss:$36 sps:$4 sm:$0xff]  }
 0x94c   :  { %9275 = vmatpush1.bf16.msra.mxu0 %v23133_v22  ;;  %v23181_v22 = vld [vmem:[#allocation37 + $0x1020] ss:$36 sps:$4 sm:$0xff]  }
 0x94d   :  { %9276 = vmatprep.subr.bf16.mxu0 %v23141_v11  ;;  %v23188_v11 = vld [vmem:[#allocation37 + $0xfdc] ss:$36 sps:$4 sm:$0xff]  }
 0x94e   :  { %11130 = vmatpush2.bf16.msra.mxu1 %v23136_v15  ;;  %v23185_v15 = vld [vmem:[#allocation37 + $0x68] ss:$36 sps:$4 sm:$0xff]  }
 0x94f   :  { %11131 = vmatprep.subr.bf16.mxu1 %v23144_v17  ;;  %v23189_v17 = vld [vmem:[#allocation37 + $0x260] ss:$36 sps:$4 sm:$0xff]  }
 0x950   :  { %9277 = vmatpush1.bf16.msra.mxu0 %v23139_v18  ;;  %v23186_v18 = vld [vmem:[#allocation37 + $0xfd8] ss:$36 sps:$4 sm:$0xff]  }
 0x951   :  { %9278 = vmatprep.subr.bf16.mxu0 %v23147_v19  ;;  %v23191_v19 = vld [vmem:[#allocation37 + $0x11d8] ss:$36 sps:$4 sm:$0xff]  }
 0x952   :  { %11132 = vmatpush2.bf16.msra.mxu1 %v23142_v44  ;;  %v23190_v44 = vld [vmem:[#allocation37 + $0x20] ss:$36 sps:$4 sm:$0xff]  }
 0x953   :  { %11133 = vmatprep.subr.bf16.mxu1 %v23150_v5  ;;  %v23195_v5 = vld [vmem:[#allocation31 + $0x8e4] ss:$16 sps:$4 sm:$0xff]  }
 0x954   :  { %9279 = vmatpush1.bf16.msra.mxu0 %v23145_v3  ;;  %v23192_v3 = vld [vmem:[#allocation37 + $0xf98] ss:$36 sps:$4 sm:$0xff]  }
 0x955   :  { %9280 = vmatprep.subr.bf16.mxu0 %v23153_v7  ;;  %v23196_v7 = vld [vmem:[#allocation37 + $0x1190] ss:$36 sps:$4 sm:$0xff]  }
 0x956   :  { %11134 = vmatpush2.bf16.msra.mxu1 %v23148_v21  ;;  %v23193_v21 = vld [vmem:[#allocation31 + $0x8e0] ss:$16 sps:$4 sm:$0xff]  }
 0x957   :  { %21162 = vmatprep.subr.bf16.mxu1 %v23154_v41 }
 0x958   :  { %9281 = vmatpush2.bf16.msra.mxu0 %v23151_v25  ;;  %v23200_v25 = vld [vmem:[#allocation31 + $0x8c4] ss:$16 sps:$4 sm:$0xff]  }
 0x959   :  { %v25986_v53 = vpop.f32.mrf.mxu1  ;;  %11136 = vmatmul.mubr.bf16.vlgmr.msra.gmra.mxu1 %v25801_v20  ;;  %9282 = vmatprep.subr.bf16.mxu0 %v23158_v12 }
 0x95a   :  { %21163 = vmatpush3.bf16.msra.mxu1 %v23155_v14  ;;  %11217 = vmatprep.mubr.bf16.mxu1 %v25798_v4  ;;  %v25996_v14 = vrot.slane %v25798_v4, 2 }
 0x95b   :  { %v25990_v34 = vpop.f32.mrf.mxu1  ;;  %21164 = vmatprep.subr.bf16.mxu1 %v23159_v60  ;;  %v23197_v60 = vld [vmem:[#allocation37 + $0xf50] ss:$36 sps:$4 sm:$0xff]  }
 0x95c   :  { %9283 = vmatpush2.bf16.msra.mxu0 %v23156_v40 }
 0x95d   :  { %v10895_v39 = vpop.f32.mrf.mxu1  ;;  %9284 = vmatprep.subr.bf16.mxu0 %v23163_v35  ;;  %v23201_v35 = vld [vmem:[#allocation37 + $0x1148] ss:$36 sps:$4 sm:$0xff]  }
 0x95e   :  { %21165 = vmatpush3.bf16.msra.mxu1 %v23160_v47  ;;  %v23202_v39 = vld [vmem:[#allocation37 + $0xf08] ss:$36 sps:$4 sm:$0xff]  }
 0x95f   :  { %v10896_v28 = vpop.f32.mrf.mxu1  ;;  %21166 = vmatprep.subr.bf16.mxu1 %v23164_v43  ;;  %v23198_v43 = vld [vmem:[#allocation31 + $0x8c0] ss:$16 sps:$4 sm:$0xff]  }
 0x960   :  { %9285 = vmatpush2.bf16.msra.mxu0 %v23161_v36  ;;  %v23206_v28 = vld [vmem:[#allocation37 + $0x1100] ss:$36 sps:$4 sm:$0xff]  }
 0x961   :  { %9286 = vmatprep.subr.bf16.mxu0 %v23168_v24 }
 0x962   :  { %21167 = vmatpush3.bf16.msra.mxu1 %v23165_v33 }
 0x963   :  { %21168 = vmatprep.subr.bf16.mxu1 %v23169_v51  ;;  %v23210_v51 = vld [vmem:[#allocation31 + $0x884] ss:$16 sps:$4 sm:$0xff]  }
 0x964   :  { %9287 = vmatpush2.bf16.msra.mxu0 %v23166_v30  ;;  %v23207_v30 = vld [vmem:[#allocation37 + $0xec0] ss:$36 sps:$4 sm:$0xff]  }
 0x965   :  { %9288 = vmatprep.subr.bf16.mxu0 %v23173_v16  ;;  %v23208_v16 = vld [vmem:[#allocation31 + $0x880] ss:$16 sps:$4 sm:$0xff]  }
 0x966   :  { %21169 = vmatpush3.bf16.msra.mxu1 %v23170_v48  ;;  %v23215_v48 = vld [vmem:[#allocation31 + $0x864] ss:$16 sps:$4 sm:$0xff]  }
 0x967   :  { %21170 = vmatprep.subr.bf16.mxu1 %v23174_v26  ;;  %v23212_v26 = vld [vmem:[#allocation37 + $0xe78] ss:$36 sps:$4 sm:$0xff]  }
 0x968   :  { %9289 = vmatpush2.bf16.msra.mxu0 %v23171_v29  ;;  %v23213_v29 = vld [vmem:[#allocation31 + $0x860] ss:$16 sps:$4 sm:$0xff]  }
 0x969   :  { %9290 = vmatprep.subr.bf16.mxu0 %v23178_v50  ;;  %v23220_v50 = vld [vmem:[#allocation31 + $0x844] ss:$16 sps:$4 sm:$0xff]  }
 0x96a   :  { %21171 = vmatpush3.bf16.msra.mxu1 %v23175_v55  ;;  %v23217_v55 = vld [vmem:[#allocation37 + $0xe30] ss:$36 sps:$4 sm:$0xff]  }
 0x96b   :  { %21172 = vmatprep.subr.bf16.mxu1 %v23179_v31  ;;  %v23221_v31 = vld [vmem:[#allocation37 + $0x1028] ss:$36 sps:$4 sm:$0xff]  }
 0x96c   :  { %9291 = vmatpush2.bf16.msra.mxu0 %v23176_v2  ;;  %v23218_v2 = vld [vmem:[#allocation31 + $0x840] ss:$16 sps:$4 sm:$0xff]  }
 0x96d   :  { %9292 = vmatprep.subr.bf16.mxu0 %v23183_v45  ;;  %v23225_v45 = vld [vmem:[#allocation31 + $0x824] ss:$16 sps:$4 sm:$0xff]  }
 0x96e   :  { %21173 = vmatpush3.bf16.msra.mxu1 %v23180_v6  ;;  %v23222_v6 = vld [vmem:[#allocation37 + $0xde8] ss:$36 sps:$4 sm:$0xff]  }
 0x96f   :  { %21174 = vmatprep.subr.bf16.mxu1 %v23184_v10  ;;  %v23226_v10 = vld [vmem:[#allocation37 + $0xfe0] ss:$36 sps:$4 sm:$0xff]  }
 0x970   :  { %9293 = vmatpush2.bf16.msra.mxu0 %v23181_v22  ;;  %v23223_v22 = vld [vmem:[#allocation31 + $0x820] ss:$16 sps:$4 sm:$0xff]  }
 0x971   :  { %9294 = vmatprep.subr.bf16.mxu0 %v23188_v11  ;;  %v23230_v11 = vld [vmem:[#allocation31 + $0x804] ss:$16 sps:$4 sm:$0xff]  }
 0x972   :  { %21175 = vmatpush3.bf16.msra.mxu1 %v23185_v15  ;;  %v23227_v15 = vld [vmem:[#allocation37 + $0xda0] ss:$36 sps:$4 sm:$0xff]  }
 0x973   :  { %21176 = vmatprep.subr.bf16.mxu1 %v23189_v17  ;;  %v23233_v17 = vld [vmem:[#allocation37 + $0x67c] ss:$36 sps:$4 sm:$0xff]  }
 0x974   :  { %9295 = vmatpush2.bf16.msra.mxu0 %v23186_v18  ;;  %v23228_v18 = vld [vmem:[#allocation31 + $0x800] ss:$16 sps:$4 sm:$0xff]  }
 0x975   :  { %21140 = vmatprep.subr.bf16.mxu0 %v23191_v19  ;;  %v23236_v19 = vld [vmem:[#allocation31 + $0x9e4] ss:$16 sps:$4 sm:$0xff]  }
 0x976   :  { %21177 = vmatpush3.bf16.msra.mxu1 %v23190_v44  ;;  %v23231_v44 = vld [vmem:[#allocation37 + $0x678] ss:$36 sps:$4 sm:$0xff]  }
 0x977   :  { %v9052_v41 = vpop.f32.mrf.mxu0  ;;  %9297 = vmatmul.mubr.bf16.vlgmr.msra.gmra.mxu0 %v25902_v8  ;;  %12041 = vmatprep.subr.bf16.mxu1 %v23195_v5  ;;  %v23239_v5 = vld [vmem:[#allocation37 + $0x634] ss:$36 sps:$4 sm:$0xff]  }
 0x978   :  { %v9053_v12 = vadd.f32 %v9052_v41, %v25922_v42  ;;  %21141 = vmatpush3.bf16.msra.mxu0 %v23192_v3  ;;  %9377 = vmatprep.mubr.bf16.mxu0 %v25892_v46  ;;  %v23205_v46 = vld [vmem:[#allocation31 + $0x8a4] ss:$16 sps:$4 sm:$0xff]   ;;  %v23234_v3 = vld [vmem:[#allocation31 + $0x9e0] ss:$16 sps:$4 sm:$0xff]  }
 0x979   :  { %11218 = vmatmul.mubr.bf16.vlgmr.msra.gmra.mxu1 %v25801_v20  ;;  %v9054_v40 = vpop.f32.mrf.mxu0  ;;  %21142 = vmatprep.subr.bf16.mxu0 %v23196_v7  ;;  %v23242_v7 = vld [vmem:[#allocation31 + $0x9c4] ss:$16 sps:$4 sm:$0xff]  }
 0x97a   :  { %v9055_v47 = vadd.f32 %v9054_v40, %v25926_v9  ;;  %12042 = vmatpush1.bf16.msra.mxu1 %v23193_v21  ;;  %12073 = vmatprep.mubr.bf16.mxu1 %v25996_v14  ;;  %v26002_v42 = vadd.f32 %v25986_v53, %v9053_v12  ;;  %v23203_v9 = vld [vmem:[#allocation31 + $0x8a0] ss:$16 sps:$4 sm:$0xff]   ;;  %v23237_v21 = vld [vmem:[#allocation37 + $0x630] ss:$36 sps:$4 sm:$0xff]  }
 0x97b   :  { %v9056_v36 = vpop.f32.mrf.mxu0  ;;  %12043 = vmatprep.subr.bf16.mxu1 %v23200_v25  ;;  %v23211_v53 = vld [vmem:[#allocation37 + $0x10b8] ss:$36 sps:$4 sm:$0xff]   ;;  %v23245_v25 = vld [vmem:[#allocation37 + $0x5ec] ss:$36 sps:$4 sm:$0xff]  }
 0x97c   :  { %21143 = vmatpush3.bf16.msra.mxu0 %v23197_v60  ;;  %v26005_v24 = vadd.f32 %v25990_v34, %v9055_v47  ;;  %v23216_v34 = vld [vmem:[#allocation37 + $0x1070] ss:$36 sps:$4 sm:$0xff]   ;;  %v23240_v12 = vld [vmem:[#allocation31 + $0x9c0] ss:$16 sps:$4 sm:$0xff]  }
 0x97d   :  { %v9057_v33 = vpop.f32.mrf.mxu0  ;;  %21144 = vmatprep.subr.bf16.mxu0 %v23201_v35  ;;  %v23248_v40 = vld [vmem:[#allocation31 + $0x9a4] ss:$16 sps:$4 sm:$0xff]  }
 0x97e   :  { %12044 = vmatpush1.bf16.msra.mxu1 %v23198_v43  ;;  %v23243_v35 = vld [vmem:[#allocation37 + $0x5e8] ss:$36 sps:$4 sm:$0xff]   ;;  %v23257_v33 = vld [vmem:[#allocation37 + $0x55c] ss:$36 sps:$4 sm:$0xff]  }
 0x97f   :  { %12045 = vmatprep.subr.bf16.mxu1 %v23205_v46  ;;  %v23246_v43 = vld [vmem:[#allocation31 + $0x9a0] ss:$16 sps:$4 sm:$0xff]   ;;  %v23254_v46 = vld [vmem:[#allocation31 + $0x984] ss:$16 sps:$4 sm:$0xff]  }
 0x980   :  { %21145 = vmatpush3.bf16.msra.mxu0 %v23202_v39  ;;  %v23249_v39 = vld [vmem:[#allocation37 + $0x5a0] ss:$36 sps:$4 sm:$0xff]  }
 0x981   :  { %21146 = vmatprep.subr.bf16.mxu0 %v23206_v28  ;;  %v23252_v28 = vld [vmem:[#allocation31 + $0x980] ss:$16 sps:$4 sm:$0xff]  }
 0x982   :  { %12046 = vmatpush1.bf16.msra.mxu1 %v23203_v9  ;;  %v23260_v9 = vld [vmem:[#allocation31 + $0x964] ss:$16 sps:$4 sm:$0xff]  }
 0x983   :  { %12047 = vmatprep.subr.bf16.mxu1 %v23210_v51  ;;  %v23255_v51 = vld [vmem:[#allocation37 + $0x558] ss:$36 sps:$4 sm:$0xff]  }
 0x984   :  { %21147 = vmatpush3.bf16.msra.mxu0 %v23207_v30  ;;  %v23263_v30 = vld [vmem:[#allocation37 + $0x514] ss:$36 sps:$4 sm:$0xff]  }
 0x985   :  { %21148 = vmatprep.subr.bf16.mxu0 %v23211_v53  ;;  %v23258_v53 = vld [vmem:[#allocation31 + $0x960] ss:$16 sps:$4 sm:$0xff]  }
 0x986   :  { %12048 = vmatpush1.bf16.msra.mxu1 %v23208_v16  ;;  %v23266_v16 = vld [vmem:[#allocation31 + $0x944] ss:$16 sps:$4 sm:$0xff]  }
 0x987   :  { %12049 = vmatprep.subr.bf16.mxu1 %v23215_v48  ;;  %v23261_v48 = vld [vmem:[#allocation37 + $0x510] ss:$36 sps:$4 sm:$0xff]  }
 0x988   :  { %21149 = vmatpush3.bf16.msra.mxu0 %v23212_v26  ;;  %v23269_v26 = vld [vmem:[#allocation37 + $0x4cc] ss:$36 sps:$4 sm:$0xff]  }
 0x989   :  { %21150 = vmatprep.subr.bf16.mxu0 %v23216_v34  ;;  %v23264_v34 = vld [vmem:[#allocation31 + $0x940] ss:$16 sps:$4 sm:$0xff]  }
 0x98a   :  { %12050 = vmatpush1.bf16.msra.mxu1 %v23213_v29  ;;  %v23272_v29 = vld [vmem:[#allocation31 + $0x924] ss:$16 sps:$4 sm:$0xff]  }
 0x98b   :  { %12051 = vmatprep.subr.bf16.mxu1 %v23220_v50  ;;  %v23267_v50 = vld [vmem:[#allocation37 + $0x4c8] ss:$36 sps:$4 sm:$0xff]  }
 0x98c   :  { %21151 = vmatpush3.bf16.msra.mxu0 %v23217_v55  ;;  %v23275_v55 = vld [vmem:[#allocation37 + $0x484] ss:$36 sps:$4 sm:$0xff]  }
 0x98d   :  { %21152 = vmatprep.subr.bf16.mxu0 %v23221_v31  ;;  %v23270_v31 = vld [vmem:[#allocation31 + $0x920] ss:$16 sps:$4 sm:$0xff]  }
 0x98e   :  { %12052 = vmatpush1.bf16.msra.mxu1 %v23218_v2  ;;  %v23278_v2 = vld [vmem:[#allocation31 + $0x904] ss:$16 sps:$4 sm:$0xff]  }
 0x98f   :  { %12053 = vmatprep.subr.bf16.mxu1 %v23225_v45  ;;  %v23273_v45 = vld [vmem:[#allocation37 + $0x480] ss:$36 sps:$4 sm:$0xff]  }
 0x990   :  { %21153 = vmatpush3.bf16.msra.mxu0 %v23222_v6  ;;  %v23281_v6 = vld [vmem:[#allocation37 + $0x8bc] ss:$36 sps:$4 sm:$0xff]  }
 0x991   :  { %21154 = vmatprep.subr.bf16.mxu0 %v23226_v10  ;;  %v23276_v10 = vld [vmem:[#allocation31 + $0x900] ss:$16 sps:$4 sm:$0xff]  }
 0x992   :  { %12054 = vmatpush1.bf16.msra.mxu1 %v23223_v22  ;;  %v23284_v22 = vld [vmem:[#allocation31 + $0x8ec] ss:$16 sps:$4 sm:$0xff]  }
 0x993   :  { %12055 = vmatprep.subr.bf16.mxu1 %v23230_v11  ;;  %v23279_v11 = vld [vmem:[#allocation37 + $0x8b8] ss:$36 sps:$4 sm:$0xff]  }
 0x994   :  { %21155 = vmatpush3.bf16.msra.mxu0 %v23227_v15  ;;  %v23287_v15 = vld [vmem:[#allocation37 + $0x874] ss:$36 sps:$4 sm:$0xff]  }
 0x995   :  { %10898 = vmatprep.subr.bf16.mxu0 %v23233_v17  ;;  %v23282_v17 = vld [vmem:[#allocation31 + $0x8e8] ss:$16 sps:$4 sm:$0xff]  }
 0x996   :  { %12056 = vmatpush1.bf16.msra.mxu1 %v23228_v18 }
 0x997   :  { %9378 = vmatmul.mubr.bf16.vlgmr.msra.gmra.mxu0 %v25902_v8  ;;  %12057 = vmatprep.subr.bf16.mxu1 %v23236_v19  ;;  %v23251_v8 = vld [vmem:[#allocation37 + $0x5a4] ss:$36 sps:$4 sm:$0xff]   ;;  %v26014_v19 = vrot.slane %v25801_v20, 2 }
 0x998   :  { %10899 = vmatpush1.bf16.msra.mxu0 %v23231_v44  ;;  %10930 = vmatprep.mubr.bf16.mxu0 %v25808_v57  ;;  %v23290_v44 = vld [vmem:[#allocation31 + $0x8cc] ss:$16 sps:$4 sm:$0xff]  }
 0x999   :  { %v26009_v41 = vpop.f32.mrf.mxu1  ;;  %10900 = vmatprep.subr.bf16.mxu0 %v23239_v5 }
 0x99a   :  { %12058 = vmatpush2.bf16.msra.mxu1 %v23234_v3  ;;  %v23285_v3 = vld [vmem:[#allocation37 + $0x870] ss:$36 sps:$4 sm:$0xff]  }
 0x99b   :  { %v26011_v60 = vpop.f32.mrf.mxu1  ;;  %12059 = vmatprep.subr.bf16.mxu1 %v23242_v7 }
 0x99c   :  { %10901 = vmatpush1.bf16.msra.mxu0 %v23237_v21  ;;  %v23293_v21 = vld [vmem:[#allocation37 + $0x82c] ss:$36 sps:$4 sm:$0xff]  }
 0x99d   :  { %v10977_v47 = vpop.f32.mrf.mxu1  ;;  %10902 = vmatprep.subr.bf16.mxu0 %v23245_v25 }
 0x99e   :  { %12060 = vmatpush2.bf16.msra.mxu1 %v23240_v12  ;;  %v23288_v12 = vld [vmem:[#allocation31 + $0x8c8] ss:$16 sps:$4 sm:$0xff]   ;;  %v23296_v47 = vld [vmem:[#allocation31 + $0x8ac] ss:$16 sps:$4 sm:$0xff]  }
 0x99f   :  { %v10978_v36 = vpop.f32.mrf.mxu1  ;;  %12061 = vmatprep.subr.bf16.mxu1 %v23248_v40 }
 0x9a0   :  { %10903 = vmatpush1.bf16.msra.mxu0 %v23243_v35  ;;  %v23299_v36 = vld [vmem:[#allocation37 + $0x7e4] ss:$36 sps:$4 sm:$0xff]  }
 0x9a1   :  { %10904 = vmatprep.subr.bf16.mxu0 %v23251_v8 }
 0x9a2   :  { %12062 = vmatpush2.bf16.msra.mxu1 %v23246_v43 }
 0x9a3   :  { %12063 = vmatprep.subr.bf16.mxu1 %v23254_v46  ;;  %v23302_v46 = vld [vmem:[#allocation31 + $0x88c] ss:$16 sps:$4 sm:$0xff]  }
 0x9a4   :  { %10905 = vmatpush1.bf16.msra.mxu0 %v23249_v39  ;;  %v23297_v39 = vld [vmem:[#allocation37 + $0x7e0] ss:$36 sps:$4 sm:$0xff]  }
 0x9a5   :  { %10906 = vmatprep.subr.bf16.mxu0 %v23257_v33  ;;  %v23300_v33 = vld [vmem:[#allocation31 + $0x888] ss:$16 sps:$4 sm:$0xff]  }
 0x9a6   :  { %12064 = vmatpush2.bf16.msra.mxu1 %v23252_v28  ;;  %v23308_v28 = vld [vmem:[#allocation31 + $0x86c] ss:$16 sps:$4 sm:$0xff]  }
 0x9a7   :  { %12065 = vmatprep.subr.bf16.mxu1 %v23260_v9  ;;  %v23303_v9 = vld [vmem:[#allocation37 + $0x798] ss:$36 sps:$4 sm:$0xff]  }
 0x9a8   :  { %10907 = vmatpush1.bf16.msra.mxu0 %v23255_v51  ;;  %v23306_v51 = vld [vmem:[#allocation31 + $0x868] ss:$16 sps:$4 sm:$0xff]  }
 0x9a9   :  { %10908 = vmatprep.subr.bf16.mxu0 %v23263_v30  ;;  %v23314_v30 = vld [vmem:[#allocation31 + $0x84c] ss:$16 sps:$4 sm:$0xff]  }
 0x9aa   :  { %12066 = vmatpush2.bf16.msra.mxu1 %v23258_v53  ;;  %v23309_v53 = vld [vmem:[#allocation37 + $0x750] ss:$36 sps:$4 sm:$0xff]  }
 0x9ab   :  { %12067 = vmatprep.subr.bf16.mxu1 %v23266_v16  ;;  %v23317_v16 = vld [vmem:[#allocation37 + $0x70c] ss:$36 sps:$4 sm:$0xff]  }
 0x9ac   :  { %10909 = vmatpush1.bf16.msra.mxu0 %v23261_v48  ;;  %v23312_v48 = vld [vmem:[#allocation31 + $0x848] ss:$16 sps:$4 sm:$0xff]  }
 0x9ad   :  { %10910 = vmatprep.subr.bf16.mxu0 %v23269_v26  ;;  %v23320_v26 = vld [vmem:[#allocation31 + $0x82c] ss:$16 sps:$4 sm:$0xff]  }
 0x9ae   :  { %12068 = vmatpush2.bf16.msra.mxu1 %v23264_v34  ;;  %v23315_v34 = vld [vmem:[#allocation37 + $0x708] ss:$36 sps:$4 sm:$0xff]  }
 0x9af   :  { %12069 = vmatprep.subr.bf16.mxu1 %v23272_v29  ;;  %v23323_v29 = vld [vmem:[#allocation37 + $0x6c4] ss:$36 sps:$4 sm:$0xff]  }
 0x9b0   :  { %10911 = vmatpush1.bf16.msra.mxu0 %v23267_v50  ;;  %v23318_v50 = vld [vmem:[#allocation31 + $0x828] ss:$16 sps:$4 sm:$0xff]  }
 0x9b1   :  { %10912 = vmatprep.subr.bf16.mxu0 %v23275_v55  ;;  %v23326_v55 = vld [vmem:[#allocation31 + $0x80c] ss:$16 sps:$4 sm:$0xff]  }
 0x9b2   :  { %12070 = vmatpush2.bf16.msra.mxu1 %v23270_v31  ;;  %v23321_v31 = vld [vmem:[#allocation37 + $0x6c0] ss:$36 sps:$4 sm:$0xff]  }
 0x9b3   :  { %12071 = vmatprep.subr.bf16.mxu1 %v23278_v2  ;;  %v23329_v2 = vld [vmem:[#allocation37 + $0x684] ss:$36 sps:$4 sm:$0xff]  }
 0x9b4   :  { %10913 = vmatpush1.bf16.msra.mxu0 %v23273_v45  ;;  %v23324_v45 = vld [vmem:[#allocation31 + $0x808] ss:$16 sps:$4 sm:$0xff]  }
 0x9b5   :  { %10914 = vmatprep.subr.bf16.mxu0 %v23281_v6  ;;  %v23332_v6 = vld [vmem:[#allocation31 + $0x9ec] ss:$16 sps:$4 sm:$0xff]  }
 0x9b6   :  { %12072 = vmatpush2.bf16.msra.mxu1 %v23276_v10  ;;  %v23327_v10 = vld [vmem:[#allocation37 + $0x680] ss:$36 sps:$4 sm:$0xff]  }
 0x9b7   :  { %v9134_v18 = vpop.f32.mrf.mxu0  ;;  %12123 = vmatprep.subr.bf16.mxu1 %v23284_v22  ;;  %v23335_v22 = vld [vmem:[#allocation37 + $0x63c] ss:$36 sps:$4 sm:$0xff]  }
 0x9b8   :  { %v9135_v5 = vadd.f32 %v9134_v18, %v25934_v0  ;;  %10915 = vmatpush2.bf16.msra.mxu0 %v23279_v11  ;;  %v23291_v0 = vld [vmem:[#allocation37 + $0x828] ss:$36 sps:$4 sm:$0xff]   ;;  %v23330_v11 = vld [vmem:[#allocation31 + $0x9e8] ss:$16 sps:$4 sm:$0xff]  }
 0x9b9   :  { %12074 = vmatmul.mubr.bf16.vlgmr.msra.gmra.mxu1 %v26014_v19  ;;  %v9136_v7 = vpop.f32.mrf.mxu0  ;;  %10916 = vmatprep.subr.bf16.mxu0 %v23287_v15  ;;  %v23338_v15 = vld [vmem:[#allocation31 + $0x9cc] ss:$16 sps:$4 sm:$0xff]  }
 0x9ba   :  { %v9137_v25 = vadd.f32 %v9136_v7, %v25938_v62  ;;  %12124 = vmatpush1.bf16.msra.mxu1 %v23282_v17  ;;  %12155 = vmatprep.mubr.bf16.mxu1 %v25996_v14  ;;  %v26021_v40 = vadd.f32 %v26009_v41, %v9135_v5  ;;  %v23294_v62 = vld [vmem:[#allocation31 + $0x8a8] ss:$16 sps:$4 sm:$0xff]   ;;  %v23333_v17 = vld [vmem:[#allocation37 + $0x638] ss:$36 sps:$4 sm:$0xff]  }
 0x9bb   :  { %v9138_v35 = vpop.f32.mrf.mxu0  ;;  %12125 = vmatprep.subr.bf16.mxu1 %v23290_v44  ;;  %v23305_v41 = vld [vmem:[#allocation37 + $0x79c] ss:$36 sps:$4 sm:$0xff]   ;;  %v23341_v44 = vld [vmem:[#allocation37 + $0x5f4] ss:$36 sps:$4 sm:$0xff]  }
 0x9bc   :  { %10917 = vmatpush2.bf16.msra.mxu0 %v23285_v3  ;;  %v26024_v8 = vadd.f32 %v26011_v60, %v9137_v25  ;;  %v23311_v60 = vld [vmem:[#allocation37 + $0x754] ss:$36 sps:$4 sm:$0xff]  }
 0x9bd   :  { %v9139_v43 = vpop.f32.mrf.mxu0  ;;  %10918 = vmatprep.subr.bf16.mxu0 %v23293_v21  ;;  %v23336_v5 = vld [vmem:[#allocation31 + $0x9c8] ss:$16 sps:$4 sm:$0xff]   ;;  %v23344_v7 = vld [vmem:[#allocation31 + $0x9ac] ss:$16 sps:$4 sm:$0xff]  }
 0x9be   :  { %12126 = vmatpush1.bf16.msra.mxu1 %v23288_v12  ;;  %v23339_v21 = vld [vmem:[#allocation37 + $0x5f0] ss:$36 sps:$4 sm:$0xff]   ;;  %v23345_v43 = vld [vmem:[#allocation37 + $0x5a8] ss:$36 sps:$4 sm:$0xff]  }
 0x9bf   :  { %12127 = vmatprep.subr.bf16.mxu1 %v23296_v47  ;;  %v23347_v12 = vld [vmem:[#allocation37 + $0x5ac] ss:$36 sps:$4 sm:$0xff]  }
 0x9c0   :  { %10919 = vmatpush2.bf16.msra.mxu0 %v23291_v0  ;;  %v23342_v35 = vld [vmem:[#allocation31 + $0x9a8] ss:$16 sps:$4 sm:$0xff]   ;;  %v23350_v0 = vld [vmem:[#allocation31 + $0x98c] ss:$16 sps:$4 sm:$0xff]  }
 0x9c1   :  { %10920 = vmatprep.subr.bf16.mxu0 %v23299_v36  ;;  %v23353_v36 = vld [vmem:[#allocation37 + $0x564] ss:$36 sps:$4 sm:$0xff]  }
 0x9c2   :  { %12128 = vmatpush1.bf16.msra.mxu1 %v23294_v62  ;;  %v23348_v62 = vld [vmem:[#allocation31 + $0x988] ss:$16 sps:$4 sm:$0xff]  }
 0x9c3   :  { %12129 = vmatprep.subr.bf16.mxu1 %v23302_v46  ;;  %v23356_v46 = vld [vmem:[#allocation31 + $0x96c] ss:$16 sps:$4 sm:$0xff]  }
 0x9c4   :  { %10921 = vmatpush2.bf16.msra.mxu0 %v23297_v39  ;;  %v23351_v39 = vld [vmem:[#allocation37 + $0x560] ss:$36 sps:$4 sm:$0xff]  }
 0x9c5   :  { %10922 = vmatprep.subr.bf16.mxu0 %v23305_v41  ;;  %v23359_v41 = vld [vmem:[#allocation37 + $0x51c] ss:$36 sps:$4 sm:$0xff]  }
 0x9c6   :  { %12130 = vmatpush1.bf16.msra.mxu1 %v23300_v33  ;;  %v23354_v33 = vld [vmem:[#allocation31 + $0x968] ss:$16 sps:$4 sm:$0xff]  }
 0x9c7   :  { %12131 = vmatprep.subr.bf16.mxu1 %v23308_v28  ;;  %v23362_v28 = vld [vmem:[#allocation31 + $0x94c] ss:$16 sps:$4 sm:$0xff]  }
 0x9c8   :  { %10923 = vmatpush2.bf16.msra.mxu0 %v23303_v9  ;;  %v23357_v9 = vld [vmem:[#allocation37 + $0x518] ss:$36 sps:$4 sm:$0xff]  }
 0x9c9   :  { %10924 = vmatprep.subr.bf16.mxu0 %v23311_v60  ;;  %v23365_v60 = vld [vmem:[#allocation37 + $0x4d4] ss:$36 sps:$4 sm:$0xff]  }
 0x9ca   :  { %12132 = vmatpush1.bf16.msra.mxu1 %v23306_v51  ;;  %v23360_v51 = vld [vmem:[#allocation31 + $0x948] ss:$16 sps:$4 sm:$0xff]  }
 0x9cb   :  { %12133 = vmatprep.subr.bf16.mxu1 %v23314_v30  ;;  %v23368_v30 = vld [vmem:[#allocation31 + $0x92c] ss:$16 sps:$4 sm:$0xff]  }
 0x9cc   :  { %10925 = vmatpush2.bf16.msra.mxu0 %v23309_v53  ;;  %v23363_v53 = vld [vmem:[#allocation37 + $0x4d0] ss:$36 sps:$4 sm:$0xff]  }
 0x9cd   :  { %10926 = vmatprep.subr.bf16.mxu0 %v23317_v16  ;;  %v23371_v16 = vld [vmem:[#allocation37 + $0x48c] ss:$36 sps:$4 sm:$0xff]  }
 0x9ce   :  { %12134 = vmatpush1.bf16.msra.mxu1 %v23312_v48  ;;  %v23366_v48 = vld [vmem:[#allocation31 + $0x928] ss:$16 sps:$4 sm:$0xff]  }
 0x9cf   :  { %12135 = vmatprep.subr.bf16.mxu1 %v23320_v26  ;;  %v23374_v26 = vld [vmem:[#allocation31 + $0x90c] ss:$16 sps:$4 sm:$0xff]  }
 0x9d0   :  { %10927 = vmatpush2.bf16.msra.mxu0 %v23315_v34  ;;  %v23369_v34 = vld [vmem:[#allocation37 + $0x488] ss:$36 sps:$4 sm:$0xff]  }
 0x9d1   :  { %10928 = vmatprep.subr.bf16.mxu0 %v23323_v29  ;;  %v23377_v29 = vld [vmem:[#allocation37 + $0x8c4] ss:$36 sps:$4 sm:$0xff]  }
 0x9d2   :  { %12136 = vmatpush1.bf16.msra.mxu1 %v23318_v50  ;;  %v23372_v50 = vld [vmem:[#allocation31 + $0x908] ss:$16 sps:$4 sm:$0xff]  }
 0x9d3   :  { %12137 = vmatprep.subr.bf16.mxu1 %v23326_v55  ;;  %v23380_v55 = vld [vmem:[#allocation37 + $0x13fc] ss:$36 sps:$4 sm:$0xff]  }
 0x9d4   :  { %10929 = vmatpush2.bf16.msra.mxu0 %v23321_v31  ;;  %v23375_v31 = vld [vmem:[#allocation37 + $0x8c0] ss:$36 sps:$4 sm:$0xff]  }
 0x9d5   :  { %10980 = vmatprep.subr.bf16.mxu0 %v23329_v2  ;;  %v23383_v2 = vld [vmem:[#allocation37 + $0x87c] ss:$36 sps:$4 sm:$0xff]  }
 0x9d6   :  { %12138 = vmatpush1.bf16.msra.mxu1 %v23324_v45  ;;  %v23378_v45 = vld [vmem:[#allocation37 + $0x13f8] ss:$36 sps:$4 sm:$0xff]  }
 0x9d7   :  { %10931 = vmatmul.mubr.bf16.vlgmr.msra.gmra.mxu0 %v25810_v1  ;;  %12139 = vmatprep.subr.bf16.mxu1 %v23332_v6 }
 0x9d8   :  { %10981 = vmatpush1.bf16.msra.mxu0 %v23327_v10  ;;  %11012 = vmatprep.mubr.bf16.mxu0 %v25808_v57  ;;  %v23386_v10 = vld [vmem:[#allocation37 + $0x13b4] ss:$36 sps:$4 sm:$0xff]  }
 0x9d9   :  { %v26028_v18 = vpop.f32.mrf.mxu1  ;;  %10982 = vmatprep.subr.bf16.mxu0 %v23335_v22 }
 0x9da   :  { %12140 = vmatpush2.bf16.msra.mxu1 %v23330_v11  ;;  %v23381_v11 = vld [vmem:[#allocation37 + $0x878] ss:$36 sps:$4 sm:$0xff]  }
 0x9db   :  { %v26030_v3 = vpop.f32.mrf.mxu1  ;;  %12141 = vmatprep.subr.bf16.mxu1 %v23338_v15 }
 0x9dc   :  { %10983 = vmatpush1.bf16.msra.mxu0 %v23333_v17  ;;  %v23389_v17 = vld [vmem:[#allocation37 + $0x834] ss:$36 sps:$4 sm:$0xff]  }
 0x9dd   :  { %v11059_v25 = vpop.f32.mrf.mxu1  ;;  %10984 = vmatprep.subr.bf16.mxu0 %v23341_v44 }
 0x9de   :  { %12142 = vmatpush2.bf16.msra.mxu1 %v23336_v5  ;;  %v23384_v5 = vld [vmem:[#allocation37 + $0x13b0] ss:$36 sps:$4 sm:$0xff]  }
 0x9df   :  { %v11060_v47 = vpop.f32.mrf.mxu1  ;;  %12143 = vmatprep.subr.bf16.mxu1 %v23344_v7  ;;  %v23392_v25 = vld [vmem:[#allocation37 + $0x136c] ss:$36 sps:$4 sm:$0xff]  }
 0x9e0   :  { %10985 = vmatpush1.bf16.msra.mxu0 %v23339_v21  ;;  %v23395_v47 = vld [vmem:[#allocation37 + $0x7ec] ss:$36 sps:$4 sm:$0xff]  }
 0x9e1   :  { %10986 = vmatprep.subr.bf16.mxu0 %v23347_v12 }
 0x9e2   :  { %12144 = vmatpush2.bf16.msra.mxu1 %v23342_v35 }
 0x9e3   :  { %12145 = vmatprep.subr.bf16.mxu1 %v23350_v0  ;;  %v23398_v0 = vld [vmem:[#allocation37 + $0x1324] ss:$36 sps:$4 sm:$0xff]  }
 0x9e4   :  { %10987 = vmatpush1.bf16.msra.mxu0 %v23345_v43  ;;  %v23393_v43 = vld [vmem:[#allocation37 + $0x7e8] ss:$36 sps:$4 sm:$0xff]  }
 0x9e5   :  { %10988 = vmatprep.subr.bf16.mxu0 %v23353_v36  ;;  %v23396_v36 = vld [vmem:[#allocation37 + $0x1320] ss:$36 sps:$4 sm:$0xff]  }
 0x9e6   :  { %12146 = vmatpush2.bf16.msra.mxu1 %v23348_v62  ;;  %v23404_v62 = vld [vmem:[#allocation37 + $0x12dc] ss:$36 sps:$4 sm:$0xff]  }
 0x9e7   :  { %12147 = vmatprep.subr.bf16.mxu1 %v23356_v46  ;;  %v23399_v46 = vld [vmem:[#allocation37 + $0x7a0] ss:$36 sps:$4 sm:$0xff]  }
 0x9e8   :  { %10989 = vmatpush1.bf16.msra.mxu0 %v23351_v39  ;;  %v23402_v39 = vld [vmem:[#allocation37 + $0x12d8] ss:$36 sps:$4 sm:$0xff]  }
 0x9e9   :  { %10990 = vmatprep.subr.bf16.mxu0 %v23359_v41  ;;  %v23410_v41 = vld [vmem:[#allocation37 + $0x1294] ss:$36 sps:$4 sm:$0xff]  }
 0x9ea   :  { %12148 = vmatpush2.bf16.msra.mxu1 %v23354_v33  ;;  %v23405_v33 = vld [vmem:[#allocation37 + $0x758] ss:$36 sps:$4 sm:$0xff]  }
 0x9eb   :  { %12149 = vmatprep.subr.bf16.mxu1 %v23362_v28  ;;  %v23413_v28 = vld [vmem:[#allocation37 + $0x714] ss:$36 sps:$4 sm:$0xff]  }
 0x9ec   :  { %10991 = vmatpush1.bf16.msra.mxu0 %v23357_v9  ;;  %v23408_v9 = vld [vmem:[#allocation37 + $0x1290] ss:$36 sps:$4 sm:$0xff]  }
 0x9ed   :  { %10992 = vmatprep.subr.bf16.mxu0 %v23365_v60  ;;  %v23416_v60 = vld [vmem:[#allocation37 + $0x124c] ss:$36 sps:$4 sm:$0xff]  }
 0x9ee   :  { %12150 = vmatpush2.bf16.msra.mxu1 %v23360_v51  ;;  %v23411_v51 = vld [vmem:[#allocation37 + $0x710] ss:$36 sps:$4 sm:$0xff]  }
 0x9ef   :  { %12151 = vmatprep.subr.bf16.mxu1 %v23368_v30  ;;  %v23419_v30 = vld [vmem:[#allocation37 + $0x6cc] ss:$36 sps:$4 sm:$0xff]  }
 0x9f0   :  { %10993 = vmatpush1.bf16.msra.mxu0 %v23363_v53  ;;  %v23414_v53 = vld [vmem:[#allocation37 + $0x1248] ss:$36 sps:$4 sm:$0xff]  }
 0x9f1   :  { %10994 = vmatprep.subr.bf16.mxu0 %v23371_v16  ;;  %v23422_v16 = vld [vmem:[#allocation37 + $0x1204] ss:$36 sps:$4 sm:$0xff]  }
 0x9f2   :  { %12152 = vmatpush2.bf16.msra.mxu1 %v23366_v48  ;;  %v23417_v48 = vld [vmem:[#allocation37 + $0x6c8] ss:$36 sps:$4 sm:$0xff]  }
 0x9f3   :  { %12153 = vmatprep.subr.bf16.mxu1 %v23374_v26  ;;  %v23425_v26 = vld [vmem:[#allocation37 + $0x68c] ss:$36 sps:$4 sm:$0xff]  }
 0x9f4   :  { %10995 = vmatpush1.bf16.msra.mxu0 %v23369_v34  ;;  %v23420_v34 = vld [vmem:[#allocation37 + $0x1200] ss:$36 sps:$4 sm:$0xff]  }
 0x9f5   :  { %10996 = vmatprep.subr.bf16.mxu0 %v23377_v29  ;;  %v23428_v29 = vld [vmem:[#allocation37 + $0x163c] ss:$36 sps:$4 sm:$0xff]  }
 0x9f6   :  { %12154 = vmatpush2.bf16.msra.mxu1 %v23372_v50  ;;  %v23423_v50 = vld [vmem:[#allocation37 + $0x688] ss:$36 sps:$4 sm:$0xff]  }
 0x9f7   :  { %v9216_v6 = vpop.f32.mrf.mxu0  ;;  %14001 = vmatprep.subr.bf16.mxu1 %v23380_v55  ;;  %v23431_v55 = vld [vmem:[#allocation37 + $0x644] ss:$36 sps:$4 sm:$0xff]  }
 0x9f8   :  { %v9217_v22 = vadd.f32 %v9216_v6, %v25946_v27  ;;  %10997 = vmatpush2.bf16.msra.mxu0 %v23375_v31  ;;  %v23387_v27 = vld [vmem:[#allocation37 + $0x830] ss:$36 sps:$4 sm:$0xff]   ;;  %v23426_v31 = vld [vmem:[#allocation37 + $0x1638] ss:$36 sps:$4 sm:$0xff]  }
 0x9f9   :  { %12156 = vmatmul.mubr.bf16.vlgmr.msra.gmra.mxu1 %v26014_v19  ;;  %v9218_v15 = vpop.f32.mrf.mxu0  ;;  %10998 = vmatprep.subr.bf16.mxu0 %v23383_v2  ;;  %v23434_v2 = vld [vmem:[#allocation37 + $0x15f4] ss:$36 sps:$4 sm:$0xff]  }
 0x9fa   :  { %v9219_v44 = vadd.f32 %v9218_v15, %v25950_v13  ;;  %14002 = vmatpush1.bf16.msra.mxu1 %v23378_v45  ;;  %14033 = vmatprep.mubr.bf16.mxu1 %v25996_v14  ;;  %v26037_v7 = vadd.f32 %v26028_v18, %v9217_v22  ;;  %v23390_v13 = vld [vmem:[#allocation37 + $0x1368] ss:$36 sps:$4 sm:$0xff]   ;;  %v23429_v45 = vld [vmem:[#allocation37 + $0x640] ss:$36 sps:$4 sm:$0xff]   ;;  %v23432_v22 = vld [vmem:[#allocation37 + $0x15f0] ss:$36 sps:$4 sm:$0xff]  }
 0x9fb   :  { %v9220_v21 = vpop.f32.mrf.mxu0  ;;  %14003 = vmatprep.subr.bf16.mxu1 %v23386_v10  ;;  %v23401_v18 = vld [vmem:[#allocation37 + $0x7a4] ss:$36 sps:$4 sm:$0xff]   ;;  %v23437_v10 = vld [vmem:[#allocation37 + $0x5fc] ss:$36 sps:$4 sm:$0xff]   ;;  %v23440_v15 = vld [vmem:[#allocation37 + $0x15ac] ss:$36 sps:$4 sm:$0xff]  }
 0x9fc   :  { %10999 = vmatpush2.bf16.msra.mxu0 %v23381_v11  ;;  %v26040_v12 = vadd.f32 %v26030_v3, %v9219_v44  ;;  %v23407_v3 = vld [vmem:[#allocation37 + $0x75c] ss:$36 sps:$4 sm:$0xff]   ;;  %v23438_v21 = vld [vmem:[#allocation37 + $0x15a8] ss:$36 sps:$4 sm:$0xff]  }
 0x9fd   :  { %v9221_v35 = vpop.f32.mrf.mxu0  ;;  %11000 = vmatprep.subr.bf16.mxu0 %v23389_v17  ;;  %v23435_v17 = vld [vmem:[#allocation37 + $0x5f8] ss:$36 sps:$4 sm:$0xff]  }
 0x9fe   :  { %14004 = vmatpush1.bf16.msra.mxu1 %v23384_v5  ;;  %v23443_v5 = vld [vmem:[#allocation37 + $0x5b4] ss:$36 sps:$4 sm:$0xff]  }
 0x9ff   :  { %14005 = vmatprep.subr.bf16.mxu1 %v23392_v25  ;;  %v23441_v35 = vld [vmem:[#allocation37 + $0x5b0] ss:$36 sps:$4 sm:$0xff]  }
 0xa00   :  { %11001 = vmatpush2.bf16.msra.mxu0 %v23387_v27  ;;  %v23446_v27 = vld [vmem:[#allocation37 + $0x1564] ss:$36 sps:$4 sm:$0xff]  }
 0xa01   :  { %11002 = vmatprep.subr.bf16.mxu0 %v23395_v47  ;;  %v23449_v47 = vld [vmem:[#allocation37 + $0x56c] ss:$36 sps:$4 sm:$0xff]  }
 0xa02   :  { %14006 = vmatpush1.bf16.msra.mxu1 %v23390_v13  ;;  %v23444_v13 = vld [vmem:[#allocation37 + $0x1560] ss:$36 sps:$4 sm:$0xff]  }
 0xa03   :  { %14007 = vmatprep.subr.bf16.mxu1 %v23398_v0  ;;  %v23452_v0 = vld [vmem:[#allocation37 + $0x151c] ss:$36 sps:$4 sm:$0xff]  }
 0xa04   :  { %11003 = vmatpush2.bf16.msra.mxu0 %v23393_v43  ;;  %v23447_v43 = vld [vmem:[#allocation37 + $0x568] ss:$36 sps:$4 sm:$0xff]  }
 0xa05   :  { %11004 = vmatprep.subr.bf16.mxu0 %v23401_v18  ;;  %v23455_v18 = vld [vmem:[#allocation37 + $0x524] ss:$36 sps:$4 sm:$0xff]  }
 0xa06   :  { %14008 = vmatpush1.bf16.msra.mxu1 %v23396_v36  ;;  %v23450_v36 = vld [vmem:[#allocation37 + $0x1518] ss:$36 sps:$4 sm:$0xff]  }
 0xa07   :  { %14009 = vmatprep.subr.bf16.mxu1 %v23404_v62  ;;  %v23458_v62 = vld [vmem:[#allocation37 + $0x14d4] ss:$36 sps:$4 sm:$0xff]  }
 0xa08   :  { %11005 = vmatpush2.bf16.msra.mxu0 %v23399_v46  ;;  %v23453_v46 = vld [vmem:[#allocation37 + $0x520] ss:$36 sps:$4 sm:$0xff]  }
 0xa09   :  { %11006 = vmatprep.subr.bf16.mxu0 %v23407_v3  ;;  %v23461_v3 = vld [vmem:[#allocation37 + $0x4dc] ss:$36 sps:$4 sm:$0xff]  }
 0xa0a   :  { %14010 = vmatpush1.bf16.msra.mxu1 %v23402_v39  ;;  %v23456_v39 = vld [vmem:[#allocation37 + $0x14d0] ss:$36 sps:$4 sm:$0xff]  }
 0xa0b   :  { %14011 = vmatprep.subr.bf16.mxu1 %v23410_v41  ;;  %v23464_v41 = vld [vmem:[#allocation37 + $0x148c] ss:$36 sps:$4 sm:$0xff]  }
 0xa0c   :  { %11007 = vmatpush2.bf16.msra.mxu0 %v23405_v33  ;;  %v23459_v33 = vld [vmem:[#allocation37 + $0x4d8] ss:$36 sps:$4 sm:$0xff]  }
 0xa0d   :  { %11008 = vmatprep.subr.bf16.mxu0 %v23413_v28  ;;  %v23467_v28 = vld [vmem:[#allocation37 + $0x494] ss:$36 sps:$4 sm:$0xff]  }
 0xa0e   :  { %14012 = vmatpush1.bf16.msra.mxu1 %v23408_v9  ;;  %v23462_v9 = vld [vmem:[#allocation37 + $0x1488] ss:$36 sps:$4 sm:$0xff]  }
 0xa0f   :  { %14013 = vmatprep.subr.bf16.mxu1 %v23416_v60  ;;  %v23470_v60 = vld [vmem:[#allocation37 + $0x1444] ss:$36 sps:$4 sm:$0xff]  }
 0xa10   :  { %11009 = vmatpush2.bf16.msra.mxu0 %v23411_v51  ;;  %v23465_v51 = vld [vmem:[#allocation37 + $0x490] ss:$36 sps:$4 sm:$0xff]  }
 0xa11   :  { %11010 = vmatprep.subr.bf16.mxu0 %v23419_v30  ;;  %v23473_v30 = vld [vmem:[#allocation37 + $0x8cc] ss:$36 sps:$4 sm:$0xff]  }
 0xa12   :  { %14014 = vmatpush1.bf16.msra.mxu1 %v23414_v53  ;;  %v23468_v53 = vld [vmem:[#allocation37 + $0x1440] ss:$36 sps:$4 sm:$0xff]  }
 0xa13   :  { %14015 = vmatprep.subr.bf16.mxu1 %v23422_v16  ;;  %v23476_v16 = vld [vmem:[#allocation37 + $0x1404] ss:$36 sps:$4 sm:$0xff]  }
 0xa14   :  { %11011 = vmatpush2.bf16.msra.mxu0 %v23417_v48  ;;  %v23471_v48 = vld [vmem:[#allocation37 + $0x8c8] ss:$36 sps:$4 sm:$0xff]  }
 0xa15   :  { %11062 = vmatprep.subr.bf16.mxu0 %v23425_v26  ;;  %v23479_v26 = vld [vmem:[#allocation37 + $0x884] ss:$36 sps:$4 sm:$0xff]  }
 0xa16   :  { %14016 = vmatpush1.bf16.msra.mxu1 %v23420_v34  ;;  %v23474_v34 = vld [vmem:[#allocation37 + $0x1400] ss:$36 sps:$4 sm:$0xff]  }
 0xa17   :  { %11013 = vmatmul.mubr.bf16.vlgmr.msra.gmra.mxu0 %v25810_v1  ;;  %14017 = vmatprep.subr.bf16.mxu1 %v23428_v29 }
 0xa18   :  { %11063 = vmatpush1.bf16.msra.mxu0 %v23423_v50  ;;  %11094 = vmatprep.mubr.bf16.mxu0 %v25808_v57  ;;  %v23482_v50 = vld [vmem:[#allocation37 + $0x13bc] ss:$36 sps:$4 sm:$0xff]  }
 0xa19   :  { %v26044_v6 = vpop.f32.mrf.mxu1  ;;  %11064 = vmatprep.subr.bf16.mxu0 %v23431_v55 }
 0xa1a   :  { %14018 = vmatpush2.bf16.msra.mxu1 %v23426_v31  ;;  %v23477_v31 = vld [vmem:[#allocation37 + $0x880] ss:$36 sps:$4 sm:$0xff]  }
 0xa1b   :  { %v26046_v11 = vpop.f32.mrf.mxu1  ;;  %14019 = vmatprep.subr.bf16.mxu1 %v23434_v2 }
 0xa1c   :  { %11065 = vmatpush1.bf16.msra.mxu0 %v23429_v45 }
 0xa1d   :  { %v11141_v44 = vpop.f32.mrf.mxu1  ;;  %11066 = vmatprep.subr.bf16.mxu0 %v23437_v10  ;;  %v23485_v10 = vld [vmem:[#allocation37 + $0x83c] ss:$36 sps:$4 sm:$0xff]  }
 0xa1e   :  { %14020 = vmatpush2.bf16.msra.mxu1 %v23432_v22 }
 0xa1f   :  { %v11142_v25 = vpop.f32.mrf.mxu1  ;;  %14021 = vmatprep.subr.bf16.mxu1 %v23440_v15  ;;  %v23480_v15 = vld [vmem:[#allocation37 + $0x13b8] ss:$36 sps:$4 sm:$0xff]  }
 0xa20   :  { %11067 = vmatpush1.bf16.msra.mxu0 %v23435_v17  ;;  %v23483_v25 = vld [vmem:[#allocation37 + $0x838] ss:$36 sps:$4 sm:$0xff]  }
 0xa21   :  { %11068 = vmatprep.subr.bf16.mxu0 %v23443_v5 }
 0xa22   :  { %14022 = vmatpush2.bf16.msra.mxu1 %v23438_v21 }
 0xa23   :  { %14023 = vmatprep.subr.bf16.mxu1 %v23446_v27 }
 0xa24   :  { %11069 = vmatpush1.bf16.msra.mxu0 %v23441_v35 }
 0xa25   :  { %11070 = vmatprep.subr.bf16.mxu0 %v23449_v47  ;;  %v23491_v47 = vld [vmem:[#allocation37 + $0x7f4] ss:$36 sps:$4 sm:$0xff]  }
 0xa26   :  { %14024 = vmatpush2.bf16.msra.mxu1 %v23444_v13  ;;  %v23486_v13 = vld [vmem:[#allocation37 + $0x1370] ss:$36 sps:$4 sm:$0xff]  }
 0xa27   :  { %14025 = vmatprep.subr.bf16.mxu1 %v23452_v0 }
 0xa28   :  { %11071 = vmatpush1.bf16.msra.mxu0 %v23447_v43  ;;  %v23489_v43 = vld [vmem:[#allocation37 + $0x7f0] ss:$36 sps:$4 sm:$0xff]  }
 0xa29   :  { %11072 = vmatprep.subr.bf16.mxu0 %v23455_v18  ;;  %v23497_v18 = vld [vmem:[#allocation37 + $0x7ac] ss:$36 sps:$4 sm:$0xff]  }
 0xa2a   :  { %14026 = vmatpush2.bf16.msra.mxu1 %v23450_v36  ;;  %v23492_v36 = vld [vmem:[#allocation37 + $0x1328] ss:$36 sps:$4 sm:$0xff]  }
 0xa2b   :  { %14027 = vmatprep.subr.bf16.mxu1 %v23458_v62  ;;  %v23500_v62 = vld [vmem:[#allocation37 + $0x12e4] ss:$36 sps:$4 sm:$0xff]  }
 0xa2c   :  { %11073 = vmatpush1.bf16.msra.mxu0 %v23453_v46  ;;  %v23503_v46 = vld [vmem:[#allocation37 + $0x764] ss:$36 sps:$4 sm:$0xff]  }
 0xa2d   :  { %11074 = vmatprep.subr.bf16.mxu0 %v23461_v3  ;;  %v23498_v3 = vld [vmem:[#allocation37 + $0x12e0] ss:$36 sps:$4 sm:$0xff]  }
 0xa2e   :  { %14028 = vmatpush2.bf16.msra.mxu1 %v23456_v39  ;;  %v23506_v39 = vld [vmem:[#allocation37 + $0x129c] ss:$36 sps:$4 sm:$0xff]  }
 0xa2f   :  { %14029 = vmatprep.subr.bf16.mxu1 %v23464_v41  ;;  %v23501_v41 = vld [vmem:[#allocation37 + $0x760] ss:$36 sps:$4 sm:$0xff]  }
 0xa30   :  { %11075 = vmatpush1.bf16.msra.mxu0 %v23459_v33  ;;  %v23509_v33 = vld [vmem:[#allocation37 + $0x71c] ss:$36 sps:$4 sm:$0xff]  }
 0xa31   :  { %11076 = vmatprep.subr.bf16.mxu0 %v23467_v28  ;;  %v23504_v28 = vld [vmem:[#allocation37 + $0x1298] ss:$36 sps:$4 sm:$0xff]  }
 0xa32   :  { %14030 = vmatpush2.bf16.msra.mxu1 %v23462_v9  ;;  %v23512_v9 = vld [vmem:[#allocation37 + $0x1254] ss:$36 sps:$4 sm:$0xff]  }
 0xa33   :  { %14031 = vmatprep.subr.bf16.mxu1 %v23470_v60  ;;  %v23507_v60 = vld [vmem:[#allocation37 + $0x718] ss:$36 sps:$4 sm:$0xff]  }
 0xa34   :  { %11077 = vmatpush1.bf16.msra.mxu0 %v23465_v51  ;;  %v23515_v51 = vld [vmem:[#allocation37 + $0x6d4] ss:$36 sps:$4 sm:$0xff]  }
 0xa35   :  { %11078 = vmatprep.subr.bf16.mxu0 %v23473_v30  ;;  %v23510_v30 = vld [vmem:[#allocation37 + $0x1250] ss:$36 sps:$4 sm:$0xff]  }
 0xa36   :  { %14032 = vmatpush2.bf16.msra.mxu1 %v23468_v53  ;;  %v23518_v53 = vld [vmem:[#allocation37 + $0x120c] ss:$36 sps:$4 sm:$0xff]  }
 0xa37   :  { %v9298_v29 = vpop.f32.mrf.mxu0  ;;  %14083 = vmatprep.subr.bf16.mxu1 %v23476_v16  ;;  %v23513_v16 = vld [vmem:[#allocation37 + $0x6d0] ss:$36 sps:$4 sm:$0xff]  }
 0xa38   :  { %v9299_v55 = vadd.f32 %v9298_v29, %v25964_v52  ;;  %11079 = vmatpush2.bf16.msra.mxu0 %v23471_v48  ;;  %v23488_v52 = vld [vmem:[#allocation37 + $0x1374] ss:$36 sps:$4 sm:$0xff]  }
 0xa39   :  { %v21178_v2 = vpop.f32.mrf.mxu1  ;;  %14034 = vmatmul.mubr.bf16.vlgmr.msra.gmra.mxu1 %v26014_v19  ;;  %v9300_v45 = vpop.f32.mrf.mxu0  ;;  %11080 = vmatprep.subr.bf16.mxu0 %v23479_v26  ;;  %v23521_v48 = vld [vmem:[#allocation37 + $0x694] ss:$36 sps:$4 sm:$0xff]   ;;  %v23516_v26 = vld [vmem:[#allocation37 + $0x1208] ss:$36 sps:$4 sm:$0xff]  }
 0xa3a   :  { %v9301_v22 = vadd.f32 %v9300_v45, %v25968_v38  ;;  %14084 = vmatpush1.bf16.msra.mxu1 %v23474_v34  ;;  %14115 = vmatprep.mubr.bf16.mxu1 %v25996_v14  ;;  %v26053_v17 = vadd.f32 %v26044_v6, %v9299_v55  ;;  %v23494_v6 = vld [vmem:[#allocation37 + $0x132c] ss:$36 sps:$4 sm:$0xff]   ;;  %v23524_v34 = vld [vmem:[#allocation37 + $0x1644] ss:$36 sps:$4 sm:$0xff]  }
 0xa3b   :  { %v21179_v44 = vpop.f32.mrf.mxu1  ;;  %v9302_v5 = vpop.f32.mrf.mxu0  ;;  %14085 = vmatprep.subr.bf16.mxu1 %v23482_v50  ;;  %v23519_v29 = vld [vmem:[#allocation37 + $0x690] ss:$36 sps:$4 sm:$0xff]   ;;  %v23522_v55 = vld [vmem:[#allocation37 + $0x1640] ss:$36 sps:$4 sm:$0xff]   ;;  %v23525_v45 = vld [vmem:[#allocation37 + $0x648] ss:$36 sps:$4 sm:$0xff]  }
 0xa3c   :  { %v26055_v21 = vadd.f32 %v21179_v44, %v21178_v2  ;;  %11081 = vmatpush2.bf16.msra.mxu0 %v23477_v31  ;;  %v26058_v27 = vadd.f32 %v26046_v11, %v9301_v22  ;;  %v23495_v11 = vld [vmem:[#allocation37 + $0x7a8] ss:$36 sps:$4 sm:$0xff]   ;;  %v23530_v2 = vld [vmem:[#allocation37 + $0x15fc] ss:$36 sps:$4 sm:$0xff]  }
 0xa3d   :  { %v21181_v35 = vpop.f32.mrf.mxu1  ;;  %v9303_v38 = vpop.f32.mrf.mxu0  ;;  %11082 = vmatprep.subr.bf16.mxu0 %v23485_v10  ;;  %v23527_v50 = vld [vmem:[#allocation37 + $0x64c] ss:$36 sps:$4 sm:$0xff]   ;;  %v23533_v22 = vld [vmem:[#allocation37 + $0x604] ss:$36 sps:$4 sm:$0xff]   ;;  %v23528_v44 = vld [vmem:[#allocation37 + $0x15f8] ss:$36 sps:$4 sm:$0xff]  }
 0xa3e   :  { %14086 = vmatpush1.bf16.msra.mxu1 %v23480_v15  ;;  %v23531_v35 = vld [vmem:[#allocation37 + $0x600] ss:$36 sps:$4 sm:$0xff]  }
 0xa3f   :  { %v21182_v0 = vpop.f32.mrf.mxu1  ;;  %14087 = vmatprep.subr.bf16.mxu1 %v23488_v52  ;;  %v23536_v52 = vld [vmem:[#allocation37 + $0x15b4] ss:$36 sps:$4 sm:$0xff]  }
 0xa40   :  { %11083 = vmatpush2.bf16.msra.mxu0 %v23483_v25 }
 0xa41   :  { %11084 = vmatprep.subr.bf16.mxu0 %v23491_v47  ;;  %v23539_v47 = vld [vmem:[#allocation37 + $0x5bc] ss:$36 sps:$4 sm:$0xff]  }
 0xa42   :  { %14088 = vmatpush1.bf16.msra.mxu1 %v23486_v13  ;;  %v23534_v13 = vld [vmem:[#allocation37 + $0x15b0] ss:$36 sps:$4 sm:$0xff]  }
 0xa43   :  { %14089 = vmatprep.subr.bf16.mxu1 %v23494_v6  ;;  %v23542_v6 = vld [vmem:[#allocation37 + $0x156c] ss:$36 sps:$4 sm:$0xff]  }
 0xa44   :  { %11085 = vmatpush2.bf16.msra.mxu0 %v23489_v43  ;;  %v23537_v43 = vld [vmem:[#allocation37 + $0x5b8] ss:$36 sps:$4 sm:$0xff]  }
 0xa45   :  { %11086 = vmatprep.subr.bf16.mxu0 %v23497_v18  ;;  %v23545_v18 = vld [vmem:[#allocation37 + $0x574] ss:$36 sps:$4 sm:$0xff]  }
 0xa46   :  { %14090 = vmatpush1.bf16.msra.mxu1 %v23492_v36  ;;  %v23540_v36 = vld [vmem:[#allocation37 + $0x1568] ss:$36 sps:$4 sm:$0xff]  }
 0xa47   :  { %14091 = vmatprep.subr.bf16.mxu1 %v23500_v62  ;;  %v23543_v62 = vld [vmem:[#allocation37 + $0x570] ss:$36 sps:$4 sm:$0xff]  }
 0xa48   :  { %11087 = vmatpush2.bf16.msra.mxu0 %v23495_v11  ;;  %v23551_v11 = vld [vmem:[#allocation37 + $0x52c] ss:$36 sps:$4 sm:$0xff]  }
 0xa49   :  { %11088 = vmatprep.subr.bf16.mxu0 %v23503_v46  ;;  %v23546_v46 = vld [vmem:[#allocation37 + $0x1520] ss:$36 sps:$4 sm:$0xff]  }
 0xa4a   :  { %14092 = vmatpush1.bf16.msra.mxu1 %v23498_v3  ;;  %v23554_v3 = vld [vmem:[#allocation37 + $0x14dc] ss:$36 sps:$4 sm:$0xff]  }
 0xa4b   :  { %14093 = vmatprep.subr.bf16.mxu1 %v23506_v39  ;;  %v23557_v39 = vld [vmem:[#allocation37 + $0x4e4] ss:$36 sps:$4 sm:$0xff]  }
 0xa4c   :  { %11089 = vmatpush2.bf16.msra.mxu0 %v23501_v41  ;;  %v23552_v41 = vld [vmem:[#allocation37 + $0x14d8] ss:$36 sps:$4 sm:$0xff]  }
 0xa4d   :  { %11090 = vmatprep.subr.bf16.mxu0 %v23509_v33  ;;  %v23560_v33 = vld [vmem:[#allocation37 + $0x1494] ss:$36 sps:$4 sm:$0xff]  }
 0xa4e   :  { %14094 = vmatpush1.bf16.msra.mxu1 %v23504_v28  ;;  %v23555_v28 = vld [vmem:[#allocation37 + $0x4e0] ss:$36 sps:$4 sm:$0xff]  }
 0xa4f   :  { %14095 = vmatprep.subr.bf16.mxu1 %v23512_v9  ;;  %v23563_v9 = vld [vmem:[#allocation37 + $0x49c] ss:$36 sps:$4 sm:$0xff]  }
 0xa50   :  { %11091 = vmatpush2.bf16.msra.mxu0 %v23507_v60  ;;  %v23558_v60 = vld [vmem:[#allocation37 + $0x1490] ss:$36 sps:$4 sm:$0xff]  }
 0xa51   :  { %11092 = vmatprep.subr.bf16.mxu0 %v23515_v51  ;;  %v23566_v51 = vld [vmem:[#allocation37 + $0x144c] ss:$36 sps:$4 sm:$0xff]  }
 0xa52   :  { %14096 = vmatpush1.bf16.msra.mxu1 %v23510_v30  ;;  %v23561_v30 = vld [vmem:[#allocation37 + $0x498] ss:$36 sps:$4 sm:$0xff]  }
 0xa53   :  { %14097 = vmatprep.subr.bf16.mxu1 %v23518_v53  ;;  %v23569_v53 = vld [vmem:[#allocation37 + $0x8d4] ss:$36 sps:$4 sm:$0xff]  }
 0xa54   :  { %11093 = vmatpush2.bf16.msra.mxu0 %v23513_v16  ;;  %v23564_v16 = vld [vmem:[#allocation37 + $0x1448] ss:$36 sps:$4 sm:$0xff]  }
 0xa55   :  { %11144 = vmatprep.subr.bf16.mxu0 %v23521_v48  ;;  %v23572_v48 = vld [vmem:[#allocation37 + $0x140c] ss:$36 sps:$4 sm:$0xff]  }
 0xa56   :  { %14098 = vmatpush1.bf16.msra.mxu1 %v23516_v26  ;;  %v23567_v26 = vld [vmem:[#allocation37 + $0x8d0] ss:$36 sps:$4 sm:$0xff]  }
 0xa57   :  { %v21156_v31 = vpop.f32.mrf.mxu0  ;;  %11095 = vmatmul.mubr.bf16.vlgmr.msra.gmra.mxu0 %v25810_v1  ;;  %14099 = vmatprep.subr.bf16.mxu1 %v23524_v34  ;;  %v23575_v34 = vld [vmem:[#allocation37 + $0x88c] ss:$36 sps:$4 sm:$0xff]  }
 0xa58   :  { %11145 = vmatpush1.bf16.msra.mxu0 %v23519_v29  ;;  %11176 = vmatprep.mubr.bf16.mxu0 %v25808_v57  ;;  %v23570_v29 = vld [vmem:[#allocation37 + $0x1408] ss:$36 sps:$4 sm:$0xff]  }
 0xa59   :  { %v21157_v10 = vpop.f32.mrf.mxu0  ;;  %11146 = vmatprep.subr.bf16.mxu0 %v23527_v50  ;;  %v23578_v50 = vld [vmem:[#allocation37 + $0x13c4] ss:$36 sps:$4 sm:$0xff]  }
 0xa5a   :  { %v21158_v15 = vadd.f32 %v21157_v10, %v21156_v31  ;;  %14100 = vmatpush2.bf16.msra.mxu1 %v23522_v55  ;;  %v23573_v55 = vld [vmem:[#allocation37 + $0x888] ss:$36 sps:$4 sm:$0xff]  }
 0xa5b   :  { %v21159_v5 = vpop.f32.mrf.mxu0  ;;  %14101 = vmatprep.subr.bf16.mxu1 %v23530_v2  ;;  %v23581_v2 = vld [vmem:[#allocation37 + $0x844] ss:$36 sps:$4 sm:$0xff]  }
 0xa5c   :  { %v9380_v25 = vadd.f32 %v21158_v15, %v25972_v32  ;;  %11147 = vmatpush1.bf16.msra.mxu0 %v23525_v45  ;;  %v23548_v32 = vld [vmem:[#allocation37 + $0x1524] ss:$36 sps:$4 sm:$0xff]   ;;  %v23587_v5 = vld [vmem:[#allocation37 + $0x7fc] ss:$36 sps:$4 sm:$0xff]  }
 0xa5d   :  { %v21160_v38 = vpop.f32.mrf.mxu0  ;;  %11148 = vmatprep.subr.bf16.mxu0 %v23533_v22  ;;  %v23576_v45 = vld [vmem:[#allocation37 + $0x13c0] ss:$36 sps:$4 sm:$0xff]  }
 0xa5e   :  { %14102 = vmatpush2.bf16.msra.mxu1 %v23528_v44  ;;  %v26064_v0 = vadd.f32 %v26055_v21, %v9380_v25  ;;  %v23549_v21 = vld [vmem:[#allocation37 + $0x528] ss:$36 sps:$4 sm:$0xff]   ;;  %v23584_v22 = vld [vmem:[#allocation37 + $0x137c] ss:$36 sps:$4 sm:$0xff]  }
 0xa5f   :  { %14103 = vmatprep.subr.bf16.mxu1 %v23536_v52  ;;  %v23579_v15 = vld [vmem:[#allocation37 + $0x840] ss:$36 sps:$4 sm:$0xff]   ;;  %v23582_v52 = vld [vmem:[#allocation37 + $0x1378] ss:$36 sps:$4 sm:$0xff]  }
 0xa60   :  { %11149 = vmatpush1.bf16.msra.mxu0 %v23531_v35  ;;  %v23590_v35 = vld [vmem:[#allocation37 + $0x1334] ss:$36 sps:$4 sm:$0xff]  }
 0xa61   :  { %11150 = vmatprep.subr.bf16.mxu0 %v23539_v47  ;;  %v23585_v38 = vld [vmem:[#allocation37 + $0x7f8] ss:$36 sps:$4 sm:$0xff]  }
 0xa62   :  { %14104 = vmatpush2.bf16.msra.mxu1 %v23534_v13  ;;  %v23593_v47 = vld [vmem:[#allocation37 + $0x7b4] ss:$36 sps:$4 sm:$0xff]  }
 0xa63   :  { %14105 = vmatprep.subr.bf16.mxu1 %v23542_v6  ;;  %v23588_v13 = vld [vmem:[#allocation37 + $0x1330] ss:$36 sps:$4 sm:$0xff]  }
 0xa64   :  { %11151 = vmatpush1.bf16.msra.mxu0 %v23537_v43  ;;  %v23596_v6 = vld [vmem:[#allocation37 + $0x12ec] ss:$36 sps:$4 sm:$0xff]  }
 0xa65   :  { %11152 = vmatprep.subr.bf16.mxu0 %v23545_v18  ;;  %v23591_v43 = vld [vmem:[#allocation37 + $0x7b0] ss:$36 sps:$4 sm:$0xff]  }
 0xa66   :  { %14106 = vmatpush2.bf16.msra.mxu1 %v23540_v36  ;;  %v23599_v18 = vld [vmem:[#allocation37 + $0x76c] ss:$36 sps:$4 sm:$0xff]  }
 0xa67   :  { %14107 = vmatprep.subr.bf16.mxu1 %v23548_v32  ;;  %v23594_v36 = vld [vmem:[#allocation37 + $0x12e8] ss:$36 sps:$4 sm:$0xff]  }
 0xa68   :  { %11153 = vmatpush1.bf16.msra.mxu0 %v23543_v62  ;;  %v23602_v32 = vld [vmem:[#allocation37 + $0x12a4] ss:$36 sps:$4 sm:$0xff]  }
 0xa69   :  { %11154 = vmatprep.subr.bf16.mxu0 %v23551_v11  ;;  %v23597_v62 = vld [vmem:[#allocation37 + $0x768] ss:$36 sps:$4 sm:$0xff]  }
 0xa6a   :  { %14108 = vmatpush2.bf16.msra.mxu1 %v23546_v46  ;;  %v23605_v11 = vld [vmem:[#allocation37 + $0x724] ss:$36 sps:$4 sm:$0xff]  }
 0xa6b   :  { %14109 = vmatprep.subr.bf16.mxu1 %v23554_v3  ;;  %v23600_v46 = vld [vmem:[#allocation37 + $0x12a0] ss:$36 sps:$4 sm:$0xff]  }
 0xa6c   :  { %11155 = vmatpush1.bf16.msra.mxu0 %v23549_v21  ;;  %v23608_v3 = vld [vmem:[#allocation37 + $0x125c] ss:$36 sps:$4 sm:$0xff]  }
 0xa6d   :  { %11156 = vmatprep.subr.bf16.mxu0 %v23557_v39  ;;  %v23603_v21 = vld [vmem:[#allocation37 + $0x720] ss:$36 sps:$4 sm:$0xff]  }
 0xa6e   :  { %14110 = vmatpush2.bf16.msra.mxu1 %v23552_v41  ;;  %v23611_v39 = vld [vmem:[#allocation37 + $0x6dc] ss:$36 sps:$4 sm:$0xff]  }
 0xa6f   :  { %14111 = vmatprep.subr.bf16.mxu1 %v23560_v33  ;;  %v23606_v41 = vld [vmem:[#allocation37 + $0x1258] ss:$36 sps:$4 sm:$0xff]  }
 0xa70   :  { %11157 = vmatpush1.bf16.msra.mxu0 %v23555_v28  ;;  %v23614_v33 = vld [vmem:[#allocation37 + $0x1214] ss:$36 sps:$4 sm:$0xff]  }
 0xa71   :  { %11158 = vmatprep.subr.bf16.mxu0 %v23563_v9  ;;  %v23609_v28 = vld [vmem:[#allocation37 + $0x6d8] ss:$36 sps:$4 sm:$0xff]  }
 0xa72   :  { %14112 = vmatpush2.bf16.msra.mxu1 %v23558_v60  ;;  %v23615_v9 = vld [vmem:[#allocation37 + $0x8d8] ss:$36 sps:$4 sm:$0xff]   ;;  %v23612_v60 = vld [vmem:[#allocation37 + $0x1210] ss:$36 sps:$4 sm:$0xff]  }
 0xa73   :  { %14113 = vmatprep.subr.bf16.mxu1 %v23566_v51  ;;  %v23619_v51 = vld [vmem:[#allocation37 + $0x164c] ss:$36 sps:$4 sm:$0xff]  }
 0xa74   :  { %11159 = vmatpush1.bf16.msra.mxu0 %v23561_v30  ;;  %v23616_v30 = vld [vmem:[#allocation37 + $0x698] ss:$36 sps:$4 sm:$0xff]  }
 0xa75   :  { %11160 = vmatprep.subr.bf16.mxu0 %v23569_v53  ;;  %v23620_v53 = vld [vmem:[#allocation37 + $0x890] ss:$36 sps:$4 sm:$0xff]  }
 0xa76   :  { %14114 = vmatpush2.bf16.msra.mxu1 %v23564_v16  ;;  %v23617_v16 = vld [vmem:[#allocation37 + $0x1648] ss:$36 sps:$4 sm:$0xff]  }
 0xa77   :  { %14165 = vmatprep.subr.bf16.mxu1 %v23572_v48 }
 0xa78   :  { %11161 = vmatpush2.bf16.msra.mxu0 %v23567_v26  ;;  %v23624_v26 = vld [vmem:[#allocation37 + $0x1604] ss:$36 sps:$4 sm:$0xff]  }
 0xa79   :  { %v26066_v31 = vpop.f32.mrf.mxu1  ;;  %14116 = vmatmul.mubr.bf16.vlgmr.msra.gmra.mxu1 %v26014_v19  ;;  %11162 = vmatprep.subr.bf16.mxu0 %v23575_v34 }
 0xa7a   :  { %14166 = vmatpush1.bf16.msra.mxu1 %v23570_v29  ;;  %14197 = vmatprep.mubr.bf16.mxu1 %v25996_v14  ;;  %v23621_v29 = vld [vmem:[#allocation37 + $0x650] ss:$36 sps:$4 sm:$0xff]  }
 0xa7b   :  { %v26070_v10 = vpop.f32.mrf.mxu1  ;;  %14167 = vmatprep.subr.bf16.mxu1 %v23578_v50 }
 0xa7c   :  { %11163 = vmatpush2.bf16.msra.mxu0 %v23573_v55  ;;  %v23625_v55 = vld [vmem:[#allocation37 + $0x848] ss:$36 sps:$4 sm:$0xff]  }
 0xa7d   :  { %v12079_v44 = vpop.f32.mrf.mxu1  ;;  %11164 = vmatprep.subr.bf16.mxu0 %v23581_v2 }
 0xa7e   :  { %14168 = vmatpush1.bf16.msra.mxu1 %v23576_v45  ;;  %v23622_v45 = vld [vmem:[#allocation37 + $0x1600] ss:$36 sps:$4 sm:$0xff]   ;;  %v23626_v44 = vld [vmem:[#allocation37 + $0x608] ss:$36 sps:$4 sm:$0xff]  }
 0xa7f   :  { %v12080_v25 = vpop.f32.mrf.mxu1  ;;  %14169 = vmatprep.subr.bf16.mxu1 %v23584_v22 }
 0xa80   :  { %11165 = vmatpush2.bf16.msra.mxu0 %v23579_v15  ;;  %v23629_v15 = vld [vmem:[#allocation37 + $0x15bc] ss:$36 sps:$4 sm:$0xff]   ;;  %v23634_v25 = vld [vmem:[#allocation37 + $0x1574] ss:$36 sps:$4 sm:$0xff]  }
 0xa81   :  { %11166 = vmatprep.subr.bf16.mxu0 %v23587_v5 }
 0xa82   :  { %14170 = vmatpush1.bf16.msra.mxu1 %v23582_v52  ;;  %v23627_v52 = vld [vmem:[#allocation37 + $0x15b8] ss:$36 sps:$4 sm:$0xff]  }
 0xa83   :  { %14171 = vmatprep.subr.bf16.mxu1 %v23590_v35  ;;  %v23631_v35 = vld [vmem:[#allocation37 + $0x5c0] ss:$36 sps:$4 sm:$0xff]  }
 0xa84   :  { %11167 = vmatpush2.bf16.msra.mxu0 %v23585_v38  ;;  %v23635_v38 = vld [vmem:[#allocation37 + $0x7b8] ss:$36 sps:$4 sm:$0xff]  }
 0xa85   :  { %11168 = vmatprep.subr.bf16.mxu0 %v23593_v47  ;;  %v23639_v47 = vld [vmem:[#allocation37 + $0x152c] ss:$36 sps:$4 sm:$0xff]  }
 0xa86   :  { %14172 = vmatpush1.bf16.msra.mxu1 %v23588_v13  ;;  %v23636_v13 = vld [vmem:[#allocation37 + $0x578] ss:$36 sps:$4 sm:$0xff]  }
 0xa87   :  { %14173 = vmatprep.subr.bf16.mxu1 %v23596_v6  ;;  %v23640_v6 = vld [vmem:[#allocation37 + $0x770] ss:$36 sps:$4 sm:$0xff]  }
 0xa88   :  { %11169 = vmatpush2.bf16.msra.mxu0 %v23591_v43  ;;  %v23637_v43 = vld [vmem:[#allocation37 + $0x1528] ss:$36 sps:$4 sm:$0xff]  }
 0xa89   :  { %11170 = vmatprep.subr.bf16.mxu0 %v23599_v18  ;;  %v23644_v18 = vld [vmem:[#allocation37 + $0x14e4] ss:$36 sps:$4 sm:$0xff]  }
 0xa8a   :  { %14174 = vmatpush1.bf16.msra.mxu1 %v23594_v36  ;;  %v23641_v36 = vld [vmem:[#allocation37 + $0x530] ss:$36 sps:$4 sm:$0xff]  }
 0xa8b   :  { %14175 = vmatprep.subr.bf16.mxu1 %v23602_v32  ;;  %v23645_v32 = vld [vmem:[#allocation37 + $0x728] ss:$36 sps:$4 sm:$0xff]  }
 0xa8c   :  { %11171 = vmatpush2.bf16.msra.mxu0 %v23597_v62  ;;  %v23642_v62 = vld [vmem:[#allocation37 + $0x14e0] ss:$36 sps:$4 sm:$0xff]  }
 0xa8d   :  { %11172 = vmatprep.subr.bf16.mxu0 %v23605_v11  ;;  %v23649_v11 = vld [vmem:[#allocation37 + $0x149c] ss:$36 sps:$4 sm:$0xff]  }
 0xa8e   :  { %14176 = vmatpush1.bf16.msra.mxu1 %v23600_v46  ;;  %v23646_v46 = vld [vmem:[#allocation37 + $0x4e8] ss:$36 sps:$4 sm:$0xff]  }
 0xa8f   :  { %14177 = vmatprep.subr.bf16.mxu1 %v23608_v3  ;;  %v23650_v3 = vld [vmem:[#allocation37 + $0x6e0] ss:$36 sps:$4 sm:$0xff]  }
 0xa90   :  { %11173 = vmatpush2.bf16.msra.mxu0 %v23603_v21  ;;  %v23647_v21 = vld [vmem:[#allocation37 + $0x1498] ss:$36 sps:$4 sm:$0xff]  }
 0xa91   :  { %11174 = vmatprep.subr.bf16.mxu0 %v23611_v39  ;;  %v23654_v39 = vld [vmem:[#allocation37 + $0x1454] ss:$36 sps:$4 sm:$0xff]  }
 0xa92   :  { %14178 = vmatpush1.bf16.msra.mxu1 %v23606_v41  ;;  %v23651_v41 = vld [vmem:[#allocation37 + $0x4a0] ss:$36 sps:$4 sm:$0xff]  }
 0xa93   :  { %14179 = vmatprep.subr.bf16.mxu1 %v23614_v33  ;;  %v23657_v33 = vld [vmem:[#allocation31 + $0xae4] ss:$16 sps:$4 sm:$0xff]  }
 0xa94   :  { %11175 = vmatpush2.bf16.msra.mxu0 %v23609_v28  ;;  %v23652_v28 = vld [vmem:[#allocation37 + $0x1450] ss:$36 sps:$4 sm:$0xff]  }
 0xa95   :  { %21184 = vmatprep.subr.bf16.mxu0 %v23615_v9  ;;  %v23660_v9 = vld [vmem:[#allocation37 + $0x1414] ss:$36 sps:$4 sm:$0xff]  }
 0xa96   :  { %14180 = vmatpush1.bf16.msra.mxu1 %v23612_v60  ;;  %v23655_v60 = vld [vmem:[#allocation31 + $0xae0] ss:$16 sps:$4 sm:$0xff]  }
 0xa97   :  { %v10932_v48 = vpop.f32.mrf.mxu0  ;;  %11177 = vmatmul.mubr.bf16.vlgmr.msra.gmra.mxu0 %v25810_v1  ;;  %14181 = vmatprep.subr.bf16.mxu1 %v23619_v51  ;;  %v23663_v51 = vld [vmem:[#allocation31 + $0xac4] ss:$16 sps:$4 sm:$0xff]  }
 0xa98   :  { %v26074_v34 = vadd.f32 %v10932_v48, %v26002_v42  ;;  %21185 = vmatpush3.bf16.msra.mxu0 %v23616_v30  ;;  %11257 = vmatprep.mubr.bf16.mxu0 %v25808_v57  ;;  %v23630_v42 = vld [vmem:[#allocation37 + $0x800] ss:$36 sps:$4 sm:$0xff]   ;;  %v26081_v30 = vrot.slane %v25808_v57, 2  ;;  %v23661_v48 = vld [vmem:[#allocation31 + $0xac0] ss:$16 sps:$4 sm:$0xff]  }
 0xa99   :  { %v10934_v50 = vpop.f32.mrf.mxu0  ;;  %21186 = vmatprep.subr.bf16.mxu0 %v23620_v53  ;;  %v23658_v53 = vld [vmem:[#allocation37 + $0x1410] ss:$36 sps:$4 sm:$0xff]  }
 0xa9a   :  { %v26078_v2 = vadd.f32 %v10934_v50, %v26005_v24  ;;  %14182 = vmatpush2.bf16.msra.mxu1 %v23617_v16  ;;  %v23632_v24 = vld [vmem:[#allocation37 + $0x1570] ss:$36 sps:$4 sm:$0xff]   ;;  %v23664_v50 = vld [vmem:[#allocation37 + $0x13c8] ss:$36 sps:$4 sm:$0xff]  }
 0xa9b   :  { %v10936_v22 = vpop.f32.mrf.mxu0  ;;  %14183 = vmatprep.subr.bf16.mxu1 %v23624_v26  ;;  %v23666_v16 = vld [vmem:[#allocation37 + $0x13cc] ss:$36 sps:$4 sm:$0xff]  }
 0xa9c   :  { %21187 = vmatpush3.bf16.msra.mxu0 %v23621_v29  ;;  %v23669_v29 = vld [vmem:[#allocation31 + $0xaa4] ss:$16 sps:$4 sm:$0xff]   ;;  %v23667_v22 = vld [vmem:[#allocation31 + $0xaa0] ss:$16 sps:$4 sm:$0xff]  }
 0xa9d   :  { %v10937_v5 = vpop.f32.mrf.mxu0  ;;  %21188 = vmatprep.subr.bf16.mxu0 %v23625_v55 }
 0xa9e   :  { %14184 = vmatpush2.bf16.msra.mxu1 %v23622_v45  ;;  %v23672_v45 = vld [vmem:[#allocation37 + $0x1384] ss:$36 sps:$4 sm:$0xff]  }
 0xa9f   :  { %14185 = vmatprep.subr.bf16.mxu1 %v23629_v15  ;;  %v23670_v5 = vld [vmem:[#allocation37 + $0x1380] ss:$36 sps:$4 sm:$0xff]  }
 0xaa0   :  { %21189 = vmatpush3.bf16.msra.mxu0 %v23626_v44  ;;  %v23675_v44 = vld [vmem:[#allocation31 + $0xa84] ss:$16 sps:$4 sm:$0xff]  }
 0xaa1   :  { %21190 = vmatprep.subr.bf16.mxu0 %v23630_v42 }
 0xaa2   :  { %14186 = vmatpush2.bf16.msra.mxu1 %v23627_v52  ;;  %v23678_v52 = vld [vmem:[#allocation37 + $0x133c] ss:$36 sps:$4 sm:$0xff]  }
 0xaa3   :  { %14187 = vmatprep.subr.bf16.mxu1 %v23634_v25  ;;  %v23673_v25 = vld [vmem:[#allocation31 + $0xa80] ss:$16 sps:$4 sm:$0xff]  }
 0xaa4   :  { %21191 = vmatpush3.bf16.msra.mxu0 %v23631_v35  ;;  %v23681_v35 = vld [vmem:[#allocation31 + $0xa64] ss:$16 sps:$4 sm:$0xff]  }
 0xaa5   :  { %21192 = vmatprep.subr.bf16.mxu0 %v23635_v38  ;;  %v23676_v38 = vld [vmem:[#allocation37 + $0x1338] ss:$36 sps:$4 sm:$0xff]  }
 0xaa6   :  { %14188 = vmatpush2.bf16.msra.mxu1 %v23632_v24  ;;  %v23684_v24 = vld [vmem:[#allocation37 + $0x12f4] ss:$36 sps:$4 sm:$0xff]  }
 0xaa7   :  { %14189 = vmatprep.subr.bf16.mxu1 %v23639_v47  ;;  %v23679_v47 = vld [vmem:[#allocation31 + $0xa60] ss:$16 sps:$4 sm:$0xff]  }
 0xaa8   :  { %21193 = vmatpush3.bf16.msra.mxu0 %v23636_v13  ;;  %v23687_v13 = vld [vmem:[#allocation31 + $0xa44] ss:$16 sps:$4 sm:$0xff]  }
 0xaa9   :  { %21194 = vmatprep.subr.bf16.mxu0 %v23640_v6  ;;  %v23682_v6 = vld [vmem:[#allocation37 + $0x12f0] ss:$36 sps:$4 sm:$0xff]  }
 0xaaa   :  { %14190 = vmatpush2.bf16.msra.mxu1 %v23637_v43  ;;  %v23690_v43 = vld [vmem:[#allocation37 + $0x12ac] ss:$36 sps:$4 sm:$0xff]  }
 0xaab   :  { %14191 = vmatprep.subr.bf16.mxu1 %v23644_v18  ;;  %v23685_v18 = vld [vmem:[#allocation31 + $0xa40] ss:$16 sps:$4 sm:$0xff]  }
 0xaac   :  { %21195 = vmatpush3.bf16.msra.mxu0 %v23641_v36  ;;  %v23693_v36 = vld [vmem:[#allocation31 + $0xa24] ss:$16 sps:$4 sm:$0xff]  }
 0xaad   :  { %21196 = vmatprep.subr.bf16.mxu0 %v23645_v32  ;;  %v23688_v32 = vld [vmem:[#allocation37 + $0x12a8] ss:$36 sps:$4 sm:$0xff]  }
 0xaae   :  { %14192 = vmatpush2.bf16.msra.mxu1 %v23642_v62  ;;  %v23696_v62 = vld [vmem:[#allocation37 + $0x1264] ss:$36 sps:$4 sm:$0xff]  }
 0xaaf   :  { %14193 = vmatprep.subr.bf16.mxu1 %v23649_v11  ;;  %v23691_v11 = vld [vmem:[#allocation31 + $0xa20] ss:$16 sps:$4 sm:$0xff]  }
 0xab0   :  { %21197 = vmatpush3.bf16.msra.mxu0 %v23646_v46  ;;  %v23699_v46 = vld [vmem:[#allocation31 + $0xa04] ss:$16 sps:$4 sm:$0xff]  }
 0xab1   :  { %21198 = vmatprep.subr.bf16.mxu0 %v23650_v3  ;;  %v23694_v3 = vld [vmem:[#allocation37 + $0x1260] ss:$36 sps:$4 sm:$0xff]  }
 0xab2   :  { %14194 = vmatpush2.bf16.msra.mxu1 %v23647_v21  ;;  %v23702_v21 = vld [vmem:[#allocation37 + $0x121c] ss:$36 sps:$4 sm:$0xff]  }
 0xab3   :  { %14195 = vmatprep.subr.bf16.mxu1 %v23654_v39  ;;  %v23697_v39 = vld [vmem:[#allocation31 + $0xa00] ss:$16 sps:$4 sm:$0xff]  }
 0xab4   :  { %21199 = vmatpush3.bf16.msra.mxu0 %v23651_v41  ;;  %v23705_v41 = vld [vmem:[#allocation31 + $0xbe4] ss:$16 sps:$4 sm:$0xff]  }
 0xab5   :  { %12082 = vmatprep.subr.bf16.mxu0 %v23657_v33  ;;  %v23700_v33 = vld [vmem:[#allocation37 + $0x1218] ss:$36 sps:$4 sm:$0xff]  }
 0xab6   :  { %14196 = vmatpush2.bf16.msra.mxu1 %v23652_v28  ;;  %v23708_v28 = vld [vmem:[#allocation37 + $0x1654] ss:$36 sps:$4 sm:$0xff]  }
 0xab7   :  { %11258 = vmatmul.mubr.bf16.vlgmr.msra.gmra.mxu0 %v25810_v1  ;;  %14247 = vmatprep.subr.bf16.mxu1 %v23660_v9  ;;  %v23703_v9 = vld [vmem:[#allocation31 + $0xbe0] ss:$16 sps:$4 sm:$0xff]  }
 0xab8   :  { %12083 = vmatpush1.bf16.msra.mxu0 %v23655_v60  ;;  %12114 = vmatprep.mubr.bf16.mxu0 %v26081_v30  ;;  %v23711_v60 = vld [vmem:[#allocation31 + $0xbc4] ss:$16 sps:$4 sm:$0xff]  }
 0xab9   :  { %v26085_v26 = vpop.f32.mrf.mxu1  ;;  %14198 = vmatmul.mubr.bf16.vlgmr.msra.gmra.mxu1 %v26014_v19  ;;  %12084 = vmatprep.subr.bf16.mxu0 %v23663_v51  ;;  %v23706_v51 = vld [vmem:[#allocation37 + $0x1650] ss:$36 sps:$4 sm:$0xff]  }
 0xaba   :  { %14248 = vmatpush1.bf16.msra.mxu1 %v23658_v53  ;;  %14279 = vmatprep.mubr.bf16.mxu1 %v25996_v14 }
 0xabb   :  { %v26089_v55 = vpop.f32.mrf.mxu1  ;;  %14249 = vmatprep.subr.bf16.mxu1 %v23666_v16  ;;  %v23714_v16 = vld [vmem:[#allocation37 + $0x160c] ss:$36 sps:$4 sm:$0xff]  }
 0xabc   :  { %12085 = vmatpush1.bf16.msra.mxu0 %v23661_v48 }
 0xabd   :  { %v12161_v15 = vpop.f32.mrf.mxu1  ;;  %12086 = vmatprep.subr.bf16.mxu0 %v23669_v29  ;;  %v23709_v29 = vld [vmem:[#allocation31 + $0xbc0] ss:$16 sps:$4 sm:$0xff]  }
 0xabe   :  { %14250 = vmatpush1.bf16.msra.mxu1 %v23664_v50  ;;  %v23712_v15 = vld [vmem:[#allocation37 + $0x1608] ss:$36 sps:$4 sm:$0xff]  }
 0xabf   :  { %v12162_v42 = vpop.f32.mrf.mxu1  ;;  %14251 = vmatprep.subr.bf16.mxu1 %v23672_v45  ;;  %v23717_v45 = vld [vmem:[#allocation31 + $0xba4] ss:$16 sps:$4 sm:$0xff]  }
 0xac0   :  { %12087 = vmatpush1.bf16.msra.mxu0 %v23667_v22  ;;  %v23715_v42 = vld [vmem:[#allocation31 + $0xba0] ss:$16 sps:$4 sm:$0xff]  }
 0xac1   :  { %12088 = vmatprep.subr.bf16.mxu0 %v23675_v44 }
 0xac2   :  { %14252 = vmatpush1.bf16.msra.mxu1 %v23670_v5  ;;  %v23720_v5 = vld [vmem:[#allocation37 + $0x15c4] ss:$36 sps:$4 sm:$0xff]  }
 0xac3   :  { %14253 = vmatprep.subr.bf16.mxu1 %v23678_v52 }
 0xac4   :  { %12089 = vmatpush1.bf16.msra.mxu0 %v23673_v25  ;;  %v23723_v25 = vld [vmem:[#allocation31 + $0xb84] ss:$16 sps:$4 sm:$0xff]  }
 0xac5   :  { %12090 = vmatprep.subr.bf16.mxu0 %v23681_v35  ;;  %v23726_v35 = vld [vmem:[#allocation37 + $0x157c] ss:$36 sps:$4 sm:$0xff]  }
 0xac6   :  { %14254 = vmatpush1.bf16.msra.mxu1 %v23676_v38  ;;  %v23721_v38 = vld [vmem:[#allocation31 + $0xb80] ss:$16 sps:$4 sm:$0xff]  }
 0xac7   :  { %14255 = vmatprep.subr.bf16.mxu1 %v23684_v24  ;;  %v23729_v24 = vld [vmem:[#allocation31 + $0xb64] ss:$16 sps:$4 sm:$0xff]  }
 0xac8   :  { %12091 = vmatpush1.bf16.msra.mxu0 %v23679_v47  ;;  %v23732_v47 = vld [vmem:[#allocation37 + $0x1534] ss:$36 sps:$4 sm:$0xff]  }
 0xac9   :  { %12092 = vmatprep.subr.bf16.mxu0 %v23687_v13  ;;  %v23727_v13 = vld [vmem:[#allocation31 + $0xb60] ss:$16 sps:$4 sm:$0xff]  }
 0xaca   :  { %14256 = vmatpush1.bf16.msra.mxu1 %v23682_v6  ;;  %v23735_v6 = vld [vmem:[#allocation31 + $0xb44] ss:$16 sps:$4 sm:$0xff]  }
 0xacb   :  { %14257 = vmatprep.subr.bf16.mxu1 %v23690_v43  ;;  %v23730_v43 = vld [vmem:[#allocation37 + $0x1530] ss:$36 sps:$4 sm:$0xff]  }
 0xacc   :  { %12093 = vmatpush1.bf16.msra.mxu0 %v23685_v18  ;;  %v23738_v18 = vld [vmem:[#allocation37 + $0x14ec] ss:$36 sps:$4 sm:$0xff]  }
 0xacd   :  { %12094 = vmatprep.subr.bf16.mxu0 %v23693_v36  ;;  %v23733_v36 = vld [vmem:[#allocation31 + $0xb40] ss:$16 sps:$4 sm:$0xff]  }
 0xace   :  { %14258 = vmatpush1.bf16.msra.mxu1 %v23688_v32  ;;  %v23741_v32 = vld [vmem:[#allocation31 + $0xb24] ss:$16 sps:$4 sm:$0xff]  }
 0xacf   :  { %14259 = vmatprep.subr.bf16.mxu1 %v23696_v62  ;;  %v23736_v62 = vld [vmem:[#allocation37 + $0x14e8] ss:$36 sps:$4 sm:$0xff]  }
 0xad0   :  { %12095 = vmatpush1.bf16.msra.mxu0 %v23691_v11  ;;  %v23744_v11 = vld [vmem:[#allocation37 + $0x14a4] ss:$36 sps:$4 sm:$0xff]  }
 0xad1   :  { %12096 = vmatprep.subr.bf16.mxu0 %v23699_v46  ;;  %v23739_v46 = vld [vmem:[#allocation31 + $0xb20] ss:$16 sps:$4 sm:$0xff]  }
 0xad2   :  { %14260 = vmatpush1.bf16.msra.mxu1 %v23694_v3  ;;  %v23747_v3 = vld [vmem:[#allocation31 + $0xb04] ss:$16 sps:$4 sm:$0xff]  }
 0xad3   :  { %14261 = vmatprep.subr.bf16.mxu1 %v23702_v21  ;;  %v23742_v21 = vld [vmem:[#allocation37 + $0x14a0] ss:$36 sps:$4 sm:$0xff]  }
 0xad4   :  { %12097 = vmatpush1.bf16.msra.mxu0 %v23697_v39  ;;  %v23750_v39 = vld [vmem:[#allocation37 + $0x145c] ss:$36 sps:$4 sm:$0xff]  }
 0xad5   :  { %12098 = vmatprep.subr.bf16.mxu0 %v23705_v41  ;;  %v23745_v41 = vld [vmem:[#allocation31 + $0xb00] ss:$16 sps:$4 sm:$0xff]  }
 0xad6   :  { %14262 = vmatpush1.bf16.msra.mxu1 %v23700_v33  ;;  %v23753_v33 = vld [vmem:[#allocation31 + $0xaec] ss:$16 sps:$4 sm:$0xff]  }
 0xad7   :  { %v11014_v53 = vpop.f32.mrf.mxu0  ;;  %14263 = vmatprep.subr.bf16.mxu1 %v23708_v28  ;;  %v23748_v28 = vld [vmem:[#allocation37 + $0x1458] ss:$36 sps:$4 sm:$0xff]  }
 0xad8   :  { %v26092_v48 = vadd.f32 %v11014_v53, %v26021_v40  ;;  %12099 = vmatpush2.bf16.msra.mxu0 %v23703_v9  ;;  %v23718_v40 = vld [vmem:[#allocation37 + $0x15c0] ss:$36 sps:$4 sm:$0xff]   ;;  %v23754_v9 = vld [vmem:[#allocation37 + $0x1658] ss:$36 sps:$4 sm:$0xff]  }
 0xad9   :  { %v11016_v50 = vpop.f32.mrf.mxu0  ;;  %12100 = vmatprep.subr.bf16.mxu0 %v23711_v60  ;;  %v23751_v60 = vld [vmem:[#allocation31 + $0xae8] ss:$16 sps:$4 sm:$0xff]   ;;  %v23758_v53 = vld [vmem:[#allocation31 + $0xacc] ss:$16 sps:$4 sm:$0xff]  }
 0xada   :  { %v26095_v22 = vadd.f32 %v11016_v50, %v26024_v8  ;;  %14264 = vmatpush2.bf16.msra.mxu1 %v23706_v51  ;;  %v23724_v8 = vld [vmem:[#allocation37 + $0x1578] ss:$36 sps:$4 sm:$0xff]   ;;  %v26098_v51 = vrot.slane %v25810_v1, 2  ;;  %v23756_v50 = vld [vmem:[#allocation31 + $0xac8] ss:$16 sps:$4 sm:$0xff]  }
 0xadb   :  { %v11018_v44 = vpop.f32.mrf.mxu0  ;;  %14265 = vmatprep.subr.bf16.mxu1 %v23714_v16  ;;  %v23755_v16 = vld [vmem:[#allocation37 + $0x1418] ss:$36 sps:$4 sm:$0xff]  }
 0xadc   :  { %12101 = vmatpush2.bf16.msra.mxu0 %v23709_v29  ;;  %v23759_v29 = vld [vmem:[#allocation37 + $0x1610] ss:$36 sps:$4 sm:$0xff]  }
 0xadd   :  { %v11019_v52 = vpop.f32.mrf.mxu0  ;;  %12102 = vmatprep.subr.bf16.mxu0 %v23717_v45  ;;  %v23760_v44 = vld [vmem:[#allocation37 + $0x13d0] ss:$36 sps:$4 sm:$0xff]  }
 0xade   :  { %14266 = vmatpush2.bf16.msra.mxu1 %v23712_v15  ;;  %v23763_v15 = vld [vmem:[#allocation31 + $0xaac] ss:$16 sps:$4 sm:$0xff]   ;;  %v23761_v52 = vld [vmem:[#allocation31 + $0xaa8] ss:$16 sps:$4 sm:$0xff]  }
 0xadf   :  { %14267 = vmatprep.subr.bf16.mxu1 %v23720_v5 }
 0xae0   :  { %12103 = vmatpush2.bf16.msra.mxu0 %v23715_v42  ;;  %v23764_v42 = vld [vmem:[#allocation37 + $0x15c8] ss:$36 sps:$4 sm:$0xff]  }
 0xae1   :  { %12104 = vmatprep.subr.bf16.mxu0 %v23723_v25 }
 0xae2   :  { %14268 = vmatpush2.bf16.msra.mxu1 %v23718_v40  ;;  %v23768_v40 = vld [vmem:[#allocation31 + $0xa8c] ss:$16 sps:$4 sm:$0xff]  }
 0xae3   :  { %14269 = vmatprep.subr.bf16.mxu1 %v23726_v35  ;;  %v23765_v35 = vld [vmem:[#allocation37 + $0x1388] ss:$36 sps:$4 sm:$0xff]  }
 0xae4   :  { %12105 = vmatpush2.bf16.msra.mxu0 %v23721_v38 }
 0xae5   :  { %12106 = vmatprep.subr.bf16.mxu0 %v23729_v24  ;;  %v23769_v24 = vld [vmem:[#allocation37 + $0x1580] ss:$36 sps:$4 sm:$0xff]  }
 0xae6   :  { %14270 = vmatpush2.bf16.msra.mxu1 %v23724_v8  ;;  %v23766_v8 = vld [vmem:[#allocation31 + $0xa88] ss:$16 sps:$4 sm:$0xff]  }
 0xae7   :  { %14271 = vmatprep.subr.bf16.mxu1 %v23732_v47  ;;  %v23773_v47 = vld [vmem:[#allocation31 + $0xa6c] ss:$16 sps:$4 sm:$0xff]  }
 0xae8   :  { %12107 = vmatpush2.bf16.msra.mxu0 %v23727_v13  ;;  %v23774_v13 = vld [vmem:[#allocation37 + $0x1538] ss:$36 sps:$4 sm:$0xff]  }
 0xae9   :  { %12108 = vmatprep.subr.bf16.mxu0 %v23735_v6  ;;  %v23771_v6 = vld [vmem:[#allocation31 + $0xa68] ss:$16 sps:$4 sm:$0xff]  }
 0xaea   :  { %14272 = vmatpush2.bf16.msra.mxu1 %v23730_v43  ;;  %v23778_v43 = vld [vmem:[#allocation31 + $0xa4c] ss:$16 sps:$4 sm:$0xff]  }
 0xaeb   :  { %14273 = vmatprep.subr.bf16.mxu1 %v23738_v18  ;;  %v23775_v18 = vld [vmem:[#allocation37 + $0x12f8] ss:$36 sps:$4 sm:$0xff]  }
 0xaec   :  { %12109 = vmatpush2.bf16.msra.mxu0 %v23733_v36  ;;  %v23779_v36 = vld [vmem:[#allocation37 + $0x14f0] ss:$36 sps:$4 sm:$0xff]  }
 0xaed   :  { %12110 = vmatprep.subr.bf16.mxu0 %v23741_v32  ;;  %v23776_v32 = vld [vmem:[#allocation31 + $0xa48] ss:$16 sps:$4 sm:$0xff]  }
 0xaee   :  { %14274 = vmatpush2.bf16.msra.mxu1 %v23736_v62  ;;  %v23783_v62 = vld [vmem:[#allocation31 + $0xa2c] ss:$16 sps:$4 sm:$0xff]  }
 0xaef   :  { %14275 = vmatprep.subr.bf16.mxu1 %v23744_v11  ;;  %v23780_v11 = vld [vmem:[#allocation37 + $0x12b0] ss:$36 sps:$4 sm:$0xff]  }
 0xaf0   :  { %12111 = vmatpush2.bf16.msra.mxu0 %v23739_v46  ;;  %v23784_v46 = vld [vmem:[#allocation37 + $0x14a8] ss:$36 sps:$4 sm:$0xff]  }
 0xaf1   :  { %12112 = vmatprep.subr.bf16.mxu0 %v23747_v3  ;;  %v23781_v3 = vld [vmem:[#allocation31 + $0xa28] ss:$16 sps:$4 sm:$0xff]  }
 0xaf2   :  { %14276 = vmatpush2.bf16.msra.mxu1 %v23742_v21  ;;  %v23788_v21 = vld [vmem:[#allocation31 + $0xa0c] ss:$16 sps:$4 sm:$0xff]  }
 0xaf3   :  { %14277 = vmatprep.subr.bf16.mxu1 %v23750_v39  ;;  %v23785_v39 = vld [vmem:[#allocation37 + $0x1268] ss:$36 sps:$4 sm:$0xff]  }
 0xaf4   :  { %12113 = vmatpush2.bf16.msra.mxu0 %v23745_v41  ;;  %v23789_v41 = vld [vmem:[#allocation37 + $0x1460] ss:$36 sps:$4 sm:$0xff]  }
 0xaf5   :  { %12164 = vmatprep.subr.bf16.mxu0 %v23753_v33  ;;  %v23786_v33 = vld [vmem:[#allocation31 + $0xa08] ss:$16 sps:$4 sm:$0xff]  }
 0xaf6   :  { %14278 = vmatpush2.bf16.msra.mxu1 %v23748_v28  ;;  %v23793_v28 = vld [vmem:[#allocation31 + $0xbec] ss:$16 sps:$4 sm:$0xff]  }
 0xaf7   :  { %12115 = vmatmul.mubr.bf16.vlgmr.msra.gmra.mxu0 %v26098_v51  ;;  %21206 = vmatprep.subr.bf16.mxu1 %v23754_v9  ;;  %v23790_v9 = vld [vmem:[#allocation37 + $0x1220] ss:$36 sps:$4 sm:$0xff]  }
 0xaf8   :  { %12165 = vmatpush1.bf16.msra.mxu0 %v23751_v60  ;;  %12196 = vmatprep.mubr.bf16.mxu0 %v26081_v30  ;;  %v23796_v60 = vld [vmem:[#allocation31 + $0xce4] ss:$16 sps:$4 sm:$0xff]  }
 0xaf9   :  { %v26102_v45 = vpop.f32.mrf.mxu1  ;;  %14280 = vmatmul.mubr.bf16.vlgmr.msra.gmra.mxu1 %v26014_v19  ;;  %12166 = vmatprep.subr.bf16.mxu0 %v23758_v53  ;;  %v23791_v53 = vld [vmem:[#allocation31 + $0xbe8] ss:$16 sps:$4 sm:$0xff]  }
 0xafa   :  { %21207 = vmatpush3.bf16.msra.mxu1 %v23755_v16  ;;  %14361 = vmatprep.mubr.bf16.mxu1 %v25996_v14  ;;  %v23770_v14 = vld [vmem:[#allocation37 + $0x1340] ss:$36 sps:$4 sm:$0xff]  }
 0xafb   :  { %v26106_v5 = vpop.f32.mrf.mxu1  ;;  %21208 = vmatprep.subr.bf16.mxu1 %v23759_v29  ;;  %v23799_v16 = vld [vmem:[#allocation31 + $0xbcc] ss:$16 sps:$4 sm:$0xff]   ;;  %v23794_v29 = vld [vmem:[#allocation31 + $0xce0] ss:$16 sps:$4 sm:$0xff]  }
 0xafc   :  { %12167 = vmatpush1.bf16.msra.mxu0 %v23756_v50 }
 0xafd   :  { %v14039_v25 = vpop.f32.mrf.mxu1  ;;  %12168 = vmatprep.subr.bf16.mxu0 %v23763_v15  ;;  %v23802_v15 = vld [vmem:[#allocation31 + $0xcc4] ss:$16 sps:$4 sm:$0xff]  }
 0xafe   :  { %21209 = vmatpush3.bf16.msra.mxu1 %v23760_v44 }
 0xaff   :  { %v14040_v38 = vpop.f32.mrf.mxu1  ;;  %21210 = vmatprep.subr.bf16.mxu1 %v23764_v42  ;;  %v26112_v42 = vrot.slane %v25798_v4, 3 }
 0xb00   :  { %12169 = vmatpush1.bf16.msra.mxu0 %v23761_v52  ;;  %v23797_v52 = vld [vmem:[#allocation31 + $0xbc8] ss:$16 sps:$4 sm:$0xff]   ;;  %v23800_v38 = vld [vmem:[#allocation31 + $0xcc0] ss:$16 sps:$4 sm:$0xff]  }
 0xb01   :  { %12170 = vmatprep.subr.bf16.mxu0 %v23768_v40  ;;  %v23805_v40 = vld [vmem:[#allocation31 + $0xbac] ss:$16 sps:$4 sm:$0xff]  }
 0xb02   :  { %21211 = vmatpush3.bf16.msra.mxu1 %v23765_v35 }
 0xb03   :  { %21212 = vmatprep.subr.bf16.mxu1 %v23769_v24 }
 0xb04   :  { %12171 = vmatpush1.bf16.msra.mxu0 %v23766_v8  ;;  %v23803_v8 = vld [vmem:[#allocation31 + $0xba8] ss:$16 sps:$4 sm:$0xff]  }
 0xb05   :  { %12172 = vmatprep.subr.bf16.mxu0 %v23773_v47  ;;  %v23811_v47 = vld [vmem:[#allocation31 + $0xb8c] ss:$16 sps:$4 sm:$0xff]  }
 0xb06   :  { %21213 = vmatpush3.bf16.msra.mxu1 %v23770_v14  ;;  %v23814_v14 = vld [vmem:[#allocation31 + $0xc84] ss:$16 sps:$4 sm:$0xff]  }
 0xb07   :  { %21214 = vmatprep.subr.bf16.mxu1 %v23774_v13  ;;  %v23809_v13 = vld [vmem:[#allocation31 + $0xb88] ss:$16 sps:$4 sm:$0xff]  }
 0xb08   :  { %12173 = vmatpush1.bf16.msra.mxu0 %v23771_v6  ;;  %v23812_v6 = vld [vmem:[#allocation31 + $0xc80] ss:$16 sps:$4 sm:$0xff]  }
 0xb09   :  { %12174 = vmatprep.subr.bf16.mxu0 %v23778_v43  ;;  %v23820_v43 = vld [vmem:[#allocation31 + $0xc64] ss:$16 sps:$4 sm:$0xff]  }
 0xb0a   :  { %21215 = vmatpush3.bf16.msra.mxu1 %v23775_v18  ;;  %v23815_v18 = vld [vmem:[#allocation31 + $0xb68] ss:$16 sps:$4 sm:$0xff]  }
 0xb0b   :  { %21216 = vmatprep.subr.bf16.mxu1 %v23779_v36  ;;  %v23823_v36 = vld [vmem:[#allocation31 + $0xb4c] ss:$16 sps:$4 sm:$0xff]  }
 0xb0c   :  { %12175 = vmatpush1.bf16.msra.mxu0 %v23776_v32  ;;  %v23818_v32 = vld [vmem:[#allocation31 + $0xc60] ss:$16 sps:$4 sm:$0xff]  }
 0xb0d   :  { %12176 = vmatprep.subr.bf16.mxu0 %v23783_v62  ;;  %v23826_v62 = vld [vmem:[#allocation31 + $0xc44] ss:$16 sps:$4 sm:$0xff]  }
 0xb0e   :  { %21217 = vmatpush3.bf16.msra.mxu1 %v23780_v11  ;;  %v23821_v11 = vld [vmem:[#allocation31 + $0xb48] ss:$16 sps:$4 sm:$0xff]  }
 0xb0f   :  { %21218 = vmatprep.subr.bf16.mxu1 %v23784_v46  ;;  %v23829_v46 = vld [vmem:[#allocation31 + $0xb2c] ss:$16 sps:$4 sm:$0xff]  }
 0xb10   :  { %12177 = vmatpush1.bf16.msra.mxu0 %v23781_v3  ;;  %v23824_v3 = vld [vmem:[#allocation31 + $0xc40] ss:$16 sps:$4 sm:$0xff]  }
 0xb11   :  { %12178 = vmatprep.subr.bf16.mxu0 %v23788_v21  ;;  %v23832_v21 = vld [vmem:[#allocation31 + $0xc24] ss:$16 sps:$4 sm:$0xff]  }
 0xb12   :  { %21219 = vmatpush3.bf16.msra.mxu1 %v23785_v39  ;;  %v23827_v39 = vld [vmem:[#allocation31 + $0xb28] ss:$16 sps:$4 sm:$0xff]  }
 0xb13   :  { %21220 = vmatprep.subr.bf16.mxu1 %v23789_v41  ;;  %v23835_v41 = vld [vmem:[#allocation31 + $0xb0c] ss:$16 sps:$4 sm:$0xff]  }
 0xb14   :  { %12179 = vmatpush1.bf16.msra.mxu0 %v23786_v33  ;;  %v23830_v33 = vld [vmem:[#allocation31 + $0xc20] ss:$16 sps:$4 sm:$0xff]  }
 0xb15   :  { %12180 = vmatprep.subr.bf16.mxu0 %v23793_v28  ;;  %v23838_v28 = vld [vmem:[#allocation31 + $0xc04] ss:$16 sps:$4 sm:$0xff]  }
 0xb16   :  { %21221 = vmatpush3.bf16.msra.mxu1 %v23790_v9  ;;  %v23833_v9 = vld [vmem:[#allocation31 + $0xb08] ss:$16 sps:$4 sm:$0xff]  }
 0xb17   :  { %v11096_v50 = vpop.f32.mrf.mxu0  ;;  %15194 = vmatprep.subr.bf16.mxu1 %v23796_v60  ;;  %v23841_v60 = vld [vmem:[#allocation37 + $0x187c] ss:$36 sps:$4 sm:$0xff]  }
 0xb18   :  { %v26109_v44 = vadd.f32 %v11096_v50, %v26037_v7  ;;  %12181 = vmatpush2.bf16.msra.mxu0 %v23791_v53  ;;  %v23808_v7 = vld [vmem:[#allocation31 + $0xca4] ss:$16 sps:$4 sm:$0xff]   ;;  %v23836_v53 = vld [vmem:[#allocation31 + $0xc00] ss:$16 sps:$4 sm:$0xff]  }
 0xb19   :  { %14362 = vmatmul.mubr.bf16.vlgmr.msra.gmra.mxu1 %v26014_v19  ;;  %v11098_v25 = vpop.f32.mrf.mxu0  ;;  %12182 = vmatprep.subr.bf16.mxu0 %v23799_v16  ;;  %v23806_v19 = vld [vmem:[#allocation31 + $0xca0] ss:$16 sps:$4 sm:$0xff]   ;;  %v23844_v16 = vld [vmem:[#allocation31 + $0xde4] ss:$16 sps:$4 sm:$0xff]  }
 0xb1a   :  { %v26116_v35 = vadd.f32 %v11098_v25, %v26040_v12  ;;  %15195 = vmatpush1.bf16.msra.mxu1 %v23794_v29  ;;  %15226 = vmatprep.mubr.bf16.mxu1 %v26112_v42  ;;  %v23817_v12 = vld [vmem:[#allocation31 + $0xb6c] ss:$16 sps:$4 sm:$0xff]  }
 0xb1b   :  { %v11100_v24 = vpop.f32.mrf.mxu0  ;;  %15196 = vmatprep.subr.bf16.mxu1 %v23802_v15  ;;  %v23839_v29 = vld [vmem:[#allocation37 + $0x1878] ss:$36 sps:$4 sm:$0xff]   ;;  %v23845_v25 = vld [vmem:[#allocation37 + $0x1830] ss:$36 sps:$4 sm:$0xff]  }
 0xb1c   :  { %12183 = vmatpush2.bf16.msra.mxu0 %v23797_v52  ;;  %v23847_v50 = vld [vmem:[#allocation37 + $0x1834] ss:$36 sps:$4 sm:$0xff]   ;;  %v23850_v52 = vld [vmem:[#allocation31 + $0xdc4] ss:$16 sps:$4 sm:$0xff]  }
 0xb1d   :  { %v11101_v4 = vpop.f32.mrf.mxu0  ;;  %12184 = vmatprep.subr.bf16.mxu0 %v23805_v40  ;;  %v23842_v15 = vld [vmem:[#allocation31 + $0xde0] ss:$16 sps:$4 sm:$0xff]  }
 0xb1e   :  { %15197 = vmatpush1.bf16.msra.mxu1 %v23800_v38  ;;  %v23853_v38 = vld [vmem:[#allocation37 + $0x17ec] ss:$36 sps:$4 sm:$0xff]  }
 0xb1f   :  { %15198 = vmatprep.subr.bf16.mxu1 %v23808_v7  ;;  %v23848_v24 = vld [vmem:[#allocation31 + $0xdc0] ss:$16 sps:$4 sm:$0xff]  }
 0xb20   :  { %12185 = vmatpush2.bf16.msra.mxu0 %v23803_v8  ;;  %v23856_v8 = vld [vmem:[#allocation31 + $0xda4] ss:$16 sps:$4 sm:$0xff]  }
 0xb21   :  { %12186 = vmatprep.subr.bf16.mxu0 %v23811_v47  ;;  %v23851_v4 = vld [vmem:[#allocation37 + $0x17e8] ss:$36 sps:$4 sm:$0xff]  }
 0xb22   :  { %15199 = vmatpush1.bf16.msra.mxu1 %v23806_v19  ;;  %v23859_v19 = vld [vmem:[#allocation37 + $0x17a4] ss:$36 sps:$4 sm:$0xff]  }
 0xb23   :  { %15200 = vmatprep.subr.bf16.mxu1 %v23814_v14  ;;  %v23854_v14 = vld [vmem:[#allocation31 + $0xda0] ss:$16 sps:$4 sm:$0xff]  }
 0xb24   :  { %12187 = vmatpush2.bf16.msra.mxu0 %v23809_v13 }
 0xb25   :  { %12188 = vmatprep.subr.bf16.mxu0 %v23817_v12  ;;  %v23862_v12 = vld [vmem:[#allocation31 + $0xd84] ss:$16 sps:$4 sm:$0xff]  }
 0xb26   :  { %15201 = vmatpush1.bf16.msra.mxu1 %v23812_v6  ;;  %v23857_v6 = vld [vmem:[#allocation37 + $0x17a0] ss:$36 sps:$4 sm:$0xff]  }
 0xb27   :  { %15202 = vmatprep.subr.bf16.mxu1 %v23820_v43  ;;  %v23865_v43 = vld [vmem:[#allocation37 + $0x175c] ss:$36 sps:$4 sm:$0xff]  }
 0xb28   :  { %12189 = vmatpush2.bf16.msra.mxu0 %v23815_v18  ;;  %v23860_v18 = vld [vmem:[#allocation31 + $0xd80] ss:$16 sps:$4 sm:$0xff]  }
 0xb29   :  { %12190 = vmatprep.subr.bf16.mxu0 %v23823_v36  ;;  %v23868_v36 = vld [vmem:[#allocation31 + $0xd64] ss:$16 sps:$4 sm:$0xff]  }
 0xb2a   :  { %15203 = vmatpush1.bf16.msra.mxu1 %v23818_v32  ;;  %v23863_v32 = vld [vmem:[#allocation37 + $0x1758] ss:$36 sps:$4 sm:$0xff]  }
 0xb2b   :  { %15204 = vmatprep.subr.bf16.mxu1 %v23826_v62  ;;  %v23871_v62 = vld [vmem:[#allocation37 + $0x1714] ss:$36 sps:$4 sm:$0xff]  }
 0xb2c   :  { %12191 = vmatpush2.bf16.msra.mxu0 %v23821_v11  ;;  %v23866_v11 = vld [vmem:[#allocation31 + $0xd60] ss:$16 sps:$4 sm:$0xff]  }
 0xb2d   :  { %12192 = vmatprep.subr.bf16.mxu0 %v23829_v46  ;;  %v23874_v46 = vld [vmem:[#allocation31 + $0xd44] ss:$16 sps:$4 sm:$0xff]  }
 0xb2e   :  { %15205 = vmatpush1.bf16.msra.mxu1 %v23824_v3  ;;  %v23869_v3 = vld [vmem:[#allocation37 + $0x1710] ss:$36 sps:$4 sm:$0xff]  }
 0xb2f   :  { %15206 = vmatprep.subr.bf16.mxu1 %v23832_v21  ;;  %v23877_v21 = vld [vmem:[#allocation37 + $0x16cc] ss:$36 sps:$4 sm:$0xff]  }
 0xb30   :  { %12193 = vmatpush2.bf16.msra.mxu0 %v23827_v39  ;;  %v23872_v39 = vld [vmem:[#allocation31 + $0xd40] ss:$16 sps:$4 sm:$0xff]  }
 0xb31   :  { %12194 = vmatprep.subr.bf16.mxu0 %v23835_v41  ;;  %v23880_v41 = vld [vmem:[#allocation31 + $0xd24] ss:$16 sps:$4 sm:$0xff]  }
 0xb32   :  { %15207 = vmatpush1.bf16.msra.mxu1 %v23830_v33  ;;  %v23875_v33 = vld [vmem:[#allocation37 + $0x16c8] ss:$36 sps:$4 sm:$0xff]  }
 0xb33   :  { %15208 = vmatprep.subr.bf16.mxu1 %v23838_v28  ;;  %v23883_v28 = vld [vmem:[#allocation37 + $0x1684] ss:$36 sps:$4 sm:$0xff]  }
 0xb34   :  { %12195 = vmatpush2.bf16.msra.mxu0 %v23833_v9  ;;  %v23878_v9 = vld [vmem:[#allocation31 + $0xd20] ss:$16 sps:$4 sm:$0xff]  }
 0xb35   :  { %14042 = vmatprep.subr.bf16.mxu0 %v23841_v60  ;;  %v23886_v60 = vld [vmem:[#allocation31 + $0xd04] ss:$16 sps:$4 sm:$0xff]  }
 0xb36   :  { %15209 = vmatpush1.bf16.msra.mxu1 %v23836_v53  ;;  %v23881_v53 = vld [vmem:[#allocation37 + $0x1680] ss:$36 sps:$4 sm:$0xff]  }
 0xb37   :  { %12197 = vmatmul.mubr.bf16.vlgmr.msra.gmra.mxu0 %v26098_v51  ;;  %15210 = vmatprep.subr.bf16.mxu1 %v23844_v16  ;;  %v23889_v16 = vld [vmem:[#allocation37 + $0x1abc] ss:$36 sps:$4 sm:$0xff]  }
 0xb38   :  { %14043 = vmatpush1.bf16.msra.mxu0 %v23839_v29  ;;  %14074 = vmatprep.mubr.bf16.mxu0 %v26081_v30  ;;  %v23884_v29 = vld [vmem:[#allocation31 + $0xd00] ss:$16 sps:$4 sm:$0xff]  }
 0xb39   :  { %v26121_v40 = vpop.f32.mrf.mxu1  ;;  %14044 = vmatprep.subr.bf16.mxu0 %v23847_v50  ;;  %v23892_v50 = vld [vmem:[#allocation31 + $0xcec] ss:$16 sps:$4 sm:$0xff]  }
 0xb3a   :  { %15211 = vmatpush2.bf16.msra.mxu1 %v23842_v15  ;;  %v23887_v15 = vld [vmem:[#allocation37 + $0x1ab8] ss:$36 sps:$4 sm:$0xff]  }
 0xb3b   :  { %v26123_v7 = vpop.f32.mrf.mxu1  ;;  %15212 = vmatprep.subr.bf16.mxu1 %v23850_v52  ;;  %v23895_v52 = vld [vmem:[#allocation37 + $0x1a74] ss:$36 sps:$4 sm:$0xff]  }
 0xb3c   :  { %14045 = vmatpush1.bf16.msra.mxu0 %v23845_v25  ;;  %v23890_v25 = vld [vmem:[#allocation31 + $0xce8] ss:$16 sps:$4 sm:$0xff]  }
 0xb3d   :  { %v14121_v47 = vpop.f32.mrf.mxu1  ;;  %14046 = vmatprep.subr.bf16.mxu0 %v23853_v38 }
 0xb3e   :  { %15213 = vmatpush2.bf16.msra.mxu1 %v23848_v24  ;;  %v26126_v24 = vrot.slane %v25801_v20, 3  ;;  %v23893_v47 = vld [vmem:[#allocation37 + $0x1a70] ss:$36 sps:$4 sm:$0xff]  }
 0xb3f   :  { %v14122_v13 = vpop.f32.mrf.mxu1  ;;  %15214 = vmatprep.subr.bf16.mxu1 %v23856_v8  ;;  %v23898_v8 = vld [vmem:[#allocation31 + $0xccc] ss:$16 sps:$4 sm:$0xff]   ;;  %v23896_v20 = vld [vmem:[#allocation31 + $0xcc8] ss:$16 sps:$4 sm:$0xff]  }
 0xb40   :  { %14047 = vmatpush1.bf16.msra.mxu0 %v23851_v4 }
 0xb41   :  { %14048 = vmatprep.subr.bf16.mxu0 %v23859_v19 }
 0xb42   :  { %15215 = vmatpush2.bf16.msra.mxu1 %v23854_v14  ;;  %v23901_v14 = vld [vmem:[#allocation37 + $0x1a2c] ss:$36 sps:$4 sm:$0xff]  }
 0xb43   :  { %15216 = vmatprep.subr.bf16.mxu1 %v23862_v12 }
 0xb44   :  { %14049 = vmatpush1.bf16.msra.mxu0 %v23857_v6  ;;  %v23904_v6 = vld [vmem:[#allocation31 + $0xcac] ss:$16 sps:$4 sm:$0xff]  }
 0xb45   :  { %14050 = vmatprep.subr.bf16.mxu0 %v23865_v43 }
 0xb46   :  { %15217 = vmatpush2.bf16.msra.mxu1 %v23860_v18  ;;  %v23907_v18 = vld [vmem:[#allocation37 + $0x19e4] ss:$36 sps:$4 sm:$0xff]  }
 0xb47   :  { %15218 = vmatprep.subr.bf16.mxu1 %v23868_v36  ;;  %v23902_v36 = vld [vmem:[#allocation31 + $0xca8] ss:$16 sps:$4 sm:$0xff]  }
 0xb48   :  { %14051 = vmatpush1.bf16.msra.mxu0 %v23863_v32  ;;  %v23910_v32 = vld [vmem:[#allocation31 + $0xc8c] ss:$16 sps:$4 sm:$0xff]  }
 0xb49   :  { %14052 = vmatprep.subr.bf16.mxu0 %v23871_v62  ;;  %v23905_v62 = vld [vmem:[#allocation37 + $0x19e0] ss:$36 sps:$4 sm:$0xff]  }
 0xb4a   :  { %15219 = vmatpush2.bf16.msra.mxu1 %v23866_v11  ;;  %v23908_v11 = vld [vmem:[#allocation31 + $0xc88] ss:$16 sps:$4 sm:$0xff]  }
 0xb4b   :  { %15220 = vmatprep.subr.bf16.mxu1 %v23874_v46  ;;  %v23916_v46 = vld [vmem:[#allocation31 + $0xc6c] ss:$16 sps:$4 sm:$0xff]  }
 0xb4c   :  { %14053 = vmatpush1.bf16.msra.mxu0 %v23869_v3  ;;  %v23911_v3 = vld [vmem:[#allocation37 + $0x1998] ss:$36 sps:$4 sm:$0xff]  }
 0xb4d   :  { %14054 = vmatprep.subr.bf16.mxu0 %v23877_v21  ;;  %v23919_v21 = vld [vmem:[#allocation37 + $0x1954] ss:$36 sps:$4 sm:$0xff]  }
 0xb4e   :  { %15221 = vmatpush2.bf16.msra.mxu1 %v23872_v39  ;;  %v23914_v39 = vld [vmem:[#allocation31 + $0xc68] ss:$16 sps:$4 sm:$0xff]  }
 0xb4f   :  { %15222 = vmatprep.subr.bf16.mxu1 %v23880_v41  ;;  %v23922_v41 = vld [vmem:[#allocation31 + $0xc4c] ss:$16 sps:$4 sm:$0xff]  }
 0xb50   :  { %14055 = vmatpush1.bf16.msra.mxu0 %v23875_v33  ;;  %v23917_v33 = vld [vmem:[#allocation37 + $0x1950] ss:$36 sps:$4 sm:$0xff]  }
 0xb51   :  { %14056 = vmatprep.subr.bf16.mxu0 %v23883_v28  ;;  %v23925_v28 = vld [vmem:[#allocation37 + $0x190c] ss:$36 sps:$4 sm:$0xff]  }
 0xb52   :  { %15223 = vmatpush2.bf16.msra.mxu1 %v23878_v9  ;;  %v23920_v9 = vld [vmem:[#allocation31 + $0xc48] ss:$16 sps:$4 sm:$0xff]  }
 0xb53   :  { %15224 = vmatprep.subr.bf16.mxu1 %v23886_v60  ;;  %v23928_v60 = vld [vmem:[#allocation31 + $0xc2c] ss:$16 sps:$4 sm:$0xff]  }
 0xb54   :  { %14057 = vmatpush1.bf16.msra.mxu0 %v23881_v53  ;;  %v23923_v53 = vld [vmem:[#allocation37 + $0x1908] ss:$36 sps:$4 sm:$0xff]  }
 0xb55   :  { %14058 = vmatprep.subr.bf16.mxu0 %v23889_v16  ;;  %v23931_v16 = vld [vmem:[#allocation37 + $0x18c4] ss:$36 sps:$4 sm:$0xff]  }
 0xb56   :  { %15225 = vmatpush2.bf16.msra.mxu1 %v23884_v29  ;;  %v23926_v29 = vld [vmem:[#allocation31 + $0xc28] ss:$16 sps:$4 sm:$0xff]  }
 0xb57   :  { %v11178_v38 = vpop.f32.mrf.mxu0  ;;  %15276 = vmatprep.subr.bf16.mxu1 %v23892_v50  ;;  %v23934_v50 = vld [vmem:[#allocation31 + $0xc0c] ss:$16 sps:$4 sm:$0xff]  }
 0xb58   :  { %v26129_v4 = vadd.f32 %v11178_v38, %v26053_v17  ;;  %14059 = vmatpush2.bf16.msra.mxu0 %v23887_v15  ;;  %v23899_v17 = vld [vmem:[#allocation37 + $0x1a28] ss:$36 sps:$4 sm:$0xff]   ;;  %v23929_v15 = vld [vmem:[#allocation37 + $0x18c0] ss:$36 sps:$4 sm:$0xff]  }
 0xb59   :  { %15227 = vmatmul.mubr.bf16.vlgmr.msra.gmra.mxu1 %v26126_v24  ;;  %v11180_v19 = vpop.f32.mrf.mxu0  ;;  %14060 = vmatprep.subr.bf16.mxu0 %v23895_v52  ;;  %v23937_v52 = vld [vmem:[#allocation37 + $0x1884] ss:$36 sps:$4 sm:$0xff]  }
 0xb5a   :  { %v26133_v13 = vadd.f32 %v11180_v19, %v26058_v27  ;;  %15277 = vmatpush1.bf16.msra.mxu1 %v23890_v25  ;;  %15308 = vmatprep.mubr.bf16.mxu1 %v26112_v42  ;;  %v23913_v27 = vld [vmem:[#allocation37 + $0x199c] ss:$36 sps:$4 sm:$0xff]   ;;  %v23940_v38 = vld [vmem:[#allocation31 + $0xdec] ss:$16 sps:$4 sm:$0xff]  }
 0xb5b   :  { %v11182_v12 = vpop.f32.mrf.mxu0  ;;  %15278 = vmatprep.subr.bf16.mxu1 %v23898_v8  ;;  %v23932_v25 = vld [vmem:[#allocation31 + $0xc08] ss:$16 sps:$4 sm:$0xff]  }
 0xb5c   :  { %14061 = vmatpush2.bf16.msra.mxu0 %v23893_v47  ;;  %v23935_v8 = vld [vmem:[#allocation37 + $0x1880] ss:$36 sps:$4 sm:$0xff]   ;;  %v23941_v12 = vld [vmem:[#allocation37 + $0x1838] ss:$36 sps:$4 sm:$0xff]  }
 0xb5d   :  { %v11183_v43 = vpop.f32.mrf.mxu0  ;;  %14062 = vmatprep.subr.bf16.mxu0 %v23901_v14  ;;  %v23943_v47 = vld [vmem:[#allocation37 + $0x183c] ss:$36 sps:$4 sm:$0xff]  }
 0xb5e   :  { %15279 = vmatpush1.bf16.msra.mxu1 %v23896_v20  ;;  %v23938_v19 = vld [vmem:[#allocation31 + $0xde8] ss:$16 sps:$4 sm:$0xff]   ;;  %v23946_v20 = vld [vmem:[#allocation31 + $0xdcc] ss:$16 sps:$4 sm:$0xff]  }
 0xb5f   :  { %15280 = vmatprep.subr.bf16.mxu1 %v23904_v6  ;;  %v23949_v43 = vld [vmem:[#allocation37 + $0x17f4] ss:$36 sps:$4 sm:$0xff]  }
 0xb60   :  { %14063 = vmatpush2.bf16.msra.mxu0 %v23899_v17 }
 0xb61   :  { %14064 = vmatprep.subr.bf16.mxu0 %v23907_v18 }
 0xb62   :  { %15281 = vmatpush1.bf16.msra.mxu1 %v23902_v36  ;;  %v23944_v36 = vld [vmem:[#allocation31 + $0xdc8] ss:$16 sps:$4 sm:$0xff]  }
 0xb63   :  { %15282 = vmatprep.subr.bf16.mxu1 %v23910_v32 }
 0xb64   :  { %14065 = vmatpush2.bf16.msra.mxu0 %v23905_v62 }
 0xb65   :  { %14066 = vmatprep.subr.bf16.mxu0 %v23913_v27  ;;  %v23952_v27 = vld [vmem:[#allocation31 + $0xdac] ss:$16 sps:$4 sm:$0xff]  }
 0xb66   :  { %15283 = vmatpush1.bf16.msra.mxu1 %v23908_v11 }
 0xb67   :  { %15284 = vmatprep.subr.bf16.mxu1 %v23916_v46  ;;  %v23947_v46 = vld [vmem:[#allocation37 + $0x17f0] ss:$36 sps:$4 sm:$0xff]  }
 0xb68   :  { %14067 = vmatpush2.bf16.msra.mxu0 %v23911_v3 }
 0xb69   :  { %14068 = vmatprep.subr.bf16.mxu0 %v23919_v21 }
 0xb6a   :  { %15285 = vmatpush1.bf16.msra.mxu1 %v23914_v39  ;;  %v23955_v39 = vld [vmem:[#allocation37 + $0x17ac] ss:$36 sps:$4 sm:$0xff]  }
 0xb6b   :  { %15286 = vmatprep.subr.bf16.mxu1 %v23922_v41  ;;  %v23950_v41 = vld [vmem:[#allocation31 + $0xda8] ss:$16 sps:$4 sm:$0xff]  }
 0xb6c   :  { %14069 = vmatpush2.bf16.msra.mxu0 %v23917_v33 }
 0xb6d   :  { %14070 = vmatprep.subr.bf16.mxu0 %v23925_v28  ;;  %v23958_v28 = vld [vmem:[#allocation31 + $0xd8c] ss:$16 sps:$4 sm:$0xff]  }
 0xb6e   :  { %15287 = vmatpush1.bf16.msra.mxu1 %v23920_v9  ;;  %v23953_v9 = vld [vmem:[#allocation37 + $0x17a8] ss:$36 sps:$4 sm:$0xff]  }
 0xb6f   :  { %15288 = vmatprep.subr.bf16.mxu1 %v23928_v60  ;;  %v23961_v60 = vld [vmem:[#allocation37 + $0x1764] ss:$36 sps:$4 sm:$0xff]  }
 0xb70   :  { %14071 = vmatpush2.bf16.msra.mxu0 %v23923_v53  ;;  %v23956_v53 = vld [vmem:[#allocation31 + $0xd88] ss:$16 sps:$4 sm:$0xff]  }
 0xb71   :  { %14072 = vmatprep.subr.bf16.mxu0 %v23931_v16  ;;  %v23959_v16 = vld [vmem:[#allocation37 + $0x1760] ss:$36 sps:$4 sm:$0xff]  }
 0xb72   :  { %15289 = vmatpush1.bf16.msra.mxu1 %v23926_v29  ;;  %v23967_v29 = vld [vmem:[#allocation37 + $0x171c] ss:$36 sps:$4 sm:$0xff]  }
 0xb73   :  { %15290 = vmatprep.subr.bf16.mxu1 %v23934_v50  ;;  %v23962_v50 = vld [vmem:[#allocation31 + $0xd68] ss:$16 sps:$4 sm:$0xff]  }
 0xb74   :  { %14073 = vmatpush2.bf16.msra.mxu0 %v23929_v15  ;;  %v23970_v15 = vld [vmem:[#allocation31 + $0xd4c] ss:$16 sps:$4 sm:$0xff]  }
 0xb75   :  { %14124 = vmatprep.subr.bf16.mxu0 %v23937_v52  ;;  %v23965_v52 = vld [vmem:[#allocation37 + $0x1718] ss:$36 sps:$4 sm:$0xff]  }
 0xb76   :  { %15291 = vmatpush1.bf16.msra.mxu1 %v23932_v25  ;;  %v23973_v25 = vld [vmem:[#allocation37 + $0x16d4] ss:$36 sps:$4 sm:$0xff]  }
 0xb77   :  { %v21200_v14 = vpop.f32.mrf.mxu0  ;;  %14075 = vmatmul.mubr.bf16.vlgmr.msra.gmra.mxu0 %v26098_v51  ;;  %15292 = vmatprep.subr.bf16.mxu1 %v23940_v38  ;;  %v23968_v38 = vld [vmem:[#allocation31 + $0xd48] ss:$16 sps:$4 sm:$0xff]  }
 0xb78   :  { %14125 = vmatpush1.bf16.msra.mxu0 %v23935_v8  ;;  %14156 = vmatprep.mubr.bf16.mxu0 %v26081_v30  ;;  %v23976_v8 = vld [vmem:[#allocation31 + $0xd2c] ss:$16 sps:$4 sm:$0xff]  }
 0xb79   :  { %v26138_v6 = vpop.f32.mrf.mxu1  ;;  %v21201_v17 = vpop.f32.mrf.mxu0  ;;  %14126 = vmatprep.subr.bf16.mxu0 %v23943_v47  ;;  %v23971_v47 = vld [vmem:[#allocation37 + $0x16d0] ss:$36 sps:$4 sm:$0xff]  }
 0xb7a   :  { %v21202_v18 = vadd.f32 %v21201_v17, %v21200_v14  ;;  %15293 = vmatpush2.bf16.msra.mxu1 %v23938_v19  ;;  %v23979_v19 = vld [vmem:[#allocation37 + $0x168c] ss:$36 sps:$4 sm:$0xff]   ;;  %v23985_v17 = vld [vmem:[#allocation37 + $0x1ac4] ss:$36 sps:$4 sm:$0xff]  }
 0xb7b   :  { %v26140_v32 = vpop.f32.mrf.mxu1  ;;  %v21203_v62 = vpop.f32.mrf.mxu0  ;;  %15294 = vmatprep.subr.bf16.mxu1 %v23946_v20  ;;  %v23974_v14 = vld [vmem:[#allocation31 + $0xd28] ss:$16 sps:$4 sm:$0xff]   ;;  %v23982_v20 = vld [vmem:[#allocation31 + $0xd0c] ss:$16 sps:$4 sm:$0xff]  }
 0xb7c   :  { %v26143_v11 = vadd.f32 %v21202_v18, %v26064_v0  ;;  %14127 = vmatpush1.bf16.msra.mxu0 %v23941_v12  ;;  %v23964_v0 = vld [vmem:[#allocation31 + $0xd6c] ss:$16 sps:$4 sm:$0xff]   ;;  %v23988_v18 = vld [vmem:[#allocation37 + $0x1cfc] ss:$36 sps:$4 sm:$0xff]  }
 0xb7d   :  { %v14203_v3 = vpop.f32.mrf.mxu1  ;;  %v21204_v21 = vpop.f32.mrf.mxu0  ;;  %14128 = vmatprep.subr.bf16.mxu0 %v23949_v43  ;;  %v23977_v12 = vld [vmem:[#allocation37 + $0x1688] ss:$36 sps:$4 sm:$0xff]   ;;  %v23980_v43 = vld [vmem:[#allocation31 + $0xd08] ss:$16 sps:$4 sm:$0xff]  }
 0xb7e   :  { %15295 = vmatpush2.bf16.msra.mxu1 %v23944_v36  ;;  %v23983_v36 = vld [vmem:[#allocation37 + $0x1ac0] ss:$36 sps:$4 sm:$0xff]   ;;  %v23989_v3 = vld [vmem:[#allocation37 + $0x1a78] ss:$36 sps:$4 sm:$0xff]  }
 0xb7f   :  { %v14204_v33 = vpop.f32.mrf.mxu1  ;;  %15296 = vmatprep.subr.bf16.mxu1 %v23952_v27  ;;  %v23991_v62 = vld [vmem:[#allocation37 + $0x1a7c] ss:$36 sps:$4 sm:$0xff]   ;;  %v23997_v21 = vld [vmem:[#allocation37 + $0x1a34] ss:$36 sps:$4 sm:$0xff]  }
 0xb80   :  { %14129 = vmatpush1.bf16.msra.mxu0 %v23947_v46  ;;  %v23986_v27 = vld [vmem:[#allocation37 + $0x1cf8] ss:$36 sps:$4 sm:$0xff]   ;;  %v23995_v33 = vld [vmem:[#allocation37 + $0x1a30] ss:$36 sps:$4 sm:$0xff]  }
 0xb81   :  { %14130 = vmatprep.subr.bf16.mxu0 %v23955_v39  ;;  %v23994_v46 = vld [vmem:[#allocation37 + $0x1cb4] ss:$36 sps:$4 sm:$0xff]  }
 0xb82   :  { %15297 = vmatpush2.bf16.msra.mxu1 %v23950_v41  ;;  %v23992_v39 = vld [vmem:[#allocation37 + $0x1cb0] ss:$36 sps:$4 sm:$0xff]  }
 0xb83   :  { %15298 = vmatprep.subr.bf16.mxu1 %v23958_v28  ;;  %v24000_v41 = vld [vmem:[#allocation37 + $0x1c6c] ss:$36 sps:$4 sm:$0xff]  }
 0xb84   :  { %14131 = vmatpush1.bf16.msra.mxu0 %v23953_v9  ;;  %v24003_v28 = vld [vmem:[#allocation37 + $0x19ec] ss:$36 sps:$4 sm:$0xff]  }
 0xb85   :  { %14132 = vmatprep.subr.bf16.mxu0 %v23961_v60  ;;  %v23998_v9 = vld [vmem:[#allocation37 + $0x1c68] ss:$36 sps:$4 sm:$0xff]  }
 0xb86   :  { %15299 = vmatpush2.bf16.msra.mxu1 %v23956_v53  ;;  %v24006_v60 = vld [vmem:[#allocation37 + $0x1c24] ss:$36 sps:$4 sm:$0xff]  }
 0xb87   :  { %15300 = vmatprep.subr.bf16.mxu1 %v23964_v0  ;;  %v24001_v53 = vld [vmem:[#allocation37 + $0x19e8] ss:$36 sps:$4 sm:$0xff]  }
 0xb88   :  { %14133 = vmatpush1.bf16.msra.mxu0 %v23959_v16  ;;  %v24009_v0 = vld [vmem:[#allocation37 + $0x19a4] ss:$36 sps:$4 sm:$0xff]  }
 0xb89   :  { %14134 = vmatprep.subr.bf16.mxu0 %v23967_v29  ;;  %v24004_v16 = vld [vmem:[#allocation37 + $0x1c20] ss:$36 sps:$4 sm:$0xff]  }
 0xb8a   :  { %15301 = vmatpush2.bf16.msra.mxu1 %v23962_v50  ;;  %v24012_v29 = vld [vmem:[#allocation37 + $0x1bdc] ss:$36 sps:$4 sm:$0xff]  }
 0xb8b   :  { %15302 = vmatprep.subr.bf16.mxu1 %v23970_v15  ;;  %v24007_v50 = vld [vmem:[#allocation37 + $0x19a0] ss:$36 sps:$4 sm:$0xff]  }
 0xb8c   :  { %14135 = vmatpush1.bf16.msra.mxu0 %v23965_v52  ;;  %v24015_v15 = vld [vmem:[#allocation37 + $0x195c] ss:$36 sps:$4 sm:$0xff]  }
 0xb8d   :  { %14136 = vmatprep.subr.bf16.mxu0 %v23973_v25  ;;  %v24010_v52 = vld [vmem:[#allocation37 + $0x1bd8] ss:$36 sps:$4 sm:$0xff]  }
 0xb8e   :  { %15303 = vmatpush2.bf16.msra.mxu1 %v23968_v38  ;;  %v24018_v25 = vld [vmem:[#allocation37 + $0x1b94] ss:$36 sps:$4 sm:$0xff]  }
 0xb8f   :  { %15304 = vmatprep.subr.bf16.mxu1 %v23976_v8  ;;  %v24013_v38 = vld [vmem:[#allocation37 + $0x1958] ss:$36 sps:$4 sm:$0xff]  }
 0xb90   :  { %14137 = vmatpush1.bf16.msra.mxu0 %v23971_v47  ;;  %v24021_v8 = vld [vmem:[#allocation37 + $0x1914] ss:$36 sps:$4 sm:$0xff]  }
 0xb91   :  { %14138 = vmatprep.subr.bf16.mxu0 %v23979_v19  ;;  %v24016_v47 = vld [vmem:[#allocation37 + $0x1b90] ss:$36 sps:$4 sm:$0xff]  }
 0xb92   :  { %15305 = vmatpush2.bf16.msra.mxu1 %v23974_v14  ;;  %v24024_v19 = vld [vmem:[#allocation37 + $0x1b4c] ss:$36 sps:$4 sm:$0xff]  }
 0xb93   :  { %15306 = vmatprep.subr.bf16.mxu1 %v23982_v20  ;;  %v24019_v14 = vld [vmem:[#allocation37 + $0x1910] ss:$36 sps:$4 sm:$0xff]  }
 0xb94   :  { %14139 = vmatpush1.bf16.msra.mxu0 %v23977_v12  ;;  %v24027_v20 = vld [vmem:[#allocation37 + $0x18cc] ss:$36 sps:$4 sm:$0xff]  }
 0xb95   :  { %14140 = vmatprep.subr.bf16.mxu0 %v23985_v17  ;;  %v24022_v12 = vld [vmem:[#allocation37 + $0x1b48] ss:$36 sps:$4 sm:$0xff]  }
 0xb96   :  { %15307 = vmatpush2.bf16.msra.mxu1 %v23980_v43  ;;  %v24030_v17 = vld [vmem:[#allocation37 + $0x1b04] ss:$36 sps:$4 sm:$0xff]  }
 0xb97   :  { %17154 = vmatprep.subr.bf16.mxu1 %v23988_v18  ;;  %v24025_v43 = vld [vmem:[#allocation37 + $0x18c8] ss:$36 sps:$4 sm:$0xff]  }
 0xb98   :  { %14141 = vmatpush2.bf16.msra.mxu0 %v23983_v36  ;;  %v24033_v18 = vld [vmem:[#allocation37 + $0x188c] ss:$36 sps:$4 sm:$0xff]   ;;  %v24028_v36 = vld [vmem:[#allocation37 + $0x1b00] ss:$36 sps:$4 sm:$0xff]  }
 0xb99   :  { %15309 = vmatmul.mubr.bf16.vlgmr.msra.gmra.mxu1 %v26126_v24  ;;  %14142 = vmatprep.subr.bf16.mxu0 %v23991_v62  ;;  %v24036_v62 = vld [vmem:[#allocation37 + $0x1f3c] ss:$36 sps:$4 sm:$0xff]  }
 0xb9a   :  { %17155 = vmatpush1.bf16.msra.mxu1 %v23986_v27  ;;  %17186 = vmatprep.mubr.bf16.mxu1 %v26112_v42  ;;  %v24031_v27 = vld [vmem:[#allocation37 + $0x1888] ss:$36 sps:$4 sm:$0xff]  }
 0xb9b   :  { %17156 = vmatprep.subr.bf16.mxu1 %v23994_v46  ;;  %v24039_v46 = vld [vmem:[#allocation37 + $0x1844] ss:$36 sps:$4 sm:$0xff]  }
 0xb9c   :  { %14143 = vmatpush2.bf16.msra.mxu0 %v23989_v3  ;;  %v24034_v3 = vld [vmem:[#allocation37 + $0x1f38] ss:$36 sps:$4 sm:$0xff]  }
 0xb9d   :  { %14144 = vmatprep.subr.bf16.mxu0 %v23997_v21 }
 0xb9e   :  { %17157 = vmatpush1.bf16.msra.mxu1 %v23992_v39  ;;  %v24042_v39 = vld [vmem:[#allocation37 + $0x1ef4] ss:$36 sps:$4 sm:$0xff]  }
 0xb9f   :  { %17158 = vmatprep.subr.bf16.mxu1 %v24000_v41 }
 0xba0   :  { %14145 = vmatpush2.bf16.msra.mxu0 %v23995_v33  ;;  %v24037_v33 = vld [vmem:[#allocation37 + $0x1840] ss:$36 sps:$4 sm:$0xff]  }
 0xba1   :  { %14146 = vmatprep.subr.bf16.mxu0 %v24003_v28 }
 0xba2   :  { %17159 = vmatpush1.bf16.msra.mxu1 %v23998_v9 }
 0xba3   :  { %17160 = vmatprep.subr.bf16.mxu1 %v24006_v60  ;;  %v24045_v60 = vld [vmem:[#allocation37 + $0x17fc] ss:$36 sps:$4 sm:$0xff]  }
 0xba4   :  { %14147 = vmatpush2.bf16.msra.mxu0 %v24001_v53 }
 0xba5   :  { %14148 = vmatprep.subr.bf16.mxu0 %v24009_v0 }
 0xba6   :  { %17161 = vmatpush1.bf16.msra.mxu1 %v24004_v16  ;;  %v24040_v16 = vld [vmem:[#allocation37 + $0x1ef0] ss:$36 sps:$4 sm:$0xff]  }
 0xba7   :  { %17162 = vmatprep.subr.bf16.mxu1 %v24012_v29 }
 0xba8   :  { %14149 = vmatpush2.bf16.msra.mxu0 %v24007_v50 }
 0xba9   :  { %14150 = vmatprep.subr.bf16.mxu0 %v24015_v15 }
 0xbaa   :  { %17163 = vmatpush1.bf16.msra.mxu1 %v24010_v52  ;;  %v24043_v52 = vld [vmem:[#allocation37 + $0x17f8] ss:$36 sps:$4 sm:$0xff]  }
 0xbab   :  { %17164 = vmatprep.subr.bf16.mxu1 %v24018_v25 }
 0xbac   :  { %14151 = vmatpush2.bf16.msra.mxu0 %v24013_v38 }
 0xbad   :  { %14152 = vmatprep.subr.bf16.mxu0 %v24021_v8  ;;  %v24051_v8 = vld [vmem:[#allocation37 + $0x17b4] ss:$36 sps:$4 sm:$0xff]  }
 0xbae   :  { %17165 = vmatpush1.bf16.msra.mxu1 %v24016_v47 }
 0xbaf   :  { %17166 = vmatprep.subr.bf16.mxu1 %v24024_v19  ;;  %v24049_v19 = vld [vmem:[#allocation37 + $0x17b0] ss:$36 sps:$4 sm:$0xff]  }
 0xbb0   :  { %14153 = vmatpush2.bf16.msra.mxu0 %v24019_v14  ;;  %v24057_v14 = vld [vmem:[#allocation37 + $0x176c] ss:$36 sps:$4 sm:$0xff]  }
 0xbb1   :  { %14154 = vmatprep.subr.bf16.mxu0 %v24027_v20  ;;  %v24052_v20 = vld [vmem:[#allocation37 + $0x1e60] ss:$36 sps:$4 sm:$0xff]  }
 0xbb2   :  { %17167 = vmatpush1.bf16.msra.mxu1 %v24022_v12  ;;  %v24055_v12 = vld [vmem:[#allocation37 + $0x1768] ss:$36 sps:$4 sm:$0xff]  }
 0xbb3   :  { %17168 = vmatprep.subr.bf16.mxu1 %v24030_v17  ;;  %v24063_v17 = vld [vmem:[#allocation37 + $0x1724] ss:$36 sps:$4 sm:$0xff]  }
 0xbb4   :  { %14155 = vmatpush2.bf16.msra.mxu0 %v24025_v43  ;;  %v24058_v43 = vld [vmem:[#allocation37 + $0x1e18] ss:$36 sps:$4 sm:$0xff]  }
 0xbb5   :  { %14206 = vmatprep.subr.bf16.mxu0 %v24033_v18  ;;  %v24066_v18 = vld [vmem:[#allocation37 + $0x1dd4] ss:$36 sps:$4 sm:$0xff]  }
 0xbb6   :  { %17169 = vmatpush1.bf16.msra.mxu1 %v24028_v36  ;;  %v24061_v36 = vld [vmem:[#allocation37 + $0x1720] ss:$36 sps:$4 sm:$0xff]  }
 0xbb7   :  { %v12116_v21 = vpop.f32.mrf.mxu0  ;;  %14157 = vmatmul.mubr.bf16.vlgmr.msra.gmra.mxu0 %v26098_v51  ;;  %17170 = vmatprep.subr.bf16.mxu1 %v24036_v62  ;;  %v24069_v62 = vld [vmem:[#allocation37 + $0x16dc] ss:$36 sps:$4 sm:$0xff]  }
 0xbb8   :  { %v12117_v41 = vadd.f32 %v12116_v21, %v26066_v31  ;;  %14207 = vmatpush1.bf16.msra.mxu0 %v24031_v27  ;;  %14238 = vmatprep.mubr.bf16.mxu0 %v26081_v30  ;;  %v24048_v31 = vld [vmem:[#allocation37 + $0x1eac] ss:$36 sps:$4 sm:$0xff]   ;;  %v24075_v21 = vld [vmem:[#allocation37 + $0x1694] ss:$36 sps:$4 sm:$0xff]  }
 0xbb9   :  { %v26150_v28 = vpop.f32.mrf.mxu1  ;;  %v12118_v9 = vpop.f32.mrf.mxu0  ;;  %14208 = vmatprep.subr.bf16.mxu0 %v24039_v46  ;;  %v24064_v27 = vld [vmem:[#allocation37 + $0x1dd0] ss:$36 sps:$4 sm:$0xff]  }
 0xbba   :  { %v26153_v53 = vadd.f32 %v12117_v41, %v25960_v37  ;;  %v12119_v0 = vadd.f32 %v12118_v9, %v26070_v10  ;;  %17171 = vmatpush2.bf16.msra.mxu1 %v24034_v3  ;;  %v24046_v37 = vld [vmem:[#allocation37 + $0x1ea8] ss:$36 sps:$4 sm:$0xff]   ;;  %v24067_v3 = vld [vmem:[#allocation37 + $0x16d8] ss:$36 sps:$4 sm:$0xff]  }
 0xbbb   :  { %v26156_v29 = vpop.f32.mrf.mxu1  ;;  %v12120_v50 = vpop.f32.mrf.mxu0  ;;  %17172 = vmatprep.subr.bf16.mxu1 %v24042_v39  ;;  %v24054_v10 = vld [vmem:[#allocation37 + $0x1e64] ss:$36 sps:$4 sm:$0xff]   ;;  %v24072_v46 = vld [vmem:[#allocation37 + $0x1d8c] ss:$36 sps:$4 sm:$0xff]  }
 0xbbc   :  { %v26159_v15 = vadd.f32 %v12119_v0, %v25966_v49  ;;  %14209 = vmatpush1.bf16.msra.mxu0 %v24037_v33  ;;  %v24060_v49 = vld [vmem:[#allocation37 + $0x1e1c] ss:$36 sps:$4 sm:$0xff]   ;;  %v24070_v39 = vld [vmem:[#allocation37 + $0x1d88] ss:$36 sps:$4 sm:$0xff]   ;;  %v24073_v33 = vld [vmem:[#allocation37 + $0x1690] ss:$36 sps:$4 sm:$0xff]  }
 0xbbd   :  { %v14285_v25 = vpop.f32.mrf.mxu1  ;;  %v12121_v38 = vpop.f32.mrf.mxu0  ;;  %14210 = vmatprep.subr.bf16.mxu0 %v24045_v60  ;;  %v24078_v41 = vld [vmem:[#allocation37 + $0x1d44] ss:$36 sps:$4 sm:$0xff]   ;;  %v24081_v9 = vld [vmem:[#allocation37 + $0x1acc] ss:$36 sps:$4 sm:$0xff]  }
 0xbbe   :  { %17173 = vmatpush2.bf16.msra.mxu1 %v24040_v16  ;;  %v24076_v60 = vld [vmem:[#allocation37 + $0x1d40] ss:$36 sps:$4 sm:$0xff]   ;;  %v24079_v16 = vld [vmem:[#allocation37 + $0x1ac8] ss:$36 sps:$4 sm:$0xff]  }
 0xbbf   :  { %v14286_v47 = vpop.f32.mrf.mxu1  ;;  %17174 = vmatprep.subr.bf16.mxu1 %v24048_v31  ;;  %v24084_v0 = vld [vmem:[#allocation37 + $0x1d04] ss:$36 sps:$4 sm:$0xff]  }
 0xbc0   :  { %14211 = vmatpush1.bf16.msra.mxu0 %v24043_v52  ;;  %v24087_v50 = vld [vmem:[#allocation37 + $0x1a84] ss:$36 sps:$4 sm:$0xff]   ;;  %v24090_v52 = vld [vmem:[#allocation37 + $0x1cbc] ss:$36 sps:$4 sm:$0xff]  }
 0xbc1   :  { %14212 = vmatprep.subr.bf16.mxu0 %v24051_v8  ;;  %v24082_v31 = vld [vmem:[#allocation37 + $0x1d00] ss:$36 sps:$4 sm:$0xff]  }
 0xbc2   :  { %17175 = vmatpush2.bf16.msra.mxu1 %v24046_v37  ;;  %v24085_v25 = vld [vmem:[#allocation37 + $0x1a80] ss:$36 sps:$4 sm:$0xff]   ;;  %v24088_v37 = vld [vmem:[#allocation37 + $0x1cb8] ss:$36 sps:$4 sm:$0xff]  }
 0xbc3   :  { %17176 = vmatprep.subr.bf16.mxu1 %v24054_v10  ;;  %v24093_v8 = vld [vmem:[#allocation37 + $0x1a3c] ss:$36 sps:$4 sm:$0xff]   ;;  %v24096_v10 = vld [vmem:[#allocation37 + $0x1c74] ss:$36 sps:$4 sm:$0xff]  }
 0xbc4   :  { %14213 = vmatpush1.bf16.msra.mxu0 %v24049_v19 }
 0xbc5   :  { %14214 = vmatprep.subr.bf16.mxu0 %v24057_v14  ;;  %v24091_v14 = vld [vmem:[#allocation37 + $0x1a38] ss:$36 sps:$4 sm:$0xff]  }
 0xbc6   :  { %17177 = vmatpush2.bf16.msra.mxu1 %v24052_v20 }
 0xbc7   :  { %17178 = vmatprep.subr.bf16.mxu1 %v24060_v49  ;;  %v24099_v49 = vld [vmem:[#allocation37 + $0x19f4] ss:$36 sps:$4 sm:$0xff]  }
 0xbc8   :  { %14215 = vmatpush1.bf16.msra.mxu0 %v24055_v12  ;;  %v24094_v12 = vld [vmem:[#allocation37 + $0x1c70] ss:$36 sps:$4 sm:$0xff]  }
 0xbc9   :  { %14216 = vmatprep.subr.bf16.mxu0 %v24063_v17 }
 0xbca   :  { %17179 = vmatpush2.bf16.msra.mxu1 %v24058_v43  ;;  %v24102_v43 = vld [vmem:[#allocation37 + $0x1c2c] ss:$36 sps:$4 sm:$0xff]  }
 0xbcb   :  { %17180 = vmatprep.subr.bf16.mxu1 %v24066_v18  ;;  %v24097_v18 = vld [vmem:[#allocation37 + $0x19f0] ss:$36 sps:$4 sm:$0xff]  }
 0xbcc   :  { %14217 = vmatpush1.bf16.msra.mxu0 %v24061_v36  ;;  %v24105_v36 = vld [vmem:[#allocation37 + $0x19ac] ss:$36 sps:$4 sm:$0xff]  }
 0xbcd   :  { %14218 = vmatprep.subr.bf16.mxu0 %v24069_v62  ;;  %v24100_v62 = vld [vmem:[#allocation37 + $0x1c28] ss:$36 sps:$4 sm:$0xff]  }
 0xbce   :  { %17181 = vmatpush2.bf16.msra.mxu1 %v24064_v27  ;;  %v24108_v27 = vld [vmem:[#allocation37 + $0x1be4] ss:$36 sps:$4 sm:$0xff]  }
 0xbcf   :  { %17182 = vmatprep.subr.bf16.mxu1 %v24072_v46  ;;  %v24103_v46 = vld [vmem:[#allocation37 + $0x19a8] ss:$36 sps:$4 sm:$0xff]  }
 0xbd0   :  { %14219 = vmatpush1.bf16.msra.mxu0 %v24067_v3  ;;  %v24111_v3 = vld [vmem:[#allocation37 + $0x1964] ss:$36 sps:$4 sm:$0xff]  }
 0xbd1   :  { %14220 = vmatprep.subr.bf16.mxu0 %v24075_v21  ;;  %v24106_v21 = vld [vmem:[#allocation37 + $0x1be0] ss:$36 sps:$4 sm:$0xff]  }
 0xbd2   :  { %17183 = vmatpush2.bf16.msra.mxu1 %v24070_v39  ;;  %v24114_v39 = vld [vmem:[#allocation37 + $0x1b9c] ss:$36 sps:$4 sm:$0xff]  }
 0xbd3   :  { %17184 = vmatprep.subr.bf16.mxu1 %v24078_v41  ;;  %v24109_v41 = vld [vmem:[#allocation37 + $0x1960] ss:$36 sps:$4 sm:$0xff]  }
 0xbd4   :  { %14221 = vmatpush1.bf16.msra.mxu0 %v24073_v33  ;;  %v24117_v33 = vld [vmem:[#allocation37 + $0x191c] ss:$36 sps:$4 sm:$0xff]  }
 0xbd5   :  { %14222 = vmatprep.subr.bf16.mxu0 %v24081_v9  ;;  %v24112_v9 = vld [vmem:[#allocation37 + $0x1b98] ss:$36 sps:$4 sm:$0xff]  }
 0xbd6   :  { %17185 = vmatpush2.bf16.msra.mxu1 %v24076_v60  ;;  %v24120_v60 = vld [vmem:[#allocation37 + $0x1b54] ss:$36 sps:$4 sm:$0xff]  }
 0xbd7   :  { %17236 = vmatprep.subr.bf16.mxu1 %v24084_v0  ;;  %v24115_v0 = vld [vmem:[#allocation37 + $0x1918] ss:$36 sps:$4 sm:$0xff]  }
 0xbd8   :  { %14223 = vmatpush2.bf16.msra.mxu0 %v24079_v16  ;;  %v24123_v16 = vld [vmem:[#allocation37 + $0x18d4] ss:$36 sps:$4 sm:$0xff]  }
 0xbd9   :  { %v21222_v38 = vpop.f32.mrf.mxu1  ;;  %17187 = vmatmul.mubr.bf16.vlgmr.msra.gmra.mxu1 %v26126_v24  ;;  %14224 = vmatprep.subr.bf16.mxu0 %v24087_v50  ;;  %v24118_v50 = vld [vmem:[#allocation37 + $0x1b50] ss:$36 sps:$4 sm:$0xff]  }
 0xbda   :  { %17237 = vmatpush1.bf16.msra.mxu1 %v24082_v31  ;;  %17268 = vmatprep.mubr.bf16.mxu1 %v26112_v42  ;;  %v24126_v31 = vld [vmem:[#allocation37 + $0x1b0c] ss:$36 sps:$4 sm:$0xff]  }
 0xbdb   :  { %v21223_v47 = vpop.f32.mrf.mxu1  ;;  %17238 = vmatprep.subr.bf16.mxu1 %v24090_v52  ;;  %v24121_v52 = vld [vmem:[#allocation37 + $0x18d0] ss:$36 sps:$4 sm:$0xff]  }
 0xbdc   :  { %v26163_v19 = vadd.f32 %v21223_v47, %v21222_v38  ;;  %14225 = vmatpush2.bf16.msra.mxu0 %v24085_v25  ;;  %v24129_v25 = vld [vmem:[#allocation37 + $0x1894] ss:$36 sps:$4 sm:$0xff]   ;;  %v24124_v38 = vld [vmem:[#allocation37 + $0x1b08] ss:$36 sps:$4 sm:$0xff]  }
 0xbdd   :  { %v21225_v20 = vpop.f32.mrf.mxu1  ;;  %14226 = vmatprep.subr.bf16.mxu0 %v24093_v8  ;;  %v24132_v8 = vld [vmem:[#allocation37 + $0x1f44] ss:$36 sps:$4 sm:$0xff]   ;;  %v24135_v47 = vld [vmem:[#allocation37 + $0x184c] ss:$36 sps:$4 sm:$0xff]  }
 0xbde   :  { %17239 = vmatpush1.bf16.msra.mxu1 %v24088_v37  ;;  %v24127_v37 = vld [vmem:[#allocation37 + $0x1890] ss:$36 sps:$4 sm:$0xff]   ;;  %v24138_v20 = vld [vmem:[#allocation37 + $0x1efc] ss:$36 sps:$4 sm:$0xff]  }
 0xbdf   :  { %v21226_v17 = vpop.f32.mrf.mxu1  ;;  %17240 = vmatprep.subr.bf16.mxu1 %v24096_v10  ;;  %v24130_v10 = vld [vmem:[#allocation37 + $0x1f40] ss:$36 sps:$4 sm:$0xff]  }
 0xbe0   :  { %14227 = vmatpush2.bf16.msra.mxu0 %v24091_v14 }
 0xbe1   :  { %14228 = vmatprep.subr.bf16.mxu0 %v24099_v49 }
 0xbe2   :  { %17241 = vmatpush1.bf16.msra.mxu1 %v24094_v12  ;;  %v24133_v12 = vld [vmem:[#allocation37 + $0x1848] ss:$36 sps:$4 sm:$0xff]  }
 0xbe3   :  { %17242 = vmatprep.subr.bf16.mxu1 %v24102_v43  ;;  %v24141_v43 = vld [vmem:[#allocation37 + $0x1804] ss:$36 sps:$4 sm:$0xff]  }
 0xbe4   :  { %14229 = vmatpush2.bf16.msra.mxu0 %v24097_v18 }
 0xbe5   :  { %14230 = vmatprep.subr.bf16.mxu0 %v24105_v36 }
 0xbe6   :  { %17243 = vmatpush1.bf16.msra.mxu1 %v24100_v62  ;;  %v24136_v62 = vld [vmem:[#allocation37 + $0x1ef8] ss:$36 sps:$4 sm:$0xff]  }
 0xbe7   :  { %17244 = vmatprep.subr.bf16.mxu1 %v24108_v27 }
 0xbe8   :  { %14231 = vmatpush2.bf16.msra.mxu0 %v24103_v46  ;;  %v24144_v46 = vld [vmem:[#allocation37 + $0x1eb4] ss:$36 sps:$4 sm:$0xff]  }
 0xbe9   :  { %14232 = vmatprep.subr.bf16.mxu0 %v24111_v3 }
 0xbea   :  { %17245 = vmatpush1.bf16.msra.mxu1 %v24106_v21 }
 0xbeb   :  { %17246 = vmatprep.subr.bf16.mxu1 %v24114_v39  ;;  %v24147_v39 = vld [vmem:[#allocation37 + $0x17bc] ss:$36 sps:$4 sm:$0xff]  }
 0xbec   :  { %14233 = vmatpush2.bf16.msra.mxu0 %v24109_v41  ;;  %v24142_v41 = vld [vmem:[#allocation37 + $0x1eb0] ss:$36 sps:$4 sm:$0xff]  }
 0xbed   :  { %14234 = vmatprep.subr.bf16.mxu0 %v24117_v33  ;;  %v24145_v33 = vld [vmem:[#allocation37 + $0x17b8] ss:$36 sps:$4 sm:$0xff]  }
 0xbee   :  { %17247 = vmatpush1.bf16.msra.mxu1 %v24112_v9  ;;  %v24148_v9 = vld [vmem:[#allocation37 + $0x1e68] ss:$36 sps:$4 sm:$0xff]  }
 0xbef   :  { %17248 = vmatprep.subr.bf16.mxu1 %v24120_v60  ;;  %v24156_v60 = vld [vmem:[#allocation37 + $0x1e24] ss:$36 sps:$4 sm:$0xff]  }
 0xbf0   :  { %14235 = vmatpush2.bf16.msra.mxu0 %v24115_v0  ;;  %v24159_v0 = vld [vmem:[#allocation37 + $0x172c] ss:$36 sps:$4 sm:$0xff]  }
 0xbf1   :  { %14236 = vmatprep.subr.bf16.mxu0 %v24123_v16  ;;  %v24154_v16 = vld [vmem:[#allocation37 + $0x1e20] ss:$36 sps:$4 sm:$0xff]  }
 0xbf2   :  { %17249 = vmatpush1.bf16.msra.mxu1 %v24118_v50  ;;  %v24162_v50 = vld [vmem:[#allocation37 + $0x1ddc] ss:$36 sps:$4 sm:$0xff]  }
 0xbf3   :  { %17250 = vmatprep.subr.bf16.mxu1 %v24126_v31  ;;  %v24157_v31 = vld [vmem:[#allocation37 + $0x1728] ss:$36 sps:$4 sm:$0xff]  }
 0xbf4   :  { %14237 = vmatpush2.bf16.msra.mxu0 %v24121_v52  ;;  %v24165_v52 = vld [vmem:[#allocation37 + $0x16e4] ss:$36 sps:$4 sm:$0xff]  }
 0xbf5   :  { %14288 = vmatprep.subr.bf16.mxu0 %v24129_v25  ;;  %v24160_v25 = vld [vmem:[#allocation37 + $0x1dd8] ss:$36 sps:$4 sm:$0xff]  }
 0xbf6   :  { %17251 = vmatpush1.bf16.msra.mxu1 %v24124_v38  ;;  %v24168_v38 = vld [vmem:[#allocation37 + $0x1d94] ss:$36 sps:$4 sm:$0xff]  }
 0xbf7   :  { %v12198_v14 = vpop.f32.mrf.mxu0  ;;  %14239 = vmatmul.mubr.bf16.vlgmr.msra.gmra.mxu0 %v26098_v51  ;;  %17252 = vmatprep.subr.bf16.mxu1 %v24132_v8  ;;  %v24163_v8 = vld [vmem:[#allocation37 + $0x16e0] ss:$36 sps:$4 sm:$0xff]  }
 0xbf8   :  { %v12199_v49 = vadd.f32 %v12198_v14, %v26085_v26  ;;  %14289 = vmatpush1.bf16.msra.mxu0 %v24127_v37  ;;  %14320 = vmatprep.mubr.bf16.mxu0 %v26081_v30  ;;  %v24139_v26 = vld [vmem:[#allocation37 + $0x1800] ss:$36 sps:$4 sm:$0xff]   ;;  %v24169_v14 = vld [vmem:[#allocation37 + $0x1698] ss:$36 sps:$4 sm:$0xff]  }
 0xbf9   :  { %v12200_v17 = vpop.f32.mrf.mxu0  ;;  %14290 = vmatprep.subr.bf16.mxu0 %v24135_v47  ;;  %v24171_v37 = vld [vmem:[#allocation37 + $0x169c] ss:$36 sps:$4 sm:$0xff]   ;;  %v24166_v47 = vld [vmem:[#allocation37 + $0x1d90] ss:$36 sps:$4 sm:$0xff]  }
 0xbfa   :  { %v26169_v18 = vadd.f32 %v12199_v49, %v25980_v23  ;;  %v12201_v36 = vadd.f32 %v12200_v17, %v26089_v55  ;;  %17253 = vmatpush2.bf16.msra.mxu1 %v24130_v10  ;;  %v24150_v23 = vld [vmem:[#allocation37 + $0x1e6c] ss:$36 sps:$4 sm:$0xff]   ;;  %v24153_v55 = vld [vmem:[#allocation37 + $0x1774] ss:$36 sps:$4 sm:$0xff]  }
 0xbfb   :  { %v12202_v27 = vpop.f32.mrf.mxu0  ;;  %17254 = vmatprep.subr.bf16.mxu1 %v24138_v20  ;;  %v24174_v10 = vld [vmem:[#allocation37 + $0x1d4c] ss:$36 sps:$4 sm:$0xff]   ;;  %v24177_v20 = vld [vmem:[#allocation37 + $0x1ad4] ss:$36 sps:$4 sm:$0xff]  }
 0xbfc   :  { %v26173_v3 = vadd.f32 %v12201_v36, %v25984_v58  ;;  %14291 = vmatpush1.bf16.msra.mxu0 %v24133_v12  ;;  %v24151_v58 = vld [vmem:[#allocation37 + $0x1770] ss:$36 sps:$4 sm:$0xff]   ;;  %v24172_v49 = vld [vmem:[#allocation37 + $0x1d48] ss:$36 sps:$4 sm:$0xff]  }
 0xbfd   :  { %v12203_v21 = vpop.f32.mrf.mxu0  ;;  %14292 = vmatprep.subr.bf16.mxu0 %v24141_v43  ;;  %v24180_v12 = vld [vmem:[#allocation37 + $0x1d0c] ss:$36 sps:$4 sm:$0xff]  }
 0xbfe   :  { %17255 = vmatpush2.bf16.msra.mxu1 %v24136_v62  ;;  %v24175_v17 = vld [vmem:[#allocation37 + $0x1ad0] ss:$36 sps:$4 sm:$0xff]   ;;  %v24178_v36 = vld [vmem:[#allocation37 + $0x1d08] ss:$36 sps:$4 sm:$0xff]   ;;  %v24184_v21 = vld [vmem:[#allocation37 + $0x1cc0] ss:$36 sps:$4 sm:$0xff]  }
 0xbff   :  { %17256 = vmatprep.subr.bf16.mxu1 %v24144_v46  ;;  %v24183_v43 = vld [vmem:[#allocation37 + $0x1a8c] ss:$36 sps:$4 sm:$0xff]   ;;  %v24186_v62 = vld [vmem:[#allocation37 + $0x1cc4] ss:$36 sps:$4 sm:$0xff]  }
 0xc00   :  { %14293 = vmatpush1.bf16.msra.mxu0 %v24139_v26  ;;  %v24181_v27 = vld [vmem:[#allocation37 + $0x1a88] ss:$36 sps:$4 sm:$0xff]  }
 0xc01   :  { %14294 = vmatprep.subr.bf16.mxu0 %v24147_v39  ;;  %v24189_v26 = vld [vmem:[#allocation37 + $0x1a44] ss:$36 sps:$4 sm:$0xff]  }
 0xc02   :  { %17257 = vmatpush2.bf16.msra.mxu1 %v24142_v41  ;;  %v24192_v41 = vld [vmem:[#allocation37 + $0x1c7c] ss:$36 sps:$4 sm:$0xff]  }
 0xc03   :  { %17258 = vmatprep.subr.bf16.mxu1 %v24150_v23  ;;  %v24187_v23 = vld [vmem:[#allocation37 + $0x1a40] ss:$36 sps:$4 sm:$0xff]  }
 0xc04   :  { %14295 = vmatpush1.bf16.msra.mxu0 %v24145_v33 }
 0xc05   :  { %14296 = vmatprep.subr.bf16.mxu0 %v24153_v55  ;;  %v24195_v55 = vld [vmem:[#allocation37 + $0x19fc] ss:$36 sps:$4 sm:$0xff]  }
 0xc06   :  { %17259 = vmatpush2.bf16.msra.mxu1 %v24148_v9  ;;  %v24190_v9 = vld [vmem:[#allocation37 + $0x1c78] ss:$36 sps:$4 sm:$0xff]  }
 0xc07   :  { %17260 = vmatprep.subr.bf16.mxu1 %v24156_v60 }
 0xc08   :  { %14297 = vmatpush1.bf16.msra.mxu0 %v24151_v58  ;;  %v24198_v58 = vld [vmem:[#allocation37 + $0x1c34] ss:$36 sps:$4 sm:$0xff]  }
 0xc09   :  { %14298 = vmatprep.subr.bf16.mxu0 %v24159_v0  ;;  %v24193_v0 = vld [vmem:[#allocation37 + $0x19f8] ss:$36 sps:$4 sm:$0xff]  }
 0xc0a   :  { %17261 = vmatpush2.bf16.msra.mxu1 %v24154_v16  ;;  %v24201_v16 = vld [vmem:[#allocation37 + $0x19b4] ss:$36 sps:$4 sm:$0xff]  }
 0xc0b   :  { %17262 = vmatprep.subr.bf16.mxu1 %v24162_v50  ;;  %v24196_v50 = vld [vmem:[#allocation37 + $0x1c30] ss:$36 sps:$4 sm:$0xff]  }
 0xc0c   :  { %14299 = vmatpush1.bf16.msra.mxu0 %v24157_v31  ;;  %v24204_v31 = vld [vmem:[#allocation37 + $0x1bec] ss:$36 sps:$4 sm:$0xff]  }
 0xc0d   :  { %14300 = vmatprep.subr.bf16.mxu0 %v24165_v52  ;;  %v24199_v52 = vld [vmem:[#allocation37 + $0x19b0] ss:$36 sps:$4 sm:$0xff]  }
 0xc0e   :  { %17263 = vmatpush2.bf16.msra.mxu1 %v24160_v25  ;;  %v24207_v25 = vld [vmem:[#allocation37 + $0x196c] ss:$36 sps:$4 sm:$0xff]  }
 0xc0f   :  { %17264 = vmatprep.subr.bf16.mxu1 %v24168_v38  ;;  %v24202_v38 = vld [vmem:[#allocation37 + $0x1be8] ss:$36 sps:$4 sm:$0xff]  }
 0xc10   :  { %14301 = vmatpush1.bf16.msra.mxu0 %v24163_v8  ;;  %v24210_v8 = vld [vmem:[#allocation37 + $0x1ba4] ss:$36 sps:$4 sm:$0xff]  }
 0xc11   :  { %14302 = vmatprep.subr.bf16.mxu0 %v24171_v37  ;;  %v24205_v37 = vld [vmem:[#allocation37 + $0x1968] ss:$36 sps:$4 sm:$0xff]  }
 0xc12   :  { %17265 = vmatpush2.bf16.msra.mxu1 %v24166_v47  ;;  %v24213_v47 = vld [vmem:[#allocation37 + $0x1924] ss:$36 sps:$4 sm:$0xff]  }
 0xc13   :  { %17266 = vmatprep.subr.bf16.mxu1 %v24174_v10  ;;  %v24208_v10 = vld [vmem:[#allocation37 + $0x1ba0] ss:$36 sps:$4 sm:$0xff]  }
 0xc14   :  { %14303 = vmatpush1.bf16.msra.mxu0 %v24169_v14  ;;  %v24216_v14 = vld [vmem:[#allocation37 + $0x1b5c] ss:$36 sps:$4 sm:$0xff]  }
 0xc15   :  { %14304 = vmatprep.subr.bf16.mxu0 %v24177_v20  ;;  %v24211_v20 = vld [vmem:[#allocation37 + $0x1920] ss:$36 sps:$4 sm:$0xff]  }
 0xc16   :  { %17267 = vmatpush2.bf16.msra.mxu1 %v24172_v49  ;;  %v24219_v49 = vld [vmem:[#allocation37 + $0x18dc] ss:$36 sps:$4 sm:$0xff]  }
 0xc17   :  { %17318 = vmatprep.subr.bf16.mxu1 %v24180_v12  ;;  %v24214_v12 = vld [vmem:[#allocation37 + $0x1b58] ss:$36 sps:$4 sm:$0xff]  }
 0xc18   :  { %14305 = vmatpush2.bf16.msra.mxu0 %v24175_v17  ;;  %v24222_v17 = vld [vmem:[#allocation37 + $0x1b14] ss:$36 sps:$4 sm:$0xff]  }
 0xc19   :  { %v26175_v46 = vpop.f32.mrf.mxu1  ;;  %17269 = vmatmul.mubr.bf16.vlgmr.msra.gmra.mxu1 %v26126_v24  ;;  %14306 = vmatprep.subr.bf16.mxu0 %v24183_v43  ;;  %v24217_v43 = vld [vmem:[#allocation37 + $0x18d8] ss:$36 sps:$4 sm:$0xff]  }
 0xc1a   :  { %17319 = vmatpush1.bf16.msra.mxu1 %v24178_v36  ;;  %17350 = vmatprep.mubr.bf16.mxu1 %v26112_v42  ;;  %v24223_v36 = vld [vmem:[#allocation37 + $0x1ad8] ss:$36 sps:$4 sm:$0xff]  }
 0xc1b   :  { %v26179_v39 = vpop.f32.mrf.mxu1  ;;  %17320 = vmatprep.subr.bf16.mxu1 %v24186_v62  ;;  %v24220_v62 = vld [vmem:[#allocation37 + $0x1b10] ss:$36 sps:$4 sm:$0xff]  }
 0xc1c   :  { %14307 = vmatpush2.bf16.msra.mxu0 %v24181_v27  ;;  %v24227_v27 = vld [vmem:[#allocation37 + $0x1f4c] ss:$36 sps:$4 sm:$0xff]  }
 0xc1d   :  { %v15232_v33 = vpop.f32.mrf.mxu1  ;;  %14308 = vmatprep.subr.bf16.mxu0 %v24189_v26  ;;  %v24224_v26 = vld [vmem:[#allocation37 + $0x1898] ss:$36 sps:$4 sm:$0xff]  }
 0xc1e   :  { %17321 = vmatpush1.bf16.msra.mxu1 %v24184_v21  ;;  %v24228_v21 = vld [vmem:[#allocation37 + $0x1a90] ss:$36 sps:$4 sm:$0xff]   ;;  %v24232_v33 = vld [vmem:[#allocation37 + $0x1f04] ss:$36 sps:$4 sm:$0xff]  }
 0xc1f   :  { %v15233_v60 = vpop.f32.mrf.mxu1  ;;  %17322 = vmatprep.subr.bf16.mxu1 %v24192_v41  ;;  %v24225_v41 = vld [vmem:[#allocation37 + $0x1f48] ss:$36 sps:$4 sm:$0xff]  }
 0xc20   :  { %14309 = vmatpush2.bf16.msra.mxu0 %v24187_v23 }
 0xc21   :  { %14310 = vmatprep.subr.bf16.mxu0 %v24195_v55 }
 0xc22   :  { %17323 = vmatpush1.bf16.msra.mxu1 %v24190_v9  ;;  %v24229_v9 = vld [vmem:[#allocation37 + $0x1850] ss:$36 sps:$4 sm:$0xff]  }
 0xc23   :  { %17324 = vmatprep.subr.bf16.mxu1 %v24198_v58  ;;  %v24233_v58 = vld [vmem:[#allocation37 + $0x1a48] ss:$36 sps:$4 sm:$0xff]  }
 0xc24   :  { %14311 = vmatpush2.bf16.msra.mxu0 %v24193_v0 }
 0xc25   :  { %14312 = vmatprep.subr.bf16.mxu0 %v24201_v16 }
 0xc26   :  { %17325 = vmatpush1.bf16.msra.mxu1 %v24196_v50  ;;  %v24230_v50 = vld [vmem:[#allocation37 + $0x1f00] ss:$36 sps:$4 sm:$0xff]  }
 0xc27   :  { %17326 = vmatprep.subr.bf16.mxu1 %v24204_v31 }
 0xc28   :  { %14313 = vmatpush2.bf16.msra.mxu0 %v24199_v52  ;;  %v24237_v52 = vld [vmem:[#allocation37 + $0x1ebc] ss:$36 sps:$4 sm:$0xff]  }
 0xc29   :  { %14314 = vmatprep.subr.bf16.mxu0 %v24207_v25 }
 0xc2a   :  { %17327 = vmatpush1.bf16.msra.mxu1 %v24202_v38  ;;  %v24238_v38 = vld [vmem:[#allocation37 + $0x1a00] ss:$36 sps:$4 sm:$0xff]  }
 0xc2b   :  { %17328 = vmatprep.subr.bf16.mxu1 %v24210_v8  ;;  %v24235_v8 = vld [vmem:[#allocation37 + $0x1eb8] ss:$36 sps:$4 sm:$0xff]  }
 0xc2c   :  { %14315 = vmatpush2.bf16.msra.mxu0 %v24205_v37  ;;  %v24239_v37 = vld [vmem:[#allocation37 + $0x17c0] ss:$36 sps:$4 sm:$0xff]  }
 0xc2d   :  { %14316 = vmatprep.subr.bf16.mxu0 %v24213_v47  ;;  %v24240_v47 = vld [vmem:[#allocation37 + $0x1e70] ss:$36 sps:$4 sm:$0xff]  }
 0xc2e   :  { %17329 = vmatpush1.bf16.msra.mxu1 %v24208_v10  ;;  %v24247_v10 = vld [vmem:[#allocation37 + $0x1e2c] ss:$36 sps:$4 sm:$0xff]  }
 0xc2f   :  { %17330 = vmatprep.subr.bf16.mxu1 %v24216_v14  ;;  %v24248_v14 = vld [vmem:[#allocation37 + $0x1970] ss:$36 sps:$4 sm:$0xff]  }
 0xc30   :  { %14317 = vmatpush2.bf16.msra.mxu0 %v24211_v20  ;;  %v24245_v20 = vld [vmem:[#allocation37 + $0x1e28] ss:$36 sps:$4 sm:$0xff]  }
 0xc31   :  { %14318 = vmatprep.subr.bf16.mxu0 %v24219_v49  ;;  %v24252_v49 = vld [vmem:[#allocation37 + $0x1de4] ss:$36 sps:$4 sm:$0xff]  }
 0xc32   :  { %17331 = vmatpush1.bf16.msra.mxu1 %v24214_v12  ;;  %v24249_v12 = vld [vmem:[#allocation37 + $0x1730] ss:$36 sps:$4 sm:$0xff]  }
 0xc33   :  { %17332 = vmatprep.subr.bf16.mxu1 %v24222_v17  ;;  %v24253_v17 = vld [vmem:[#allocation37 + $0x1928] ss:$36 sps:$4 sm:$0xff]  }
 0xc34   :  { %14319 = vmatpush2.bf16.msra.mxu0 %v24217_v43  ;;  %v24250_v43 = vld [vmem:[#allocation37 + $0x1de0] ss:$36 sps:$4 sm:$0xff]  }
 0xc35   :  { %21228 = vmatprep.subr.bf16.mxu0 %v24223_v36  ;;  %v24257_v36 = vld [vmem:[#allocation37 + $0x1d9c] ss:$36 sps:$4 sm:$0xff]  }
 0xc36   :  { %17333 = vmatpush1.bf16.msra.mxu1 %v24220_v62  ;;  %v24254_v62 = vld [vmem:[#allocation37 + $0x16e8] ss:$36 sps:$4 sm:$0xff]  }
 0xc37   :  { %v14076_v23 = vpop.f32.mrf.mxu0  ;;  %14321 = vmatmul.mubr.bf16.vlgmr.msra.gmra.mxu0 %v26098_v51  ;;  %17334 = vmatprep.subr.bf16.mxu1 %v24227_v27  ;;  %v24258_v27 = vld [vmem:[#allocation37 + $0x18e0] ss:$36 sps:$4 sm:$0xff]  }
 0xc38   :  { %v14077_v55 = vadd.f32 %v14076_v23, %v26102_v45  ;;  %21229 = vmatpush3.bf16.msra.mxu0 %v24224_v26  ;;  %14401 = vmatprep.mubr.bf16.mxu0 %v26081_v30  ;;  %v24234_v45 = vld [vmem:[#allocation37 + $0x1808] ss:$36 sps:$4 sm:$0xff]   ;;  %v24255_v26 = vld [vmem:[#allocation37 + $0x1d98] ss:$36 sps:$4 sm:$0xff]  }
 0xc39   :  { %v14078_v60 = vpop.f32.mrf.mxu0  ;;  %21230 = vmatprep.subr.bf16.mxu0 %v24228_v21  ;;  %v24262_v21 = vld [vmem:[#allocation37 + $0x1d54] ss:$36 sps:$4 sm:$0xff]   ;;  %v24265_v23 = vld [vmem:[#allocation31 + $0xee4] ss:$16 sps:$4 sm:$0xff]  }
 0xc3a   :  { %v26185_v0 = vadd.f32 %v14077_v55, %v26074_v34  ;;  %v14079_v16 = vadd.f32 %v14078_v60, %v26106_v5  ;;  %17335 = vmatpush2.bf16.msra.mxu1 %v24225_v41  ;;  %v24242_v34 = vld [vmem:[#allocation37 + $0x1e74] ss:$36 sps:$4 sm:$0xff]   ;;  %v24259_v41 = vld [vmem:[#allocation37 + $0x16a0] ss:$36 sps:$4 sm:$0xff]  }
 0xc3b   :  { %v14080_v31 = vpop.f32.mrf.mxu0  ;;  %17336 = vmatprep.subr.bf16.mxu1 %v24232_v33  ;;  %v24243_v5 = vld [vmem:[#allocation37 + $0x19b8] ss:$36 sps:$4 sm:$0xff]   ;;  %v24260_v33 = vld [vmem:[#allocation37 + $0x1d50] ss:$36 sps:$4 sm:$0xff]  }
 0xc3c   :  { %v26189_v25 = vadd.f32 %v14079_v16, %v26078_v2  ;;  %21231 = vmatpush3.bf16.msra.mxu0 %v24229_v9  ;;  %v24244_v2 = vld [vmem:[#allocation37 + $0x1778] ss:$36 sps:$4 sm:$0xff]   ;;  %v24266_v16 = vld [vmem:[#allocation37 + $0x1d10] ss:$36 sps:$4 sm:$0xff]  }
 0xc3d   :  { %v14081_v30 = vpop.f32.mrf.mxu0  ;;  %21232 = vmatprep.subr.bf16.mxu0 %v24233_v58  ;;  %v24268_v55 = vld [vmem:[#allocation37 + $0x1d14] ss:$36 sps:$4 sm:$0xff]   ;;  %v24271_v60 = vld [vmem:[#allocation31 + $0xec4] ss:$16 sps:$4 sm:$0xff]   ;;  %v26192_v58 = vrot.slane %v25808_v57, 3 }
 0xc3e   :  { %17337 = vmatpush2.bf16.msra.mxu1 %v24230_v50  ;;  %v24263_v9 = vld [vmem:[#allocation31 + $0xee0] ss:$16 sps:$4 sm:$0xff]  }
 0xc3f   :  { %17338 = vmatprep.subr.bf16.mxu1 %v24237_v52  ;;  %v24274_v50 = vld [vmem:[#allocation37 + $0x1ccc] ss:$36 sps:$4 sm:$0xff]  }
 0xc40   :  { %21233 = vmatpush3.bf16.msra.mxu0 %v24234_v45  ;;  %v24269_v31 = vld [vmem:[#allocation31 + $0xec0] ss:$16 sps:$4 sm:$0xff]   ;;  %v24277_v45 = vld [vmem:[#allocation31 + $0xea4] ss:$16 sps:$4 sm:$0xff]  }
 0xc41   :  { %21234 = vmatprep.subr.bf16.mxu0 %v24238_v38  ;;  %v24272_v57 = vld [vmem:[#allocation37 + $0x1cc8] ss:$36 sps:$4 sm:$0xff]  }
 0xc42   :  { %17339 = vmatpush2.bf16.msra.mxu1 %v24235_v8  ;;  %v24275_v38 = vld [vmem:[#allocation31 + $0xea0] ss:$16 sps:$4 sm:$0xff]  }
 0xc43   :  { %17340 = vmatprep.subr.bf16.mxu1 %v24242_v34  ;;  %v24283_v34 = vld [vmem:[#allocation31 + $0xe84] ss:$16 sps:$4 sm:$0xff]  }
 0xc44   :  { %21235 = vmatpush3.bf16.msra.mxu0 %v24239_v37  ;;  %v24278_v37 = vld [vmem:[#allocation37 + $0x1c80] ss:$36 sps:$4 sm:$0xff]  }
 0xc45   :  { %21236 = vmatprep.subr.bf16.mxu0 %v24243_v5 }
 0xc46   :  { %17341 = vmatpush2.bf16.msra.mxu1 %v24240_v47  ;;  %v24286_v47 = vld [vmem:[#allocation37 + $0x1c3c] ss:$36 sps:$4 sm:$0xff]  }
 0xc47   :  { %17342 = vmatprep.subr.bf16.mxu1 %v24247_v10  ;;  %v24281_v10 = vld [vmem:[#allocation31 + $0xe80] ss:$16 sps:$4 sm:$0xff]  }
 0xc48   :  { %21237 = vmatpush3.bf16.msra.mxu0 %v24244_v2  ;;  %v24289_v2 = vld [vmem:[#allocation31 + $0xe64] ss:$16 sps:$4 sm:$0xff]  }
 0xc49   :  { %21238 = vmatprep.subr.bf16.mxu0 %v24248_v14  ;;  %v24284_v14 = vld [vmem:[#allocation37 + $0x1c38] ss:$36 sps:$4 sm:$0xff]  }
 0xc4a   :  { %17343 = vmatpush2.bf16.msra.mxu1 %v24245_v20  ;;  %v24292_v20 = vld [vmem:[#allocation37 + $0x1bf4] ss:$36 sps:$4 sm:$0xff]  }
 0xc4b   :  { %17344 = vmatprep.subr.bf16.mxu1 %v24252_v49  ;;  %v24287_v49 = vld [vmem:[#allocation31 + $0xe60] ss:$16 sps:$4 sm:$0xff]  }
 0xc4c   :  { %21239 = vmatpush3.bf16.msra.mxu0 %v24249_v12  ;;  %v24295_v12 = vld [vmem:[#allocation31 + $0xe44] ss:$16 sps:$4 sm:$0xff]  }
 0xc4d   :  { %21240 = vmatprep.subr.bf16.mxu0 %v24253_v17  ;;  %v24290_v17 = vld [vmem:[#allocation37 + $0x1bf0] ss:$36 sps:$4 sm:$0xff]  }
 0xc4e   :  { %17345 = vmatpush2.bf16.msra.mxu1 %v24250_v43  ;;  %v24298_v43 = vld [vmem:[#allocation37 + $0x1bac] ss:$36 sps:$4 sm:$0xff]  }
 0xc4f   :  { %17346 = vmatprep.subr.bf16.mxu1 %v24257_v36  ;;  %v24293_v36 = vld [vmem:[#allocation31 + $0xe40] ss:$16 sps:$4 sm:$0xff]  }
 0xc50   :  { %21241 = vmatpush3.bf16.msra.mxu0 %v24254_v62  ;;  %v24301_v62 = vld [vmem:[#allocation31 + $0xe24] ss:$16 sps:$4 sm:$0xff]  }
 0xc51   :  { %21242 = vmatprep.subr.bf16.mxu0 %v24258_v27  ;;  %v24296_v27 = vld [vmem:[#allocation37 + $0x1ba8] ss:$36 sps:$4 sm:$0xff]  }
 0xc52   :  { %17347 = vmatpush2.bf16.msra.mxu1 %v24255_v26  ;;  %v24304_v26 = vld [vmem:[#allocation37 + $0x1b64] ss:$36 sps:$4 sm:$0xff]  }
 0xc53   :  { %17348 = vmatprep.subr.bf16.mxu1 %v24262_v21  ;;  %v24299_v21 = vld [vmem:[#allocation31 + $0xe20] ss:$16 sps:$4 sm:$0xff]  }
 0xc54   :  { %21243 = vmatpush3.bf16.msra.mxu0 %v24259_v41  ;;  %v24307_v41 = vld [vmem:[#allocation31 + $0xe04] ss:$16 sps:$4 sm:$0xff]  }
 0xc55   :  { %15235 = vmatprep.subr.bf16.mxu0 %v24265_v23  ;;  %v24302_v23 = vld [vmem:[#allocation37 + $0x1b60] ss:$36 sps:$4 sm:$0xff]  }
 0xc56   :  { %17349 = vmatpush2.bf16.msra.mxu1 %v24260_v33  ;;  %v24310_v33 = vld [vmem:[#allocation37 + $0x1b1c] ss:$36 sps:$4 sm:$0xff]  }
 0xc57   :  { %14402 = vmatmul.mubr.bf16.vlgmr.msra.gmra.mxu0 %v26098_v51  ;;  %17400 = vmatprep.subr.bf16.mxu1 %v24268_v55  ;;  %v24280_v51 = vld [vmem:[#allocation37 + $0x1c84] ss:$36 sps:$4 sm:$0xff]  }
 0xc58   :  { %15236 = vmatpush1.bf16.msra.mxu0 %v24263_v9  ;;  %15267 = vmatprep.mubr.bf16.mxu0 %v26192_v58  ;;  %v24305_v55 = vld [vmem:[#allocation31 + $0xe00] ss:$16 sps:$4 sm:$0xff]   ;;  %v24313_v9 = vld [vmem:[#allocation31 + $0xfe4] ss:$16 sps:$4 sm:$0xff]  }
 0xc59   :  { %v26196_v52 = vpop.f32.mrf.mxu1  ;;  %17351 = vmatmul.mubr.bf16.vlgmr.msra.gmra.mxu1 %v26126_v24  ;;  %15237 = vmatprep.subr.bf16.mxu0 %v24271_v60  ;;  %v24308_v60 = vld [vmem:[#allocation37 + $0x1b18] ss:$36 sps:$4 sm:$0xff]  }
 0xc5a   :  { %17401 = vmatpush1.bf16.msra.mxu1 %v24266_v16  ;;  %17432 = vmatprep.mubr.bf16.mxu1 %v26112_v42  ;;  %v24316_v16 = vld [vmem:[#allocation37 + $0x1f54] ss:$36 sps:$4 sm:$0xff]  }
 0xc5b   :  { %v26200_v30 = vpop.f32.mrf.mxu1  ;;  %17402 = vmatprep.subr.bf16.mxu1 %v24274_v50  ;;  %v24311_v50 = vld [vmem:[#allocation31 + $0xfe0] ss:$16 sps:$4 sm:$0xff]  }
 0xc5c   :  { %15238 = vmatpush1.bf16.msra.mxu0 %v24269_v31  ;;  %v24319_v31 = vld [vmem:[#allocation31 + $0xfc4] ss:$16 sps:$4 sm:$0xff]  }
 0xc5d   :  { %v15314_v8 = vpop.f32.mrf.mxu1  ;;  %15239 = vmatprep.subr.bf16.mxu0 %v24277_v45  ;;  %v24314_v45 = vld [vmem:[#allocation37 + $0x1f50] ss:$36 sps:$4 sm:$0xff]  }
 0xc5e   :  { %17403 = vmatpush1.bf16.msra.mxu1 %v24272_v57  ;;  %v24317_v8 = vld [vmem:[#allocation31 + $0xfc0] ss:$16 sps:$4 sm:$0xff]  }
 0xc5f   :  { %v15315_v5 = vpop.f32.mrf.mxu1  ;;  %17404 = vmatprep.subr.bf16.mxu1 %v24280_v51  ;;  %v24322_v51 = vld [vmem:[#allocation37 + $0x1f0c] ss:$36 sps:$4 sm:$0xff]  }
 0xc60   :  { %15240 = vmatpush1.bf16.msra.mxu0 %v24275_v38 }
 0xc61   :  { %15241 = vmatprep.subr.bf16.mxu0 %v24283_v34 }
 0xc62   :  { %17405 = vmatpush1.bf16.msra.mxu1 %v24278_v37  ;;  %v24325_v37 = vld [vmem:[#allocation31 + $0xfa4] ss:$16 sps:$4 sm:$0xff]  }
 0xc63   :  { %17406 = vmatprep.subr.bf16.mxu1 %v24286_v47 }
 0xc64   :  { %15242 = vmatpush1.bf16.msra.mxu0 %v24281_v10  ;;  %v24320_v10 = vld [vmem:[#allocation37 + $0x1f08] ss:$36 sps:$4 sm:$0xff]  }
 0xc65   :  { %15243 = vmatprep.subr.bf16.mxu0 %v24289_v2 }
 0xc66   :  { %17407 = vmatpush1.bf16.msra.mxu1 %v24284_v14  ;;  %v24328_v14 = vld [vmem:[#allocation37 + $0x1ec4] ss:$36 sps:$4 sm:$0xff]  }
 0xc67   :  { %17408 = vmatprep.subr.bf16.mxu1 %v24292_v20 }
 0xc68   :  { %15244 = vmatpush1.bf16.msra.mxu0 %v24287_v49 }
 0xc69   :  { %15245 = vmatprep.subr.bf16.mxu0 %v24295_v12  ;;  %v24331_v12 = vld [vmem:[#allocation31 + $0xf84] ss:$16 sps:$4 sm:$0xff]  }
 0xc6a   :  { %17409 = vmatpush1.bf16.msra.mxu1 %v24290_v17  ;;  %v24326_v17 = vld [vmem:[#allocation37 + $0x1ec0] ss:$36 sps:$4 sm:$0xff]  }
 0xc6b   :  { %17410 = vmatprep.subr.bf16.mxu1 %v24298_v43  ;;  %v24329_v43 = vld [vmem:[#allocation31 + $0xf80] ss:$16 sps:$4 sm:$0xff]  }
 0xc6c   :  { %15246 = vmatpush1.bf16.msra.mxu0 %v24293_v36  ;;  %v24332_v36 = vld [vmem:[#allocation37 + $0x1e78] ss:$36 sps:$4 sm:$0xff]  }
 0xc6d   :  { %15247 = vmatprep.subr.bf16.mxu0 %v24301_v62  ;;  %v24340_v62 = vld [vmem:[#allocation37 + $0x1e34] ss:$36 sps:$4 sm:$0xff]  }
 0xc6e   :  { %17411 = vmatpush1.bf16.msra.mxu1 %v24296_v27  ;;  %v24343_v27 = vld [vmem:[#allocation31 + $0xf44] ss:$16 sps:$4 sm:$0xff]  }
 0xc6f   :  { %17412 = vmatprep.subr.bf16.mxu1 %v24304_v26  ;;  %v24338_v26 = vld [vmem:[#allocation37 + $0x1e30] ss:$36 sps:$4 sm:$0xff]  }
 0xc70   :  { %15248 = vmatpush1.bf16.msra.mxu0 %v24299_v21  ;;  %v24346_v21 = vld [vmem:[#allocation37 + $0x1dec] ss:$36 sps:$4 sm:$0xff]  }
 0xc71   :  { %15249 = vmatprep.subr.bf16.mxu0 %v24307_v41  ;;  %v24341_v41 = vld [vmem:[#allocation31 + $0xf40] ss:$16 sps:$4 sm:$0xff]  }
 0xc72   :  { %17413 = vmatpush1.bf16.msra.mxu1 %v24302_v23  ;;  %v24349_v23 = vld [vmem:[#allocation31 + $0xf24] ss:$16 sps:$4 sm:$0xff]  }
 0xc73   :  { %17414 = vmatprep.subr.bf16.mxu1 %v24310_v33  ;;  %v24344_v33 = vld [vmem:[#allocation37 + $0x1de8] ss:$36 sps:$4 sm:$0xff]  }
 0xc74   :  { %15250 = vmatpush1.bf16.msra.mxu0 %v24305_v55  ;;  %v24352_v55 = vld [vmem:[#allocation37 + $0x1da4] ss:$36 sps:$4 sm:$0xff]  }
 0xc75   :  { %15251 = vmatprep.subr.bf16.mxu0 %v24313_v9  ;;  %v24347_v9 = vld [vmem:[#allocation31 + $0xf20] ss:$16 sps:$4 sm:$0xff]  }
 0xc76   :  { %17415 = vmatpush1.bf16.msra.mxu1 %v24308_v60  ;;  %v24355_v60 = vld [vmem:[#allocation31 + $0xf04] ss:$16 sps:$4 sm:$0xff]  }
 0xc77   :  { %v14158_v57 = vpop.f32.mrf.mxu0  ;;  %17416 = vmatprep.subr.bf16.mxu1 %v24316_v16  ;;  %v24350_v16 = vld [vmem:[#allocation37 + $0x1da0] ss:$36 sps:$4 sm:$0xff]  }
 0xc78   :  { %v14159_v38 = vadd.f32 %v14158_v57, %v26121_v40  ;;  %15252 = vmatpush2.bf16.msra.mxu0 %v24311_v50  ;;  %v24323_v40 = vld [vmem:[#allocation31 + $0xfa0] ss:$16 sps:$4 sm:$0xff]  }
 0xc79   :  { %v14160_v34 = vpop.f32.mrf.mxu0  ;;  %15253 = vmatprep.subr.bf16.mxu0 %v24319_v31  ;;  %v24358_v50 = vld [vmem:[#allocation37 + $0x1d5c] ss:$36 sps:$4 sm:$0xff]  }
 0xc7a   :  { %v26204_v5 = vadd.f32 %v14159_v38, %v26092_v48  ;;  %v14161_v47 = vadd.f32 %v14160_v34, %v26123_v7  ;;  %17417 = vmatpush2.bf16.msra.mxu1 %v24314_v45  ;;  %v24334_v48 = vld [vmem:[#allocation37 + $0x1e7c] ss:$36 sps:$4 sm:$0xff]   ;;  %v24361_v45 = vld [vmem:[#allocation31 + $0xeec] ss:$16 sps:$4 sm:$0xff]  }
 0xc7b   :  { %v14162_v2 = vpop.f32.mrf.mxu0  ;;  %17418 = vmatprep.subr.bf16.mxu1 %v24322_v51  ;;  %v24337_v7 = vld [vmem:[#allocation31 + $0xf64] ss:$16 sps:$4 sm:$0xff]   ;;  %v24353_v31 = vld [vmem:[#allocation31 + $0xf00] ss:$16 sps:$4 sm:$0xff]   ;;  %v24359_v38 = vld [vmem:[#allocation31 + $0xee8] ss:$16 sps:$4 sm:$0xff]  }
 0xc7c   :  { %v26208_v20 = vadd.f32 %v14161_v47, %v26095_v22  ;;  %15254 = vmatpush2.bf16.msra.mxu0 %v24317_v8  ;;  %v24335_v22 = vld [vmem:[#allocation31 + $0xf60] ss:$16 sps:$4 sm:$0xff]   ;;  %v26211_v8 = vrot.slane %v25810_v1, 3  ;;  %v24366_v34 = vld [vmem:[#allocation31 + $0xecc] ss:$16 sps:$4 sm:$0xff]  }
 0xc7d   :  { %v14163_v49 = vpop.f32.mrf.mxu0  ;;  %15255 = vmatprep.subr.bf16.mxu0 %v24325_v37  ;;  %v24356_v57 = vld [vmem:[#allocation37 + $0x1d58] ss:$36 sps:$4 sm:$0xff]   ;;  %v24367_v47 = vld [vmem:[#allocation37 + $0x1f10] ss:$36 sps:$4 sm:$0xff]  }
 0xc7e   :  { %17419 = vmatpush2.bf16.msra.mxu1 %v24320_v10  ;;  %v24362_v51 = vld [vmem:[#allocation37 + $0x1f58] ss:$36 sps:$4 sm:$0xff]   ;;  %v24364_v10 = vld [vmem:[#allocation31 + $0xec8] ss:$16 sps:$4 sm:$0xff]   ;;  %v24372_v49 = vld [vmem:[#allocation37 + $0x1ec8] ss:$36 sps:$4 sm:$0xff]  }
 0xc7f   :  { %17420 = vmatprep.subr.bf16.mxu1 %v24328_v14  ;;  %v24363_v37 = vld [vmem:[#allocation37 + $0x1d18] ss:$36 sps:$4 sm:$0xff]   ;;  %v24368_v1 = vld [vmem:[#allocation37 + $0x1cd0] ss:$36 sps:$4 sm:$0xff]  }
 0xc80   :  { %15256 = vmatpush2.bf16.msra.mxu0 %v24323_v40  ;;  %v24371_v14 = vld [vmem:[#allocation31 + $0xeac] ss:$16 sps:$4 sm:$0xff]  }
 0xc81   :  { %15257 = vmatprep.subr.bf16.mxu0 %v24331_v12  ;;  %v24369_v12 = vld [vmem:[#allocation31 + $0xea8] ss:$16 sps:$4 sm:$0xff]  }
 0xc82   :  { %17421 = vmatpush2.bf16.msra.mxu1 %v24326_v17 }
 0xc83   :  { %17422 = vmatprep.subr.bf16.mxu1 %v24334_v48  ;;  %v24376_v48 = vld [vmem:[#allocation31 + $0xe8c] ss:$16 sps:$4 sm:$0xff]  }
 0xc84   :  { %15258 = vmatpush2.bf16.msra.mxu0 %v24329_v43  ;;  %v24373_v43 = vld [vmem:[#allocation37 + $0x1c88] ss:$36 sps:$4 sm:$0xff]  }
 0xc85   :  { %15259 = vmatprep.subr.bf16.mxu0 %v24337_v7 }
 0xc86   :  { %17423 = vmatpush2.bf16.msra.mxu1 %v24332_v36  ;;  %v24377_v36 = vld [vmem:[#allocation37 + $0x1e80] ss:$36 sps:$4 sm:$0xff]  }
 0xc87   :  { %17424 = vmatprep.subr.bf16.mxu1 %v24340_v62  ;;  %v24374_v62 = vld [vmem:[#allocation31 + $0xe88] ss:$16 sps:$4 sm:$0xff]  }
 0xc88   :  { %15260 = vmatpush2.bf16.msra.mxu0 %v24335_v22  ;;  %v24381_v22 = vld [vmem:[#allocation31 + $0xe6c] ss:$16 sps:$4 sm:$0xff]  }
 0xc89   :  { %15261 = vmatprep.subr.bf16.mxu0 %v24343_v27  ;;  %v24382_v27 = vld [vmem:[#allocation37 + $0x1e38] ss:$36 sps:$4 sm:$0xff]  }
 0xc8a   :  { %17425 = vmatpush2.bf16.msra.mxu1 %v24338_v26  ;;  %v24379_v26 = vld [vmem:[#allocation31 + $0xe68] ss:$16 sps:$4 sm:$0xff]  }
 0xc8b   :  { %17426 = vmatprep.subr.bf16.mxu1 %v24346_v21  ;;  %v24386_v21 = vld [vmem:[#allocation31 + $0xe4c] ss:$16 sps:$4 sm:$0xff]  }
 0xc8c   :  { %15262 = vmatpush2.bf16.msra.mxu0 %v24341_v41  ;;  %v24383_v41 = vld [vmem:[#allocation37 + $0x1bf8] ss:$36 sps:$4 sm:$0xff]  }
 0xc8d   :  { %15263 = vmatprep.subr.bf16.mxu0 %v24349_v23  ;;  %v24387_v23 = vld [vmem:[#allocation37 + $0x1df0] ss:$36 sps:$4 sm:$0xff]  }
 0xc8e   :  { %17427 = vmatpush2.bf16.msra.mxu1 %v24344_v33  ;;  %v24384_v33 = vld [vmem:[#allocation31 + $0xe48] ss:$16 sps:$4 sm:$0xff]  }
 0xc8f   :  { %17428 = vmatprep.subr.bf16.mxu1 %v24352_v55  ;;  %v24391_v55 = vld [vmem:[#allocation31 + $0xe2c] ss:$16 sps:$4 sm:$0xff]  }
 0xc90   :  { %15264 = vmatpush2.bf16.msra.mxu0 %v24347_v9  ;;  %v24388_v9 = vld [vmem:[#allocation37 + $0x1bb0] ss:$36 sps:$4 sm:$0xff]  }
 0xc91   :  { %15265 = vmatprep.subr.bf16.mxu0 %v24355_v60  ;;  %v24392_v60 = vld [vmem:[#allocation37 + $0x1da8] ss:$36 sps:$4 sm:$0xff]  }
 0xc92   :  { %17429 = vmatpush2.bf16.msra.mxu1 %v24350_v16  ;;  %v24389_v16 = vld [vmem:[#allocation31 + $0xe28] ss:$16 sps:$4 sm:$0xff]  }
 0xc93   :  { %17430 = vmatprep.subr.bf16.mxu1 %v24358_v50  ;;  %v24396_v50 = vld [vmem:[#allocation31 + $0xe0c] ss:$16 sps:$4 sm:$0xff]  }
 0xc94   :  { %15266 = vmatpush2.bf16.msra.mxu0 %v24353_v31  ;;  %v24393_v31 = vld [vmem:[#allocation37 + $0x1b68] ss:$36 sps:$4 sm:$0xff]  }
 0xc95   :  { %15317 = vmatprep.subr.bf16.mxu0 %v24361_v45  ;;  %v24397_v45 = vld [vmem:[#allocation37 + $0x1d60] ss:$36 sps:$4 sm:$0xff]  }
 0xc96   :  { %17431 = vmatpush2.bf16.msra.mxu1 %v24356_v57  ;;  %v26221_v57 = vld.sshfl [vmem:[#allocation5] sm:$0x33 pattern:$0x76325410] }
 0xc97   :  { %15268 = vmatmul.mubr.bf16.vlgmr.msra.gmra.mxu0 %v26211_v8  ;;  %21250 = vmatprep.subr.bf16.mxu1 %v24362_v51  ;;  %v24394_v51 = vld [vmem:[#allocation31 + $0xe08] ss:$16 sps:$4 sm:$0xff]  }
 0xc98   :  { %15318 = vmatpush1.bf16.msra.mxu0 %v24359_v38  ;;  %15349 = vmatprep.mubr.bf16.mxu0 %v26192_v58  ;;  %v24401_v38 = vld [vmem:[#allocation31 + $0xfec] ss:$16 sps:$4 sm:$0xff]  }
 0xc99   :  { %v26215_v2 = vpop.f32.mrf.mxu1  ;;  %17433 = vmatmul.mubr.bf16.vlgmr.msra.gmra.mxu1 %v26126_v24  ;;  %15319 = vmatprep.subr.bf16.mxu0 %v24366_v34  ;;  %v24398_v34 = vld [vmem:[#allocation37 + $0x1b20] ss:$36 sps:$4 sm:$0xff]  }
 0xc9a   :  { %21251 = vmatpush3.bf16.msra.mxu1 %v24363_v37  ;;  %17514 = vmatprep.mubr.bf16.mxu1 %v26112_v42  ;;  %v24378_v42 = vld [vmem:[#allocation37 + $0x1c40] ss:$36 sps:$4 sm:$0xff]   ;;  %v26225_v37 = vcombine.high %v26221_v57, %v26221_v57 }
 0xc9b   :  { %v26219_v40 = vpop.f32.mrf.mxu1  ;;  %21252 = vmatprep.subr.bf16.mxu1 %v24367_v47  ;;  %v24404_v47 = vld [vmem:[#allocation29 + $0xe4] ss:$16 sps:$4 sm:$0xff]  }
 0xc9c   :  { %15320 = vmatpush1.bf16.msra.mxu0 %v24364_v10  ;;  %v24399_v10 = vld [vmem:[#allocation31 + $0xfe8] ss:$16 sps:$4 sm:$0xff]  }
 0xc9d   :  { %v17192_v17 = vpop.f32.mrf.mxu1  ;;  %15321 = vmatprep.subr.bf16.mxu0 %v24371_v14  ;;  %v24407_v14 = vld [vmem:[#allocation31 + $0xfcc] ss:$16 sps:$4 sm:$0xff]  }
 0xc9e   :  { %21253 = vmatpush3.bf16.msra.mxu1 %v24368_v1  ;;  %v24402_v1 = vld [vmem:[#allocation29 + $0xe0] ss:$16 sps:$4 sm:$0xff]   ;;  %v24410_v17 = vld [vmem:[#allocation29 + $0xc4] ss:$16 sps:$4 sm:$0xff]  }
 0xc9f   :  { %v17193_v7 = vpop.f32.mrf.mxu1  ;;  %21254 = vmatprep.subr.bf16.mxu1 %v24372_v49  ;;  %v26229_v49 = vpack.c.bf16 %v26225_v37, %v26225_v37 }
 0xca0   :  { %15322 = vmatpush1.bf16.msra.mxu0 %v24369_v12 }
 0xca1   :  { %15323 = vmatprep.subr.bf16.mxu0 %v24376_v48 }
 0xca2   :  { %21255 = vmatpush3.bf16.msra.mxu1 %v24373_v43  ;;  %v24405_v43 = vld [vmem:[#allocation31 + $0xfc8] ss:$16 sps:$4 sm:$0xff]  }
 0xca3   :  { %21256 = vmatprep.subr.bf16.mxu1 %v24377_v36  ;;  %v24413_v36 = vld [vmem:[#allocation31 + $0xfac] ss:$16 sps:$4 sm:$0xff]  }
 0xca4   :  { %15324 = vmatpush1.bf16.msra.mxu0 %v24374_v62 }
 0xca5   :  { %15325 = vmatprep.subr.bf16.mxu0 %v24381_v22 }
 0xca6   :  { %21257 = vmatpush3.bf16.msra.mxu1 %v24378_v42  ;;  %v24408_v42 = vld [vmem:[#allocation29 + $0xc0] ss:$16 sps:$4 sm:$0xff]  }
 0xca7   :  { %21258 = vmatprep.subr.bf16.mxu1 %v24382_v27 }
 0xca8   :  { %15326 = vmatpush1.bf16.msra.mxu0 %v24379_v26  ;;  %v24416_v26 = vld [vmem:[#allocation29 + $0xa4] ss:$16 sps:$4 sm:$0xff]  }
 0xca9   :  { %15327 = vmatprep.subr.bf16.mxu0 %v24386_v21 }
 0xcaa   :  { %21259 = vmatpush3.bf16.msra.mxu1 %v24383_v41  ;;  %v24419_v41 = vld [vmem:[#allocation31 + $0xf8c] ss:$16 sps:$4 sm:$0xff]  }
 0xcab   :  { %21260 = vmatprep.subr.bf16.mxu1 %v24387_v23  ;;  %v24422_v23 = vld [vmem:[#allocation29 + $0x84] ss:$16 sps:$4 sm:$0xff]  }
 0xcac   :  { %15328 = vmatpush1.bf16.msra.mxu0 %v24384_v33  ;;  %v24425_v33 = vld [vmem:[#allocation31 + $0xf6c] ss:$16 sps:$4 sm:$0xff]  }
 0xcad   :  { %15329 = vmatprep.subr.bf16.mxu0 %v24391_v55  ;;  %v24420_v55 = vld [vmem:[#allocation29 + $0x80] ss:$16 sps:$4 sm:$0xff]  }
 0xcae   :  { %21261 = vmatpush3.bf16.msra.mxu1 %v24388_v9  ;;  %v24428_v9 = vld [vmem:[#allocation29 + $0x64] ss:$16 sps:$4 sm:$0xff]  }
 0xcaf   :  { %21262 = vmatprep.subr.bf16.mxu1 %v24392_v60  ;;  %v24431_v60 = vld [vmem:[#allocation31 + $0xf4c] ss:$16 sps:$4 sm:$0xff]  }
 0xcb0   :  { %15330 = vmatpush1.bf16.msra.mxu0 %v24389_v16  ;;  %v24426_v16 = vld [vmem:[#allocation29 + $0x60] ss:$16 sps:$4 sm:$0xff]  }
 0xcb1   :  { %15331 = vmatprep.subr.bf16.mxu0 %v24396_v50  ;;  %v24434_v50 = vld [vmem:[#allocation29 + $0x44] ss:$16 sps:$4 sm:$0xff]  }
 0xcb2   :  { %21263 = vmatpush3.bf16.msra.mxu1 %v24393_v31  ;;  %v24429_v31 = vld [vmem:[#allocation31 + $0xf48] ss:$16 sps:$4 sm:$0xff]  }
 0xcb3   :  { %21264 = vmatprep.subr.bf16.mxu1 %v24397_v45  ;;  %v24437_v45 = vld [vmem:[#allocation31 + $0xf2c] ss:$16 sps:$4 sm:$0xff]  }
 0xcb4   :  { %15332 = vmatpush1.bf16.msra.mxu0 %v24394_v51  ;;  %v24432_v51 = vld [vmem:[#allocation29 + $0x40] ss:$16 sps:$4 sm:$0xff]  }
 0xcb5   :  { %15333 = vmatprep.subr.bf16.mxu0 %v24401_v38  ;;  %v24440_v38 = vld [vmem:[#allocation29 + $0x24] ss:$16 sps:$4 sm:$0xff]  }
 0xcb6   :  { %21265 = vmatpush3.bf16.msra.mxu1 %v24398_v34  ;;  %v24435_v34 = vld [vmem:[#allocation31 + $0xf28] ss:$16 sps:$4 sm:$0xff]  }
 0xcb7   :  { %v14240_v12 = vpop.f32.mrf.mxu0  ;;  %18025 = vmatprep.subr.bf16.mxu1 %v24404_v47  ;;  %v24443_v47 = vld [vmem:[#allocation31 + $0xf0c] ss:$16 sps:$4 sm:$0xff]  }
 0xcb8   :  { %v14241_v48 = vadd.f32 %v14240_v12, %v26138_v6  ;;  %15334 = vmatpush2.bf16.msra.mxu0 %v24399_v10  ;;  %v24438_v10 = vld [vmem:[#allocation29 + $0x20] ss:$16 sps:$4 sm:$0xff]  }
 0xcb9   :  { %17515 = vmatmul.mubr.bf16.vlgmr.msra.gmra.mxu1 %v26126_v24  ;;  %v14242_v7 = vpop.f32.mrf.mxu0  ;;  %15335 = vmatprep.subr.bf16.mxu0 %v24407_v14  ;;  %v24411_v24 = vld [vmem:[#allocation31 + $0xfa8] ss:$16 sps:$4 sm:$0xff]   ;;  %v24446_v14 = vld [vmem:[#allocation29 + $0x4] ss:$16 sps:$4 sm:$0xff]  }
 0xcba   :  { %v26234_v62 = vadd.f32 %v14241_v48, %v26109_v44  ;;  %v14243_v22 = vadd.f32 %v14242_v7, %v26140_v32  ;;  %18026 = vmatpush1.bf16.msra.mxu1 %v24402_v1  ;;  %18057 = vmatprep.mubr.bf16.mxu1 %v26229_v49  ;;  %v24414_v44 = vld [vmem:[#allocation29 + $0xa0] ss:$16 sps:$4 sm:$0xff]   ;;  %v24417_v32 = vld [vmem:[#allocation31 + $0xf88] ss:$16 sps:$4 sm:$0xff]   ;;  %v24452_v48 = vld [vmem:[#allocation29 + $0x1e4] ss:$16 sps:$4 sm:$0xff]  }
 0xcbb   :  { %v14244_v27 = vpop.f32.mrf.mxu0  ;;  %18027 = vmatprep.subr.bf16.mxu1 %v24410_v17  ;;  %v24441_v1 = vld [vmem:[#allocation31 + $0xf08] ss:$16 sps:$4 sm:$0xff]   ;;  %v24444_v17 = vld [vmem:[#allocation29] ss:$16 sps:$4 sm:$0xff]  }
 0xcbc   :  { %v26239_v6 = vadd.f32 %v14243_v22, %v26116_v35  ;;  %15336 = vmatpush2.bf16.msra.mxu0 %v24405_v43  ;;  %v24423_v35 = vld [vmem:[#allocation31 + $0xf68] ss:$16 sps:$4 sm:$0xff]   ;;  %v24447_v43 = vld [vmem:[#allocation37 + $0x2178] ss:$36 sps:$4 sm:$0xff]  }
 0xcbd   :  { %v14245_v21 = vpop.f32.mrf.mxu0  ;;  %15337 = vmatprep.subr.bf16.mxu0 %v24413_v36  ;;  %v24449_v12 = vld [vmem:[#allocation37 + $0x217c] ss:$36 sps:$4 sm:$0xff]   ;;  %v24455_v7 = vld [vmem:[#allocation37 + $0x2134] ss:$36 sps:$4 sm:$0xff]  }
 0xcbe   :  { %18028 = vmatpush1.bf16.msra.mxu1 %v24408_v42  ;;  %v24450_v36 = vld [vmem:[#allocation29 + $0x1e0] ss:$16 sps:$4 sm:$0xff]   ;;  %v24458_v22 = vld [vmem:[#allocation29 + $0x1c4] ss:$16 sps:$4 sm:$0xff]  }
 0xcbf   :  { %18029 = vmatprep.subr.bf16.mxu1 %v24416_v26  ;;  %v24453_v42 = vld [vmem:[#allocation37 + $0x2130] ss:$36 sps:$4 sm:$0xff]  }
 0xcc0   :  { %15338 = vmatpush2.bf16.msra.mxu0 %v24411_v24  ;;  %v24461_v26 = vld [vmem:[#allocation37 + $0x20ec] ss:$36 sps:$4 sm:$0xff]  }
 0xcc1   :  { %15339 = vmatprep.subr.bf16.mxu0 %v24419_v41  ;;  %v24456_v24 = vld [vmem:[#allocation29 + $0x1c0] ss:$16 sps:$4 sm:$0xff]   ;;  %v24464_v41 = vld [vmem:[#allocation29 + $0x1a4] ss:$16 sps:$4 sm:$0xff]  }
 0xcc2   :  { %18030 = vmatpush1.bf16.msra.mxu1 %v24414_v44  ;;  %v24459_v44 = vld [vmem:[#allocation37 + $0x20e8] ss:$36 sps:$4 sm:$0xff]  }
 0xcc3   :  { %18031 = vmatprep.subr.bf16.mxu1 %v24422_v23 }
 0xcc4   :  { %15340 = vmatpush2.bf16.msra.mxu0 %v24417_v32  ;;  %v24467_v32 = vld [vmem:[#allocation37 + $0x20a4] ss:$36 sps:$4 sm:$0xff]  }
 0xcc5   :  { %15341 = vmatprep.subr.bf16.mxu0 %v24425_v33  ;;  %v24462_v33 = vld [vmem:[#allocation29 + $0x1a0] ss:$16 sps:$4 sm:$0xff]  }
 0xcc6   :  { %18032 = vmatpush1.bf16.msra.mxu1 %v24420_v55 }
 0xcc7   :  { %18033 = vmatprep.subr.bf16.mxu1 %v24428_v9  ;;  %v24470_v9 = vld [vmem:[#allocation29 + $0x184] ss:$16 sps:$4 sm:$0xff]  }
 0xcc8   :  { %15342 = vmatpush2.bf16.msra.mxu0 %v24423_v35  ;;  %v24465_v35 = vld [vmem:[#allocation37 + $0x20a0] ss:$36 sps:$4 sm:$0xff]  }
 0xcc9   :  { %15343 = vmatprep.subr.bf16.mxu0 %v24431_v60  ;;  %v24473_v60 = vld [vmem:[#allocation37 + $0x205c] ss:$36 sps:$4 sm:$0xff]  }
 0xcca   :  { %18034 = vmatpush1.bf16.msra.mxu1 %v24426_v16  ;;  %v24468_v16 = vld [vmem:[#allocation29 + $0x180] ss:$16 sps:$4 sm:$0xff]  }
 0xccb   :  { %18035 = vmatprep.subr.bf16.mxu1 %v24434_v50  ;;  %v24476_v50 = vld [vmem:[#allocation29 + $0x164] ss:$16 sps:$4 sm:$0xff]  }
 0xccc   :  { %15344 = vmatpush2.bf16.msra.mxu0 %v24429_v31  ;;  %v24471_v31 = vld [vmem:[#allocation37 + $0x2058] ss:$36 sps:$4 sm:$0xff]  }
 0xccd   :  { %15345 = vmatprep.subr.bf16.mxu0 %v24437_v45  ;;  %v24479_v45 = vld [vmem:[#allocation37 + $0x2014] ss:$36 sps:$4 sm:$0xff]  }
 0xcce   :  { %18036 = vmatpush1.bf16.msra.mxu1 %v24432_v51  ;;  %v24474_v51 = vld [vmem:[#allocation29 + $0x160] ss:$16 sps:$4 sm:$0xff]  }
 0xccf   :  { %18037 = vmatprep.subr.bf16.mxu1 %v24440_v38  ;;  %v24482_v38 = vld [vmem:[#allocation29 + $0x144] ss:$16 sps:$4 sm:$0xff]  }
 0xcd0   :  { %15346 = vmatpush2.bf16.msra.mxu0 %v24435_v34  ;;  %v24477_v34 = vld [vmem:[#allocation37 + $0x2010] ss:$36 sps:$4 sm:$0xff]  }
 0xcd1   :  { %15347 = vmatprep.subr.bf16.mxu0 %v24443_v47  ;;  %v24485_v47 = vld [vmem:[#allocation37 + $0x1fcc] ss:$36 sps:$4 sm:$0xff]  }
 0xcd2   :  { %18038 = vmatpush1.bf16.msra.mxu1 %v24438_v10  ;;  %v24480_v10 = vld [vmem:[#allocation29 + $0x140] ss:$16 sps:$4 sm:$0xff]  }
 0xcd3   :  { %18039 = vmatprep.subr.bf16.mxu1 %v24446_v14  ;;  %v24488_v14 = vld [vmem:[#allocation29 + $0x124] ss:$16 sps:$4 sm:$0xff]  }
 0xcd4   :  { %15348 = vmatpush2.bf16.msra.mxu0 %v24441_v1  ;;  %v24483_v1 = vld [vmem:[#allocation37 + $0x1fc8] ss:$36 sps:$4 sm:$0xff]  }
 0xcd5   :  { %17195 = vmatprep.subr.bf16.mxu0 %v24449_v12  ;;  %v24491_v12 = vld [vmem:[#allocation37 + $0x1f84] ss:$36 sps:$4 sm:$0xff]  }
 0xcd6   :  { %18040 = vmatpush1.bf16.msra.mxu1 %v24444_v17  ;;  %v24486_v17 = vld [vmem:[#allocation29 + $0x120] ss:$16 sps:$4 sm:$0xff]  }
 0xcd7   :  { %15350 = vmatmul.mubr.bf16.vlgmr.msra.gmra.mxu0 %v26211_v8  ;;  %18041 = vmatprep.subr.bf16.mxu1 %v24452_v48  ;;  %v24494_v48 = vld [vmem:[#allocation29 + $0x104] ss:$16 sps:$4 sm:$0xff]  }
 0xcd8   :  { %17196 = vmatpush1.bf16.msra.mxu0 %v24447_v43  ;;  %17227 = vmatprep.mubr.bf16.mxu0 %v26192_v58  ;;  %v24489_v43 = vld [vmem:[#allocation37 + $0x1f80] ss:$36 sps:$4 sm:$0xff]  }
 0xcd9   :  { %v26243_v27 = vpop.f32.mrf.mxu1  ;;  %17197 = vmatprep.subr.bf16.mxu0 %v24455_v7  ;;  %v24497_v7 = vld [vmem:[#allocation37 + $0x23bc] ss:$36 sps:$4 sm:$0xff]  }
 0xcda   :  { %18042 = vmatpush2.bf16.msra.mxu1 %v24450_v36  ;;  %v24492_v36 = vld [vmem:[#allocation29 + $0x100] ss:$16 sps:$4 sm:$0xff]  }
 0xcdb   :  { %v26245_v21 = vpop.f32.mrf.mxu1  ;;  %18043 = vmatprep.subr.bf16.mxu1 %v24458_v22  ;;  %v24495_v22 = vld [vmem:[#allocation37 + $0x23b8] ss:$36 sps:$4 sm:$0xff]  }
 0xcdc   :  { %17198 = vmatpush1.bf16.msra.mxu0 %v24453_v42  ;;  %v26249_v42 = vpack.c.bf16 %v26221_v57, %v26221_v57 }
 0xcdd   :  { %v17274_v23 = vpop.f32.mrf.mxu1  ;;  %17199 = vmatprep.subr.bf16.mxu0 %v24461_v26  ;;  %v24500_v26 = vld [vmem:[#allocation37 + $0x2374] ss:$36 sps:$4 sm:$0xff]  }
 0xcde   :  { %18044 = vmatpush2.bf16.msra.mxu1 %v24456_v24 }
 0xcdf   :  { %v17275_v55 = vpop.f32.mrf.mxu1  ;;  %18045 = vmatprep.subr.bf16.mxu1 %v24464_v41 }
 0xce0   :  { %17200 = vmatpush1.bf16.msra.mxu0 %v24459_v44  ;;  %v24498_v44 = vld [vmem:[#allocation37 + $0x2370] ss:$36 sps:$4 sm:$0xff]  }
 0xce1   :  { %17201 = vmatprep.subr.bf16.mxu0 %v24467_v32  ;;  %v24503_v32 = vld [vmem:[#allocation37 + $0x232c] ss:$36 sps:$4 sm:$0xff]  }
 0xce2   :  { %18046 = vmatpush2.bf16.msra.mxu1 %v24462_v33 }
 0xce3   :  { %18047 = vmatprep.subr.bf16.mxu1 %v24470_v9 }
 0xce4   :  { %17202 = vmatpush1.bf16.msra.mxu0 %v24465_v35  ;;  %v24501_v35 = vld [vmem:[#allocation37 + $0x2328] ss:$36 sps:$4 sm:$0xff]  }
 0xce5   :  { %17203 = vmatprep.subr.bf16.mxu0 %v24473_v60 }
 0xce6   :  { %18048 = vmatpush2.bf16.msra.mxu1 %v24468_v16  ;;  %v24504_v16 = vld [vmem:[#allocation37 + $0x22e0] ss:$36 sps:$4 sm:$0xff]  }
 0xce7   :  { %18049 = vmatprep.subr.bf16.mxu1 %v24476_v50  ;;  %v24509_v50 = vld [vmem:[#allocation37 + $0x229c] ss:$36 sps:$4 sm:$0xff]  }
 0xce8   :  { %17204 = vmatpush1.bf16.msra.mxu0 %v24471_v31  ;;  %v24605_v31 = vld [vmem:[#allocation34 + $0x74] ss:$8 sps:$4 sm:$0xff]  }
 0xce9   :  { %17205 = vmatprep.subr.bf16.mxu0 %v24479_v45  ;;  %v24507_v45 = vld [vmem:[#allocation37 + $0x2298] ss:$36 sps:$4 sm:$0xff]  }
 0xcea   :  { %18050 = vmatpush2.bf16.msra.mxu1 %v24474_v51  ;;  %v24512_v51 = vld [vmem:[#allocation37 + $0x2254] ss:$36 sps:$4 sm:$0xff]  }
 0xceb   :  { %18051 = vmatprep.subr.bf16.mxu1 %v24482_v38  ;;  %v24609_v38 = vld [vmem:[#allocation34 + $0x60] ss:$8 sps:$4 sm:$0xff]  }
 0xcec   :  { %17206 = vmatpush1.bf16.msra.mxu0 %v24477_v34  ;;  %v24515_v34 = vld [vmem:[#allocation37 + $0x220c] ss:$36 sps:$4 sm:$0xff]  }
 0xced   :  { %17207 = vmatprep.subr.bf16.mxu0 %v24485_v47  ;;  %v24617_v47 = vld [vmem:[#allocation34 + $0x54] ss:$8 sps:$4 sm:$0xff]  }
 0xcee   :  { %18052 = vmatpush2.bf16.msra.mxu1 %v24480_v10  ;;  %v24513_v10 = vld [vmem:[#allocation37 + $0x2208] ss:$36 sps:$4 sm:$0xff]  }
 0xcef   :  { %18053 = vmatprep.subr.bf16.mxu1 %v24488_v14  ;;  %v24615_v14 = vld [vmem:[#allocation34 + $0x50] ss:$8 sps:$4 sm:$0xff]  }
 0xcf0   :  { %17208 = vmatpush1.bf16.msra.mxu0 %v24483_v1  ;;  %v24518_v1 = vld [vmem:[#allocation37 + $0x21c4] ss:$36 sps:$4 sm:$0xff]  }
 0xcf1   :  { %17209 = vmatprep.subr.bf16.mxu0 %v24491_v12  ;;  %v24623_v12 = vld [vmem:[#allocation34 + $0x44] ss:$8 sps:$4 sm:$0xff]  }
 0xcf2   :  { %18054 = vmatpush2.bf16.msra.mxu1 %v24486_v17  ;;  %v24516_v17 = vld [vmem:[#allocation37 + $0x21c0] ss:$36 sps:$4 sm:$0xff]  }
 0xcf3   :  { %18055 = vmatprep.subr.bf16.mxu1 %v24494_v48  ;;  %v24621_v48 = vld [vmem:[#allocation34 + $0x40] ss:$8 sps:$4 sm:$0xff]  }
 0xcf4   :  { %17210 = vmatpush1.bf16.msra.mxu0 %v24489_v43  ;;  %v24521_v43 = vld [vmem:[#allocation37 + $0x2184] ss:$36 sps:$4 sm:$0xff]  }
 0xcf5   :  { %17211 = vmatprep.subr.bf16.mxu0 %v24497_v7  ;;  %v24629_v7 = vld [vmem:[#allocation34 + $0x34] ss:$8 sps:$4 sm:$0xff]  }
 0xcf6   :  { %18056 = vmatpush2.bf16.msra.mxu1 %v24492_v36  ;;  %v24519_v36 = vld [vmem:[#allocation37 + $0x2180] ss:$36 sps:$4 sm:$0xff]  }
 0xcf7   :  { %v14322_v24 = vpop.f32.mrf.mxu0  ;;  %18537 = vmatprep.subr.bf16.mxu1 %v24605_v31  ;;  %v24525_v31 = vld [vmem:[#allocation37 + $0x20f0] ss:$36 sps:$4 sm:$0xff]  }
 0xcf8   :  { %v14323_v41 = vadd.f32 %v14322_v24, %v26150_v28  ;;  %17212 = vmatpush2.bf16.msra.mxu0 %v24495_v22  ;;  %v24506_v28 = vld [vmem:[#allocation37 + $0x22e4] ss:$36 sps:$4 sm:$0xff]   ;;  %v24627_v22 = vld [vmem:[#allocation34 + $0x30] ss:$8 sps:$4 sm:$0xff]  }
 0xcf9   :  { %18058 = vmatmul.mubr.bf16.vlgmr.msra.gmra.mxu1 %v26249_v42  ;;  %v14324_v23 = vpop.f32.mrf.mxu0  ;;  %17213 = vmatprep.subr.bf16.mxu0 %v24500_v26  ;;  %v24524_v26 = vld [vmem:[#allocation37 + $0x213c] ss:$36 sps:$4 sm:$0xff]  }
 0xcfa   :  { %v26254_v33 = vadd.f32 %v14323_v41, %v26129_v4  ;;  %v14325_v55 = vadd.f32 %v14324_v23, %v26156_v29  ;;  %v24603_v4 = vld [vmem:[#allocation34 + $0x70] ss:$8 sps:$4 sm:$0xff]   ;;  %v24611_v29 = vld [vmem:[#allocation34 + $0x64] ss:$8 sps:$4 sm:$0xff]   ;;  %v24633_v23 = vld [vmem:[#allocation34 + $0x20] ss:$8 sps:$4 sm:$0xff]  }
 0xcfb   :  { %v14326_v9 = vpop.f32.mrf.mxu0  ;;  %18538 = vmatpush1.bf16.msra.mxu1 %v24603_v4  ;;  %v24635_v41 = vld [vmem:[#allocation34 + $0x24] ss:$8 sps:$4 sm:$0xff]  }
 0xcfc   :  { %v26258_v57 = vadd.f32 %v14325_v55, %v26133_v13  ;;  %17214 = vmatpush2.bf16.msra.mxu0 %v24498_v44  ;;  %v24510_v13 = vld [vmem:[#allocation37 + $0x2250] ss:$36 sps:$4 sm:$0xff]   ;;  %18539 = vmatprep.subr.bf16.mxu1 %v24611_v29  ;;  %v24522_v44 = vld [vmem:[#allocation37 + $0x2138] ss:$36 sps:$4 sm:$0xff]  }
 0xcfd   :  { %v14327_v60 = vpop.f32.mrf.mxu0  ;;  %17215 = vmatprep.subr.bf16.mxu0 %v24503_v32  ;;  %v24527_v9 = vld [vmem:[#allocation37 + $0x20f4] ss:$36 sps:$4 sm:$0xff]   ;;  %v24530_v29 = vld [vmem:[#allocation37 + $0x20ac] ss:$36 sps:$4 sm:$0xff]  }
 0xcff   :  { %18540 = vmatpush1.bf16.msra.mxu1 %v24609_v38 }
 0xd00   :  { %17216 = vmatpush2.bf16.msra.mxu0 %v24501_v35  ;;  %18541 = vmatprep.subr.bf16.mxu1 %v24617_v47  ;;  %v24528_v47 = vld [vmem:[#allocation37 + $0x20a8] ss:$36 sps:$4 sm:$0xff]  }
 0xd01   :  { %17217 = vmatprep.subr.bf16.mxu0 %v24506_v28 }
 0xd03   :  { %18542 = vmatpush1.bf16.msra.mxu1 %v24615_v14  ;;  %v24533_v14 = vld [vmem:[#allocation37 + $0x2064] ss:$36 sps:$4 sm:$0xff]  }
 0xd04   :  { %17218 = vmatpush2.bf16.msra.mxu0 %v24504_v16  ;;  %18543 = vmatprep.subr.bf16.mxu1 %v24623_v12  ;;  %v24641_v16 = vld [vmem:[#allocation34 + $0x14] ss:$8 sps:$4 sm:$0xff]   ;;  %v24651_v12 = vld [vmem:[#allocation34 + $0xf0] ss:$8 sps:$4 sm:$0xff]  }
 0xd05   :  { %17219 = vmatprep.subr.bf16.mxu0 %v24509_v50 }
 0xd07   :  { %18544 = vmatpush1.bf16.msra.mxu1 %v24621_v48  ;;  %v24534_v48 = vld [vmem:[#allocation37 + $0x2018] ss:$36 sps:$4 sm:$0xff]  }
 0xd08   :  { %17220 = vmatpush2.bf16.msra.mxu0 %v24507_v45  ;;  %18545 = vmatprep.subr.bf16.mxu1 %v24629_v7  ;;  %v24639_v45 = vld [vmem:[#allocation34 + $0x10] ss:$8 sps:$4 sm:$0xff]  }
 0xd09   :  { %17221 = vmatprep.subr.bf16.mxu0 %v24512_v51  ;;  %v24539_v7 = vld [vmem:[#allocation37 + $0x1fd4] ss:$36 sps:$4 sm:$0xff]  }
 0xd0b   :  { %18546 = vmatpush1.bf16.msra.mxu1 %v24627_v22  ;;  %v24537_v22 = vld [vmem:[#allocation37 + $0x1fd0] ss:$36 sps:$4 sm:$0xff]  }
 0xd0c   :  { %17222 = vmatpush2.bf16.msra.mxu0 %v24510_v13  ;;  %18547 = vmatprep.subr.bf16.mxu1 %v24635_v41  ;;  %v24671_v41 = vld [vmem:[#allocation34 + $0xc4] ss:$8 sps:$4 sm:$0xff]  }
 0xd0d   :  { %17223 = vmatprep.subr.bf16.mxu0 %v24515_v34  ;;  %v24647_v34 = vld [vmem:[#allocation34 + $0x4] ss:$8 sps:$4 sm:$0xff]  }
 0xd0f   :  { %18548 = vmatpush1.bf16.msra.mxu1 %v24633_v23  ;;  %v24669_v23 = vld [vmem:[#allocation34 + $0xc0] ss:$8 sps:$4 sm:$0xff]  }
 0xd10   :  { %17224 = vmatpush2.bf16.msra.mxu0 %v24513_v10  ;;  %18549 = vmatprep.subr.bf16.mxu1 %v24641_v16  ;;  %v24645_v10 = vld [vmem:[#allocation34] ss:$8 sps:$4 sm:$0xff]  }
 0xd11   :  { %17225 = vmatprep.subr.bf16.mxu0 %v24518_v1  ;;  %v24531_v1 = vld [vmem:[#allocation37 + $0x2060] ss:$36 sps:$4 sm:$0xff]  }
 0xd12   :  { %v24548_v16 = vld [vmem:[#allocation37 + $0x237c] ss:$36 sps:$4 sm:$0xff]  }
 0xd13   :  { %18550 = vmatpush1.bf16.msra.mxu1 %v24639_v45  ;;  %v24681_v45 = vld [vmem:[#allocation34 + $0xa0] ss:$8 sps:$4 sm:$0xff]  }
 0xd14   :  { %17226 = vmatpush2.bf16.msra.mxu0 %v24516_v17  ;;  %18551 = vmatprep.subr.bf16.mxu1 %v24647_v34  ;;  %v24536_v17 = vld [vmem:[#allocation37 + $0x201c] ss:$36 sps:$4 sm:$0xff]   ;;  %v24554_v34 = vld [vmem:[#allocation37 + $0x22ec] ss:$36 sps:$4 sm:$0xff]  }
 0xd15   :  { %17277 = vmatprep.subr.bf16.mxu0 %v24521_v43  ;;  %v24657_v43 = vld [vmem:[#allocation34 + $0xe0] ss:$8 sps:$4 sm:$0xff]  }
 0xd17   :  { %v21244_v24 = vpop.f32.mrf.mxu0  ;;  %17228 = vmatmul.mubr.bf16.vlgmr.msra.gmra.mxu0 %v26211_v8  ;;  %18552 = vmatpush1.bf16.msra.mxu1 %v24645_v10  ;;  %v24552_v10 = vld [vmem:[#allocation37 + $0x22e8] ss:$36 sps:$4 sm:$0xff]  }
 0xd18   :  { %17278 = vmatpush1.bf16.msra.mxu0 %v24519_v36  ;;  %17309 = vmatprep.mubr.bf16.mxu0 %v26192_v58  ;;  %v24665_v36 = vld [vmem:[#allocation34 + $0xd4] ss:$8 sps:$4 sm:$0xff]  }
 0xd19   :  { %v26262_v32 = vpop.f32.mrf.mxu1  ;;  %v21245_v55 = vpop.f32.mrf.mxu0  ;;  %17279 = vmatprep.subr.bf16.mxu0 %v24524_v26  ;;  %v24663_v26 = vld [vmem:[#allocation34 + $0xd0] ss:$8 sps:$4 sm:$0xff]  }
 0xd1a   :  { %v21246_v35 = vadd.f32 %v21245_v55, %v21244_v24  ;;  %v24542_v24 = vld [vmem:[#allocation37 + $0x1f8c] ss:$36 sps:$4 sm:$0xff]   ;;  %v24545_v55 = vld [vmem:[#allocation37 + $0x23c4] ss:$36 sps:$4 sm:$0xff]  }
 0xd1b   :  { %v26264_v60 = vpop.f32.mrf.mxu1  ;;  %v21247_v28 = vpop.f32.mrf.mxu0 }
 0xd1c   :  { %v14404_v50 = vadd.f32 %v21246_v35, %v26163_v19  ;;  %17280 = vmatpush1.bf16.msra.mxu0 %v24522_v44  ;;  %v24653_v19 = vld [vmem:[#allocation34 + $0xf4] ss:$8 sps:$4 sm:$0xff]   ;;  %v24540_v44 = vld [vmem:[#allocation37 + $0x1f88] ss:$36 sps:$4 sm:$0xff]   ;;  %v24543_v35 = vld [vmem:[#allocation37 + $0x23c0] ss:$36 sps:$4 sm:$0xff]  }
 0xd1d   :  { %v17356_v4 = vpop.f32.mrf.mxu1  ;;  %v21248_v51 = vpop.f32.mrf.mxu0  ;;  %17281 = vmatprep.subr.bf16.mxu0 %v24527_v9  ;;  %18553 = vmatprep.subr.bf16.mxu1 %v24653_v19  ;;  %v24677_v9 = vld [vmem:[#allocation34 + $0xb4] ss:$8 sps:$4 sm:$0xff]   ;;  %v24675_v28 = vld [vmem:[#allocation34 + $0xb0] ss:$8 sps:$4 sm:$0xff]   ;;  %v24557_v19 = vld [vmem:[#allocation37 + $0x22a4] ss:$36 sps:$4 sm:$0xff]  }
 0xd1e   :  { %v26268_v13 = vadd.f32 %v14404_v50, %v26143_v11  ;;  %18554 = vmatpush2.bf16.msra.mxu1 %v24651_v12  ;;  %v24659_v11 = vld [vmem:[#allocation34 + $0xe4] ss:$8 sps:$4 sm:$0xff]   ;;  %v24551_v4 = vld [vmem:[#allocation37 + $0x2334] ss:$36 sps:$4 sm:$0xff]  }
 0xd1f   :  { %v17357_v38 = vpop.f32.mrf.mxu1  ;;  %18555 = vmatprep.subr.bf16.mxu1 %v24659_v11  ;;  %v24683_v50 = vld [vmem:[#allocation34 + $0xa4] ss:$8 sps:$4 sm:$0xff]   ;;  %v24689_v51 = vld [vmem:[#allocation34 + $0x94] ss:$8 sps:$4 sm:$0xff]  }
 0xd20   :  { %17282 = vmatpush1.bf16.msra.mxu0 %v24525_v31  ;;  %v24546_v31 = vld [vmem:[#allocation37 + $0x2378] ss:$36 sps:$4 sm:$0xff]  }
 0xd21   :  { %17283 = vmatprep.subr.bf16.mxu0 %v24530_v29  ;;  %v24549_v29 = vld [vmem:[#allocation37 + $0x2330] ss:$36 sps:$4 sm:$0xff]   ;;  %v24560_v12 = vld [vmem:[#allocation37 + $0x225c] ss:$36 sps:$4 sm:$0xff]  }
 0xd22   :  { %18556 = vmatpush2.bf16.msra.mxu1 %v24657_v43  ;;  %v24687_v38 = vld [vmem:[#allocation34 + $0x90] ss:$8 sps:$4 sm:$0xff]  }
 0xd23   :  { %18557 = vmatprep.subr.bf16.mxu1 %v24665_v36  ;;  %v24563_v11 = vld [vmem:[#allocation37 + $0x2214] ss:$36 sps:$4 sm:$0xff]   ;;  %v24566_v43 = vld [vmem:[#allocation37 + $0x21cc] ss:$36 sps:$4 sm:$0xff]  }
 0xd24   :  { %17284 = vmatpush1.bf16.msra.mxu0 %v24528_v47  ;;  %v24695_v47 = vld [vmem:[#allocation34 + $0x84] ss:$8 sps:$4 sm:$0xff]  }
 0xd25   :  { %17285 = vmatprep.subr.bf16.mxu0 %v24533_v14  ;;  %v24693_v14 = vld [vmem:[#allocation34 + $0x80] ss:$8 sps:$4 sm:$0xff]   ;;  %v24569_v36 = vld [vmem:[#allocation37 + $0x218c] ss:$36 sps:$4 sm:$0xff]  }
 0xd26   :  { %18558 = vmatpush2.bf16.msra.mxu1 %v24663_v26  ;;  %v24572_v26 = vld [vmem:[#allocation37 + $0x2144] ss:$36 sps:$4 sm:$0xff]  }
 0xd27   :  { %18559 = vmatprep.subr.bf16.mxu1 %v24671_v41 }
 0xd28   :  { %17286 = vmatpush1.bf16.msra.mxu0 %v24531_v1  ;;  %v24555_v1 = vld [vmem:[#allocation37 + $0x22a0] ss:$36 sps:$4 sm:$0xff]  }
 0xd29   :  { %17287 = vmatprep.subr.bf16.mxu0 %v24536_v17  ;;  %v24558_v17 = vld [vmem:[#allocation37 + $0x2258] ss:$36 sps:$4 sm:$0xff]  }
 0xd2a   :  { %18560 = vmatpush2.bf16.msra.mxu1 %v24669_v23 }
 0xd2b   :  { %18561 = vmatprep.subr.bf16.mxu1 %v24677_v9  ;;  %v24575_v9 = vld [vmem:[#allocation37 + $0x20fc] ss:$36 sps:$4 sm:$0xff]  }
 0xd2c   :  { %17288 = vmatpush1.bf16.msra.mxu0 %v24534_v48  ;;  %v24561_v48 = vld [vmem:[#allocation37 + $0x2210] ss:$36 sps:$4 sm:$0xff]  }
 0xd2d   :  { %17289 = vmatprep.subr.bf16.mxu0 %v24539_v7  ;;  %v24564_v7 = vld [vmem:[#allocation37 + $0x21c8] ss:$36 sps:$4 sm:$0xff]  }
 0xd2e   :  { %18562 = vmatpush2.bf16.msra.mxu1 %v24675_v28 }
 0xd2f   :  { %18563 = vmatprep.subr.bf16.mxu1 %v24683_v50 }
 0xd30   :  { %17290 = vmatpush1.bf16.msra.mxu0 %v24537_v22  ;;  %v24567_v22 = vld [vmem:[#allocation37 + $0x2188] ss:$36 sps:$4 sm:$0xff]  }
 0xd31   :  { %17291 = vmatprep.subr.bf16.mxu0 %v24542_v24 }
 0xd32   :  { %18564 = vmatpush2.bf16.msra.mxu1 %v24681_v45 }
 0xd33   :  { %18565 = vmatprep.subr.bf16.mxu1 %v24689_v51  ;;  %v24578_v51 = vld [vmem:[#allocation37 + $0x20b4] ss:$36 sps:$4 sm:$0xff]  }
 0xd34   :  { %17292 = vmatpush1.bf16.msra.mxu0 %v24540_v44  ;;  %v24570_v44 = vld [vmem:[#allocation37 + $0x2140] ss:$36 sps:$4 sm:$0xff]  }
 0xd35   :  { %17293 = vmatprep.subr.bf16.mxu0 %v24545_v55 }
 0xd36   :  { %18566 = vmatpush2.bf16.msra.mxu1 %v24687_v38  ;;  %v24576_v38 = vld [vmem:[#allocation37 + $0x20b0] ss:$36 sps:$4 sm:$0xff]  }
 0xd37   :  { %18567 = vmatprep.subr.bf16.mxu1 %v24695_v47  ;;  %v24582_v47 = vld [vmem:[#allocation37 + $0x2020] ss:$36 sps:$4 sm:$0xff]  }
 0xd38   :  { %17294 = vmatpush2.bf16.msra.mxu0 %v24543_v35 }
 0xd39   :  { %17295 = vmatprep.subr.bf16.mxu0 %v24548_v16 }
 0xd3a   :  { %18568 = vmatpush2.bf16.msra.mxu1 %v24693_v14  ;;  %v24590_v14 = vld [vmem:[#allocation37 + $0x1f94] ss:$36 sps:$4 sm:$0xff]  }
 0xd3c   :  { %17296 = vmatpush2.bf16.msra.mxu0 %v24546_v31  ;;  %v24573_v31 = vld [vmem:[#allocation37 + $0x20f8] ss:$36 sps:$4 sm:$0xff]  }
 0xd3d   :  { %17297 = vmatprep.subr.bf16.mxu0 %v24551_v4 }
 0xd40   :  { %17298 = vmatpush2.bf16.msra.mxu0 %v24549_v29 }
 0xd41   :  { %17299 = vmatprep.subr.bf16.mxu0 %v24554_v34  ;;  %v24584_v34 = vld [vmem:[#allocation37 + $0x2024] ss:$36 sps:$4 sm:$0xff]  }
 0xd44   :  { %17300 = vmatpush2.bf16.msra.mxu0 %v24552_v10  ;;  %v24587_v10 = vld [vmem:[#allocation37 + $0x1fdc] ss:$36 sps:$4 sm:$0xff]  }
 0xd45   :  { %17301 = vmatprep.subr.bf16.mxu0 %v24557_v19  ;;  %v24588_v19 = vld [vmem:[#allocation37 + $0x1f90] ss:$36 sps:$4 sm:$0xff]  }
 0xd48   :  { %17302 = vmatpush2.bf16.msra.mxu0 %v24555_v1  ;;  %v24593_v1 = vld [vmem:[#allocation37 + $0x23cc] ss:$36 sps:$4 sm:$0xff]  }
 0xd49   :  { %17303 = vmatprep.subr.bf16.mxu0 %v24560_v12  ;;  %v24591_v12 = vld [vmem:[#allocation37 + $0x23c8] ss:$36 sps:$4 sm:$0xff]  }
 0xd4c   :  { %17304 = vmatpush2.bf16.msra.mxu0 %v24558_v17  ;;  %v24596_v17 = vld [vmem:[#allocation37 + $0x2384] ss:$36 sps:$4 sm:$0xff]  }
 0xd4d   :  { %17305 = vmatprep.subr.bf16.mxu0 %v24563_v11  ;;  %v24594_v11 = vld [vmem:[#allocation37 + $0x2380] ss:$36 sps:$4 sm:$0xff]  }
 0xd50   :  { %17306 = vmatpush2.bf16.msra.mxu0 %v24561_v48 }
 0xd51   :  { %17307 = vmatprep.subr.bf16.mxu0 %v24566_v43  ;;  %v24599_v43 = vld [vmem:[#allocation37 + $0x233c] ss:$36 sps:$4 sm:$0xff]  }
 0xd54   :  { %17308 = vmatpush2.bf16.msra.mxu0 %v24564_v7 }
 0xd55   :  { %17359 = vmatprep.subr.bf16.mxu0 %v24569_v36 }
 0xd57   :  { %v15269_v24 = vpop.f32.mrf.mxu0  ;;  %17310 = vmatmul.mubr.bf16.vlgmr.msra.gmra.mxu0 %v26211_v8 }
 0xd58   :  { %v15270_v41 = vadd.f32 %v15269_v24, %v26175_v46  ;;  %17360 = vmatpush1.bf16.msra.mxu0 %v24567_v22  ;;  %17391 = vmatprep.mubr.bf16.mxu0 %v26192_v58  ;;  %v24597_v22 = vld [vmem:[#allocation37 + $0x2338] ss:$36 sps:$4 sm:$0xff]  }
 0xd59   :  { %v26273_v23 = vpop.f32.mrf.mxu1  ;;  %v15271_v55 = vpop.f32.mrf.mxu0  ;;  %17361 = vmatprep.subr.bf16.mxu0 %v24572_v26  ;;  %v24602_v24 = vld [vmem:[#allocation37 + $0x22f4] ss:$36 sps:$4 sm:$0xff]  }
 0xd5a   :  { %v15272_v35 = vadd.f32 %v15271_v55, %v26179_v39  ;;  %v26277_v28 = vadd.f32 %v15270_v41, %v26153_v53  ;;  %v24581_v39 = vld [vmem:[#allocation37 + $0x206c] ss:$36 sps:$4 sm:$0xff]  }
 0xd5b   :  { %v26279_v16 = vpop.f32.mrf.mxu1  ;;  %v15273_v50 = vpop.f32.mrf.mxu0  ;;  %v24579_v53 = vld [vmem:[#allocation37 + $0x2068] ss:$36 sps:$4 sm:$0xff]  }
 0xd5c   :  { %17362 = vmatpush1.bf16.msra.mxu0 %v24570_v44  ;;  %v26282_v46 = vadd.f32 %v15272_v35, %v26159_v15  ;;  %v24585_v15 = vld [vmem:[#allocation37 + $0x1fd8] ss:$36 sps:$4 sm:$0xff]   ;;  %v24600_v44 = vld [vmem:[#allocation37 + $0x22f0] ss:$36 sps:$4 sm:$0xff]   ;;  %v24614_v35 = vld [vmem:[#allocation37 + $0x2264] ss:$36 sps:$4 sm:$0xff]  }
 0xd5d   :  { %v17438_v45 = vpop.f32.mrf.mxu1  ;;  %v15274_v4 = vpop.f32.mrf.mxu0  ;;  %17363 = vmatprep.subr.bf16.mxu0 %v24575_v9  ;;  %v24608_v55 = vld [vmem:[#allocation37 + $0x22ac] ss:$36 sps:$4 sm:$0xff]   ;;  %v24612_v50 = vld [vmem:[#allocation37 + $0x2260] ss:$36 sps:$4 sm:$0xff]  }
 0xd5e   :  { %v24606_v9 = vld [vmem:[#allocation37 + $0x22a8] ss:$36 sps:$4 sm:$0xff]   ;;  %v24618_v45 = vld [vmem:[#allocation37 + $0x2218] ss:$36 sps:$4 sm:$0xff]  }
 0xd5f   :  { %v17439_v29 = vpop.f32.mrf.mxu1  ;;  %v24626_v4 = vld [vmem:[#allocation37 + $0x21d4] ss:$36 sps:$4 sm:$0xff]  }
 0xd60   :  { %17364 = vmatpush1.bf16.msra.mxu0 %v24573_v31  ;;  %v24620_v31 = vld [vmem:[#allocation37 + $0x221c] ss:$36 sps:$4 sm:$0xff]   ;;  %v24632_v29 = vld [vmem:[#allocation37 + $0x2194] ss:$36 sps:$4 sm:$0xff]  }
 0xd61   :  { %17365 = vmatprep.subr.bf16.mxu0 %v24578_v51  ;;  %v24624_v51 = vld [vmem:[#allocation37 + $0x21d0] ss:$36 sps:$4 sm:$0xff]  }
 0xd64   :  { %17366 = vmatpush1.bf16.msra.mxu0 %v24576_v38  ;;  %v24630_v38 = vld [vmem:[#allocation37 + $0x2190] ss:$36 sps:$4 sm:$0xff]  }
 0xd65   :  { %17367 = vmatprep.subr.bf16.mxu0 %v24581_v39  ;;  %v24638_v39 = vld [vmem:[#allocation37 + $0x214c] ss:$36 sps:$4 sm:$0xff]  }
 0xd68   :  { %17368 = vmatpush1.bf16.msra.mxu0 %v24579_v53 }
 0xd69   :  { %17369 = vmatprep.subr.bf16.mxu0 %v24584_v34 }
 0xd6c   :  { %17370 = vmatpush1.bf16.msra.mxu0 %v24582_v47  ;;  %v24636_v47 = vld [vmem:[#allocation37 + $0x2148] ss:$36 sps:$4 sm:$0xff]  }
 0xd6d   :  { %17371 = vmatprep.subr.bf16.mxu0 %v24587_v10 }
 0xd70   :  { %17372 = vmatpush1.bf16.msra.mxu0 %v24585_v15  ;;  %v24644_v15 = vld [vmem:[#allocation37 + $0x2104] ss:$36 sps:$4 sm:$0xff]  }
 0xd71   :  { %17373 = vmatprep.subr.bf16.mxu0 %v24590_v14 }
 0xd74   :  { %17374 = vmatpush1.bf16.msra.mxu0 %v24588_v19 }
 0xd75   :  { %17375 = vmatprep.subr.bf16.mxu0 %v24593_v1 }
 0xd78   :  { %17376 = vmatpush2.bf16.msra.mxu0 %v24591_v12  ;;  %v24642_v12 = vld [vmem:[#allocation37 + $0x2100] ss:$36 sps:$4 sm:$0xff]  }
 0xd79   :  { %v21266_v48 = vpop.f32.mrf.mxu1  ;;  %17377 = vmatprep.subr.bf16.mxu0 %v24596_v17 }
 0xd7b   :  { %v21267_v7 = vpop.f32.mrf.mxu1 }
 0xd7c   :  { %v26284_v36 = vadd.f32 %v21267_v7, %v21266_v48  ;;  %17378 = vmatpush2.bf16.msra.mxu0 %v24594_v11  ;;  %v24648_v48 = vld [vmem:[#allocation37 + $0x20b8] ss:$36 sps:$4 sm:$0xff]   ;;  %v24654_v7 = vld [vmem:[#allocation37 + $0x2070] ss:$36 sps:$4 sm:$0xff]  }
 0xd7d   :  { %v21269_v26 = vpop.f32.mrf.mxu1  ;;  %17379 = vmatprep.subr.bf16.mxu0 %v24599_v43  ;;  %v24656_v43 = vld [vmem:[#allocation37 + $0x2074] ss:$36 sps:$4 sm:$0xff]  }
 0xd7e   :  { %v24666_v26 = vld [vmem:[#allocation37 + $0x1fe0] ss:$36 sps:$4 sm:$0xff]  }
 0xd7f   :  { %v21270_v41 = vpop.f32.mrf.mxu1 }
 0xd80   :  { %17380 = vmatpush2.bf16.msra.mxu0 %v24597_v22  ;;  %v24668_v22 = vld [vmem:[#allocation37 + $0x1fe4] ss:$36 sps:$4 sm:$0xff]   ;;  %v24680_v41 = vld [vmem:[#allocation37 + $0x23d4] ss:$36 sps:$4 sm:$0xff]  }
 0xd81   :  { %17381 = vmatprep.subr.bf16.mxu0 %v24602_v24  ;;  %v24672_v24 = vld [vmem:[#allocation37 + $0x1f98] ss:$36 sps:$4 sm:$0xff]  }
 0xd84   :  { %17382 = vmatpush2.bf16.msra.mxu0 %v24600_v44  ;;  %v24678_v44 = vld [vmem:[#allocation37 + $0x23d0] ss:$36 sps:$4 sm:$0xff]  }
 0xd85   :  { %17383 = vmatprep.subr.bf16.mxu0 %v24608_v55  ;;  %v26296_v55 = vld [vmem:[#allocation32] sm:$0xf] }
 0xd88   :  { %17384 = vmatpush2.bf16.msra.mxu0 %v24606_v9  ;;  %v24686_v9 = vld [vmem:[#allocation37 + $0x238c] ss:$36 sps:$4 sm:$0xff]  }
 0xd89   :  { %17385 = vmatprep.subr.bf16.mxu0 %v24614_v35  ;;  %v18112_v35 = vrot.slane %v26296_v55, %v25688_v61 }
 0xd8c   :  { %17386 = vmatpush2.bf16.msra.mxu0 %v24612_v50  ;;  %v24684_v50 = vld [vmem:[#allocation37 + $0x2388] ss:$36 sps:$4 sm:$0xff]  }
 0xd8d   :  { %17387 = vmatprep.subr.bf16.mxu0 %v24620_v31 }
 0xd90   :  { %17388 = vmatpush2.bf16.msra.mxu0 %v24618_v45  ;;  %v24692_v45 = vld [vmem:[#allocation37 + $0x2344] ss:$36 sps:$4 sm:$0xff]  }
 0xd91   :  { %17389 = vmatprep.subr.bf16.mxu0 %v24626_v4 }
 0xd94   :  { %17390 = vmatpush2.bf16.msra.mxu0 %v24624_v51  ;;  %v18116_v51 = vrot.slane %v26296_v55, %v25682_v56 }
 0xd95   :  { %17441 = vmatprep.subr.bf16.mxu0 %v24632_v29 }
 0xd97   :  { %v15351_v53 = vpop.f32.mrf.mxu0  ;;  %17392 = vmatmul.mubr.bf16.vlgmr.msra.gmra.mxu0 %v26211_v8 }
 0xd98   :  { %v15352_v34 = vadd.f32 %v15351_v53, %v26196_v52  ;;  %17442 = vmatpush1.bf16.msra.mxu0 %v24630_v38  ;;  %17473 = vmatprep.mubr.bf16.mxu0 %v26192_v58  ;;  %v24650_v52 = vld [vmem:[#allocation37 + $0x20bc] ss:$36 sps:$4 sm:$0xff]  }
 0xd99   :  { %v15353_v10 = vpop.f32.mrf.mxu0  ;;  %17443 = vmatprep.subr.bf16.mxu0 %v24638_v39  ;;  %v24690_v53 = vld [vmem:[#allocation37 + $0x2340] ss:$36 sps:$4 sm:$0xff]  }
 0xd9a   :  { %v15354_v14 = vadd.f32 %v15353_v10, %v26200_v30  ;;  %v26291_v19 = vadd.f32 %v15352_v34, %v26169_v18  ;;  %v24662_v30 = vld [vmem:[#allocation37 + $0x202c] ss:$36 sps:$4 sm:$0xff]   ;;  %v24698_v34 = vld [vmem:[#allocation37 + $0x22fc] ss:$36 sps:$4 sm:$0xff]  }
 0xd9b   :  { %v15355_v1 = vpop.f32.mrf.mxu0  ;;  %v24660_v18 = vld [vmem:[#allocation37 + $0x2028] ss:$36 sps:$4 sm:$0xff]  }
 0xd9c   :  { %17444 = vmatpush1.bf16.msra.mxu0 %v24636_v47  ;;  %v26294_v17 = vadd.f32 %v15354_v14, %v26173_v3  ;;  %v24674_v3 = vld [vmem:[#allocation37 + $0x1f9c] ss:$36 sps:$4 sm:$0xff]  }
 0xd9d   :  { %v15356_v11 = vpop.f32.mrf.mxu0  ;;  %17445 = vmatprep.subr.bf16.mxu0 %v24644_v15 }
 0xda0   :  { %17446 = vmatpush1.bf16.msra.mxu0 %v24642_v12  ;;  %v24696_v12 = vld [vmem:[#allocation37 + $0x22f8] ss:$36 sps:$4 sm:$0xff]  }
 0xda1   :  { %17447 = vmatprep.subr.bf16.mxu0 %v24650_v52 }
 0xda4   :  { %17448 = vmatpush1.bf16.msra.mxu0 %v24648_v48  ;;  %v24699_v48 = vld [vmem:[#allocation37 + $0x22b0] ss:$36 sps:$4 sm:$0xff]  }
 0xda5   :  { %17449 = vmatprep.subr.bf16.mxu0 %v24656_v43  ;;  %v24702_v43 = vld [vmem:[#allocation37 + $0x2268] ss:$36 sps:$4 sm:$0xff]  }
 0xda8   :  { %17450 = vmatpush1.bf16.msra.mxu0 %v24654_v7  ;;  %v24707_v7 = vld [vmem:[#allocation37 + $0x2224] ss:$36 sps:$4 sm:$0xff]  }
 0xda9   :  { %17451 = vmatprep.subr.bf16.mxu0 %v24662_v30  ;;  %v24705_v30 = vld [vmem:[#allocation37 + $0x2220] ss:$36 sps:$4 sm:$0xff]  }
 0xdac   :  { %17452 = vmatpush1.bf16.msra.mxu0 %v24660_v18  ;;  %v24710_v18 = vld [vmem:[#allocation37 + $0x21dc] ss:$36 sps:$4 sm:$0xff]  }
 0xdad   :  { %17453 = vmatprep.subr.bf16.mxu0 %v24668_v22  ;;  %v24708_v22 = vld [vmem:[#allocation37 + $0x21d8] ss:$36 sps:$4 sm:$0xff]  }
 0xdb0   :  { %17454 = vmatpush1.bf16.msra.mxu0 %v24666_v26  ;;  %v24711_v26 = vld [vmem:[#allocation37 + $0x23d8] ss:$36 sps:$4 sm:$0xff]  }
 0xdb1   :  { %17455 = vmatprep.subr.bf16.mxu0 %v24674_v3  ;;  %v24712_v3 = vld [vmem:[#allocation37 + $0x2198] ss:$36 sps:$4 sm:$0xff]  }
 0xdb4   :  { %17456 = vmatpush1.bf16.msra.mxu0 %v24672_v24  ;;  %v24713_v24 = vld [vmem:[#allocation37 + $0x2390] ss:$36 sps:$4 sm:$0xff]  }
 0xdb5   :  { %17457 = vmatprep.subr.bf16.mxu0 %v24680_v41 }
 0xdb8   :  { %17458 = vmatpush2.bf16.msra.mxu0 %v24678_v44 }
 0xdb9   :  { %v18059_v31 = vpop.f32.mrf.mxu1  ;;  %17459 = vmatprep.subr.bf16.mxu0 %v24686_v9  ;;  %v24714_v9 = vld [vmem:[#allocation37 + $0x2150] ss:$36 sps:$4 sm:$0xff]  }
 0xdba   :  { %v18060_v4 = vadd.f32 %v18059_v31, %v26277_v28  ;;  %v24701_v28 = vld [vmem:[#allocation37 + $0x22b4] ss:$36 sps:$4 sm:$0xff]  }
 0xdbb   :  { %v18061_v29 = vpop.f32.mrf.mxu1 }
 0xdbc   :  { %v18129_v38 = vadd.f32 %v18112_v35, %v18060_v4  ;;  %v18062_v39 = vadd.f32 %v18061_v29, %v26282_v46  ;;  %17460 = vmatpush2.bf16.msra.mxu0 %v24684_v50  ;;  %v24704_v46 = vld [vmem:[#allocation37 + $0x226c] ss:$36 sps:$4 sm:$0xff]  }
 0xdbd   :  { %17461 = vmatprep.subr.bf16.mxu0 %v24692_v45  ;;  %v18063_v47 = vpop.f32.mrf.mxu1  ;;  %v24715_v50 = vld [vmem:[#allocation37 + $0x2348] ss:$36 sps:$4 sm:$0xff]  }
 0xdbe   :  { %v18130_v10 = vadd.f32 %v18116_v51, %v18062_v39  ;;  %v18133_v15 = vmax.f32 %v18129_v38, 0.0  ;;  %v24716_v29 = vld [vmem:[#allocation37 + $0x2108] ss:$36 sps:$4 sm:$0xff]   ;;  %v24718_v39 = vld [vmem:[#allocation37 + $0x20c0] ss:$36 sps:$4 sm:$0xff]  }
 0xdbf   :  { %v18064_v14 = vpop.f32.mrf.mxu1  ;;  %v24724_v47 = vld [vmem:[#allocation37 + $0x1fe8] ss:$36 sps:$4 sm:$0xff]  }
 0xdc0   :  { %v18134_v1 = vmax.f32 %v18130_v10, 0.0  ;;  %17462 = vmatpush2.bf16.msra.mxu0 %v24690_v53  ;;  %v18201_v52 = vpack.c.bf16 %v18133_v15, %v18133_v15  ;;  %v24719_v53 = vld [vmem:[#allocation37 + $0x22b8] ss:$36 sps:$4 sm:$0xff]   ;;  %v24725_v10 = vld [vmem:[#allocation37 + $0x21e0] ss:$36 sps:$4 sm:$0xff]  }
 0xdc1   :  { %17463 = vmatprep.subr.bf16.mxu0 %v24698_v34  ;;  %v24722_v34 = vld [vmem:[#allocation37 + $0x2030] ss:$36 sps:$4 sm:$0xff]   ;;  %v24726_v15 = vld [vmem:[#allocation37 + $0x1fa0] ss:$36 sps:$4 sm:$0xff]  }
 0xdc2   :  { %v18202_v11 = vpack.c.bf16 %v18134_v1, %v18134_v1  ;;  %v24729_v14 = vld [vmem:[#allocation29 + $0xec] ss:$16 sps:$4 sm:$0xff]   ;;  %v24727_v1 = vld [vmem:[#allocation29 + $0xe8] ss:$16 sps:$4 sm:$0xff]  }
 0xdc4   :  { %18569 = vmatprep.mubr.bf16.mxu1 %v18202_v11  ;;  %17464 = vmatpush2.bf16.msra.mxu0 %v24696_v12  ;;  %v24732_v12 = vld [vmem:[#allocation29 + $0xcc] ss:$16 sps:$4 sm:$0xff]  }
 0xdc5   :  { %18570 = vmatmul.mubr.bf16.vlgmr.msra.gmra.mxu1 %v18201_v52  ;;  %17465 = vmatprep.subr.bf16.mxu0 %v24701_v28  ;;  %v24730_v28 = vld [vmem:[#allocation29 + $0xc8] ss:$16 sps:$4 sm:$0xff]   ;;  %v24735_v11 = vld [vmem:[#allocation29 + $0xac] ss:$16 sps:$4 sm:$0xff]  }
 0xdc6   :  { %v24733_v52 = vld [vmem:[#allocation29 + $0xa8] ss:$16 sps:$4 sm:$0xff]  }
 0xdc8   :  { %17466 = vmatpush2.bf16.msra.mxu0 %v24699_v48  ;;  %v24738_v48 = vld [vmem:[#allocation29 + $0x8c] ss:$16 sps:$4 sm:$0xff]  }
 0xdc9   :  { %17467 = vmatprep.subr.bf16.mxu0 %v24704_v46  ;;  %v24736_v46 = vld [vmem:[#allocation29 + $0x88] ss:$16 sps:$4 sm:$0xff]  }
 0xdcc   :  { %17468 = vmatpush2.bf16.msra.mxu0 %v24702_v43  ;;  %v24741_v43 = vld [vmem:[#allocation29 + $0x6c] ss:$16 sps:$4 sm:$0xff]  }
 0xdcd   :  { %17469 = vmatprep.subr.bf16.mxu0 %v24707_v7  ;;  %v24739_v7 = vld [vmem:[#allocation29 + $0x68] ss:$16 sps:$4 sm:$0xff]  }
 0xdd0   :  { %17470 = vmatpush2.bf16.msra.mxu0 %v24705_v30  ;;  %v24744_v30 = vld [vmem:[#allocation29 + $0x4c] ss:$16 sps:$4 sm:$0xff]  }
 0xdd1   :  { %17471 = vmatprep.subr.bf16.mxu0 %v24710_v18  ;;  %v24747_v18 = vld [vmem:[#allocation29 + $0x2c] ss:$16 sps:$4 sm:$0xff]  }
 0xdd4   :  { %17472 = vmatpush2.bf16.msra.mxu0 %v24708_v22  ;;  %v24750_v22 = vld [vmem:[#allocation29 + $0xc] ss:$16 sps:$4 sm:$0xff]  }
 0xdd5   :  { %21272 = vmatprep.subr.bf16.mxu0 %v24711_v26  ;;  %v24748_v26 = vld [vmem:[#allocation29 + $0x8] ss:$16 sps:$4 sm:$0xff]  }
 0xdd7   :  { %v17229_v41 = vpop.f32.mrf.mxu0  ;;  %17474 = vmatmul.mubr.bf16.vlgmr.msra.gmra.mxu0 %v26211_v8 }
 0xdd8   :  { %v17230_v44 = vadd.f32 %v17229_v41, %v26215_v2  ;;  %21273 = vmatpush3.bf16.msra.mxu0 %v24712_v3  ;;  %17554 = vmatprep.mubr.bf16.mxu0 %v26192_v58  ;;  %v24717_v2 = vld [vmem:[#allocation37 + $0x2300] ss:$36 sps:$4 sm:$0xff]  }
 0xdd9   :  { %v17231_v35 = vpop.f32.mrf.mxu0  ;;  %21274 = vmatprep.subr.bf16.mxu0 %v24713_v24  ;;  %v24753_v3 = vld [vmem:[#allocation29 + $0x1ec] ss:$16 sps:$4 sm:$0xff]   ;;  %v25448_v24 = vmov 1983009808  }
 0xdda   :  { %v26308_v31 = vadd.f32 %v17230_v44, %v26185_v0  ;;  %v17232_v45 = vadd.f32 %v17231_v35, %v26219_v40  ;;  %v24720_v0 = vld [vmem:[#allocation37 + $0x2078] ss:$36 sps:$4 sm:$0xff]   ;;  %v24721_v40 = vld [vmem:[#allocation37 + $0x2270] ss:$36 sps:$4 sm:$0xff]   ;;  %v17583_v41 = vunpack.c.l.s4 %v25448_v24 }
 0xddb   :  { %v17233_v4 = vpop.f32.mrf.mxu0  ;;  %v24751_v44 = vld [vmem:[#allocation29 + $0x1e8] ss:$16 sps:$4 sm:$0xff]  }
 0xddc   :  { %v26312_v51 = vadd.f32 %v17232_v45, %v26189_v25  ;;  %21275 = vmatpush3.bf16.msra.mxu0 %v24714_v9  ;;  %v24723_v25 = vld [vmem:[#allocation37 + $0x2228] ss:$36 sps:$4 sm:$0xff]   ;;  %v24754_v4 = vld [vmem:[#allocation29 + $0x1c8] ss:$16 sps:$4 sm:$0xff]  }
 0xddd   :  { %v17234_v38 = vpop.f32.mrf.mxu0  ;;  %21276 = vmatprep.subr.bf16.mxu0 %v24715_v50  ;;  %v24756_v9 = vld [vmem:[#allocation29 + $0x1cc] ss:$16 sps:$4 sm:$0xff]   ;;  %v17584_v50 = vunpack.c.0.s8 %v17583_v41  ;;  %v24798_v41 = vld [vmem:[#allocation34 + $0x104] ss:$8 sps:$4 sm:$0xff]  }
 0xdde   :  { %v17580_v58 = vcombine.low %v26308_v31, %v26312_v51  ;;  %v24759_v38 = vld [vmem:[#allocation29 + $0x1ac] ss:$16 sps:$4 sm:$0xff]   ;;  %v24772_v51 = vld [vmem:[#allocation29 + $0x108] ss:$16 sps:$4 sm:$0xff]  }
 0xddf   :  { %v24774_v31 = vld [vmem:[#allocation29 + $0x10c] ss:$16 sps:$4 sm:$0xff]  }
 0xde0   :  { %21277 = vmatpush3.bf16.msra.mxu0 %v24716_v29 }
 0xde1   :  { %21278 = vmatprep.subr.bf16.mxu0 %v24717_v2 }
 0xde4   :  { %21279 = vmatpush3.bf16.msra.mxu0 %v24718_v39 }
 0xde5   :  { %21280 = vmatprep.subr.bf16.mxu0 %v24719_v53  ;;  %v26321_v53 = vsub.s32 %v17584_v50, %v25679_v54  ;;  %v24760_v54 = vld [vmem:[#allocation29 + $0x188] ss:$16 sps:$4 sm:$0xff]  }
 0xde8   :  { %21281 = vmatpush3.bf16.msra.mxu0 %v24720_v0 }
 0xde9   :  { %21282 = vmatprep.subr.bf16.mxu0 %v24721_v40 }
 0xdec   :  { %21283 = vmatpush3.bf16.msra.mxu0 %v24722_v34  ;;  %v24757_v34 = vld [vmem:[#allocation29 + $0x1a8] ss:$16 sps:$4 sm:$0xff]  }
 0xded   :  { %21284 = vmatprep.subr.bf16.mxu0 %v24723_v25 }
 0xdf0   :  { %21285 = vmatpush3.bf16.msra.mxu0 %v24724_v47 }
 0xdf1   :  { %21286 = vmatprep.subr.bf16.mxu0 %v24725_v10  ;;  %v17588_v10 = vrot.slane %v17580_v58, %v26321_v53  ;;  %v24775_v58 = vld [vmem:[#allocation34 + $0x170] ss:$8 sps:$4 sm:$0xff]  }
 0xdf4   :  { %21287 = vmatpush3.bf16.msra.mxu0 %v24726_v15  ;;  %v24765_v15 = vld [vmem:[#allocation29 + $0x16c] ss:$16 sps:$4 sm:$0xff]  }
 0xdf5   :  { %18066 = vmatprep.subr.bf16.mxu0 %v24729_v14  ;;  %v24768_v14 = vld [vmem:[#allocation29 + $0x14c] ss:$16 sps:$4 sm:$0xff]  }
 0xdf7   :  { %17555 = vmatmul.mubr.bf16.vlgmr.msra.gmra.mxu0 %v26211_v8  ;;  %v24742_v8 = vld [vmem:[#allocation29 + $0x48] ss:$16 sps:$4 sm:$0xff]  }
 0xdf8   :  { %18067 = vmatpush1.bf16.msra.mxu0 %v24727_v1  ;;  %18098 = vmatprep.mubr.bf16.mxu0 %v26229_v49  ;;  %v24745_v49 = vld [vmem:[#allocation29 + $0x28] ss:$16 sps:$4 sm:$0xff]  }
 0xdf9   :  { %18068 = vmatprep.subr.bf16.mxu0 %v24732_v12  ;;  %v24766_v1 = vld [vmem:[#allocation29 + $0x148] ss:$16 sps:$4 sm:$0xff]   ;;  %v24771_v12 = vld [vmem:[#allocation29 + $0x12c] ss:$16 sps:$4 sm:$0xff]  }
 0xdfc   :  { %18069 = vmatpush1.bf16.msra.mxu0 %v24730_v28  ;;  %v24769_v28 = vld [vmem:[#allocation29 + $0x128] ss:$16 sps:$4 sm:$0xff]  }
 0xdfd   :  { %18070 = vmatprep.subr.bf16.mxu0 %v24735_v11  ;;  %v24777_v11 = vld [vmem:[#allocation34 + $0x174] ss:$8 sps:$4 sm:$0xff]  }
 0xe00   :  { %18071 = vmatpush1.bf16.msra.mxu0 %v24733_v52  ;;  %v24780_v52 = vld [vmem:[#allocation34 + $0x164] ss:$8 sps:$4 sm:$0xff]  }
 0xe01   :  { %18072 = vmatprep.subr.bf16.mxu0 %v24738_v48  ;;  %v24778_v48 = vld [vmem:[#allocation34 + $0x160] ss:$8 sps:$4 sm:$0xff]  }
 0xe04   :  { %18073 = vmatpush1.bf16.msra.mxu0 %v24736_v46  ;;  %v24783_v46 = vld [vmem:[#allocation34 + $0x154] ss:$8 sps:$4 sm:$0xff]  }
 0xe05   :  { %18074 = vmatprep.subr.bf16.mxu0 %v24741_v43  ;;  %v24781_v43 = vld [vmem:[#allocation34 + $0x150] ss:$8 sps:$4 sm:$0xff]  }
 0xe08   :  { %18075 = vmatpush1.bf16.msra.mxu0 %v24739_v7  ;;  %v24786_v7 = vld [vmem:[#allocation34 + $0x144] ss:$8 sps:$4 sm:$0xff]  }
 0xe09   :  { %18076 = vmatprep.subr.bf16.mxu0 %v24744_v30  ;;  %v24784_v30 = vld [vmem:[#allocation34 + $0x140] ss:$8 sps:$4 sm:$0xff]  }
 0xe0c   :  { %18077 = vmatpush1.bf16.msra.mxu0 %v24742_v8  ;;  %v24789_v8 = vld [vmem:[#allocation34 + $0x134] ss:$8 sps:$4 sm:$0xff]  }
 0xe0d   :  { %18078 = vmatprep.subr.bf16.mxu0 %v24747_v18  ;;  %v24787_v18 = vld [vmem:[#allocation34 + $0x130] ss:$8 sps:$4 sm:$0xff]  }
 0xe10   :  { %18079 = vmatpush1.bf16.msra.mxu0 %v24745_v49  ;;  %v24790_v49 = vld [vmem:[#allocation34 + $0x120] ss:$8 sps:$4 sm:$0xff]  }
 0xe11   :  { %18080 = vmatprep.subr.bf16.mxu0 %v24750_v22  ;;  %v24795_v22 = vld [vmem:[#allocation34 + $0x114] ss:$8 sps:$4 sm:$0xff]  }
 0xe14   :  { %18081 = vmatpush1.bf16.msra.mxu0 %v24748_v26 }
 0xe15   :  { %18082 = vmatprep.subr.bf16.mxu0 %v24753_v3  ;;  %v24793_v3 = vld [vmem:[#allocation34 + $0x110] ss:$8 sps:$4 sm:$0xff]  }
 0xe17   :  { %v17311_v35 = vpop.f32.mrf.mxu0 }
 0xe18   :  { %v17312_v45 = vadd.f32 %v17311_v35, %v26243_v27  ;;  %18083 = vmatpush2.bf16.msra.mxu0 %v24751_v44  ;;  %v24762_v27 = vld [vmem:[#allocation29 + $0x18c] ss:$16 sps:$4 sm:$0xff]  }
 0xe19   :  { %v17313_v29 = vpop.f32.mrf.mxu0  ;;  %18084 = vmatprep.subr.bf16.mxu0 %v24756_v9 }
 0xe1a   :  { %v17314_v2 = vadd.f32 %v17313_v29, %v26245_v21  ;;  %v17564_v0 = vadd.f32 %v17312_v45, %v26204_v5  ;;  %v24796_v45 = vld [vmem:[#allocation34 + $0x100] ss:$8 sps:$4 sm:$0xff]   ;;  %v24801_v29 = vld [vmem:[#allocation34 + $0x1f4] ss:$8 sps:$4 sm:$0xff]  }
 0xe1b   :  { %v17315_v39 = vpop.f32.mrf.mxu0 }
 0xe1c   :  { %v17565_v40 = vadd.f32 %v17314_v2, %v26208_v20  ;;  %18085 = vmatpush2.bf16.msra.mxu0 %v24754_v4  ;;  %v24763_v20 = vld [vmem:[#allocation29 + $0x168] ss:$16 sps:$4 sm:$0xff]   ;;  %v24799_v39 = vld [vmem:[#allocation34 + $0x1f0] ss:$8 sps:$4 sm:$0xff]  }
 0xe1d   :  { %v17316_v25 = vpop.f32.mrf.mxu0  ;;  %18086 = vmatprep.subr.bf16.mxu0 %v24759_v38 }
 0xe1e   :  { %v17581_v47 = vcombine.low %v17564_v0, %v17565_v40  ;;  %v24802_v0 = vld [vmem:[#allocation34 + $0x1e0] ss:$8 sps:$4 sm:$0xff]   ;;  %v24807_v40 = vld [vmem:[#allocation34 + $0x1d4] ss:$8 sps:$4 sm:$0xff]   ;;  %v24811_v25 = vld [vmem:[#allocation34 + $0x1b0] ss:$8 sps:$4 sm:$0xff]  }
 0xe20   :  { %v17595_v21 = vrot.slane %v17581_v47, %v26321_v53  ;;  %18087 = vmatpush2.bf16.msra.mxu0 %v24757_v34  ;;  %v24808_v34 = vld [vmem:[#allocation34 + $0x1c0] ss:$8 sps:$4 sm:$0xff]  }
 0xe21   :  { %18088 = vmatprep.subr.bf16.mxu0 %v24762_v27  ;;  %v24816_v27 = vld [vmem:[#allocation34 + $0x1a4] ss:$8 sps:$4 sm:$0xff]   ;;  %v24814_v47 = vld [vmem:[#allocation34 + $0x1a0] ss:$8 sps:$4 sm:$0xff]  }
 0xe22   :  { %v17596_v5 = vcombine.low %v17588_v10, %v17595_v21  ;;  %v24819_v10 = vld [vmem:[#allocation34 + $0x194] ss:$8 sps:$4 sm:$0xff]   ;;  %v24817_v21 = vld [vmem:[#allocation34 + $0x190] ss:$8 sps:$4 sm:$0xff]  }
 0xe24   :  { %17624 = vst [vmem:[#allocation41] sm:$0xff] %v17596_v5  ;;  %18089 = vmatpush2.bf16.msra.mxu0 %v24760_v54  ;;  %v24822_v54 = vld [vmem:[#allocation34 + $0x184] ss:$8 sps:$4 sm:$0xff]  }
 0xe25   :  { %18090 = vmatprep.subr.bf16.mxu0 %v24765_v15  ;;  %v24820_v15 = vld [vmem:[#allocation34 + $0x180] ss:$8 sps:$4 sm:$0xff]  }
 0xe28   :  { %18091 = vmatpush2.bf16.msra.mxu0 %v24763_v20 }
 0xe29   :  { %18092 = vmatprep.subr.bf16.mxu0 %v24768_v14 }
 0xe2c   :  { %18093 = vmatpush2.bf16.msra.mxu0 %v24766_v1 }
 0xe2d   :  { %18094 = vmatprep.subr.bf16.mxu0 %v24771_v12 }
 0xe30   :  { %18095 = vmatpush2.bf16.msra.mxu0 %v24769_v28 }
 0xe31   :  { %18096 = vmatprep.subr.bf16.mxu0 %v24774_v31 }
 0xe34   :  { %18097 = vmatpush2.bf16.msra.mxu0 %v24772_v51 }
 0xe35   :  { %18578 = vmatprep.subr.bf16.mxu0 %v24777_v11 }
 0xe37   :  { %18099 = vmatmul.mubr.bf16.vlgmr.msra.gmra.mxu0 %v26249_v42  ;;  %v24792_v42 = vld [vmem:[#allocation34 + $0x124] ss:$8 sps:$4 sm:$0xff]  }
 0xe38   :  { %18579 = vmatpush1.bf16.msra.mxu0 %v24775_v58 }
 0xe39   :  { %18580 = vmatprep.subr.bf16.mxu0 %v24780_v52 }
 0xe3c   :  { %18581 = vmatpush1.bf16.msra.mxu0 %v24778_v48 }
 0xe3d   :  { %18582 = vmatprep.subr.bf16.mxu0 %v24783_v46 }
 0xe40   :  { %18583 = vmatpush1.bf16.msra.mxu0 %v24781_v43 }
 0xe41   :  { %18584 = vmatprep.subr.bf16.mxu0 %v24786_v7 }
 0xe44   :  { %18585 = vmatpush1.bf16.msra.mxu0 %v24784_v30 }
 0xe45   :  { %18586 = vmatprep.subr.bf16.mxu0 %v24789_v8 }
 0xe48   :  { %18587 = vmatpush1.bf16.msra.mxu0 %v24787_v18 }
 0xe49   :  { %18588 = vmatprep.subr.bf16.mxu0 %v24792_v42 }
 0xe4c   :  { %18589 = vmatpush1.bf16.msra.mxu0 %v24790_v49 }
 0xe4d   :  { %18590 = vmatprep.subr.bf16.mxu0 %v24795_v22 }
 0xe50   :  { %18591 = vmatpush1.bf16.msra.mxu0 %v24793_v3 }
 0xe51   :  { %18592 = vmatprep.subr.bf16.mxu0 %v24798_v41 }
 0xe54   :  { %18593 = vmatpush1.bf16.msra.mxu0 %v24796_v45 }
 0xe55   :  { %18594 = vmatprep.subr.bf16.mxu0 %v24801_v29 }
 0xe57   :  { %v17393_v26 = vpop.f32.mrf.mxu0 }
 0xe58   :  { %v17394_v24 = vadd.f32 %v17393_v26, %v26262_v32  ;;  %v24804_v32 = vld [vmem:[#allocation34 + $0x1e4] ss:$8 sps:$4 sm:$0xff]   ;;  %18595 = vmatpush2.bf16.msra.mxu0 %v24799_v39 }
 0xe59   :  { %v17395_v44 = vpop.f32.mrf.mxu0  ;;  %18596 = vmatprep.subr.bf16.mxu0 %v24804_v32 }
 0xe5a   :  { %v17566_v9 = vadd.f32 %v17394_v24, %v26234_v62  ;;  %v17396_v35 = vadd.f32 %v17395_v44, %v26264_v60  ;;  %v24805_v62 = vld [vmem:[#allocation34 + $0x1d0] ss:$8 sps:$4 sm:$0xff]   ;;  %v24810_v60 = vld [vmem:[#allocation34 + $0x1c4] ss:$8 sps:$4 sm:$0xff]  }
 0xe5b   :  { %v17397_v50 = vpop.f32.mrf.mxu0 }
 0xe5c   :  { %v17567_v4 = vadd.f32 %v17396_v35, %v26239_v6  ;;  %18597 = vmatpush2.bf16.msra.mxu0 %v24802_v0  ;;  %v24813_v6 = vld [vmem:[#allocation34 + $0x1b4] ss:$8 sps:$4 sm:$0xff]  }
 0xe5d   :  { %v17398_v38 = vpop.f32.mrf.mxu0  ;;  %18598 = vmatprep.subr.bf16.mxu0 %v24807_v40 }
 0xe5e   :  { %v17597_v2 = vcombine.low %v17566_v9, %v17567_v4 }
 0xe60   :  { %18599 = vmatpush2.bf16.msra.mxu0 %v24805_v62  ;;  %v17605_v43 = vrot.slane %v17597_v2, %v26321_v53 }
 0xe61   :  { %18600 = vmatprep.subr.bf16.mxu0 %v24810_v60 }
 0xe64   :  { %18601 = vmatpush2.bf16.msra.mxu0 %v24808_v34 }
 0xe65   :  { %18602 = vmatprep.subr.bf16.mxu0 %v24813_v6 }
 0xe68   :  { %18603 = vmatpush2.bf16.msra.mxu0 %v24811_v25 }
 0xe69   :  { %18604 = vmatprep.subr.bf16.mxu0 %v24816_v27 }
 0xe6c   :  { %18605 = vmatpush2.bf16.msra.mxu0 %v24814_v47 }
 0xe6d   :  { %18606 = vmatprep.subr.bf16.mxu0 %v24819_v10 }
 0xe70   :  { %18607 = vmatpush2.bf16.msra.mxu0 %v24817_v21 }
 0xe71   :  { %18608 = vmatprep.subr.bf16.mxu0 %v24822_v54 }
 0xe74   :  { %18609 = vmatpush2.bf16.msra.mxu0 %v24820_v15 }
 0xe85   :  { %v18571_v5 = vpop.f32.mrf.mxu1 }
 0xe87   :  { %v18573_v20 = vpop.f32.mrf.mxu1 }
 0xe89   :  { %v18575_v14 = vpop.f32.mrf.mxu1 }
 0xe8b   :  { %v18576_v1 = vpop.f32.mrf.mxu1 }
 0xe97   :  { %v17475_v12 = vpop.f32.mrf.mxu0 }
 0xe98   :  { %v17476_v28 = vadd.f32 %v17475_v12, %v26273_v23 }
 0xe99   :  { %v17477_v31 = vpop.f32.mrf.mxu0 }
 0xe9a   :  { %v17478_v51 = vadd.f32 %v17477_v31, %v26279_v16  ;;  %v17568_v11 = vadd.f32 %v17476_v28, %v26254_v33  ;;  %v18120_v33 = vrot.slane %v26296_v55, %v25691_v63 }
 0xe9b   :  { %v17479_v58 = vpop.f32.mrf.mxu0 }
 0xe9c   :  { %v17569_v52 = vadd.f32 %v17478_v51, %v26258_v57 }
 0xe9d   :  { %v17480_v48 = vpop.f32.mrf.mxu0 }
 0xe9e   :  { %v17598_v46 = vcombine.low %v17568_v11, %v17569_v52 }
 0xea0   :  { %v17612_v7 = vrot.slane %v17598_v46, %v26321_v53  ;;  %v18124_v53 = vrot.slane %v26296_v55, %v25685_v59 }
 0xea2   :  { %v17613_v30 = vcombine.low %v17605_v43, %v17612_v7 }
 0xea4   :  { %17625 = vst [vmem:[#allocation41 + $0x8] sm:$0xff] %v17613_v30 }
 0xeb7   :  { %v21288_v8 = vpop.f32.mrf.mxu0 }
 0xeb9   :  { %v21289_v18 = vpop.f32.mrf.mxu0 }
 0xeba   :  { %v21290_v42 = vadd.f32 %v21289_v18, %v21288_v8 }
 0xebb   :  { %v21291_v23 = vpop.f32.mrf.mxu0 }
 0xebc   :  { %v17557_v49 = vadd.f32 %v21290_v42, %v26284_v36 }
 0xebd   :  { %v21292_v16 = vpop.f32.mrf.mxu0 }
 0xebe   :  { %v17570_v22 = vadd.f32 %v17557_v49, %v26268_v13 }
 0xec0   :  { %20934 = vst.sshfl [vmem:[#allocation41 + $0x10] sm:$0x3 pattern:$0x76325410] %v17570_v22 }
 0xef7   :  { %v18100_v57 = vpop.f32.mrf.mxu0 }
 0xef8   :  { %v18101_v26 = vadd.f32 %v18100_v57, %v26291_v19 }
 0xef9   :  { %v18102_v3 = vpop.f32.mrf.mxu0 }
 0xefa   :  { %v18131_v24 = vadd.f32 %v18120_v33, %v18101_v26  ;;  %v18103_v41 = vadd.f32 %v18102_v3, %v26294_v17 }
 0xefb   :  { %v18104_v44 = vpop.f32.mrf.mxu0 }
 0xefc   :  { %v18132_v9 = vadd.f32 %v18124_v53, %v18103_v41  ;;  %v18135_v36 = vmax.f32 %v18131_v24, 0.0 }
 0xefd   :  { %v18105_v35 = vpop.f32.mrf.mxu0 }
 0xefe   :  { %v18136_v50 = vmax.f32 %v18132_v9, 0.0  ;;  %v18203_v45 = vpack.c.bf16 %v18135_v36, %v18135_v36 }
 0xf00   :  { %v18204_v13 = vpack.c.bf16 %v18136_v50, %v18136_v50 }
 0xf02   :  { %18610 = vmatprep.mubr.bf16.mxu0 %v18204_v13 }
 0xf03   :  { %18611 = vmatmul.mubr.bf16.vlgmr.msra.gmra.mxu0 %v18203_v45 }
 0xf04   :  { %25305 = shalt.err (!%p25302_p7)
}
 0xf05   :  { %18642 = dma.vmem_to_hbm [thread:$0]  %s18640_s20, 128, %s25595_s19, [#allocation4]   ;;  %v18205_v59 = vld [vmem:[#allocation35] sm:$0x3] }
 0xf06   :  { %v18210_v63 = vrot.slane %v18205_v59, %v25688_v61  ;;  %v18214_v19 = vrot.slane %v18205_v59, %v25682_v56  ;;  %s25450_s15 = smov [#allocation39]   ;;  %v24833_v32 = vld.sshfl [vmem:[#allocation5] sm:$0x33 pattern:$0x76325410]  ;;  %s25451_s16 = smov [#allocation41]  }
 0xf07   :  { %s18649_s0 = sshll.u32 %s25450_s15, 4  ;;  %s18659_s19 = sshll.u32 %s25451_s16, 4  ;;  %s18650_s0 = int_to_ptr.vmem [resolvable:$true] %s18649_s0  ;;  %s18660_s19 = int_to_ptr.vmem [resolvable:$true] %s18659_s19 }
 0xf08   :  { %v18572_v17 = vadd.f32 %v18571_v5, %v18210_v63  ;;  %v18574_v4 = vadd.f32 %v18573_v20, %v18214_v19  ;;  %s25314_s30 = scalar_lea.vmem %s18650_s0, 64  ;;  %p25319_p9 = scmp.lt.s32.totalorder %s18650_s0, %s18650_s0 }
 0xf09   :  { %p25315_p8 = scmp.ne.s32.totalorder %s18650_s0, %s25314_s30  ;;  %p25320_p10 = scmp.lt.s32.totalorder %s25314_s30, %s25314_s30 }
 0xf0b   :  { %p25321_p11 = por %p25320_p10, %p25319_p9 }
 0xf0d   :  { %p25322_p12 = pnand %p25321_p11, %p25315_p8 }
 0xfc3   :  { %v18612_v55 = vpop.f32.mrf.mxu0 }
 0xfc4   :  { %v18613_v29 = vadd.f32 %v18612_v55, %v18572_v17 }
 0xfc5   :  { %v18614_v38 = vpop.f32.mrf.mxu0 }
 0xfc6   :  { %v18615_v2 = vadd.f32 %v18614_v38, %v18574_v4  ;;  %v18619_v0 = vadd.f32 %v24833_v32, %v18613_v29 }
 0xfc7   :  { %v18616_v39 = vpop.f32.mrf.mxu0 }
 0xfc8   :  { %v18620_v40 = vadd.f32 %v18615_v2, %v26225_v37 }
 0xfc9   :  { %v18617_v62 = vpop.f32.mrf.mxu0 }
 0xfca   :  { %v18623_v60 = vcombine.low %v18619_v0, %v18620_v40 }
 0xfcc   :  { %21064 = vst.sshfl [vmem:[#allocation39] sm:$0x33 pattern:$0x76325410] %v18623_v60 }
 0xfcd   :  { %25325 = shalt.err (!%p25322_p12)
}
 0xfce   :  { %18652 = dma.vmem_to_hbm [thread:$0]  %s18650_s0, 64, %s25600_s13, [#allocation40]  }
 0xfcf   :  { %s25334_s5 = scalar_lea.vmem %s18660_s19, 288  ;;  %p25339_p0 = scmp.lt.s32.totalorder %s18660_s19, %s18660_s19 }
 0xfd0   :  { %p25335_p13 = scmp.ne.s32.totalorder %s18660_s19, %s25334_s5  ;;  %p25340_p1 = scmp.lt.s32.totalorder %s25334_s5, %s25334_s5 }
 0xfd2   :  { %p25341_p2 = por %p25340_p1, %p25339_p0 }
 0xfd4   :  { %p25342_p3 = pnand %p25341_p2, %p25335_p13 }
 0xfd6   :  { %25345 = shalt.err (!%p25342_p3)
}
 0xfd7   :  { %18662 = dma.vmem_to_hbm [thread:$0]  %s18660_s19, 288, %s25605_s8, [#allocation40]  }
 0xfd8   :  { %25378 = dma.done.wait [#allocation4], 128  }
 0xfd9   :  { %25379 = vsyncadd [#allocation4], 4294967168 }
 0xfda   :  { %25380 = dma.done.wait [#allocation40], 352  }
 0xfdb   :  { %25381 = vsyncadd [#allocation40], 4294966944 }
 0xfdc   :  { %18672 = vsyncpa [#allocation3], 1 }
 0xfdd   :  { %18673 = vsyncpa [#allocation6], 1 }
 0xfde   :  { %18674 = vsyncpa [#allocation9], 1 }
 0xfdf   :  { %18675 = vsyncpa [#allocation12], 1 }
 0xfe0   :  { %18676 = vsyncpa [#allocation15], 1 }
 0xfe1   :  { %18677 = vsyncpa [#allocation18], 1 }
 0xfe2   :  { %18678 = vsyncpa [#allocation21], 1 }
 0xfe3   :  { %18679 = vsyncpa [#allocation24], 1 }
 0xfe4   :  { %18680 = vsyncpa [#allocation27], 1 }
 0xfe5   :  { %18681 = vsyncpa [#allocation30], 1 }
 0xfe6   :  { %18682 = vsyncpa [#allocation33], 1 }
 0xfe7   :  { %18683 = vsyncpa [#allocation36], 1 }
 0xfe8   :  { %18684 = vsyncpa [#allocation4], 1 }
 0xfe9   :  { %18685 = vsyncpa [#allocation40], 1 }

</bundles_post_ra>
